<compile_context>
chip_gen: v6e
topology: v6e:2x2x1
jax: 0.10.0
libtpu: 0.0.40
codegen_flags: <defaults>
</compile_context>

<pallas_src>
import functools

import jax
import jax.numpy as jnp
from jax import lax
from jax.experimental import pallas as pl
from jax.experimental.pallas import tpu as pltpu

EPS = 1e-5


def _fused_kernel(x_ref, w1_ref, g1_ref, b1_ref, w2_ref, g2_ref, b2_ref, o_ref):
    """Pixel-major fused 1x1conv -> BN -> 1x1conv -> BN.

    x_ref : (P, C1)     bf16  activations, pixel-major (P = N*H*W)
    w1_ref: (C1, Cmid)  bf16  conv1 weight, pre-transposed to (in, out)
    g1_ref: (1, Cmid)   f32   BN1 gamma
    b1_ref: (1, Cmid)   f32   BN1 beta
    w2_ref: (Cmid, Tco) bf16  conv2 weight tile, pre-transposed to (in, out)
    g2_ref: (1, Tco)    f32   BN2 gamma tile
    b2_ref: (1, Tco)    f32   BN2 beta tile
    o_ref : (P, Tco)    f32   output tile, pixel-major
    """
    # conv1 on the MXU (bf16 inputs, f32 accumulation).
    y1 = jnp.dot(x_ref[...], w1_ref[...], preferred_element_type=jnp.float32)

    # BN1, training mode: biased batch statistics over the pixel axis.
    # Two-pass variance (numerically safe vs the one-pass E[x^2]-E[x]^2 form).
    m1 = jnp.mean(y1, axis=0, keepdims=True)
    d1 = y1 - m1
    v1 = jnp.mean(d1 * d1, axis=0, keepdims=True)
    y1n = d1 * (g1_ref[...] * lax.rsqrt(v1 + EPS)) + b1_ref[...]

    # conv2 for this Cout tile (bf16 MXU inputs, f32 accumulation).
    y2 = jnp.dot(y1n.astype(jnp.bfloat16), w2_ref[...],
                 preferred_element_type=jnp.float32)

    # BN2: statistics are per output channel, so tiling Cout is exact.
    m2 = jnp.mean(y2, axis=0, keepdims=True)
    d2 = y2 - m2
    v2 = jnp.mean(d2 * d2, axis=0, keepdims=True)
    o_ref[...] = d2 * (g2_ref[...] * lax.rsqrt(v2 + EPS)) + b2_ref[...]


def num_cout_tiles():
    """1 tile on single-TensorCore chips (v5e/v6e), 2 balanced tiles on
    dual-TensorCore / megacore chips (v7x, v4, v5p)."""
    try:
        kind = jax.devices()[0].device_kind.lower()
    except Exception:
        return 1
    dual_tc = ("7" in kind) or ("v4" in kind) or ("v5p" in kind)
    return 2 if dual_tc else 1


def prepare_params(w1_oi, g1, b1, w2_oi, g2, b2, *, cout_tiles):
    """One-time weight preparation (outside the hot path): transpose conv
    weights to (in, out), cast to bf16 for the MXU, lane-align the Cout
    tiling (zero padding, sliced off in the forward)."""
    cmid, c1 = w1_oi.shape
    cout = w2_oi.shape[0]
    if cout_tiles == 1:
        cout_pad = cout
    else:
        tco = -(-cout // cout_tiles)          # ceil(Cout / tiles)
        tco = -(-tco // 128) * 128            # lane-align each tile
        cout_pad = tco * cout_tiles

    w1_t = jnp.asarray(w1_oi, jnp.float32).T.astype(jnp.bfloat16)   # (C1, Cmid)
    w2_t = jnp.asarray(w2_oi, jnp.float32).T.astype(jnp.bfloat16)   # (Cmid, Cout)
    g2f = jnp.asarray(g2, jnp.float32)
    b2f = jnp.asarray(b2, jnp.float32)
    if cout_pad != cout:
        w2_t = jnp.pad(w2_t, ((0, 0), (0, cout_pad - cout)))
        g2f = jnp.pad(g2f, (0, cout_pad - cout))
        b2f = jnp.pad(b2f, (0, cout_pad - cout))

    return dict(
        w1=w1_t,
        g1=jnp.asarray(g1, jnp.float32).reshape(1, cmid),
        b1=jnp.asarray(b1, jnp.float32).reshape(1, cmid),
        w2=w2_t,
        g2=g2f.reshape(1, cout_pad),
        b2=b2f.reshape(1, cout_pad),
    )


@functools.partial(jax.jit, static_argnames=("cout", "cout_tiles"))
def conv_bn_conv_bn(x_nchw, w1, g1, b1, w2, g2, b2, *, cout, cout_tiles):
    """Forward pass of the fused module.  x_nchw: (N, C1, H, W) f32."""
    n, c1, h, w = x_nchw.shape
    p = n * h * w
    cmid = w1.shape[1]
    cout_pad = w2.shape[1]
    tco = cout_pad // cout_tiles

    # Pixel-major / channel-last activation matrix (P, C1).  The f32->bf16
    # convert fuses into this single layout change -- no standalone cast pass
    # over HBM in the hot path.
    x_pm = jnp.transpose(x_nchw, (0, 2, 3, 1)).reshape(p, c1).astype(jnp.bfloat16)

    flops = 2 * p * (c1 * cmid * cout_tiles + cmid * cout_pad)
    bytes_accessed = (x_pm.size * 2 + w1.size * 2 + w2.size * 2
                      + p * cout_pad * 4 + (2 * cmid + 2 * cout_pad) * 4)

    out_pm = pl.pallas_call(
        _fused_kernel,
        out_shape=jax.ShapeDtypeStruct((p, cout_pad), jnp.float32),
        grid=(cout_tiles,),
        in_specs=[
            pl.BlockSpec((p, c1), lambda j: (0, 0)),       # x   (resident)
            pl.BlockSpec((c1, cmid), lambda j: (0, 0)),    # w1  (resident)
            pl.BlockSpec((1, cmid), lambda j: (0, 0)),     # g1  (resident)
            pl.BlockSpec((1, cmid), lambda j: (0, 0)),     # b1  (resident)
            pl.BlockSpec((cmid, tco), lambda j: (0, j)),   # w2 tile
            pl.BlockSpec((1, tco), lambda j: (0, j)),      # g2 tile
            pl.BlockSpec((1, tco), lambda j: (0, j)),      # b2 tile
        ],
        out_specs=pl.BlockSpec((p, tco), lambda j: (0, j)),
        compiler_params=pltpu.CompilerParams(
            dimension_semantics=("parallel",)),
        cost_estimate=pl.CostEstimate(
            flops=flops,
            transcendentals=cmid * cout_tiles + cout_pad,
            bytes_accessed=bytes_accessed),
    )(x_pm, w1, g1, b1, w2, g2, b2)

    # Drop the lane-alignment padding (if any) and restore NCHW for parity
    # with the torch module; this final transpose is layout plumbing outside
    # the kernel.
    out_pm = out_pm[:, :cout]
    return jnp.transpose(out_pm.reshape(n, h, w, cout), (0, 3, 1, 2))


def _reference(x_nchw, w1_oi, g1, b1, w2_oi, g2, b2):
    """Pure-JAX f32 reference matching PyTorch training-mode forward."""
    n, c1, h, w = x_nchw.shape
    cout = w2_oi.shape[0]
    hi = lax.Precision.HIGHEST
    x = jnp.transpose(x_nchw, (0, 2, 3, 1)).reshape(-1, c1)
    y1 = jnp.dot(x, w1_oi.T, precision=hi)
    m1 = y1.mean(axis=0)
    v1 = ((y1 - m1) ** 2).mean(axis=0)
    y1 = (y1 - m1) / jnp.sqrt(v1 + EPS) * g1 + b1
    y2 = jnp.dot(y1, w2_oi.T, precision=hi)
    m2 = y2.mean(axis=0)
    v2 = ((y2 - m2) ** 2).mean(axis=0)
    y2 = (y2 - m2) / jnp.sqrt(v2 + EPS) * g2 + b2
    return y2.reshape(n, h, w, cout).transpose(0, 3, 1, 2)


if __name__ == "__main__":
    # Shapes implied by the module: input (1, 1200, 7, 7).
    N, C1, H, W = 1, 1200, 7, 7
    Cmid, Cout = 344, 2064

    key = jax.random.PRNGKey(0)
    kx, kw1, kw2, kg1, kb1, kg2, kb2 = jax.random.split(key, 7)

    x = jax.random.normal(kx, (N, C1, H, W), dtype=jnp.float32)

    # Conv weights in torch-native (out, in) layout (1x1 kernels squeezed).
    w1 = jax.random.normal(kw1, (Cmid, C1), dtype=jnp.float32) * 0.02
    w2 = jax.random.normal(kw2, (Cout, Cmid), dtype=jnp.float32) * 0.02

    # Non-trivial BN affine params.
    g1 = 1.0 + 0.1 * jax.random.normal(kg1, (Cmid,), dtype=jnp.float32)
    b1 = 0.1 * jax.random.normal(kb1, (Cmid,), dtype=jnp.float32)
    g2 = 1.0 + 0.1 * jax.random.normal(kg2, (Cout,), dtype=jnp.float32)
    b2 = 0.1 * jax.random.normal(kb2, (Cout,), dtype=jnp.float32)

    cout_tiles = num_cout_tiles()
    params = prepare_params(w1, g1, b1, w2, g2, b2, cout_tiles=cout_tiles)

    out = conv_bn_conv_bn(x, params["w1"], params["g1"], params["b1"],
                          params["w2"], params["g2"], params["b2"],
                          cout=Cout, cout_tiles=cout_tiles)
    out = jax.block_until_ready(out)
    ref = _reference(x, w1, g1, b1, w2, g2, b2)

    assert out.shape == (N, Cout, H, W), out.shape
    max_err = float(jnp.max(jnp.abs(out - ref)))
    # bf16 matmul inputs, f32 accumulation / BN math -> a few 1e-3 abs error
    # on the unit-scale (BN-normalized) output.
    assert jnp.allclose(out, ref, atol=2e-2, rtol=2e-2), max_err

    print("KERNEL_OK")
</pallas_src>

<mosaic_0001>
module attributes {stable_mosaic.version = 11 : i64} {
  func.func @_fused_kernel(%arg0: i32, %arg1: memref<49x1200xbf16, #tpu.memory_space<vmem>>, %arg2: memref<1200x344xbf16, #tpu.memory_space<vmem>>, %arg3: memref<1x344xf32, #tpu.memory_space<vmem>>, %arg4: memref<1x344xf32, #tpu.memory_space<vmem>>, %arg5: memref<344x2064xbf16, #tpu.memory_space<vmem>>, %arg6: memref<1x2064xf32, #tpu.memory_space<vmem>>, %arg7: memref<1x2064xf32, #tpu.memory_space<vmem>>, %arg8: memref<49x2064xf32, #tpu.memory_space<vmem>>) attributes {dimension_semantics = [#tpu.dimension_semantics<parallel>], iteration_bounds = array<i64: 1>, scalar_prefetch = 0 : i64, scratch_operands = 0 : i64, tpu.core_type = #tpu.core_type<tc>, window_params = [{pipeline_mode = #tpu.pipeline_mode<synchronous>, transform_indices = @transform_0, window_bounds = array<i64: 49, 1200>}, {pipeline_mode = #tpu.pipeline_mode<synchronous>, transform_indices = @transform_1, window_bounds = array<i64: 1200, 344>}, {pipeline_mode = #tpu.pipeline_mode<synchronous>, transform_indices = @transform_2, window_bounds = array<i64: 1, 344>}, {pipeline_mode = #tpu.pipeline_mode<synchronous>, transform_indices = @transform_3, window_bounds = array<i64: 1, 344>}, {transform_indices = @transform_4, window_bounds = array<i64: 344, 2064>}, {transform_indices = @transform_5, window_bounds = array<i64: 1, 2064>}, {transform_indices = @transform_6, window_bounds = array<i64: 1, 2064>}, {transform_indices = @transform_7, window_bounds = array<i64: 49, 2064>}]} {
    %c0 = arith.constant 0 : index
    %c0_0 = arith.constant 0 : index
    %0 = vector.load %arg1[%c0, %c0_0] : memref<49x1200xbf16, #tpu.memory_space<vmem>>, vector<49x1200xbf16>
    %c0_1 = arith.constant 0 : index
    %c0_2 = arith.constant 0 : index
    %1 = vector.load %arg2[%c0_1, %c0_2] : memref<1200x344xbf16, #tpu.memory_space<vmem>>, vector<1200x344xbf16>
    %cst = arith.constant dense<0.000000e+00> : vector<49x344xf32>
    %2 = tpu.matmul %0, %1, %cst {dimension_numbers = #tpu.dot_dimension_numbers<[1], [0], [0], [1], [0, 0, 1, 1], [], []>} : vector<49x1200xbf16>, vector<1200x344xbf16>, vector<49x344xf32> -> vector<49x344xf32>
    %cst_3 = arith.constant dense<0.000000e+00> : vector<344xf32>
    %3 = vector.multi_reduction <add>, %2, %cst_3 [0] : vector<49x344xf32> to vector<344xf32>
    %4 = vector.shape_cast %3 : vector<344xf32> to vector<1x344xf32>
    %cst_4 = arith.constant 4.900000e+01 : f32
    %5 = vector.broadcast %cst_4 : f32 to vector<1x344xf32>
    %6 = arith.divf %4, %5 : vector<1x344xf32>
    %7 = vector.broadcast %6 : vector<1x344xf32> to vector<49x344xf32>
    %8 = arith.subf %2, %7 : vector<49x344xf32>
    %9 = arith.mulf %8, %8 : vector<49x344xf32>
    %cst_5 = arith.constant dense<0.000000e+00> : vector<344xf32>
    %10 = vector.multi_reduction <add>, %9, %cst_5 [0] : vector<49x344xf32> to vector<344xf32>
    %11 = vector.shape_cast %10 : vector<344xf32> to vector<1x344xf32>
    %cst_6 = arith.constant 4.900000e+01 : f32
    %12 = vector.broadcast %cst_6 : f32 to vector<1x344xf32>
    %13 = arith.divf %11, %12 : vector<1x344xf32>
    %c0_7 = arith.constant 0 : index
    %c0_8 = arith.constant 0 : index
    %14 = vector.load %arg3[%c0_7, %c0_8] : memref<1x344xf32, #tpu.memory_space<vmem>>, vector<1x344xf32>
    %cst_9 = arith.constant 9.99999974E-6 : f32
    %15 = vector.broadcast %cst_9 : f32 to vector<1x344xf32>
    %16 = arith.addf %13, %15 : vector<1x344xf32>
    %17 = math.rsqrt %16 : vector<1x344xf32>
    %18 = arith.mulf %14, %17 : vector<1x344xf32>
    %19 = vector.broadcast %18 : vector<1x344xf32> to vector<49x344xf32>
    %20 = arith.mulf %8, %19 : vector<49x344xf32>
    %c0_10 = arith.constant 0 : index
    %c0_11 = arith.constant 0 : index
    %21 = vector.load %arg4[%c0_10, %c0_11] : memref<1x344xf32, #tpu.memory_space<vmem>>, vector<1x344xf32>
    %22 = vector.broadcast %21 : vector<1x344xf32> to vector<49x344xf32>
    %23 = arith.addf %20, %22 : vector<49x344xf32>
    %24 = arith.truncf %23 : vector<49x344xf32> to vector<49x344xbf16>
    %c0_12 = arith.constant 0 : index
    %c0_13 = arith.constant 0 : index
    %25 = vector.load %arg5[%c0_12, %c0_13] : memref<344x2064xbf16, #tpu.memory_space<vmem>>, vector<344x2064xbf16>
    %cst_14 = arith.constant dense<0.000000e+00> : vector<49x2064xf32>
    %26 = tpu.matmul %24, %25, %cst_14 {dimension_numbers = #tpu.dot_dimension_numbers<[1], [0], [0], [1], [0, 0, 1, 1], [], []>} : vector<49x344xbf16>, vector<344x2064xbf16>, vector<49x2064xf32> -> vector<49x2064xf32>
    %cst_15 = arith.constant dense<0.000000e+00> : vector<2064xf32>
    %27 = vector.multi_reduction <add>, %26, %cst_15 [0] : vector<49x2064xf32> to vector<2064xf32>
    %28 = vector.shape_cast %27 : vector<2064xf32> to vector<1x2064xf32>
    %cst_16 = arith.constant 4.900000e+01 : f32
    %29 = vector.broadcast %cst_16 : f32 to vector<1x2064xf32>
    %30 = arith.divf %28, %29 : vector<1x2064xf32>
    %31 = vector.broadcast %30 : vector<1x2064xf32> to vector<49x2064xf32>
    %32 = arith.subf %26, %31 : vector<49x2064xf32>
    %33 = arith.mulf %32, %32 : vector<49x2064xf32>
    %cst_17 = arith.constant dense<0.000000e+00> : vector<2064xf32>
    %34 = vector.multi_reduction <add>, %33, %cst_17 [0] : vector<49x2064xf32> to vector<2064xf32>
    %35 = vector.shape_cast %34 : vector<2064xf32> to vector<1x2064xf32>
    %cst_18 = arith.constant 4.900000e+01 : f32
    %36 = vector.broadcast %cst_18 : f32 to vector<1x2064xf32>
    %37 = arith.divf %35, %36 : vector<1x2064xf32>
    %c0_19 = arith.constant 0 : index
    %c0_20 = arith.constant 0 : index
    %38 = vector.load %arg6[%c0_19, %c0_20] : memref<1x2064xf32, #tpu.memory_space<vmem>>, vector<1x2064xf32>
    %cst_21 = arith.constant 9.99999974E-6 : f32
    %39 = vector.broadcast %cst_21 : f32 to vector<1x2064xf32>
    %40 = arith.addf %37, %39 : vector<1x2064xf32>
    %41 = math.rsqrt %40 : vector<1x2064xf32>
    %42 = arith.mulf %38, %41 : vector<1x2064xf32>
    %43 = vector.broadcast %42 : vector<1x2064xf32> to vector<49x2064xf32>
    %44 = arith.mulf %32, %43 : vector<49x2064xf32>
    %c0_22 = arith.constant 0 : index
    %c0_23 = arith.constant 0 : index
    %45 = vector.load %arg7[%c0_22, %c0_23] : memref<1x2064xf32, #tpu.memory_space<vmem>>, vector<1x2064xf32>
    %46 = vector.broadcast %45 : vector<1x2064xf32> to vector<49x2064xf32>
    %47 = arith.addf %44, %46 : vector<49x2064xf32>
    %c0_24 = arith.constant 0 : index
    %c0_25 = arith.constant 0 : index
    %48 = vector.load %arg8[%c0_24, %c0_25] : memref<49x2064xf32, #tpu.memory_space<vmem>>, vector<49x2064xf32>
    tpu.vector_store %arg8[%c0_24, %c0_25], %47 {strides = array<i32>} : memref<49x2064xf32, #tpu.memory_space<vmem>>, vector<49x2064xf32>,
    return
  }
  func.func @transform_0(%arg0: i32) -> (i32, i32) {
    %c0_i32 = arith.constant 0 : i32
    %c0_i32_0 = arith.constant 0 : i32
    %c0_i32_1 = arith.constant 0 : i32
    return %c0_i32, %c0_i32_0 : i32, i32
  }
  func.func @transform_1(%arg0: i32) -> (i32, i32) {
    %c0_i32 = arith.constant 0 : i32
    %c0_i32_0 = arith.constant 0 : i32
    %c0_i32_1 = arith.constant 0 : i32
    return %c0_i32, %c0_i32_0 : i32, i32
  }
  func.func @transform_2(%arg0: i32) -> (i32, i32) {
    %c0_i32 = arith.constant 0 : i32
    %c0_i32_0 = arith.constant 0 : i32
    %c0_i32_1 = arith.constant 0 : i32
    return %c0_i32, %c0_i32_0 : i32, i32
  }
  func.func @transform_3(%arg0: i32) -> (i32, i32) {
    %c0_i32 = arith.constant 0 : i32
    %c0_i32_0 = arith.constant 0 : i32
    %c0_i32_1 = arith.constant 0 : i32
    return %c0_i32, %c0_i32_0 : i32, i32
  }
  func.func @transform_4(%arg0: i32) -> (i32, i32) {
    %c0_i32 = arith.constant 0 : i32
    %c0_i32_0 = arith.constant 0 : i32
    return %c0_i32, %arg0 : i32, i32
  }
  func.func @transform_5(%arg0: i32) -> (i32, i32) {
    %c0_i32 = arith.constant 0 : i32
    %c0_i32_0 = arith.constant 0 : i32
    return %c0_i32, %arg0 : i32, i32
  }
  func.func @transform_6(%arg0: i32) -> (i32, i32) {
    %c0_i32 = arith.constant 0 : i32
    %c0_i32_0 = arith.constant 0 : i32
    return %c0_i32, %arg0 : i32, i32
  }
  func.func @transform_7(%arg0: i32) -> (i32, i32) {
    %c0_i32 = arith.constant 0 : i32
    %c0_i32_0 = arith.constant 0 : i32
    return %c0_i32, %arg0 : i32, i32
  }
}

</mosaic_0001>

<bundles_post_ra>
// kernel: conv_bn_conv_bn.1
= control target key start
LH: loop header
LB: loop body
LE: loop exit
PB: predicated region body
PF: predicated region fallthrough
CT: control target
= control target key end

     0   :  { %vm1743_vm0 = vcmask 392192   ;;  %vm2436_vm1 = vcmask 1040384   ;;  %vm4943_vm2 = vcmask 1043456   ;;  %vm2458_vm3 = vcmask 719872   ;;  %s14671_s1 = inlined_call_operand.vmem [shape: bf16[1200,344], index: 1, kind: input, shape index: {}]   ;;  %s14672_s0 = inlined_call_operand.vmem [shape: bf16[49,1200], index: 0, kind: input, shape index: {}]   ;;  %s14673_s4 = inlined_call_operand.vmem [shape: bf16[344,2064], index: 4, kind: input, shape index: {}]   ;;  %s14674_s2 = inlined_call_operand.vmem [shape: f32[1,344], index: 2, kind: input, shape index: {}]   ;;  %s14675_s3 = inlined_call_operand.vmem [shape: f32[1,344], index: 3, kind: input, shape index: {}]   ;;  %s14676_s6 = inlined_call_operand.vmem [shape: f32[1,2064], index: 6, kind: input, shape index: {}]   ;;  %s14677_s5 = inlined_call_operand.vmem [shape: f32[1,2064], index: 5, kind: input, shape index: {}]   ;;  %s14678_s7 = inlined_call_operand.vmem [shape: f32[49,2064], index: 7, kind: output, shape index: {}]  }
   0x1   :  { %v8624_v0 = vld [vmem:[%s14671_s1 + $0xac] ss:$12 sps:$4 sm:$0xff]   ;;  %v8628_v2 = vld [vmem:[%s14671_s1 + $0xa8] ss:$12 sps:$4 sm:$0xff]   ;;  %v8634_v6 = vld [vmem:[%s14671_s1 + $0x90] ss:$12 sps:$4 sm:$0xff]  }
   0x2   :  { %v8626_v1 = vld [vmem:[%s14671_s1 + $0x22c] ss:$12 sps:$4 sm:$0xff]   ;;  %1756 = vmatprep.subr.bf16.mxu0 %v8624_v0  ;;  %v8629_v3 = vld [vmem:[%s14671_s1 + $0x228] ss:$12 sps:$4 sm:$0xff]   ;;  %v8635_v7 = vld [vmem:[%s14671_s1 + $0x210] ss:$12 sps:$4 sm:$0xff]  }
   0x3   :  { %1827 = vmatprep.subr.bf16.mxu1 %v8626_v1  ;;  %v8630_v4 = vld [vmem:[%s14671_s1 + $0x94] ss:$12 sps:$4 sm:$0xff]   ;;  %1757 = vmatpush1.bf16.msra.mxu0 %v8628_v2  ;;  %v8636_v8 = vld [vmem:[%s14671_s1 + $0x7c] ss:$12 sps:$4 sm:$0xff]   ;;  %v8640_v10 = vld [vmem:[%s14671_s1 + $0x78] ss:$12 sps:$4 sm:$0xff]  }
   0x4   :  { %1828 = vmatpush1.bf16.msra.mxu1 %v8629_v3  ;;  %v8632_v5 = vld [vmem:[%s14671_s1 + $0x214] ss:$12 sps:$4 sm:$0xff]   ;;  %1758 = vmatprep.subr.bf16.mxu0 %v8630_v4  ;;  %v8638_v9 = vld [vmem:[%s14671_s1 + $0x1fc] ss:$12 sps:$4 sm:$0xff]   ;;  %v8641_v11 = vld [vmem:[%s14671_s1 + $0x1f8] ss:$12 sps:$4 sm:$0xff]  }
   0x5   :  { %1829 = vmatprep.subr.bf16.mxu1 %v8632_v5  ;;  %v8642_v12 = vld [vmem:[%s14671_s1 + $0x64] ss:$12 sps:$4 sm:$0xff]   ;;  %v8646_v14 = vld [vmem:[%s14671_s1 + $0x60] ss:$12 sps:$4 sm:$0xff]   ;;  %v8652_v18 = vld [vmem:[%s14671_s1 + $0x48] ss:$12 sps:$4 sm:$0xff]  }
   0x6   :  { %v8644_v13 = vld [vmem:[%s14671_s1 + $0x1e4] ss:$12 sps:$4 sm:$0xff]   ;;  %v8647_v15 = vld [vmem:[%s14671_s1 + $0x1e0] ss:$12 sps:$4 sm:$0xff]   ;;  %v8653_v19 = vld [vmem:[%s14671_s1 + $0x1c8] ss:$12 sps:$4 sm:$0xff]  }
   0x7   :  { %1759 = vmatpush1.bf16.msra.mxu0 %v8634_v6  ;;  %v8648_v16 = vld [vmem:[%s14671_s1 + $0x4c] ss:$12 sps:$4 sm:$0xff]   ;;  %v8654_v20 = vld [vmem:[%s14671_s1 + $0x34] ss:$12 sps:$4 sm:$0xff]   ;;  %v8658_v22 = vld [vmem:[%s14671_s1 + $0x30] ss:$12 sps:$4 sm:$0xff]  }
   0x8   :  { %1830 = vmatpush1.bf16.msra.mxu1 %v8635_v7  ;;  %1760 = vmatprep.subr.bf16.mxu0 %v8636_v8  ;;  %v8650_v17 = vld [vmem:[%s14671_s1 + $0x1cc] ss:$12 sps:$4 sm:$0xff]   ;;  %v8656_v21 = vld [vmem:[%s14671_s1 + $0x1b4] ss:$12 sps:$4 sm:$0xff]   ;;  %v8659_v23 = vld [vmem:[%s14671_s1 + $0x1b0] ss:$12 sps:$4 sm:$0xff]  }
   0x9   :  { %1831 = vmatprep.subr.bf16.mxu1 %v8638_v9  ;;  %v8660_v24 = vld [vmem:[%s14671_s1 + $0x1c] ss:$12 sps:$4 sm:$0xff]   ;;  %v8664_v26 = vld [vmem:[%s14671_s1 + $0x18] ss:$12 sps:$4 sm:$0xff]   ;;  %v8670_v30 = vld [vmem:[%s14671_s1] ss:$12 sps:$4 sm:$0xff]  }
   0xa   :  { %v8662_v25 = vld [vmem:[%s14671_s1 + $0x19c] ss:$12 sps:$4 sm:$0xff]   ;;  %v8665_v27 = vld [vmem:[%s14671_s1 + $0x198] ss:$12 sps:$4 sm:$0xff]   ;;  %v8671_v31 = vld [vmem:[%s14671_s1 + $0x180] ss:$12 sps:$4 sm:$0xff]  }
   0xb   :  { %1761 = vmatpush1.bf16.msra.mxu0 %v8640_v10  ;;  %v8666_v28 = vld [vmem:[%s14671_s1 + $0x4] ss:$12 sps:$4 sm:$0xff]   ;;  %v8672_v32 = vld [vmem:[%s14671_s1 + $0x16c] ss:$12 sps:$4 sm:$0xff]   ;;  %v8676_v34 = vld [vmem:[%s14671_s1 + $0x168] ss:$12 sps:$4 sm:$0xff]  }
   0xc   :  { %1832 = vmatpush1.bf16.msra.mxu1 %v8641_v11  ;;  %1762 = vmatprep.subr.bf16.mxu0 %v8642_v12  ;;  %v8668_v29 = vld [vmem:[%s14671_s1 + $0x184] ss:$12 sps:$4 sm:$0xff]   ;;  %v8674_v33 = vld [vmem:[%s14671_s1 + $0x2ec] ss:$12 sps:$4 sm:$0xff]   ;;  %v8677_v35 = vld [vmem:[%s14671_s1 + $0x2e8] ss:$12 sps:$4 sm:$0xff]  }
   0xd   :  { %1833 = vmatprep.subr.bf16.mxu1 %v8644_v13  ;;  %v8678_v36 = vld [vmem:[%s14671_s1 + $0x154] ss:$12 sps:$4 sm:$0xff]   ;;  %v8682_v38 = vld [vmem:[%s14671_s1 + $0x150] ss:$12 sps:$4 sm:$0xff]   ;;  %v8688_v42 = vld [vmem:[%s14671_s1 + $0x138] ss:$12 sps:$4 sm:$0xff]  }
   0xe   :  { %v8680_v37 = vld [vmem:[%s14671_s1 + $0x2d4] ss:$12 sps:$4 sm:$0xff]   ;;  %v8683_v39 = vld [vmem:[%s14671_s1 + $0x2d0] ss:$12 sps:$4 sm:$0xff]   ;;  %v8689_v43 = vld [vmem:[%s14671_s1 + $0x2b8] ss:$12 sps:$4 sm:$0xff]  }
   0xf   :  { %1763 = vmatpush1.bf16.msra.mxu0 %v8646_v14  ;;  %v8684_v40 = vld [vmem:[%s14671_s1 + $0x13c] ss:$12 sps:$4 sm:$0xff]   ;;  %v8690_v44 = vld [vmem:[%s14671_s1 + $0x124] ss:$12 sps:$4 sm:$0xff]   ;;  %v8694_v46 = vld [vmem:[%s14671_s1 + $0x120] ss:$12 sps:$4 sm:$0xff]  }
  0x10   :  { %1834 = vmatpush1.bf16.msra.mxu1 %v8647_v15  ;;  %1764 = vmatprep.subr.bf16.mxu0 %v8648_v16  ;;  %v8686_v41 = vld [vmem:[%s14671_s1 + $0x2bc] ss:$12 sps:$4 sm:$0xff]   ;;  %v8692_v45 = vld [vmem:[%s14671_s1 + $0x2a4] ss:$12 sps:$4 sm:$0xff]   ;;  %v8695_v47 = vld [vmem:[%s14671_s1 + $0x2a0] ss:$12 sps:$4 sm:$0xff]  }
  0x11   :  { %1835 = vmatprep.subr.bf16.mxu1 %v8650_v17  ;;  %v8696_v48 = vld [vmem:[%s14671_s1 + $0x10c] ss:$12 sps:$4 sm:$0xff]   ;;  %v8700_v52 = vld [vmem:[%s14671_s1 + $0x108] ss:$12 sps:$4 sm:$0xff]   ;;  %v8706_v56 = vld [vmem:[%s14671_s1 + $0xf0] ss:$12 sps:$4 sm:$0xff]  }
  0x12   :  { %v9759_v49 = vld [vmem:[%s14672_s0 + $0x4] ss:$40 sps:$4 sm:$0xff]   ;;  %v8701_v53 = vld [vmem:[%s14671_s1 + $0x288] ss:$12 sps:$4 sm:$0xff]   ;;  %v8707_v57 = vld [vmem:[%s14671_s1 + $0x270] ss:$12 sps:$4 sm:$0xff]  }
  0x13   :  { %1765 = vmatpush1.bf16.msra.mxu0 %v8652_v18  ;;  %v8698_v50 = vld [vmem:[%s14671_s1 + $0x28c] ss:$12 sps:$4 sm:$0xff]   ;;  %1788 = vmatprep.mubr.bf16.mxu0 %v9759_v49  ;;  %v8702_v54 = vld [vmem:[%s14671_s1 + $0xf4] ss:$12 sps:$4 sm:$0xff]   ;;  %v8708_v58 = vld [vmem:[%s14671_s1 + $0xdc] ss:$12 sps:$4 sm:$0xff]  }
  0x14   :  { %1836 = vmatpush1.bf16.msra.mxu1 %v8653_v19  ;;  %1766 = vmatprep.subr.bf16.mxu0 %v8654_v20  ;;  %v8725_v51 = vld [vmem:[%s14672_s0 + $0xc] ss:$40 sps:$4 sm:$0xff]   ;;  %v8710_v59 = vld [vmem:[%s14671_s1 + $0x25c] ss:$12 sps:$4 sm:$0xff]   ;;  %v8712_v60 = vld [vmem:[%s14671_s1 + $0xd8] ss:$12 sps:$4 sm:$0xff]  }
  0x15   :  { %1837 = vmatprep.subr.bf16.mxu1 %v8656_v21  ;;  %1859 = vmatprep.mubr.bf16.mxu1 %v8725_v51  ;;  %v8704_v55 = vld [vmem:[%s14671_s1 + $0x274] ss:$12 sps:$4 sm:$0xff]   ;;  %v8713_v61 = vld [vmem:[%s14671_s1 + $0x258] ss:$12 sps:$4 sm:$0xff]   ;;  %v8723_v5 = vld [vmem:[%s14672_s0 + $0x8] ss:$40 sps:$4 sm:$0xff]  }
  0x16   :  { %v8714_v62 = vld [vmem:[%s14671_s1 + $0xc4] ss:$12 sps:$4 sm:$0xff]   ;;  %v8718_v0 = vld [vmem:[%s14671_s1 + $0xc0] ss:$12 sps:$4 sm:$0xff]   ;;  %v8726_v6 = vld [vmem:[%s14671_s1 + $0x3a8] ss:$12 sps:$4 sm:$0xff]  }
  0x17   :  { %1767 = vmatpush1.bf16.msra.mxu0 %v8658_v22  ;;  %v8716_v63 = vld [vmem:[%s14671_s1 + $0x244] ss:$12 sps:$4 sm:$0xff]   ;;  %v8719_v1 = vld [vmem:[%s14671_s1 + $0x240] ss:$12 sps:$4 sm:$0xff]   ;;  %v8729_v7 = vld [vmem:[%s14671_s1 + $0x528] ss:$12 sps:$4 sm:$0xff]  }
  0x18   :  { %1838 = vmatpush1.bf16.msra.mxu1 %v8659_v23  ;;  %1768 = vmatprep.subr.bf16.mxu0 %v8660_v24  ;;  %v8728_v2 = vld [vmem:[%s14671_s1 + $0x3ac] ss:$12 sps:$4 sm:$0xff]   ;;  %v9819_v4 = vld [vmem:[%s14672_s0] ss:$40 sps:$4 sm:$0xff]   ;;  %v8732_v10 = vld [vmem:[%s14671_s1 + $0x390] ss:$12 sps:$4 sm:$0xff]  }
  0x19   :  { %1839 = vmatprep.subr.bf16.mxu1 %v8662_v25  ;;  %v8731_v3 = vld [vmem:[%s14671_s1 + $0x52c] ss:$12 sps:$4 sm:$0xff]   ;;  %v8734_v8 = vld [vmem:[%s14671_s1 + $0x394] ss:$12 sps:$4 sm:$0xff]   ;;  %v8735_v11 = vld [vmem:[%s14671_s1 + $0x510] ss:$12 sps:$4 sm:$0xff]  }
  0x1a   :  { %v8737_v9 = vld [vmem:[%s14671_s1 + $0x514] ss:$12 sps:$4 sm:$0xff]   ;;  %v8740_v12 = vld [vmem:[%s14671_s1 + $0x37c] ss:$12 sps:$4 sm:$0xff]   ;;  %v8738_v14 = vld [vmem:[%s14671_s1 + $0x378] ss:$12 sps:$4 sm:$0xff]  }
  0x1b   :  { %1769 = vmatpush1.bf16.msra.mxu0 %v8664_v26  ;;  %v8743_v13 = vld [vmem:[%s14671_s1 + $0x4fc] ss:$12 sps:$4 sm:$0xff]   ;;  %v8741_v15 = vld [vmem:[%s14671_s1 + $0x4f8] ss:$12 sps:$4 sm:$0xff]   ;;  %v8744_v22 = vld [vmem:[%s14671_s1 + $0x360] ss:$12 sps:$4 sm:$0xff]  }
  0x1c   :  { %1840 = vmatpush1.bf16.msra.mxu1 %v8665_v27  ;;  %1770 = vmatprep.subr.bf16.mxu0 %v8666_v28  ;;  %v9858_v16 = vld [vmem:[%s14672_s0 + $0x54] ss:$40 sps:$4 sm:$0xff]   ;;  %v9866_v18 = vld [vmem:[%s14672_s0 + $0x50] ss:$40 sps:$4 sm:$0xff]   ;;  %v8747_v23 = vld [vmem:[%s14671_s1 + $0x4e0] ss:$12 sps:$4 sm:$0xff]  }
  0x1d   :  { %1841 = vmatprep.subr.bf16.mxu1 %v8668_v29  ;;  %v8782_v17 = vld [vmem:[%s14672_s0 + $0x5c] ss:$40 sps:$4 sm:$0xff]   ;;  %v8785_v19 = vld [vmem:[%s14672_s0 + $0x58] ss:$40 sps:$4 sm:$0xff]   ;;  %v8750_v26 = vld [vmem:[%s14671_s1 + $0x348] ss:$12 sps:$4 sm:$0xff]  }
  0x1e   :  { %v8746_v20 = vld [vmem:[%s14671_s1 + $0x364] ss:$12 sps:$4 sm:$0xff]   ;;  %v8752_v24 = vld [vmem:[%s14671_s1 + $0x34c] ss:$12 sps:$4 sm:$0xff]   ;;  %v8753_v27 = vld [vmem:[%s14671_s1 + $0x4c8] ss:$12 sps:$4 sm:$0xff]  }
  0x1f   :  { %1771 = vmatpush1.bf16.msra.mxu0 %v8670_v30  ;;  %v8749_v21 = vld [vmem:[%s14671_s1 + $0x4e4] ss:$12 sps:$4 sm:$0xff]   ;;  %v8755_v25 = vld [vmem:[%s14671_s1 + $0x4cc] ss:$12 sps:$4 sm:$0xff]   ;;  %v9908_v30 = vld [vmem:[%s14672_s0 + $0xa0] ss:$40 sps:$4 sm:$0xff]  }
  0x20   :  { %1842 = vmatpush1.bf16.msra.mxu1 %v8671_v31  ;;  %1772 = vmatprep.subr.bf16.mxu0 %v8672_v32  ;;  %v9900_v28 = vld [vmem:[%s14672_s0 + $0xa4] ss:$40 sps:$4 sm:$0xff]   ;;  %v8803_v31 = vld [vmem:[%s14672_s0 + $0xa8] ss:$40 sps:$4 sm:$0xff]   ;;  %v8758_v32 = vld [vmem:[%s14671_s1 + $0x334] ss:$12 sps:$4 sm:$0xff]  }
  0x21   :  { %1843 = vmatprep.subr.bf16.mxu1 %v8674_v33  ;;  %v8800_v29 = vld [vmem:[%s14672_s0 + $0xac] ss:$40 sps:$4 sm:$0xff]   ;;  %vm2470_vm4 = vcmask 712704   ;;  %vm6467_vm5 = vcmask 130048   ;;  %vm6479_vm6 = vcmask 122880  }
  0x22   :  { %v8761_v33 = vld [vmem:[%s14671_s1 + $0x4b4] ss:$12 sps:$4 sm:$0xff]   ;;  %v8776_v51 = vld [vmem:[%s14671_s1 + $0x46c] ss:$12 sps:$4 sm:$0xff]  }
  0x23   :  { %1773 = vmatpush2.bf16.msra.mxu0 %v8676_v34  ;;  %v8756_v34 = vld [vmem:[%s14671_s1 + $0x330] ss:$12 sps:$4 sm:$0xff]  }
  0x24   :  { %1844 = vmatpush2.bf16.msra.mxu1 %v8677_v35  ;;  %1774 = vmatprep.subr.bf16.mxu0 %v8678_v36  ;;  %v8759_v35 = vld [vmem:[%s14671_s1 + $0x4b0] ss:$12 sps:$4 sm:$0xff]  }
  0x25   :  { %1845 = vmatprep.subr.bf16.mxu1 %v8680_v37  ;;  %v8764_v36 = vld [vmem:[%s14671_s1 + $0x31c] ss:$12 sps:$4 sm:$0xff]  }
  0x26   :  { %v8767_v37 = vld [vmem:[%s14671_s1 + $0x49c] ss:$12 sps:$4 sm:$0xff]  }
  0x27   :  { %1775 = vmatpush2.bf16.msra.mxu0 %v8682_v38  ;;  %v57_v38 = vld [vmem:[%s14672_s0 + $0xf0] sm:$0x11] }
  0x28   :  { %1846 = vmatpush2.bf16.msra.mxu1 %v8683_v39  ;;  %1776 = vmatprep.subr.bf16.mxu0 %v8684_v40  ;;  %v9936_v39 = vcombine.high %v57_v38, %v57_v38  ;;  %v8762_v40 = vld [vmem:[%s14671_s1 + $0x318] ss:$12 sps:$4 sm:$0xff]  }
  0x29   :  { %1847 = vmatprep.subr.bf16.mxu1 %v8686_v41  ;;  %v9941_v41 = vcombine.low %v57_v38, %v57_v38  ;;  %v10126_v38 = vld [vmem:[%s14672_s0 + $0x60] ss:$40 sps:$4 sm:$0xff]  }
  0x2b   :  { %1777 = vmatpush2.bf16.msra.mxu0 %v8688_v42  ;;  %v8765_v42 = vld [vmem:[%s14671_s1 + $0x498] ss:$12 sps:$4 sm:$0xff]  }
  0x2c   :  { %1848 = vmatpush2.bf16.msra.mxu1 %v8689_v43  ;;  %1778 = vmatprep.subr.bf16.mxu0 %v8690_v44  ;;  %v58_v43 = vld [vmem:[%s14672_s0 + $0xf8] sm:$0x11]  ;;  %v8770_v44 = vld [vmem:[%s14671_s1 + $0x304] ss:$12 sps:$4 sm:$0xff]  }
  0x2d   :  { %1849 = vmatprep.subr.bf16.mxu1 %v8692_v45  ;;  %v8773_v45 = vld [vmem:[%s14671_s1 + $0x484] ss:$12 sps:$4 sm:$0xff]  }
  0x2f   :  { %1779 = vmatpush2.bf16.msra.mxu0 %v8694_v46  ;;  %v9955_v46 = vcombine.high %v58_v43, %v58_v43 }
  0x30   :  { %1850 = vmatpush2.bf16.msra.mxu1 %v8695_v47  ;;  %1780 = vmatprep.subr.bf16.mxu0 %v8696_v48  ;;  %v9958_v47 = vcombine.low %v58_v43, %v58_v43  ;;  %v8768_v48 = vld [vmem:[%s14671_s1 + $0x300] ss:$12 sps:$4 sm:$0xff]  }
  0x31   :  { %1851 = vmatprep.subr.bf16.mxu1 %v8698_v50  ;;  %v8771_v50 = vld [vmem:[%s14671_s1 + $0x480] ss:$12 sps:$4 sm:$0xff]  }
  0x32   :  { %v8863_v43 = vld [vmem:[%s14671_s1 + $0x140] ss:$12 sps:$4 sm:$0xff]  }
  0x33   :  { %1781 = vmatpush2.bf16.msra.mxu0 %v8700_v52  ;;  %v8779_v52 = vld [vmem:[%s14671_s1 + $0x5ec] ss:$12 sps:$4 sm:$0xff]  }
  0x34   :  { %1852 = vmatpush2.bf16.msra.mxu1 %v8701_v53  ;;  %1782 = vmatprep.subr.bf16.mxu0 %v8702_v54  ;;  %v8774_v53 = vld [vmem:[%s14671_s1 + $0x468] ss:$12 sps:$4 sm:$0xff]  }
  0x35   :  { %1853 = vmatprep.subr.bf16.mxu1 %v8704_v55  ;;  %v9981_v54 = vld [vmem:[%s14672_s0 + $0x14] ss:$40 sps:$4 sm:$0xff]  }
  0x36   :  { %v8777_v55 = vld [vmem:[%s14671_s1 + $0x5e8] ss:$12 sps:$4 sm:$0xff]  }
  0x37   :  { %1783 = vmatpush2.bf16.msra.mxu0 %v8706_v56  ;;  %v9989_v56 = vld [vmem:[%s14672_s0 + $0x1c] ss:$40 sps:$4 sm:$0xff]  }
  0x38   :  { %1854 = vmatpush2.bf16.msra.mxu1 %v8707_v57  ;;  %1784 = vmatprep.subr.bf16.mxu0 %v8708_v58  ;;  %v8788_v57 = vld [vmem:[%s14671_s1 + $0x454] ss:$12 sps:$4 sm:$0xff]  }
  0x39   :  { %1855 = vmatprep.subr.bf16.mxu1 %v8710_v59  ;;  %v8791_v58 = vld [vmem:[%s14671_s1 + $0x5d4] ss:$12 sps:$4 sm:$0xff]   ;;  %v8786_v59 = vld [vmem:[%s14671_s1 + $0x450] ss:$12 sps:$4 sm:$0xff]  }
  0x3b   :  { %1785 = vmatpush2.bf16.msra.mxu0 %v8712_v60  ;;  %v8789_v60 = vld [vmem:[%s14671_s1 + $0x5d0] ss:$12 sps:$4 sm:$0xff]  }
  0x3c   :  { %1856 = vmatpush2.bf16.msra.mxu1 %v8713_v61  ;;  %1786 = vmatprep.subr.bf16.mxu0 %v8714_v62  ;;  %v8794_v61 = vld [vmem:[%s14671_s1 + $0x43c] ss:$12 sps:$4 sm:$0xff]  }
  0x3d   :  { %1857 = vmatprep.subr.bf16.mxu1 %v8716_v63  ;;  %v8797_v62 = vld [vmem:[%s14671_s1 + $0x5bc] ss:$12 sps:$4 sm:$0xff]   ;;  %v8792_v63 = vld [vmem:[%s14671_s1 + $0x438] ss:$12 sps:$4 sm:$0xff]  }
  0x3f   :  { %1787 = vmatpush2.bf16.msra.mxu0 %v8718_v0  ;;  %v8795_v0 = vld [vmem:[%s14671_s1 + $0x5b8] ss:$12 sps:$4 sm:$0xff]  }
  0x40   :  { %1858 = vmatpush2.bf16.msra.mxu1 %v8719_v1  ;;  %1898 = vmatprep.subr.bf16.mxu0 %v8728_v2  ;;  %v8806_v1 = vld [vmem:[%s14671_s1 + $0x424] ss:$12 sps:$4 sm:$0xff]  }
  0x41   :  { %1969 = vmatprep.subr.bf16.mxu1 %v8731_v3  ;;  %v8809_v2 = vld [vmem:[%s14671_s1 + $0x5a4] ss:$12 sps:$4 sm:$0xff]   ;;  %v8804_v3 = vld [vmem:[%s14671_s1 + $0x420] ss:$12 sps:$4 sm:$0xff]  }
  0x42   :  { %1789 = vmatmul.mubr.bf16.vlgmr.msra.gmra.mxu0 %v9819_v4 }
  0x43   :  { %1860 = vmatmul.mubr.bf16.vlgmr.msra.gmra.mxu1 %v8723_v5  ;;  %1899 = vmatpush1.bf16.msra.mxu0 %v8726_v6  ;;  %v8807_v5 = vld [vmem:[%s14671_s1 + $0x5a0] ss:$12 sps:$4 sm:$0xff]  }
  0x44   :  { %1970 = vmatpush1.bf16.msra.mxu1 %v8729_v7  ;;  %1900 = vmatprep.subr.bf16.mxu0 %v8734_v8  ;;  %v8812_v6 = vld [vmem:[%s14671_s1 + $0x40c] ss:$12 sps:$4 sm:$0xff]   ;;  %v8810_v8 = vld [vmem:[%s14671_s1 + $0x408] ss:$12 sps:$4 sm:$0xff]  }
  0x45   :  { %1971 = vmatprep.subr.bf16.mxu1 %v8737_v9  ;;  %1798 = vmatprep.mubr.bf16.mxu0 %v9858_v16  ;;  %v8815_v7 = vld [vmem:[%s14671_s1 + $0x58c] ss:$12 sps:$4 sm:$0xff]   ;;  %v8813_v9 = vld [vmem:[%s14671_s1 + $0x588] ss:$12 sps:$4 sm:$0xff]  }
  0x46   :  { %1869 = vmatprep.mubr.bf16.mxu1 %v8782_v17  ;;  %v8826_v17 = vld [vmem:[%s14671_s1 + $0x3d8] ss:$12 sps:$4 sm:$0xff]  }
  0x47   :  { %1901 = vmatpush1.bf16.msra.mxu0 %v8732_v10  ;;  %v8820_v10 = vld [vmem:[%s14671_s1 + $0x3f4] ss:$12 sps:$4 sm:$0xff]  }
  0x48   :  { %1972 = vmatpush1.bf16.msra.mxu1 %v8735_v11  ;;  %1902 = vmatprep.subr.bf16.mxu0 %v8740_v12  ;;  %v8823_v11 = vld [vmem:[%s14671_s1 + $0x574] ss:$12 sps:$4 sm:$0xff]   ;;  %v8818_v12 = vld [vmem:[%s14671_s1 + $0x3f0] ss:$12 sps:$4 sm:$0xff]  }
  0x49   :  { %1973 = vmatprep.subr.bf16.mxu1 %v8743_v13  ;;  %v8821_v13 = vld [vmem:[%s14671_s1 + $0x570] ss:$12 sps:$4 sm:$0xff]  }
  0x4a   :  { %1799 = vmatmul.mubr.bf16.gmra.mxu0 %v9866_v18 }
  0x4b   :  { %1870 = vmatmul.mubr.bf16.gmra.mxu1 %v8785_v19  ;;  %1903 = vmatpush1.bf16.msra.mxu0 %v8738_v14  ;;  %v8828_v14 = vld [vmem:[%s14671_s1 + $0x3dc] ss:$12 sps:$4 sm:$0xff]   ;;  %v8829_v19 = vld [vmem:[%s14671_s1 + $0x558] ss:$12 sps:$4 sm:$0xff]  }
  0x4c   :  { %1974 = vmatpush1.bf16.msra.mxu1 %v8741_v15  ;;  %1904 = vmatprep.subr.bf16.mxu0 %v8746_v20  ;;  %v8831_v15 = vld [vmem:[%s14671_s1 + $0x55c] ss:$12 sps:$4 sm:$0xff]   ;;  %v8834_v20 = vld [vmem:[%s14671_s1 + $0x3c4] ss:$12 sps:$4 sm:$0xff]  }
  0x4d   :  { %1975 = vmatprep.subr.bf16.mxu1 %v8749_v21  ;;  %1808 = vmatprep.mubr.bf16.mxu0 %v9900_v28  ;;  %v8837_v21 = vld [vmem:[%s14671_s1 + $0x544] ss:$12 sps:$4 sm:$0xff]  }
  0x4e   :  { %1879 = vmatprep.mubr.bf16.mxu1 %v8800_v29  ;;  %v8844_v29 = vld [vmem:[%s14671_s1 + $0x6a8] ss:$12 sps:$4 sm:$0xff]  }
  0x4f   :  { %1905 = vmatpush1.bf16.msra.mxu0 %v8744_v22  ;;  %v8832_v22 = vld [vmem:[%s14671_s1 + $0x3c0] ss:$12 sps:$4 sm:$0xff]  }
  0x50   :  { %1976 = vmatpush1.bf16.msra.mxu1 %v8747_v23  ;;  %1906 = vmatprep.subr.bf16.mxu0 %v8752_v24  ;;  %v8835_v23 = vld [vmem:[%s14671_s1 + $0x540] ss:$12 sps:$4 sm:$0xff]  }
  0x51   :  { %1977 = vmatprep.subr.bf16.mxu1 %v8755_v25  ;;  %v8846_v24 = vld [vmem:[%s14671_s1 + $0x6ac] ss:$12 sps:$4 sm:$0xff]  }
  0x52   :  { %1809 = vmatmul.mubr.bf16.gmra.mxu0 %v9908_v30  ;;  %v10083_v25 = vld [vmem:[%s14672_s0 + $0x10] ss:$40 sps:$4 sm:$0xff]  }
  0x53   :  { %1880 = vmatmul.mubr.bf16.gmra.mxu1 %v8803_v31  ;;  %1907 = vmatpush1.bf16.msra.mxu0 %v8750_v26  ;;  %v10088_v26 = vld [vmem:[%s14672_s0 + $0x18] ss:$40 sps:$4 sm:$0xff]   ;;  %v8848_v31 = vld [vmem:[%s14671_s1 + $0xb0] ss:$12 sps:$4 sm:$0xff]  }
  0x54   :  { %1978 = vmatpush1.bf16.msra.mxu1 %v8753_v27  ;;  %1908 = vmatprep.subr.bf16.mxu0 %v8758_v32  ;;  %v8847_v27 = vld [vmem:[%s14671_s1 + $0x170] ss:$12 sps:$4 sm:$0xff]   ;;  %v8851_v32 = vld [vmem:[%s14671_s1 + $0x694] ss:$12 sps:$4 sm:$0xff]  }
  0x55   :  { %1979 = vmatprep.subr.bf16.mxu1 %v8761_v33  ;;  %1818 = vmatprep.mubr.bf16.mxu0 %v9936_v39  ;;  %v8852_v33 = vld [vmem:[%s14671_s1 + $0x158] ss:$12 sps:$4 sm:$0xff]  }
  0x56   :  { %1889 = vmatprep.mubr.bf16.mxu1 %v9955_v46 }
  0x57   :  { %1909 = vmatpush1.bf16.msra.mxu0 %v8756_v34  ;;  %v10108_v34 = vld [vmem:[%s14672_s0 + $0x64] ss:$40 sps:$4 sm:$0xff]  }
  0x58   :  { %1980 = vmatpush1.bf16.msra.mxu1 %v8759_v35  ;;  %1910 = vmatprep.subr.bf16.mxu0 %v8764_v36  ;;  %v10113_v35 = vld [vmem:[%s14672_s0 + $0x6c] ss:$40 sps:$4 sm:$0xff]   ;;  %v8849_v36 = vld [vmem:[%s14671_s1 + $0x690] ss:$12 sps:$4 sm:$0xff]  }
  0x59   :  { %1981 = vmatprep.subr.bf16.mxu1 %v8767_v37  ;;  %v8853_v37 = vld [vmem:[%s14671_s1 + $0x98] ss:$12 sps:$4 sm:$0xff]  }
  0x5a   :  { %1819 = vmatmul.mubr.bf16.gmra.mxu0 %v9941_v41 }
  0x5b   :  { %1911 = vmatpush1.bf16.msra.mxu0 %v8762_v40  ;;  %1890 = vmatmul.mubr.bf16.gmra.mxu1 %v9958_v47  ;;  %v10131_v40 = vld [vmem:[%s14672_s0 + $0x68] ss:$40 sps:$4 sm:$0xff]  }
  0x5c   :  { %1982 = vmatpush1.bf16.msra.mxu1 %v8765_v42  ;;  %1912 = vmatprep.subr.bf16.mxu0 %v8770_v44  ;;  %v8862_v42 = vld [vmem:[%s14671_s1 + $0x67c] ss:$12 sps:$4 sm:$0xff]   ;;  %v8860_v44 = vld [vmem:[%s14671_s1 + $0x678] ss:$12 sps:$4 sm:$0xff]  }
  0x5d   :  { %1983 = vmatprep.subr.bf16.mxu1 %v8773_v45  ;;  %1930 = vmatprep.mubr.bf16.mxu0 %v9981_v54  ;;  %v8864_v45 = vld [vmem:[%s14671_s1 + $0x80] ss:$12 sps:$4 sm:$0xff]  }
  0x5e   :  { %2001 = vmatprep.mubr.bf16.mxu1 %v9989_v56 }
  0x5f   :  { %1913 = vmatpush1.bf16.msra.mxu0 %v8768_v48  ;;  %v8867_v48 = vld [vmem:[%s14671_s1 + $0x664] ss:$12 sps:$4 sm:$0xff]  }
  0x60   :  { %1984 = vmatpush1.bf16.msra.mxu1 %v8771_v50  ;;  %1914 = vmatprep.subr.bf16.mxu0 %v8776_v51  ;;  %v8868_v50 = vld [vmem:[%s14671_s1 + $0x128] ss:$12 sps:$4 sm:$0xff]  }
  0x61   :  { %1985 = vmatprep.subr.bf16.mxu1 %v8779_v52  ;;  %v10156_v51 = vld [vmem:[%s14672_s0 + $0xb4] ss:$40 sps:$4 sm:$0xff]  }
  0x62   :  { %v10161_v52 = vld [vmem:[%s14672_s0 + $0xbc] ss:$40 sps:$4 sm:$0xff]  }
  0x63   :  { %1915 = vmatpush2.bf16.msra.mxu0 %v8774_v53  ;;  %v8865_v53 = vld [vmem:[%s14671_s1 + $0x660] ss:$12 sps:$4 sm:$0xff]  }
  0x64   :  { %1986 = vmatpush2.bf16.msra.mxu1 %v8777_v55  ;;  %1916 = vmatprep.subr.bf16.mxu0 %v8788_v57  ;;  %v8869_v55 = vld [vmem:[%s14671_s1 + $0x68] ss:$12 sps:$4 sm:$0xff]   ;;  %v8878_v57 = vld [vmem:[%s14671_s1 + $0x64c] ss:$12 sps:$4 sm:$0xff]  }
  0x65   :  { %1987 = vmatprep.subr.bf16.mxu1 %v8791_v58  ;;  %v10177_v58 = vld [vmem:[%s14672_s0 + $0xb0] ss:$40 sps:$4 sm:$0xff]  }
  0x67   :  { %1917 = vmatpush2.bf16.msra.mxu0 %v8786_v59  ;;  %v10182_v59 = vld [vmem:[%s14672_s0 + $0xb8] ss:$40 sps:$4 sm:$0xff]  }
  0x68   :  { %1988 = vmatpush2.bf16.msra.mxu1 %v8789_v60  ;;  %1918 = vmatprep.subr.bf16.mxu0 %v8794_v61  ;;  %v8879_v60 = vld [vmem:[%s14671_s1 + $0x110] ss:$12 sps:$4 sm:$0xff]   ;;  %v8876_v61 = vld [vmem:[%s14671_s1 + $0x648] ss:$12 sps:$4 sm:$0xff]  }
  0x69   :  { %1989 = vmatprep.subr.bf16.mxu1 %v8797_v62  ;;  %v8880_v62 = vld [vmem:[%s14671_s1 + $0x50] ss:$12 sps:$4 sm:$0xff]  }
  0x6b   :  { %1919 = vmatpush2.bf16.msra.mxu0 %v8792_v63  ;;  %v59_v63 = vld [vmem:[%s14672_s0 + $0x100] sm:$0x11] }
  0x6c   :  { %1990 = vmatpush2.bf16.msra.mxu1 %v8795_v0  ;;  %1920 = vmatprep.subr.bf16.mxu0 %v8806_v1  ;;  %v60_v0 = vld [vmem:[%s14672_s0 + $0x108] sm:$0x11]  ;;  %v8883_v1 = vld [vmem:[%s14671_s1 + $0x634] ss:$12 sps:$4 sm:$0xff]  }
  0x6d   :  { %1991 = vmatprep.subr.bf16.mxu1 %v8809_v2  ;;  %v8884_v2 = vld [vmem:[%s14671_s1 + $0xf8] ss:$12 sps:$4 sm:$0xff]  }
  0x6f   :  { %1921 = vmatpush2.bf16.msra.mxu0 %v8804_v3  ;;  %v10207_v3 = vcombine.high %v59_v63, %v59_v63 }
  0x70   :  { %1992 = vmatpush2.bf16.msra.mxu1 %v8807_v5  ;;  %1922 = vmatprep.subr.bf16.mxu0 %v8812_v6  ;;  %v10209_v5 = vcombine.high %v60_v0, %v60_v0  ;;  %v8881_v6 = vld [vmem:[%s14671_s1 + $0x630] ss:$12 sps:$4 sm:$0xff]  }
  0x71   :  { %1993 = vmatprep.subr.bf16.mxu1 %v8815_v7  ;;  %v8885_v7 = vld [vmem:[%s14671_s1 + $0x38] ss:$12 sps:$4 sm:$0xff]  }
  0x73   :  { %1923 = vmatpush2.bf16.msra.mxu0 %v8810_v8  ;;  %v8892_v8 = vld [vmem:[%s14671_s1 + $0x61c] ss:$12 sps:$4 sm:$0xff]  }
  0x74   :  { %1994 = vmatpush2.bf16.msra.mxu1 %v8813_v9  ;;  %1924 = vmatprep.subr.bf16.mxu0 %v8820_v10  ;;  %v8893_v9 = vld [vmem:[%s14671_s1 + $0xe0] ss:$12 sps:$4 sm:$0xff]   ;;  %v8890_v10 = vld [vmem:[%s14671_s1 + $0x618] ss:$12 sps:$4 sm:$0xff]  }
  0x75   :  { %1995 = vmatprep.subr.bf16.mxu1 %v8823_v11  ;;  %v10230_v11 = vcombine.low %v59_v63, %v59_v63  ;;  %v8934_v63 = vld [vmem:[%s14671_s1 + $0x428] ss:$12 sps:$4 sm:$0xff]  }
  0x77   :  { %1925 = vmatpush2.bf16.msra.mxu0 %v8818_v12  ;;  %v10232_v12 = vcombine.low %v60_v0, %v60_v0  ;;  %v10367_v0 = vld [vmem:[%s14672_s0 + $0xc4] ss:$40 sps:$4 sm:$0xff]  }
  0x78   :  { %1996 = vmatpush2.bf16.msra.mxu1 %v8821_v13  ;;  %1926 = vmatprep.subr.bf16.mxu0 %v8828_v14  ;;  %v8894_v13 = vld [vmem:[%s14671_s1 + $0x20] ss:$12 sps:$4 sm:$0xff]   ;;  %v8897_v14 = vld [vmem:[%s14671_s1 + $0x604] ss:$12 sps:$4 sm:$0xff]  }
  0x79   :  { %1997 = vmatprep.subr.bf16.mxu1 %v8831_v15  ;;  %v8898_v15 = vld [vmem:[%s14671_s1 + $0xc8] ss:$12 sps:$4 sm:$0xff]  }
  0x7b   :  { %1927 = vmatpush2.bf16.msra.mxu0 %v8826_v17  ;;  %v8895_v17 = vld [vmem:[%s14671_s1 + $0x600] ss:$12 sps:$4 sm:$0xff]  }
  0x7c   :  { %1998 = vmatpush2.bf16.msra.mxu1 %v8829_v19  ;;  %1928 = vmatprep.subr.bf16.mxu0 %v8834_v20  ;;  %v10249_v19 = vld [vmem:[%s14672_s0 + $0x24] ss:$40 sps:$4 sm:$0xff]   ;;  %v8899_v20 = vld [vmem:[%s14671_s1 + $0x8] ss:$12 sps:$4 sm:$0xff]  }
  0x7d   :  { %1999 = vmatprep.subr.bf16.mxu1 %v8837_v21  ;;  %v8902_v21 = vld [vmem:[%s14671_s1 + $0x6f4] ss:$12 sps:$4 sm:$0xff]  }
  0x7f   :  { %1929 = vmatpush2.bf16.msra.mxu0 %v8832_v22  ;;  %v8903_v22 = vld [vmem:[%s14671_s1 + $0x2f0] ss:$12 sps:$4 sm:$0xff]  }
  0x80   :  { %2000 = vmatpush2.bf16.msra.mxu1 %v8835_v23  ;;  %2040 = vmatprep.subr.bf16.mxu0 %v8846_v24  ;;  %v8900_v23 = vld [vmem:[%s14671_s1 + $0x6f0] ss:$12 sps:$4 sm:$0xff]  }
  0x81   :  { %8391 = vmatprep.subr.bf16.mxu1 %v8847_v27  ;;  %v8904_v24 = vld [vmem:[%s14671_s1 + $0x230] ss:$12 sps:$4 sm:$0xff]  }
  0x82   :  { %1931 = vmatmul.mubr.bf16.vlgmr.msra.gmra.mxu0 %v10083_v25  ;;  %v8907_v27 = vld [vmem:[%s14671_s1 + $0x6dc] ss:$12 sps:$4 sm:$0xff]  }
  0x83   :  { %2002 = vmatmul.mubr.bf16.vlgmr.msra.gmra.mxu1 %v10088_v26  ;;  %2041 = vmatpush1.bf16.msra.mxu0 %v8844_v29  ;;  %v8905_v29 = vld [vmem:[%s14671_s1 + $0x6d8] ss:$12 sps:$4 sm:$0xff]  }
  0x84   :  { %8392 = vmatpush3.bf16.msra.mxu1 %v8848_v31  ;;  %2042 = vmatprep.subr.bf16.mxu0 %v8851_v32  ;;  %v8909_v31 = vld [vmem:[%s14671_s1 + $0x218] ss:$12 sps:$4 sm:$0xff]  }
  0x85   :  { %8393 = vmatprep.subr.bf16.mxu1 %v8852_v33  ;;  %1940 = vmatprep.mubr.bf16.mxu0 %v10108_v34  ;;  %v8912_v32 = vld [vmem:[%s14671_s1 + $0x6c4] ss:$12 sps:$4 sm:$0xff]   ;;  %v8913_v33 = vld [vmem:[%s14671_s1 + $0x2c0] ss:$12 sps:$4 sm:$0xff]  }
  0x86   :  { %2011 = vmatprep.mubr.bf16.mxu1 %v10113_v35 }
  0x87   :  { %2043 = vmatpush1.bf16.msra.mxu0 %v8849_v36  ;;  %v8914_v36 = vld [vmem:[%s14671_s1 + $0x200] ss:$12 sps:$4 sm:$0xff]  }
  0x88   :  { %8394 = vmatpush3.bf16.msra.mxu1 %v8853_v37  ;;  %2044 = vmatprep.subr.bf16.mxu0 %v8862_v42  ;;  %v8918_v37 = vld [vmem:[%s14671_s1 + $0x2a8] ss:$12 sps:$4 sm:$0xff]   ;;  %v8919_v42 = vld [vmem:[%s14671_s1 + $0x470] ss:$12 sps:$4 sm:$0xff]  }
  0x89   :  { %8395 = vmatprep.subr.bf16.mxu1 %v8863_v43  ;;  %v8920_v43 = vld [vmem:[%s14671_s1 + $0x1e8] ss:$12 sps:$4 sm:$0xff]  }
  0x8a   :  { %1941 = vmatmul.mubr.bf16.gmra.mxu0 %v10126_v38 }
  0x8b   :  { %2012 = vmatmul.mubr.bf16.gmra.mxu1 %v10131_v40  ;;  %2045 = vmatpush1.bf16.msra.mxu0 %v8860_v44  ;;  %v8921_v44 = vld [vmem:[%s14671_s1 + $0x3b0] ss:$12 sps:$4 sm:$0xff]  }
  0x8c   :  { %8396 = vmatpush3.bf16.msra.mxu1 %v8864_v45  ;;  %2046 = vmatprep.subr.bf16.mxu0 %v8867_v48  ;;  %v8922_v45 = vld [vmem:[%s14671_s1 + $0x290] ss:$12 sps:$4 sm:$0xff]   ;;  %v8923_v48 = vld [vmem:[%s14671_s1 + $0x458] ss:$12 sps:$4 sm:$0xff]  }
  0x8d   :  { %8397 = vmatprep.subr.bf16.mxu1 %v8868_v50  ;;  %1950 = vmatprep.mubr.bf16.mxu0 %v10156_v51  ;;  %v10328_v50 = vld [vmem:[%s14672_s0 + $0x74] ss:$40 sps:$4 sm:$0xff]  }
  0x8e   :  { %2021 = vmatprep.mubr.bf16.mxu1 %v10161_v52 }
  0x8f   :  { %2047 = vmatpush1.bf16.msra.mxu0 %v8865_v53  ;;  %v8925_v53 = vld [vmem:[%s14671_s1 + $0x398] ss:$12 sps:$4 sm:$0xff]  }
  0x90   :  { %8398 = vmatpush3.bf16.msra.mxu1 %v8869_v55  ;;  %2048 = vmatprep.subr.bf16.mxu0 %v8878_v57  ;;  %v10340_v55 = vld [vmem:[%s14672_s0 + $0x70] ss:$40 sps:$4 sm:$0xff]   ;;  %v8930_v57 = vld [vmem:[%s14671_s1 + $0x440] ss:$12 sps:$4 sm:$0xff]  }
  0x91   :  { %8399 = vmatprep.subr.bf16.mxu1 %v8879_v60  ;;  %v8931_v60 = vld [vmem:[%s14671_s1 + $0x1b8] ss:$12 sps:$4 sm:$0xff]  }
  0x92   :  { %1951 = vmatmul.mubr.bf16.gmra.mxu0 %v10177_v58 }
  0x93   :  { %2022 = vmatmul.mubr.bf16.gmra.mxu1 %v10182_v59  ;;  %2049 = vmatpush1.bf16.msra.mxu0 %v8876_v61  ;;  %v8932_v61 = vld [vmem:[%s14671_s1 + $0x380] ss:$12 sps:$4 sm:$0xff]  }
  0x94   :  { %8400 = vmatpush3.bf16.msra.mxu1 %v8880_v62  ;;  %2050 = vmatprep.subr.bf16.mxu0 %v8883_v1  ;;  %v8933_v62 = vld [vmem:[%s14671_s1 + $0x260] ss:$12 sps:$4 sm:$0xff]   ;;  %v8936_v1 = vld [vmem:[%s14671_s1 + $0x368] ss:$12 sps:$4 sm:$0xff]  }
  0x95   :  { %8401 = vmatprep.subr.bf16.mxu1 %v8884_v2  ;;  %1960 = vmatprep.mubr.bf16.mxu0 %v10207_v3  ;;  %v10379_v2 = vld [vmem:[%s14672_s0 + $0xc0] ss:$40 sps:$4 sm:$0xff]  }
  0x96   :  { %2031 = vmatprep.mubr.bf16.mxu1 %v10209_v5 }
  0x97   :  { %2051 = vmatpush1.bf16.msra.mxu0 %v8881_v6  ;;  %v8941_v6 = vld [vmem:[%s14671_s1 + $0x410] ss:$12 sps:$4 sm:$0xff]  }
  0x98   :  { %8402 = vmatpush3.bf16.msra.mxu1 %v8885_v7  ;;  %2052 = vmatprep.subr.bf16.mxu0 %v8892_v8  ;;  %v8942_v7 = vld [vmem:[%s14671_s1 + $0x188] ss:$12 sps:$4 sm:$0xff]   ;;  %v8943_v8 = vld [vmem:[%s14671_s1 + $0x350] ss:$12 sps:$4 sm:$0xff]  }
  0x99   :  { %8403 = vmatprep.subr.bf16.mxu1 %v8893_v9  ;;  %v61_v9 = vld [vmem:[%s14672_s0 + $0x110] sm:$0x11] }
  0x9a   :  { %1961 = vmatmul.mubr.bf16.gmra.mxu0 %v10230_v11 }
  0x9b   :  { %2032 = vmatmul.mubr.bf16.gmra.mxu1 %v10232_v12  ;;  %2053 = vmatpush1.bf16.msra.mxu0 %v8890_v10  ;;  %v8944_v10 = vld [vmem:[%s14671_s1 + $0x3f8] ss:$12 sps:$4 sm:$0xff]  }
  0x9c   :  { %8404 = vmatpush3.bf16.msra.mxu1 %v8894_v13  ;;  %2054 = vmatprep.subr.bf16.mxu0 %v8897_v14  ;;  %v8945_v13 = vld [vmem:[%s14671_s1 + $0x5f0] ss:$12 sps:$4 sm:$0xff]   ;;  %v8946_v14 = vld [vmem:[%s14671_s1 + $0x338] ss:$12 sps:$4 sm:$0xff]  }
  0x9d   :  { %8405 = vmatprep.subr.bf16.mxu1 %v8898_v15  ;;  %2143 = vmatprep.mubr.bf16.mxu1 %v9759_v49  ;;  %v8908_v49 = vld [vmem:[%s14671_s1 + $0x2d8] ss:$12 sps:$4 sm:$0xff]   ;;  %v10408_v15 = vcombine.high %v61_v9, %v61_v9 }
  0x9e   :  { %7964 = vmatprep.mubr.msk.bf16.mxu0 %vm1743_vm0, %v10249_v19 }
  0x9f   :  { %2055 = vmatpush1.bf16.msra.mxu0 %v8895_v17  ;;  %v8947_v17 = vld [vmem:[%s14671_s1 + $0x530] ss:$12 sps:$4 sm:$0xff]  }
  0xa0   :  { %8406 = vmatpush3.bf16.msra.mxu1 %v8899_v20  ;;  %2066 = vmatprep.subr.bf16.mxu0 %v8902_v21  ;;  %v8950_v20 = vld [vmem:[%s14671_s1 + $0x3e0] ss:$12 sps:$4 sm:$0xff]   ;;  %v8951_v21 = vld [vmem:[%s14671_s1 + $0x5d8] ss:$12 sps:$4 sm:$0xff]  }
  0xa1   :  { %8431 = vmatprep.subr.bf16.mxu1 %v8903_v22  ;;  %v9562_v22 = vld [vmem:[%s14672_s0 + $0x8] ss:$40 sps:$4 sm:$0xff]  }
  0xa3   :  { %2144 = vmatmul.mubr.bf16.vlgmr.msra.gmra.mxu1 %v9819_v4  ;;  %2067 = vmatpush2.bf16.msra.mxu0 %v8900_v23  ;;  %v8910_v4 = vld [vmem:[%s14671_s1 + $0x6c0] ss:$12 sps:$4 sm:$0xff]   ;;  %v10425_v23 = vcombine.low %v61_v9, %v61_v9 }
  0xa4   :  { %8432 = vmatpush3.bf16.msra.mxu1 %v8904_v24  ;;  %2068 = vmatprep.subr.bf16.mxu0 %v8907_v27  ;;  %v8952_v24 = vld [vmem:[%s14671_s1 + $0x320] ss:$12 sps:$4 sm:$0xff]   ;;  %v8953_v27 = vld [vmem:[%s14671_s1 + $0x518] ss:$12 sps:$4 sm:$0xff]  }
  0xa5   :  { %8433 = vmatprep.subr.bf16.mxu1 %v8908_v49  ;;  %2151 = vmatprep.mubr.bf16.mxu1 %v9858_v16  ;;  %v10303_v16 = vld [vmem:[%s14672_s0 + $0x20] ss:$40 sps:$4 sm:$0xff]  }
  0xa6   :  { %v8954_v49 = vld [vmem:[%s14671_s1 + $0x3c8] ss:$12 sps:$4 sm:$0xff]  }
  0xa7   :  { %2069 = vmatpush2.bf16.msra.mxu0 %v8905_v29  ;;  %v8955_v29 = vld [vmem:[%s14671_s1 + $0x5c0] ss:$12 sps:$4 sm:$0xff]  }
  0xa8   :  { %8434 = vmatpush3.bf16.msra.mxu1 %v8909_v31  ;;  %2070 = vmatprep.subr.bf16.mxu0 %v8912_v32  ;;  %v9563_v31 = vld [vmem:[%s14672_s0 + $0x5c] ss:$40 sps:$4 sm:$0xff]   ;;  %v8956_v32 = vld [vmem:[%s14671_s1 + $0x308] ss:$12 sps:$4 sm:$0xff]  }
  0xa9   :  { %8435 = vmatprep.subr.bf16.mxu1 %v8913_v33  ;;  %v8957_v33 = vld [vmem:[%s14671_s1 + $0x500] ss:$12 sps:$4 sm:$0xff]  }
  0xab   :  { %2152 = vmatmul.mubr.bf16.gmra.mxu1 %v9866_v18  ;;  %2071 = vmatpush2.bf16.msra.mxu0 %v8910_v4  ;;  %v8924_v18 = vld [vmem:[%s14671_s1 + $0x1d0] ss:$12 sps:$4 sm:$0xff]   ;;  %v8958_v4 = vld [vmem:[%s14671_s1 + $0x5a8] ss:$12 sps:$4 sm:$0xff]  }
  0xac   :  { %8436 = vmatpush3.bf16.msra.mxu1 %v8914_v36  ;;  %8471 = vmatprep.subr.bf16.mxu0 %v8919_v42  ;;  %v9564_v36 = vld [vmem:[%s14672_s0 + $0x58] ss:$40 sps:$4 sm:$0xff]   ;;  %v8960_v42 = vld [vmem:[%s14671_s1 + $0x6b0] ss:$12 sps:$4 sm:$0xff]  }
  0xad   :  { %8437 = vmatprep.subr.bf16.mxu1 %v8918_v37  ;;  %2159 = vmatprep.mubr.bf16.mxu1 %v9900_v28  ;;  %v8929_v28 = vld [vmem:[%s14671_s1 + $0x278] ss:$12 sps:$4 sm:$0xff]   ;;  %v8959_v37 = vld [vmem:[%s14671_s1 + $0x4e8] ss:$12 sps:$4 sm:$0xff]  }
  0xae   :  { %2073 = vmatmul.mubr.bf16.vlgmr.msra.gmra.mxu0 %v10303_v16 }
  0xaf   :  { %8472 = vmatpush3.bf16.msra.mxu0 %v8921_v44  ;;  %7965 = vmatprep.mubr.msk.bf16.mxu0 %vm1743_vm0, %v10328_v50  ;;  %v9565_v44 = vld [vmem:[%s14672_s0 + $0xac] ss:$40 sps:$4 sm:$0xff]  }
  0xb0   :  { %8438 = vmatpush3.bf16.msra.mxu1 %v8920_v43  ;;  %8473 = vmatprep.subr.bf16.mxu0 %v8923_v48  ;;  %v14679_v43 = vmov 0   ;;  %v8963_v48 = vld [vmem:[%s14671_s1 + $0x698] ss:$12 sps:$4 sm:$0xff]  }
  0xb1   :  { %8439 = vmatprep.subr.bf16.mxu1 %v8922_v45  ;;  %v8962_v45 = vld [vmem:[%s14671_s1 + $0x4d0] ss:$12 sps:$4 sm:$0xff]  }
  0xb3   :  { %2160 = vmatmul.mubr.bf16.gmra.mxu1 %v9908_v30  ;;  %8474 = vmatpush3.bf16.msra.mxu0 %v8925_v53  ;;  %v8935_v30 = vld [vmem:[%s14671_s1 + $0x1a0] ss:$12 sps:$4 sm:$0xff]   ;;  %v8965_v53 = vld [vmem:[%s14671_s1 + $0x4b8] ss:$12 sps:$4 sm:$0xff]  }
  0xb4   :  { %8440 = vmatpush3.bf16.msra.mxu1 %v8924_v18  ;;  %8475 = vmatprep.subr.bf16.mxu0 %v8930_v57  ;;  %v8964_v18 = vld [vmem:[%s14671_s1 + $0x578] ss:$12 sps:$4 sm:$0xff]   ;;  %v8968_v57 = vld [vmem:[%s14671_s1 + $0x4a0] ss:$12 sps:$4 sm:$0xff]  }
  0xb5   :  { %8441 = vmatprep.subr.bf16.mxu1 %v8929_v28  ;;  %2167 = vmatprep.mubr.bf16.mxu1 %v9936_v39  ;;  %v8940_v39 = vld [vmem:[%s14671_s1 + $0x248] ss:$12 sps:$4 sm:$0xff]   ;;  %v8966_v28 = vld [vmem:[%s14671_s1 + $0x680] ss:$12 sps:$4 sm:$0xff]  }
  0xb6   :  { %2083 = vmatmul.mubr.bf16.gmra.mxu0 %v10340_v55 }
  0xb7   :  { %8476 = vmatpush3.bf16.msra.mxu0 %v8932_v61  ;;  %7966 = vmatprep.mubr.msk.bf16.mxu0 %vm1743_vm0, %v10367_v0  ;;  %v8970_v61 = vld [vmem:[%s14671_s1 + $0x548] ss:$12 sps:$4 sm:$0xff]  }
  0xb8   :  { %8442 = vmatpush3.bf16.msra.mxu1 %v8931_v60  ;;  %8477 = vmatprep.subr.bf16.mxu0 %v8934_v63  ;;  %v8969_v60 = vld [vmem:[%s14671_s1 + $0x668] ss:$12 sps:$4 sm:$0xff]  }
  0xb9   :  { %8443 = vmatprep.subr.bf16.mxu1 %v8933_v62 }
  0xbb   :  { %2168 = vmatmul.mubr.bf16.gmra.mxu1 %v9941_v41  ;;  %8478 = vmatpush3.bf16.msra.mxu0 %v8936_v1  ;;  %v9561_v41 = vld [vmem:[%s14672_s0 + $0xc] ss:$40 sps:$4 sm:$0xff]  }
  0xbc   :  { %8444 = vmatpush3.bf16.msra.mxu1 %v8935_v30  ;;  %8479 = vmatprep.subr.bf16.mxu0 %v8941_v6 }
  0xbd   :  { %8445 = vmatprep.subr.bf16.mxu1 %v8940_v39  ;;  %2207 = vmatprep.mubr.bf16.mxu1 %v9561_v41 }
  0xbe   :  { %2093 = vmatmul.mubr.bf16.gmra.mxu0 %v10379_v2 }
  0xbf   :  { %8480 = vmatpush3.bf16.msra.mxu0 %v8943_v8  ;;  %7967 = vmatprep.mubr.msk.bf16.mxu0 %vm1743_vm0, %v10408_v15 }
  0xc0   :  { %8446 = vmatpush3.bf16.msra.mxu1 %v8942_v7  ;;  %8481 = vmatprep.subr.bf16.mxu0 %v8944_v10 }
  0xc1   :  { %8511 = vmatprep.subr.bf16.mxu1 %v8945_v13 }
  0xc3   :  { %2208 = vmatmul.mubr.bf16.vlgmr.msra.gmra.mxu1 %v9562_v22  ;;  %8482 = vmatpush3.bf16.msra.mxu0 %v8946_v14 }
  0xc4   :  { %8512 = vmatpush3.bf16.msra.mxu1 %v8947_v17  ;;  %8483 = vmatprep.subr.bf16.mxu0 %v8950_v20 }
  0xc5   :  { %8513 = vmatprep.subr.bf16.mxu1 %v8951_v21  ;;  %2215 = vmatprep.mubr.bf16.mxu1 %v9563_v31 }
  0xc6   :  { %2103 = vmatmul.mubr.bf16.gmra.mxu0 %v10425_v23 }
  0xc7   :  { %8484 = vmatpush3.bf16.msra.mxu0 %v8952_v24  ;;  %2271 = vmatprep.mubr.bf16.mxu0 %v9981_v54  ;;  %v8961_v54 = vld [vmem:[%s14671_s1 + $0x590] ss:$12 sps:$4 sm:$0xff]  }
  0xc8   :  { %8514 = vmatpush3.bf16.msra.mxu1 %v8953_v27  ;;  %8485 = vmatprep.subr.bf16.mxu0 %v8954_v49 }
  0xc9   :  { %8515 = vmatprep.subr.bf16.mxu1 %v8955_v29 }
  0xcb   :  { %2216 = vmatmul.mubr.bf16.gmra.mxu1 %v9564_v36  ;;  %8486 = vmatpush3.bf16.msra.mxu0 %v8956_v32 }
  0xcc   :  { %8516 = vmatpush3.bf16.msra.mxu1 %v8957_v33  ;;  %2367 = vmatprep.subr.bf16.mxu0 %v14679_v43 }
  0xcd   :  { %8517 = vmatprep.subr.bf16.mxu1 %v8958_v4  ;;  %2223 = vmatprep.mubr.bf16.mxu1 %v9565_v44 }
  0xce   :  { %2272 = vmatmul.mubr.bf16.vlgmr.msra.gmra.mxu0 %v10083_v25  ;;  %v9566_v25 = vld [vmem:[%s14672_s0 + $0xa8] ss:$40 sps:$4 sm:$0xff]  }
  0xcf   :  { %2368 = vmatpush1.bf16.msra.mxu0 %v8960_v42  ;;  %2279 = vmatprep.mubr.bf16.mxu0 %v10108_v34  ;;  %v8967_v34 = vld [vmem:[%s14671_s1 + $0x560] ss:$12 sps:$4 sm:$0xff]  }
  0xd0   :  { %8518 = vmatpush3.bf16.msra.mxu1 %v8959_v37  ;;  %2369 = vmatprep.subr.bf16.mxu0 %v14679_v43 }
  0xd1   :  { %8519 = vmatprep.subr.bf16.mxu1 %v8961_v54 }
  0xd3   :  { %2224 = vmatmul.mubr.bf16.gmra.mxu1 %v9566_v25  ;;  %2370 = vmatpush1.bf16.msra.mxu0 %v8963_v48 }
  0xd4   :  { %8520 = vmatpush3.bf16.msra.mxu1 %v8962_v45  ;;  %2371 = vmatprep.subr.bf16.mxu0 %v14679_v43 }
  0xd5   :  { %8521 = vmatprep.subr.bf16.mxu1 %v8964_v18  ;;  %2231 = vmatprep.mubr.bf16.mxu1 %v9955_v46  ;;  %v8971_v46 = vld [vmem:[%s14671_s1 + $0x488] ss:$12 sps:$4 sm:$0xff]  }
  0xd6   :  { %2280 = vmatmul.mubr.bf16.gmra.mxu0 %v10126_v38  ;;  %v8972_v38 = vld [vmem:[%s14671_s1 + $0x650] ss:$12 sps:$4 sm:$0xff]  }
  0xd7   :  { %2372 = vmatpush1.bf16.msra.mxu0 %v8966_v28  ;;  %2287 = vmatprep.mubr.bf16.mxu0 %v10156_v51  ;;  %v8974_v51 = vld [vmem:[%s14671_s1 + $0x620] ss:$12 sps:$4 sm:$0xff]  }
  0xd8   :  { %8522 = vmatpush3.bf16.msra.mxu1 %v8965_v53  ;;  %2373 = vmatprep.subr.bf16.mxu0 %v14679_v43 }
  0xd9   :  { %8523 = vmatprep.subr.bf16.mxu1 %v8967_v34 }
  0xdb   :  { %2232 = vmatmul.mubr.bf16.gmra.mxu1 %v9958_v47  ;;  %2374 = vmatpush1.bf16.msra.mxu0 %v8969_v60  ;;  %v8973_v47 = vld [vmem:[%s14671_s1 + $0x638] ss:$12 sps:$4 sm:$0xff]  }
  0xdc   :  { %8524 = vmatpush3.bf16.msra.mxu1 %v8968_v57  ;;  %2375 = vmatprep.subr.bf16.mxu0 %v14679_v43 }
  0xdd   :  { %8525 = vmatprep.subr.bf16.mxu1 %v8970_v61  ;;  %2335 = vmatprep.mubr.bf16.mxu1 %v9989_v56  ;;  %v8975_v56 = vld [vmem:[%s14671_s1 + $0x608] ss:$12 sps:$4 sm:$0xff]  }
  0xde   :  { %2288 = vmatmul.mubr.bf16.gmra.mxu0 %v10177_v58 }
  0xdf   :  { %2376 = vmatpush1.bf16.msra.mxu0 %v8972_v38  ;;  %2295 = vmatprep.mubr.bf16.mxu0 %v10207_v3 }
  0xe0   :  { %8526 = vmatpush3.bf16.msra.mxu1 %v8971_v46  ;;  %2377 = vmatprep.subr.bf16.mxu0 %v14679_v43 }
  0xe3   :  { %2336 = vmatmul.mubr.bf16.vlgmr.msra.gmra.mxu1 %v10088_v26  ;;  %2378 = vmatpush1.bf16.msra.mxu0 %v8973_v47  ;;  %v8976_v26 = vld [vmem:[%s14671_s1 + $0x6f8] ss:$12 sps:$4 sm:$0xff]  }
  0xe4   :  { %2343 = vmatprep.mubr.bf16.mxu1 %v10113_v35  ;;  %2379 = vmatprep.subr.bf16.mxu0 %v14679_v43  ;;  %v8977_v35 = vld [vmem:[%s14671_s1 + $0x6e0] ss:$12 sps:$4 sm:$0xff]  }
  0xe6   :  { %2296 = vmatmul.mubr.bf16.gmra.mxu0 %v10230_v11 }
  0xe7   :  { %2380 = vmatpush1.bf16.msra.mxu0 %v8974_v51  ;;  %7968 = vmatprep.mubr.msk.bf16.mxu0 %vm1743_vm0, %v10249_v19 }
  0xe8   :  { %2381 = vmatprep.subr.bf16.mxu0 %v14679_v43 }
  0xeb   :  { %2344 = vmatmul.mubr.bf16.gmra.mxu1 %v10131_v40  ;;  %2382 = vmatpush1.bf16.msra.mxu0 %v8975_v56  ;;  %v8978_v40 = vld [vmem:[%s14671_s1 + $0x6c8] ss:$12 sps:$4 sm:$0xff]  }
  0xec   :  { %2351 = vmatprep.mubr.bf16.mxu1 %v10161_v52  ;;  %2393 = vmatprep.subr.bf16.mxu0 %v14679_v43 }
  0xef   :  { %2394 = vmatpush2.bf16.msra.mxu0 %v8976_v26 }
  0xf0   :  { %2395 = vmatprep.subr.bf16.mxu0 %v14679_v43 }
  0xf3   :  { %2352 = vmatmul.mubr.bf16.gmra.mxu1 %v10182_v59  ;;  %2396 = vmatpush2.bf16.msra.mxu0 %v8977_v35 }
  0xf4   :  { %2359 = vmatprep.mubr.bf16.mxu1 %v10209_v5  ;;  %2397 = vmatprep.subr.bf16.mxu0 %v14679_v43 }
  0xf7   :  { %2398 = vmatpush2.bf16.msra.mxu0 %v8978_v40 }
  0xfa   :  { %2400 = vmatmul.mubr.bf16.vlgmr.msra.gmra.mxu0 %v10303_v16 }
  0xfb   :  { %2360 = vmatmul.mubr.bf16.gmra.mxu1 %v10232_v12  ;;  %7969 = vmatprep.mubr.msk.bf16.mxu0 %vm1743_vm0, %v10328_v50 }
 0x102   :  { %v1790_v52 = vpop.f32.mrf.mxu0  ;;  %2408 = vmatmul.mubr.bf16.gmra.mxu0 %v10340_v55 }
 0x103   :  { %v1861_v58 = vpop.f32.mrf.mxu1  ;;  %7970 = vmatprep.mubr.msk.bf16.mxu0 %vm1743_vm0, %v10367_v0 }
 0x104   :  { %v1862_v59 = vadd.f32 %v1861_v58, %v1790_v52  ;;  %v1792_v3 = vpop.f32.mrf.mxu0 }
 0x105   :  { %v1863_v5 = vpop.f32.mrf.mxu1 }
 0x106   :  { %v1864_v11 = vadd.f32 %v1863_v5, %v1792_v3  ;;  %v1794_v19 = vpop.f32.mrf.mxu0 }
 0x107   :  { %v1865_v62 = vpop.f32.mrf.mxu1 }
 0x108   :  { %v1866_v63 = vadd.f32 %v1865_v62, %v1794_v19  ;;  %v10558_v12 = vpop.f32.mrf.mxu0 }
 0x109   :  { %v10560_v16 = vpop.f32.mrf.mxu1 }
 0x10a   :  { %2416 = vmatmul.mubr.bf16.gmra.mxu0 %v10379_v2  ;;  %v1800_v50 = vpop.f32.mrf.mxu0 }
 0x10b   :  { %v1871_v30 = vpop.f32.mrf.mxu1  ;;  %7971 = vmatprep.mubr.msk.bf16.mxu0 %vm1743_vm0, %v10408_v15 }
 0x10c   :  { %v1872_v55 = vadd.f32 %v1871_v30, %v1800_v50  ;;  %v1802_v1 = vpop.f32.mrf.mxu0 }
 0x10d   :  { %v1873_v0 = vpop.f32.mrf.mxu1 }
 0x10e   :  { %v1874_v39 = vadd.f32 %v1873_v0, %v1802_v1  ;;  %v1804_v6 = vpop.f32.mrf.mxu0 }
 0x10f   :  { %v1875_v7 = vpop.f32.mrf.mxu1 }
 0x110   :  { %v1876_v8 = vadd.f32 %v1875_v7, %v1804_v6  ;;  %v10565_v9 = vpop.f32.mrf.mxu0 }
 0x111   :  { %v10567_v10 = vpop.f32.mrf.mxu1 }
 0x112   :  { %2424 = vmatmul.mubr.bf16.gmra.mxu0 %v10425_v23  ;;  %v1810_v13 = vpop.f32.mrf.mxu0 }
 0x113   :  { %v1881_v2 = vpop.f32.mrf.mxu1  ;;  %5098 = vmatprep.mubr.bf16.mxu0 %v14679_v43 }
 0x114   :  { %v1882_v41 = vadd.f32 %v1881_v2, %v1810_v13  ;;  %v1812_v14 = vpop.f32.mrf.mxu0 }
 0x115   :  { %v1883_v15 = vpop.f32.mrf.mxu1 }
 0x116   :  { %v1884_v17 = vadd.f32 %v1883_v15, %v1812_v14  ;;  %v1814_v20 = vpop.f32.mrf.mxu0 }
 0x117   :  { %v1885_v21 = vpop.f32.mrf.mxu1 }
 0x118   :  { %v1886_v22 = vadd.f32 %v1885_v21, %v1814_v20  ;;  %v10571_v24 = vpop.f32.mrf.mxu0 }
 0x119   :  { %v10573_v49 = vpop.f32.mrf.mxu1 }
 0x11a   :  { %v1820_v27 = vpop.f32.mrf.mxu0 }
 0x11b   :  { %v1891_v31 = vpop.f32.mrf.mxu1 }
 0x11c   :  { %v1822_v29 = vpop.f32.mrf.mxu0  ;;  %v1892_v23 = vadd.f32 %v1891_v31, %v1820_v27 }
 0x11d   :  { %v1893_v33 = vpop.f32.mrf.mxu1 }
 0x11e   :  { %v1824_v32 = vpop.f32.mrf.mxu0  ;;  %v1894_v36 = vadd.f32 %v1893_v33, %v1822_v29 }
 0x11f   :  { %v1895_v37 = vpop.f32.mrf.mxu1 }
 0x120   :  { %v1825_v4 = vpop.f32.mrf.mxu0 }
 0x121   :  { %v1896_v42 = vpop.f32.mrf.mxu1 }
 0x142   :  { %v1932_v54 = vpop.f32.mrf.mxu0 }
 0x143   :  { %v2003_v44 = vpop.f32.mrf.mxu1  ;;  %v1933_v45 = vadd.f32 %v1932_v54, %v1862_v59 }
 0x144   :  { %v1934_v48 = vpop.f32.mrf.mxu0 }
 0x145   :  { %v2005_v18 = vpop.f32.mrf.mxu1  ;;  %v10575_v25 = vadd.f32 %v2003_v44, %v1933_v45  ;;  %v1935_v53 = vadd.f32 %v1934_v48, %v1864_v11 }
 0x146   :  { %v1936_v28 = vpop.f32.mrf.mxu0 }
 0x147   :  { %v2007_v34 = vpop.f32.mrf.mxu1  ;;  %v10577_v57 = vadd.f32 %v2005_v18, %v1935_v53  ;;  %v1937_v60 = vadd.f32 %v1936_v28, %v1866_v63  ;;  %v8981_v18 = vld [vmem:[%s14673_s4 + $0x3bc] ss:$68 sps:$4 sm:$0xff]   ;;  %v1868_v28 = vadd.f32 %v10560_v16, %v10558_v12  ;;  %v8982_v12 = vld [vmem:[%s14673_s4 + $0x330] ss:$68 sps:$4 sm:$0xff]  }
 0x148   :  { %v1938_v61 = vpop.f32.mrf.mxu0  ;;  %v8979_v53 = vld [vmem:[%s14673_s4 + $0x3b8] ss:$68 sps:$4 sm:$0xff]   ;;  %4995 = vmatprep.subr.bf16.mxu1 %v8981_v18 }
 0x149   :  { %v10579_v46 = vpop.f32.mrf.mxu1  ;;  %v10581_v38 = vadd.f32 %v2007_v34, %v1937_v60  ;;  %4996 = vmatpush1.bf16.msra.mxu1 %v8979_v53  ;;  %v8996_v53 = vld [vmem:[%s14673_s4 + $0x114] ss:$68 sps:$4 sm:$0xff]  }
 0x14a   :  { %v1942_v47 = vpop.f32.mrf.mxu0 }
 0x14b   :  { %v2013_v51 = vpop.f32.mrf.mxu1  ;;  %v1943_v56 = vadd.f32 %v1942_v47, %v1872_v55 }
 0x14c   :  { %v1944_v26 = vpop.f32.mrf.mxu0 }
 0x14d   :  { %v2015_v35 = vpop.f32.mrf.mxu1  ;;  %v10583_v40 = vadd.f32 %v2013_v51, %v1943_v56  ;;  %v1945_v52 = vadd.f32 %v1944_v26, %v1874_v39  ;;  %v1939_v51 = vadd.f32 %v1938_v61, %v1868_v28  ;;  %v8984_v26 = vld [vmem:[%s14673_s4 + $0x334] ss:$68 sps:$4 sm:$0xff]  }
 0x14e   :  { %v1946_v58 = vpop.f32.mrf.mxu0  ;;  %4997 = vmatprep.subr.bf16.mxu1 %v8984_v26  ;;  %v8994_v26 = vld [vmem:[%s14673_s4 + $0x110] ss:$68 sps:$4 sm:$0xff]  }
 0x14f   :  { %v2017_v59 = vpop.f32.mrf.mxu1  ;;  %v10585_v3 = vadd.f32 %v2015_v35, %v1945_v52  ;;  %v1947_v5 = vadd.f32 %v1946_v58, %v1876_v8  ;;  %4998 = vmatpush1.bf16.msra.mxu1 %v8982_v12 }
 0x150   :  { %v10587_v11 = vpop.f32.mrf.mxu0 }
 0x151   :  { %v10589_v19 = vpop.f32.mrf.mxu1  ;;  %v10591_v62 = vadd.f32 %v2017_v59, %v1947_v5  ;;  %v8987_v5 = vld [vmem:[%s14673_s4 + $0x2ac] ss:$68 sps:$4 sm:$0xff]  }
 0x152   :  { %v1952_v63 = vpop.f32.mrf.mxu0  ;;  %4999 = vmatprep.subr.bf16.mxu1 %v8987_v5 }
 0x153   :  { %v2023_v50 = vpop.f32.mrf.mxu1  ;;  %v1953_v30 = vadd.f32 %v1952_v63, %v1882_v41 }
 0x154   :  { %v1954_v55 = vpop.f32.mrf.mxu0 }
 0x155   :  { %v2025_v1 = vpop.f32.mrf.mxu1  ;;  %v10593_v0 = vadd.f32 %v2023_v50, %v1953_v30  ;;  %v1955_v6 = vadd.f32 %v1954_v55, %v1884_v17  ;;  %v1878_v30 = vadd.f32 %v10567_v10, %v10565_v9  ;;  %v8990_v9 = vld [vmem:[%s14673_s4 + $0x224] ss:$68 sps:$4 sm:$0xff]  }
 0x156   :  { %v1956_v39 = vpop.f32.mrf.mxu0 }
 0x157   :  { %v2027_v7 = vpop.f32.mrf.mxu1  ;;  %v10595_v13 = vadd.f32 %v2025_v1, %v1955_v6  ;;  %v1957_v2 = vadd.f32 %v1956_v39, %v1886_v22  ;;  %v1949_v39 = vadd.f32 %v10587_v11, %v1878_v30 }
 0x158   :  { %v10597_v8 = vpop.f32.mrf.mxu0 }
 0x159   :  { %v10599_v14 = vpop.f32.mrf.mxu1  ;;  %v10601_v15 = vadd.f32 %v2027_v7, %v1957_v2 }
 0x15a   :  { %v1962_v20 = vpop.f32.mrf.mxu0 }
 0x15b   :  { %v2033_v21 = vpop.f32.mrf.mxu1  ;;  %v1963_v27 = vadd.f32 %v1962_v20, %v1892_v23  ;;  %v8988_v20 = vld [vmem:[%s14673_s4 + $0x220] ss:$68 sps:$4 sm:$0xff]  }
 0x15c   :  { %v1964_v41 = vpop.f32.mrf.mxu0 }
 0x15d   :  { %v2035_v29 = vpop.f32.mrf.mxu1  ;;  %v10603_v31 = vadd.f32 %v2033_v21, %v1963_v27  ;;  %v1965_v32 = vadd.f32 %v1964_v41, %v1894_v36 }
 0x15e   :  { %v1966_v33 = vpop.f32.mrf.mxu0 }
 0x15f   :  { %v2037_v17 = vpop.f32.mrf.mxu1  ;;  %v10605_v4 = vadd.f32 %v2035_v29, %v1965_v32  ;;  %v2020_v29 = vadd.f32 %v10589_v19, %v1949_v39  ;;  %v8993_v33 = vld [vmem:[%s14673_s4 + $0x19c] ss:$68 sps:$4 sm:$0xff]  }
 0x160   :  { %v1967_v22 = vpop.f32.mrf.mxu0 }
 0x161   :  { %v2038_v37 = vpop.f32.mrf.mxu1 }
 0x163   :  { %v8407_v42 = vpop.f32.mrf.mxu1 }
 0x165   :  { %v8408_v54 = vpop.f32.mrf.mxu1 }
 0x166   :  { %v10607_v44 = vadd.f32 %v8408_v54, %v8407_v42 }
 0x167   :  { %v10609_v45 = vpop.f32.mrf.mxu1 }
 0x169   :  { %v10611_v48 = vpop.f32.mrf.mxu1 }
 0x16b   :  { %v8413_v23 = vpop.f32.mrf.mxu1 }
 0x16d   :  { %v8414_v36 = vpop.f32.mrf.mxu1 }
 0x16e   :  { %v10621_v34 = vadd.f32 %v8414_v36, %v8413_v23  ;;  %v2074_v60 = vpop.f32.mrf.mxu0 }
 0x16f   :  { %v10623_v47 = vpop.f32.mrf.mxu1  ;;  %v10626_v56 = vadd.f32 %v2074_v60, %v10575_v25  ;;  %v2010_v25 = vadd.f32 %v10579_v46, %v1939_v51 }
 0x170   :  { %v2076_v35 = vpop.f32.mrf.mxu0 }
 0x171   :  { %v10631_v52 = vpop.f32.mrf.mxu1  ;;  %v10637_v16 = vadd.f32 %v2076_v35, %v10577_v57  ;;  %v8985_v57 = vld [vmem:[%s14673_s4 + $0x2a8] ss:$68 sps:$4 sm:$0xff]  }
 0x172   :  { %v2078_v58 = vpop.f32.mrf.mxu0  ;;  %5000 = vmatpush1.bf16.msra.mxu1 %v8985_v57 }
 0x173   :  { %v8419_v61 = vpop.f32.mrf.mxu1  ;;  %v10641_v59 = vadd.f32 %v2078_v58, %v10581_v38  ;;  %5001 = vmatprep.subr.bf16.mxu1 %v8990_v9  ;;  %v9000_v9 = vld [vmem:[%s14673_s4] ss:$68 sps:$4 sm:$0xff]  }
 0x174   :  { %v2080_v63 = vpop.f32.mrf.mxu0 }
 0x175   :  { %v8420_v50 = vpop.f32.mrf.mxu1  ;;  %v2431_v55 = vadd.f32 %v10641_v59, %v10626_v56  ;;  %v10653_v46 = vadd.f32 %v2080_v63, %v2010_v25 }
 0x176   :  { %v10655_v38 = vadd.f32 %v8420_v50, %v8419_v61  ;;  %v2084_v1 = vpop.f32.mrf.mxu0  ;;  %5002 = vmatpush1.bf16.msra.mxu1 %v8988_v20  ;;  %v8999_v61 = vld [vmem:[%s14673_s4 + $0x8c] ss:$68 sps:$4 sm:$0xff]  }
 0x177   :  { %v10657_v6 = vpop.f32.mrf.mxu1  ;;  %v10661_v7 = vadd.f32 %v2084_v1, %v10583_v40  ;;  %v2445_v21 = vadd.f32 %v10653_v46, %v10637_v16  ;;  %5003 = vmatprep.subr.bf16.mxu1 %v8993_v33 }
 0x178   :  { %v2086_v10 = vpop.f32.mrf.mxu0 }
 0x179   :  { %v10666_v2 = vpop.f32.mrf.mxu1  ;;  %v2432_v27 = vadd.f32 %v2431_v55, %v10661_v7  ;;  %v10675_v11 = vadd.f32 %v2086_v10, %v10585_v3  ;;  %v8991_v3 = vld [vmem:[%s14673_s4 + $0x198] ss:$68 sps:$4 sm:$0xff]  }
 0x17a   :  { %v2088_v40 = vpop.f32.mrf.mxu0  ;;  %5004 = vmatpush1.bf16.msra.mxu1 %v8991_v3 }
 0x17b   :  { %v8425_v41 = vpop.f32.mrf.mxu1  ;;  %v2446_v32 = vadd.f32 %v2445_v21, %v10675_v11  ;;  %v10680_v17 = vadd.f32 %v2088_v40, %v10591_v62  ;;  %v1888_v62 = vadd.f32 %v10573_v49, %v10571_v24  ;;  %5005 = vmatprep.subr.bf16.mxu1 %v8996_v53 }
 0x17c   :  { %v2090_v37 = vpop.f32.mrf.mxu0 }
 0x17d   :  { %v8426_v22 = vpop.f32.mrf.mxu1  ;;  %v2433_v42 = vadd.f32 %v2432_v27, %v10680_v17  ;;  %v10689_v54 = vadd.f32 %v2090_v37, %v2020_v29  ;;  %v1959_v28 = vadd.f32 %v10597_v8, %v1888_v62  ;;  %v9006_v29 = vld [vmem:[%s14673_s4 + $0x7fc] ss:$68 sps:$4 sm:$0xff]  }
 0x17e   :  { %v10691_v19 = vadd.f32 %v8426_v22, %v8425_v41  ;;  %v2094_v23 = vpop.f32.mrf.mxu0  ;;  %5006 = vmatpush1.bf16.msra.mxu1 %v8994_v26  ;;  %v9004_v22 = vld [vmem:[%s14673_s4 + $0x7f8] ss:$68 sps:$4 sm:$0xff]   ;;  %v3073_v26 = vld [vmem:[%s14673_s4 + $0xb28] sm:$0xff] }
 0x17f   :  { %v8428_v18 = vpop.f32.mrf.mxu1  ;;  %v10696_v36 = vadd.f32 %v2094_v23, %v10593_v0  ;;  %v2447_v24 = vadd.f32 %v2446_v32, %v10689_v54  ;;  %v2030_v25 = vadd.f32 %v10599_v14, %v1959_v28  ;;  %5007 = vmatprep.subr.bf16.mxu1 %v8999_v61  ;;  %v9002_v14 = vld [vmem:[%s14673_s4 + $0x4] ss:$68 sps:$4 sm:$0xff]  }
 0x180   :  { %v2096_v60 = vpop.f32.mrf.mxu0  ;;  %v9010_v18 = vld [vmem:[%s14673_s4 + $0x774] ss:$68 sps:$4 sm:$0xff]  }
 0x181   :  { %v8429_v51 = vpop.f32.mrf.mxu1  ;;  %v2434_v49 = vadd.f32 %v2433_v42, %v10696_v36  ;;  %v10708_v35 = vadd.f32 %v2096_v60, %v10595_v13  ;;  %v8997_v13 = vld [vmem:[%s14673_s4 + $0x88] ss:$68 sps:$4 sm:$0xff]  }
 0x182   :  { %v2098_v0 = vpop.f32.mrf.mxu0  ;;  %5008 = vmatpush1.bf16.msra.mxu1 %v8997_v13 }
 0x183   :  { %v10710_v12 = vpop.f32.mrf.mxu1  ;;  %v2448_v8 = vadd.f32 %v2447_v24, %v10708_v35  ;;  %v10714_v58 = vadd.f32 %v2098_v0, %v10601_v15  ;;  %5009 = vmatprep.subr.bf16.mxu1 %v9002_v14  ;;  %v9008_v24 = vld [vmem:[%s14673_s4 + $0x770] ss:$68 sps:$4 sm:$0xff]   ;;  %v8329_v0 = vcombine.low %v3073_v26, %v3073_v26 }
 0x184   :  { %v2100_v5 = vpop.f32.mrf.mxu0 }
 0x185   :  { %v10720_v63 = vpop.f32.mrf.mxu1  ;;  %v2435_v50 = vadd.f32 %v2434_v49, %v10714_v58  ;;  %v10726_v57 = vadd.f32 %v2100_v5, %v2030_v25  ;;  %v8330_v49 = vcombine.high %v3073_v26, %v3073_v26  ;;  %v4945_v13 = vsel %vm4943_vm2, %v8329_v0, 0 }
 0x186   :  { %v2104_v15 = vpop.f32.mrf.mxu0  ;;  %5010 = vmatpush1.bf16.msra.mxu1 %v9000_v9 }
 0x187   :  { %v10728_v30 = vpop.f32.mrf.mxu1  ;;  %v10731_v55 = vadd.f32 %v2104_v15, %v10603_v31  ;;  %v2449_v31 = vadd.f32 %v2448_v8, %v10726_v57  ;;  %5011 = vmatprep.subr.bf16.mxu1 %v9006_v29  ;;  %8346 = vmatprep.subr.msk.bf16.mxu0 %vm4943_vm2, %v8330_v49 }
 0x188   :  { %v2106_v1 = vpop.f32.mrf.mxu0  ;;  %5071 = vmatpush1.bf16.msra.mxu0 %v4945_v13  ;;  %v9028_v13 = vld [vmem:[%s14673_s4 + $0x5dc] ss:$68 sps:$4 sm:$0xff]  }
 0x189   :  { %v10736_v39 = vpop.f32.mrf.mxu1  ;;  %v2437_v10 = vsel %vm2436_vm1, %v10731_v55, 0.0  ;;  %v10744_v20 = vadd.f32 %v2106_v1, %v10605_v4 }
 0x18a   :  { %v2438_v21 = vadd.f32 %v2437_v10, %v2435_v50  ;;  %v2108_v27 = vpop.f32.mrf.mxu0  ;;  %5012 = vmatpush2.bf16.msra.mxu1 %v9004_v22  ;;  %v9016_v50 = vld [vmem:[%s14673_s4 + $0x6ec] ss:$68 sps:$4 sm:$0xff]  }
 0x18b   :  { %v10747_v40 = vpop.f32.mrf.mxu1  ;;  %v2450_v41 = vsel %vm2436_vm1, %v10744_v20, 0.0  ;;  %5013 = vmatprep.subr.bf16.mxu1 %v9010_v18  ;;  %v9014_v10 = vld [vmem:[%s14673_s4 + $0x6e8] ss:$68 sps:$4 sm:$0xff]   ;;  %v9020_v18 = vld [vmem:[%s14673_s4 + $0x660] ss:$68 sps:$4 sm:$0xff]  }
 0x18c   :  { %v2439_v32 = vrot.slane %v2438_v21, 4  ;;  %v2451_v33 = vadd.f32 %v2450_v41, %v2449_v31  ;;  %v2109_v37 = vpop.f32.mrf.mxu0  ;;  %v9013_v31 = vld [vmem:[%s14673_s4 + $0xaa4] ss:$68 sps:$4 sm:$0xff]  }
 0x18d   :  { %v10754_v4 = vpop.f32.mrf.mxu1  ;;  %5072 = vmatprep.subr.bf16.mxu0 %v9013_v31 }
 0x18e   :  { %v2440_v3 = vadd.f32 %v2439_v32, %v2438_v21  ;;  %v2452_v42 = vrot.slane %v2451_v33, 4  ;;  %v10761_v23 = vpop.f32.mrf.mxu0  ;;  %5014 = vmatpush2.bf16.msra.mxu1 %v9008_v24  ;;  %v9011_v32 = vld [vmem:[%s14673_s4 + $0xaa0] ss:$68 sps:$4 sm:$0xff]  }
 0x18f   :  { %v10759_v62 = vpop.f32.mrf.mxu1  ;;  %5015 = vmatprep.subr.bf16.mxu1 %v9016_v50  ;;  %5073 = vmatpush1.bf16.msra.mxu0 %v9011_v32 }
 0x190   :  { %v2441_v53 = vrot.slane %v2440_v3, 2  ;;  %v2453_v28 = vadd.f32 %v2452_v42, %v2451_v33  ;;  %v10768_v51 = vpop.f32.mrf.mxu0  ;;  %v9022_v33 = vld [vmem:[%s14673_s4 + $0x664] ss:$68 sps:$4 sm:$0xff]  }
 0x191   :  { %v10766_v60 = vpop.f32.mrf.mxu1 }
 0x192   :  { %v2442_v8 = vadd.f32 %v2441_v53, %v2440_v3  ;;  %v2454_v61 = vrot.slane %v2453_v28, 2  ;;  %v10778_v5 = vpop.f32.mrf.mxu0  ;;  %5016 = vmatpush2.bf16.msra.mxu1 %v9014_v10  ;;  %v9019_v53 = vld [vmem:[%s14673_s4 + $0xa1c] ss:$68 sps:$4 sm:$0xff]   ;;  %v9025_v10 = vld [vmem:[%s14673_s4 + $0x994] ss:$68 sps:$4 sm:$0xff]  }
 0x193   :  { %v10776_v25 = vpop.f32.mrf.mxu1  ;;  %5017 = vmatprep.subr.bf16.mxu1 %v9022_v33  ;;  %5074 = vmatprep.subr.bf16.mxu0 %v9019_v53 }
 0x194   :  { %v2443_v15 = vrot.slane %v2442_v8, 1  ;;  %v2455_v14 = vadd.f32 %v2454_v61, %v2453_v28  ;;  %v10787_v9 = vpop.f32.mrf.mxu0  ;;  %v9017_v61 = vld [vmem:[%s14673_s4 + $0xa18] ss:$68 sps:$4 sm:$0xff]  }
 0x195   :  { %v10785_v1 = vpop.f32.mrf.mxu1  ;;  %5075 = vmatpush1.bf16.msra.mxu0 %v9017_v61 }
 0x196   :  { %v2444_v21 = vadd.f32 %v2443_v15, %v2442_v8  ;;  %v2456_v27 = vrot.slane %v2455_v14, 1  ;;  %v10797_v29 = vpop.f32.mrf.mxu0  ;;  %5018 = vmatpush2.bf16.msra.mxu1 %v9020_v18  ;;  %5076 = vmatprep.subr.bf16.mxu0 %v9025_v10 }
 0x197   :  { %v10795_v41 = vpop.f32.mrf.mxu1  ;;  %5019 = vmatprep.subr.bf16.mxu1 %v9028_v13 }
 0x198   :  { %v2480_v37 = vmul.f32 0.020408163, %v2444_v21  ;;  %v2457_v22 = vadd.f32 %v2456_v27, %v2455_v14  ;;  %v10807_v42 = vpop.f32.mrf.mxu0 }
 0x199   :  { %v10805_v3 = vpop.f32.mrf.mxu1 }
 0x19a   :  { %v10816_v28 = vsub.f32 %v10626_v56, %v2480_v37  ;;  %v10819_v26 = vsub.f32 %v10641_v59, %v2480_v37  ;;  %v10822_v24 = vsub.f32 %v10661_v7, %v2480_v37  ;;  %v10825_v49 = vsub.f32 %v10680_v17, %v2480_v37  ;;  %v10829_v8 = vpop.f32.mrf.mxu0 }
 0x19b   :  { %v10827_v0 = vpop.f32.mrf.mxu1  ;;  %v10835_v56 = vsub.f32 %v10696_v36, %v2480_v37  ;;  %v10838_v59 = vsub.f32 %v10714_v58, %v2480_v37  ;;  %v10841_v7 = vsub.f32 %v10731_v55, %v2480_v37  ;;  %v2481_v17 = vmul.f32 0.020408163, %v2457_v22  ;;  %v9026_v58 = vld [vmem:[%s14673_s4 + $0x5d8] ss:$68 sps:$4 sm:$0xff]  }
 0x19c   :  { %14801 = vst [vmem:[#allocation2_spill] sm:$0xff] %v10816_v28  ;;  %14802 = vst [vmem:[#allocation3_spill] sm:$0xff] %v10819_v26  ;;  %v2504_v50 = vmul.f32 %v10816_v28, %v10816_v28  ;;  %v2507_v15 = vmul.f32 %v10819_v26, %v10819_v26  ;;  %v10852_v14 = vpop.f32.mrf.mxu0  ;;  %v2510_v31 = vmul.f32 %v10822_v24, %v10822_v24  ;;  %5020 = vmatpush2.bf16.msra.mxu1 %v9026_v58 }
 0x19d   :  { %14803 = vst [vmem:[#allocation4_spill] sm:$0xff] %v10822_v24  ;;  %14804 = vst [vmem:[#allocation5_spill] sm:$0xff] %v10825_v49  ;;  %v10850_v36 = vpop.f32.mrf.mxu1  ;;  %v10858_v55 = vsub.f32 %v10637_v16, %v2481_v17  ;;  %v10866_v27 = vsub.f32 %v10653_v46, %v2481_v17  ;;  %v10869_v32 = vsub.f32 %v10675_v11, %v2481_v17  ;;  %v9023_v16 = vld [vmem:[%s14673_s4 + $0x990] ss:$68 sps:$4 sm:$0xff]  }
 0x19e   :  { %14805 = vst [vmem:[#allocation6_spill] sm:$0xff] %v10835_v56  ;;  %14806 = vst [vmem:[#allocation7_spill] sm:$0xff] %v10838_v59  ;;  %v2525_v21 = vadd.f32 %v2507_v15, %v2504_v50  ;;  %v10871_v37 = vpop.f32.mrf.mxu0  ;;  %v2513_v22 = vmul.f32 %v10825_v49, %v10825_v49  ;;  %v10879_v18 = vsub.f32 %v10708_v35, %v2481_v17  ;;  %v9031_v11 = vld [vmem:[%s14673_s4 + $0x554] ss:$68 sps:$4 sm:$0xff]   ;;  %5077 = vmatpush1.bf16.msra.mxu0 %v9023_v16 }
 0x19f   :  { %14807 = vst [vmem:[#allocation8_spill] sm:$0xff] %v10841_v7  ;;  %14808 = vst [vmem:[#allocation9_spill] sm:$0xff] %v10866_v27  ;;  %v8468_v33 = vpop.f32.mrf.mxu1  ;;  %v10882_v46 = vsub.f32 %v10744_v20, %v2481_v17  ;;  %v10888_v61 = vsub.f32 %v10689_v54, %v2481_v17  ;;  %v2505_v13 = vmul.f32 %v10858_v55, %v10858_v55  ;;  %v9029_v20 = vld [vmem:[%s14673_s4 + $0x550] ss:$68 sps:$4 sm:$0xff]   ;;  %5021 = vmatprep.subr.bf16.mxu1 %v9031_v11  ;;  %v9032_v11 = vld [vmem:[%s14673_s4 + $0x908] ss:$68 sps:$4 sm:$0xff]  }
 0x1a0   :  { %14809 = vst [vmem:[#allocation10_spill] sm:$0xff] %v10869_v32  ;;  %14810 = vst [vmem:[#allocation11_spill] sm:$0xff] %v10879_v18  ;;  %v2526_v53 = vadd.f32 %v2525_v21, %v2510_v31  ;;  %v2508_v50 = vmul.f32 %v10866_v27, %v10866_v27  ;;  %v10894_v15 = vpop.f32.mrf.mxu0  ;;  %v9034_v54 = vld [vmem:[%s14673_s4 + $0x90c] ss:$68 sps:$4 sm:$0xff]   ;;  %v2516_v58 = vmul.f32 %v10835_v56, %v10835_v56  ;;  %5022 = vmatpush2.bf16.msra.mxu1 %v9029_v20 }
 0x1a1   :  { %14811 = vst [vmem:[#allocation12_spill] sm:$0xff] %v10882_v46  ;;  %14812 = vst [vmem:[#allocation13_spill] sm:$0xff] %v10888_v61  ;;  %v8469_v35 = vpop.f32.mrf.mxu1  ;;  %v2511_v31 = vmul.f32 %v10869_v32, %v10869_v32  ;;  %v2522_v43 = vmul.f32 %v10841_v7, %v10841_v7  ;;  %5078 = vmatprep.subr.bf16.mxu0 %v9034_v54  ;;  %v9035_v54 = vld [vmem:[%s14673_s4 + $0x4c8] ss:$68 sps:$4 sm:$0xff]   ;;  %v9038_v7 = vld [vmem:[%s14673_s4 + $0x880] ss:$68 sps:$4 sm:$0xff]  }
 0x1a2   :  { %v2527_v10 = vadd.f32 %v2526_v53, %v2513_v22  ;;  %v2538_v21 = vadd.f32 %v2508_v50, %v2505_v13  ;;  %v10906_v33 = vpop.f32.mrf.mxu0  ;;  %v2519_v35 = vmul.f32 %v10838_v59, %v10838_v59  ;;  %v9037_v22 = vld [vmem:[%s14673_s4 + $0x4cc] ss:$68 sps:$4 sm:$0xff]   ;;  %v10921_v13 = vsub.f32 %v10726_v57, %v2481_v17  ;;  %5079 = vmatpush1.bf16.msra.mxu0 %v9032_v11  ;;  %v9040_v57 = vld [vmem:[%s14673_s4 + $0x884] ss:$68 sps:$4 sm:$0xff]  }
 0x1a3   :  { %v10908_v16 = vpop.f32.mrf.mxu1  ;;  %v2514_v50 = vmul.f32 %v10888_v61, %v10888_v61  ;;  %5023 = vmatprep.subr.bf16.mxu1 %v9037_v22  ;;  %v9043_v17 = vld [vmem:[%s14673_s4 + $0x444] ss:$68 sps:$4 sm:$0xff]   ;;  %v2530_v24 = vsel %vm2436_vm1, %v2522_v43, 0.0  ;;  %5080 = vmatprep.subr.bf16.mxu0 %v9040_v57 }
 0x1a4   :  { %v2528_v53 = vadd.f32 %v2527_v10, %v2516_v58  ;;  %14813 = vst [vmem:[#allocation14_spill] sm:$0xff] %v10921_v13  ;;  %v2539_v20 = vadd.f32 %v2538_v21, %v2511_v31  ;;  %v10925_v56 = vpop.f32.mrf.mxu0  ;;  %v2517_v10 = vmul.f32 %v10879_v18, %v10879_v18  ;;  %5024 = vmatpush2.bf16.msra.mxu1 %v9035_v54  ;;  %v9041_v22 = vld [vmem:[%s14673_s4 + $0x440] ss:$68 sps:$4 sm:$0xff]  }
 0x1a5   :  { %v8528_v49 = vpop.f32.mrf.mxu1  ;;  %v9046_v59 = vld [vmem:[%s14673_s4 + $0x3c4] ss:$68 sps:$4 sm:$0xff]   ;;  %5025 = vmatprep.subr.bf16.mxu1 %v9043_v17 }
 0x1a6   :  { %v2529_v58 = vadd.f32 %v2528_v53, %v2519_v35  ;;  %v2540_v31 = vadd.f32 %v2539_v20, %v2514_v50  ;;  %v10941_v21 = vpop.f32.mrf.mxu0  ;;  %v2523_v35 = vmul.f32 %v10882_v46, %v10882_v46  ;;  %v2520_v50 = vmul.f32 %v10921_v13, %v10921_v13  ;;  %5081 = vmatpush1.bf16.msra.mxu0 %v9038_v7 }
 0x1a7   :  { %v8530_v11 = vpop.f32.mrf.mxu1  ;;  %5137 = vmatprep.subr.bf16.mxu0 %v9046_v59 }
 0x1a8   :  { %v2531_v53 = vadd.f32 %v2530_v24, %v2529_v58  ;;  %v2541_v20 = vadd.f32 %v2540_v31, %v2517_v10  ;;  %v10954_v54 = vpop.f32.mrf.mxu0  ;;  %5026 = vmatpush2.bf16.msra.mxu1 %v9041_v22  ;;  %v2543_v43 = vsel %vm2436_vm1, %v2523_v35, 0.0  ;;  %v10960_v10 = vld [vmem:[%s14673_s4 + $0xb30] sm:$0xff]  ;;  %v8449_v35 = vadd.f32 %v10720_v63, %v10710_v12 }
 0x1a9   :  { %v8531_v18 = vpop.f32.mrf.mxu1  ;;  %v8332_v59 = vcombine.high %v10960_v10, %v10960_v10  ;;  %v8492_v12 = vadd.f32 %v10787_v9, %v10778_v5  ;;  %v8529_v63 = vadd.f32 %v8528_v49, %v10908_v16 }
 0x1aa   :  { %v2532_v61 = vrot.slane %v2531_v53, 4  ;;  %v2542_v32 = vadd.f32 %v2541_v20, %v2520_v50  ;;  %v8508_v28 = vpop.f32.mrf.mxu0 }
 0x1ab   :  { %v8533_v26 = vpop.f32.mrf.mxu1  ;;  %8351 = vmatprep.subr.msk.bf16.mxu1 %vm4943_vm2, %v8332_v59  ;;  %v2210_v59 = vadd.f32 %v8449_v35, %v10607_v44  ;;  %v8495_v44 = vadd.f32 %v10807_v42, %v10797_v29 }
 0x1ac   :  { %v2533_v46 = vadd.f32 %v2532_v61, %v2531_v53  ;;  %v2544_v57 = vadd.f32 %v2543_v43, %v2542_v32  ;;  %v8509_v24 = vpop.f32.mrf.mxu0  ;;  %v8452_v43 = vadd.f32 %v10736_v39, %v10728_v30  ;;  %v8455_v30 = vadd.f32 %v10754_v4, %v10747_v40 }
 0x1ad   :  { %v8534_v17 = vpop.f32.mrf.mxu1  ;;  %v8489_v24 = vadd.f32 %v10768_v51, %v10761_v23  ;;  %v8458_v40 = vadd.f32 %v10766_v60, %v10759_v62  ;;  %v8461_v60 = vadd.f32 %v10785_v1, %v10776_v25  ;;  %v8464_v25 = vadd.f32 %v10805_v3, %v10795_v41 }
 0x1ae   :  { %v2534_v58 = vrot.slane %v2533_v46, 2  ;;  %v2545_v27 = vrot.slane %v2544_v57, 4  ;;  %v2218_v49 = vadd.f32 %v8455_v30, %v10621_v34  ;;  %v8535_v35 = vadd.f32 %v8534_v17, %v8533_v26 }
 0x1af   :  { %v8536_v13 = vpop.f32.mrf.mxu1  ;;  %v8498_v34 = vadd.f32 %v10852_v14, %v10829_v8  ;;  %v8501_v8 = vadd.f32 %v10894_v15, %v10871_v37  ;;  %v8424_v30 = vadd.f32 %v10666_v2, %v10657_v6  ;;  %v8504_v37 = vadd.f32 %v10925_v56, %v10906_v33 }
 0x1b0   :  { %v2535_v7 = vadd.f32 %v2534_v58, %v2533_v46  ;;  %v2546_v28 = vadd.f32 %v2545_v27, %v2544_v57  ;;  %v8412_v58 = vadd.f32 %v10611_v48, %v10609_v45  ;;  %v8467_v41 = vadd.f32 %v10850_v36, %v10827_v0 }
 0x1b1   :  { %v8537_v31 = vpop.f32.mrf.mxu1  ;;  %v8507_v56 = vadd.f32 %v10954_v54, %v10941_v21 }
 0x1b2   :  { %v2536_v61 = vrot.slane %v2535_v7, 1  ;;  %v2547_v32 = vrot.slane %v2546_v28, 2  ;;  %v2213_v51 = vadd.f32 %v8452_v43, %v8412_v58  ;;  %v2282_v43 = vadd.f32 %v8495_v44, %v2218_v49 }
 0x1b3   :  { %v8539_v22 = vpop.f32.mrf.mxu1  ;;  %v2234_v36 = vadd.f32 %v8467_v41, %v10691_v19 }
 0x1b4   :  { %v2537_v53 = vadd.f32 %v2536_v61, %v2535_v7  ;;  %v2548_v50 = vadd.f32 %v2547_v32, %v2546_v28  ;;  %v2274_v28 = vadd.f32 %v8489_v24, %v2210_v59  ;;  %v8532_v61 = vadd.f32 %v8531_v18, %v8530_v11 }
 0x1b5   :  { %v8540_v20 = vpop.f32.mrf.mxu1  ;;  %v2277_v48 = vadd.f32 %v8492_v12, %v2213_v51 }
 0x1b6   :  { %v2570_v46 = vmul.f32 0.020408163, %v2537_v53  ;;  %v2549_v27 = vrot.slane %v2548_v50, 1  ;;  %v2338_v5 = vadd.f32 %v8529_v63, %v2274_v28 }
 0x1b7   :  { %v10971_v57 = vpop.f32.mrf.mxu1  ;;  %v2341_v11 = vadd.f32 %v8532_v61, %v2277_v48  ;;  %v2229_v61 = vadd.f32 %v8464_v25, %v8424_v30 }
 0x1b8   :  { %v2550_v7 = vadd.f32 %v2549_v27, %v2548_v50  ;;  %v2574_v23 = vadd.f32 1e-05, %v2570_v46  ;;  %v8418_v50 = vadd.f32 %v10631_v52, %v10623_v47  ;;  %v8538_v46 = vadd.f32 %v8537_v31, %v8536_v13 }
 0x1b9   :  { %v8543_v39 = vpop.f32.mrf.mxu1  ;;  %v2346_v27 = vadd.f32 %v8535_v35, %v2282_v43  ;;  %v2226_v13 = vadd.f32 %v8461_v60, %v10655_v38  ;;  %v8541_v31 = vadd.f32 %v8540_v20, %v8539_v22  ;;  %v2293_v48 = vadd.f32 %v8504_v37, %v2229_v61 }
 0x1ba   :  { %v2571_v32 = vmul.f32 0.020408163, %v2550_v7  ;;  %v2401_v45 = vpop.f32.mrf.mxu0  ;;  %9521 = vrsqrt.f32 %v2574_v23  ;;  %v2221_v62 = vadd.f32 %v8458_v40, %v8418_v50  ;;  %v8544_v38 = vadd.f32 %v8543_v39, %v10971_v57 }
 0x1bb   :  { %v10981_v53 = vpop.f32.mrf.mxu1  ;;  %v10988_v18 = vadd.f32 %v2401_v45, %v2338_v5  ;;  %v2290_v28 = vadd.f32 %v8501_v8, %v2226_v13  ;;  %v2298_v40 = vadd.f32 %v8507_v56, %v2234_v36 }
 0x1bc   :  { %v2575_v9 = vadd.f32 1e-05, %v2571_v32  ;;  %v2403_v16 = vpop.f32.mrf.mxu0  ;;  %v2285_v12 = vadd.f32 %v8498_v34, %v2221_v62  ;;  %v2357_v5 = vadd.f32 %v8544_v38, %v2293_v48 }
 0x1bd   :  { %v8546_v4 = vpop.f32.mrf.mxu1  ;;  %v2459_v47 = vsel %vm2458_vm3, %v10988_v18, 0.0  ;;  %v2354_v22 = vadd.f32 %v8541_v31, %v2290_v28 }
 0x1be   :  { %9523 = vrsqrt.f32 %v2575_v9  ;;  %v2404_v29 = vpop.f32.mrf.mxu0  ;;  %v2349_v7 = vadd.f32 %v8538_v46, %v2285_v12  ;;  %v8547_v57 = vadd.f32 %v8546_v4, %v10981_v53 }
 0x1bf   :  { %v8548_v42 = vpop.f32.mrf.mxu1  ;;  %v10994_v24 = vadd.f32 %v2404_v29, %v2341_v11 }
 0x1c0   :  { %v2406_v26 = vpop.f32.mrf.mxu0  ;;  %v2362_v21 = vadd.f32 %v8547_v57, %v2298_v40 }
 0x1c1   :  { %v8549_v17 = vpop.f32.mrf.mxu1  ;;  %v2460_v52 = vsel %vm2458_vm3, %v10994_v24, 0.0 }
 0x1c2   :  { %v2461_v58 = vadd.f32 %v2460_v52, %v2459_v47  ;;  %v2409_v59 = vpop.f32.mrf.mxu0 }
 0x1c3   :  { %v2410_v14 = vadd.f32 %v2409_v59, %v2346_v27 }
 0x1c4   :  { %v2411_v1 = vpop.f32.mrf.mxu0 }
 0x1c5   :  { %v2462_v63 = vsel %vm2458_vm3, %v2410_v14, 0.0 }
 0x1c6   :  { %v2463_v23 = vadd.f32 %v2462_v63, %v2461_v58  ;;  %v2412_v51 = vpop.f32.mrf.mxu0 }
 0x1c7   :  { %v2413_v15 = vadd.f32 %v2412_v51, %v2349_v7  ;;  %v11016_v20 = vpop.eup %9521 }
 0x1c8   :  { %v2414_v32 = vpop.f32.mrf.mxu0 }
 0x1c9   :  { %v2464_v3 = vsel %vm2458_vm3, %v2413_v15, 0.0 }
 0x1ca   :  { %v2465_v6 = vadd.f32 %v2464_v3, %v2463_v23  ;;  %v2417_v2 = vpop.f32.mrf.mxu0 }
 0x1cb   :  { %v11018_v45 = vpop.eup %9523  ;;  %v2418_v33 = vadd.f32 %v2417_v2, %v2354_v22 }
 0x1cc   :  { %v2583_v44 = vcombine.low %v11016_v20, %v11018_v45  ;;  %v2419_v0 = vpop.f32.mrf.mxu0  ;;  %v2645_v20 = vld [vmem:[%s14675_s3] sm:$0x7] }
 0x1cd   :  { %v2466_v39 = vsel %vm2458_vm3, %v2418_v33, 0.0 }
 0x1ce   :  { %v2467_v9 = vadd.f32 %v2466_v39, %v2465_v6  ;;  %v2420_v49 = vpop.f32.mrf.mxu0  ;;  %v9568_v39 = vmov 1966171168  }
 0x1cf   :  { %v2421_v16 = vadd.f32 %v2420_v49, %v2357_v5  ;;  %v2585_v5 = vunpack.c.l.s4 %v9568_v39 }
 0x1d0   :  { %v2422_v35 = vpop.f32.mrf.mxu0 }
 0x1d1   :  { %v2468_v11 = vsel %vm2458_vm3, %v2421_v16, 0.0  ;;  %v2586_v49 = vunpack.c.0.s8 %v2585_v5 }
 0x1d2   :  { %v2469_v54 = vadd.f32 %v2468_v11, %v2467_v9  ;;  %v2425_v50 = vpop.f32.mrf.mxu0  ;;  %v2587_v9 = vlaneseq }
 0x1d3   :  { %v2426_v29 = vadd.f32 %v2425_v50, %v2362_v21 }
 0x1d4   :  { %v2427_v42 = vpop.f32.mrf.mxu0  ;;  %v11038_v40 = vshrl.u32 %v2587_v9, 7  ;;  %v14825_v9 = vld [vmem:[#allocation4_spill] sm:$0xff] }
 0x1d5   :  { %v2471_v19 = vsel %vm2470_vm4, %v2426_v29, 0.0 }
 0x1d6   :  { %v2472_v43 = vadd.f32 %v2471_v19, %v2469_v54  ;;  %v2428_v53 = vpop.f32.mrf.mxu0  ;;  %v2573_v54 = vld [vmem:[%s14674_s2] sm:$0x7]  ;;  %v11052_v50 = vsub.s32 0, %v11038_v40  ;;  %v11058_v42 = vsub.s32 2, %v11038_v40 }
 0x1d8   :  { %v2473_v4 = vrot.slane %v2472_v43, 4  ;;  %v2429_v34 = vpop.f32.mrf.mxu0  ;;  %14815 = vst [vmem:[#allocation16_spill] sm:$0xff] %v11052_v50  ;;  %14817 = vst [vmem:[#allocation18_spill] sm:$0xff] %v11058_v42 }
 0x1da   :  { %v2474_v62 = vadd.f32 %v2473_v4, %v2472_v43  ;;  %v11069_v4 = vrot.slane %v2645_v20, %v11058_v42 }
 0x1dc   :  { %v2475_v60 = vrot.slane %v2474_v62, 2 }
 0x1de   :  { %v2476_v26 = vadd.f32 %v2475_v60, %v2474_v62  ;;  %v11075_v62 = vrot.slane %v2645_v20, %v11052_v50 }
 0x1e0   :  { %v2477_v17 = vrot.slane %v2476_v26, 1 }
 0x1e2   :  { %v2478_v46 = vadd.f32 %v2477_v17, %v2476_v26 }
 0x1e4   :  { %v2482_v47 = vmul.f32 0.020408163, %v2478_v46 }
 0x1e6   :  { %v2485_v52 = vsub.f32 %v10988_v18, %v2482_v47  ;;  %v2488_v27 = vsub.f32 %v10994_v24, %v2482_v47  ;;  %v2491_v58 = vsub.f32 %v2410_v14, %v2482_v47  ;;  %v2494_v59 = vsub.f32 %v2413_v15, %v2482_v47 }
 0x1e7   :  { %v2497_v12 = vsub.f32 %v2418_v33, %v2482_v47  ;;  %v2500_v8 = vsub.f32 %v2421_v16, %v2482_v47  ;;  %v2503_v25 = vsub.f32 %v2426_v29, %v2482_v47  ;;  %v11041_v16 = vsub.s32 %v2586_v49, %v11038_v40 }
 0x1e8   :  { %v2506_v1 = vmul.f32 %v2485_v52, %v2485_v52  ;;  %v2509_v13 = vmul.f32 %v2488_v27, %v2488_v27  ;;  %v2512_v31 = vmul.f32 %v2491_v58, %v2491_v58  ;;  %v2515_v63 = vmul.f32 %v2494_v59, %v2494_v59 }
 0x1e9   :  { %v2518_v51 = vmul.f32 %v2497_v12, %v2497_v12  ;;  %v2521_v37 = vmul.f32 %v2500_v8, %v2500_v8  ;;  %v2524_v15 = vmul.f32 %v2503_v25, %v2503_v25  ;;  %14814 = vst [vmem:[#allocation15_spill] sm:$0xff] %v11041_v16  ;;  %v2590_v11 = vrot.slane %v2583_v44, %v11041_v16 }
 0x1ea   :  { %v2551_v7 = vsel %vm2458_vm3, %v2506_v1, 0.0  ;;  %v2552_v30 = vsel %vm2458_vm3, %v2509_v13, 0.0  ;;  %v2554_v28 = vsel %vm2458_vm3, %v2512_v31, 0.0  ;;  %v2556_v24 = vsel %vm2458_vm3, %v2515_v63, 0.0 }
 0x1eb   :  { %v2553_v23 = vadd.f32 %v2552_v30, %v2551_v7  ;;  %v2558_v61 = vsel %vm2458_vm3, %v2518_v51, 0.0  ;;  %v2560_v41 = vsel %vm2458_vm3, %v2521_v37, 0.0  ;;  %v2562_v3 = vsel %vm2470_vm4, %v2524_v15, 0.0  ;;  %v9049_v37 = vld [vmem:[%s14673_s4 + $0x33c] ss:$68 sps:$4 sm:$0xff]   ;;  %v14820_v15 = vld [vmem:[#allocation3_spill] sm:$0xff] }
 0x1ec   :  { %v11055_v29 = vsub.s32 1, %v11038_v40 }
 0x1ed   :  { %v2555_v18 = vadd.f32 %v2554_v28, %v2553_v23  ;;  %v14819_v28 = vld [vmem:[#allocation2_spill] sm:$0xff] }
 0x1ee   :  { %14816 = vst [vmem:[#allocation17_spill] sm:$0xff] %v11055_v29  ;;  %v11078_v60 = vrot.slane %v2645_v20, %v11055_v29 }
 0x1ef   :  { %v2557_v14 = vadd.f32 %v2556_v24, %v2555_v18 }
 0x1f1   :  { %v2559_v32 = vadd.f32 %v2558_v61, %v2557_v14 }
 0x1f3   :  { %v2561_v38 = vadd.f32 %v2560_v41, %v2559_v32  ;;  %v14821_v41 = vld [vmem:[#allocation10_spill] sm:$0xff] }
 0x1f5   :  { %v2563_v22 = vadd.f32 %v2562_v3, %v2561_v38  ;;  %v14822_v3 = vld [vmem:[#allocation13_spill] sm:$0xff] }
 0x1f7   :  { %v2564_v6 = vrot.slane %v2563_v22, 4 }
 0x1f9   :  { %v2565_v2 = vadd.f32 %v2564_v6, %v2563_v22  ;;  %v8331_v6 = vcombine.low %v10960_v10, %v10960_v10  ;;  %v9052_v10 = vld [vmem:[%s14673_s4 + $0x2b4] ss:$68 sps:$4 sm:$0xff]  }
 0x1fb   :  { %v2566_v48 = vrot.slane %v2565_v2, 2  ;;  %v4951_v20 = vsel %vm4943_vm2, %v8331_v6, 0  ;;  %v14831_v6 = vld [vmem:[#allocation8_spill] sm:$0xff] }
 0x1fd   :  { %v2567_v56 = vadd.f32 %v2566_v48, %v2565_v2 }
 0x1ff   :  { %v2568_v33 = vrot.slane %v2567_v56, 1 }
 0x201   :  { %v2569_v0 = vadd.f32 %v2568_v33, %v2567_v56  ;;  %v9047_v56 = vld [vmem:[%s14673_s4 + $0x338] ss:$68 sps:$4 sm:$0xff]   ;;  %v14823_v33 = vmov 0  }
 0x203   :  { %v2572_v36 = vmul.f32 0.020408163, %v2569_v0 }
 0x205   :  { %v2576_v57 = vadd.f32 1e-05, %v2572_v36 }
 0x207   :  { %9525 = vrsqrt.f32 %v2576_v57  ;;  %v14824_v57 = vld [vmem:[#allocation11_spill] sm:$0xff] }
 0x214   :  { %v9526_v35 = vpop.eup %9525 }
 0x215   :  { %v2597_v21 = vrot.slane %v9526_v35, %v11041_v16  ;;  %v14826_v35 = vld [vmem:[#allocation5_spill] sm:$0xff] }
 0x217   :  { %v2598_v19 = vcombine.low %v2590_v11, %v2597_v21  ;;  %v14827_v21 = vld [vmem:[#allocation14_spill] sm:$0xff] }
 0x219   :  { %v2605_v45 = vrot.slane %v2598_v19, %v11041_v16 }
 0x21b   :  { %v2607_v44 = vmul.f32 %v2605_v45, %v2573_v54 }
 0x21d   :  { %v11065_v43 = vrot.slane %v2607_v44, %v11055_v29  ;;  %v2620_v53 = vrot.slane %v2607_v44, %v11058_v42  ;;  %v11072_v34 = vrot.slane %v2607_v44, %v11052_v50  ;;  %v9060_v44 = vld [vmem:[%s14673_s4 + $0xaac] ss:$68 sps:$4 sm:$0xff]  }
 0x21f   :  { %v2626_v26 = vmul.f32 %v2620_v53, %v2485_v52  ;;  %v2629_v17 = vmul.f32 %v2620_v53, %v2488_v27  ;;  %v2632_v46 = vmul.f32 %v2620_v53, %v2491_v58  ;;  %v2635_v47 = vmul.f32 %v2620_v53, %v2494_v59  ;;  %v9044_v58 = vld [vmem:[%s14673_s4 + $0x3c0] ss:$68 sps:$4 sm:$0xff]   ;;  %v14818_v59 = vld [vmem:[#allocation9_spill] sm:$0xff] }
 0x220   :  { %v2638_v1 = vmul.f32 %v2620_v53, %v2497_v12  ;;  %v2641_v13 = vmul.f32 %v2620_v53, %v2500_v8  ;;  %v11080_v31 = vmul.f32 %v2620_v53, %v2503_v25  ;;  %v2625_v63 = vmul.f32 %v11065_v43, %v10858_v55  ;;  %v9050_v53 = vld [vmem:[%s14673_s4 + $0x2b0] ss:$68 sps:$4 sm:$0xff]  }
 0x221   :  { %v2664_v7 = vadd.f32 %v11069_v4, %v2626_v26  ;;  %v2667_v30 = vadd.f32 %v11069_v4, %v2629_v17  ;;  %v2670_v23 = vadd.f32 %v11069_v4, %v2632_v46  ;;  %v2673_v51 = vadd.f32 %v11069_v4, %v2635_v47  ;;  %v9057_v17 = vld [vmem:[%s14673_s4 + $0x22c] ss:$68 sps:$4 sm:$0xff]  }
 0x222   :  { %v2676_v52 = vadd.f32 %v11069_v4, %v2638_v1  ;;  %v2679_v27 = vadd.f32 %v11069_v4, %v2641_v13  ;;  %v2628_v12 = vmul.f32 %v11065_v43, %v14818_v59  ;;  %v2663_v25 = vadd.f32 %v11078_v60, %v2625_v63  ;;  %v9058_v13 = vld [vmem:[%s14673_s4 + $0xaa8] ss:$68 sps:$4 sm:$0xff]  }
 0x223   :  { %v11095_v55 = vpack.c.bf16 %v2667_v30, %v2664_v7  ;;  %v11097_v8 = vpack.c.bf16 %v2673_v51, %v2670_v23  ;;  %v2624_v18 = vmul.f32 %v11072_v34, %v14819_v28  ;;  %v2627_v61 = vmul.f32 %v11072_v34, %v14820_v15  ;;  %v9066_v63 = vld [vmem:[%s14673_s4 + $0xa24] ss:$68 sps:$4 sm:$0xff]   ;;  %v9072_v28 = vld [vmem:[%s14673_s4 + $0x99c] ss:$68 sps:$4 sm:$0xff]  }
 0x224   :  { %v11105_v24 = vpack.c.bf16 %v2679_v27, %v2676_v52  ;;  %v2666_v14 = vadd.f32 %v11078_v60, %v2628_v12  ;;  %v2631_v38 = vmul.f32 %v11065_v43, %v14821_v41  ;;  %v2634_v22 = vmul.f32 %v11065_v43, %v14822_v3  ;;  %v9055_v7 = vld [vmem:[%s14673_s4 + $0x228] ss:$68 sps:$4 sm:$0xff]   ;;  %v9064_v51 = vld [vmem:[%s14673_s4 + $0xa20] ss:$68 sps:$4 sm:$0xff]   ;;  %v14830_v12 = vld [vmem:[#allocation12_spill] sm:$0xff] }
 0x225   :  { %8347 = vmatmul.mubr.msk.bf16.vlgmr.msra.gmra.mxu0 %vm2458_vm3, %v11095_v55  ;;  %v2662_v32 = vadd.f32 %v11075_v62, %v2624_v18  ;;  %v2665_v48 = vadd.f32 %v11075_v62, %v2627_v61  ;;  %v2637_v39 = vmul.f32 %v11065_v43, %v14824_v57  ;;  %v2630_v49 = vmul.f32 %v11072_v34, %v14825_v9  ;;  %v9063_v30 = vld [vmem:[%s14673_s4 + $0x1a4] ss:$68 sps:$4 sm:$0xff]   ;;  %v9070_v15 = vld [vmem:[%s14673_s4 + $0x998] ss:$68 sps:$4 sm:$0xff]   ;;  %v9090_v57 = vld [vmem:[%s14673_s4 + $0x3cc] ss:$68 sps:$4 sm:$0xff]  }
 0x226   :  { %v11119_v2 = vpack.c.bf16 %v2666_v14, %v2663_v25  ;;  %5138 = vmatpush1.bf16.msra.mxu0 %v9044_v58  ;;  %5108 = vmatprep.mubr.bf16.mxu0 %v14823_v33  ;;  %v2669_v0 = vadd.f32 %v11078_v60, %v2631_v38  ;;  %v2672_v36 = vadd.f32 %v11078_v60, %v2634_v22  ;;  %v14828_v52 = vld [vmem:[#allocation6_spill] sm:$0xff]  ;;  %v14829_v58 = vld [vmem:[#allocation7_spill] sm:$0xff]  ;;  %v9067_v41 = vld [vmem:[%s14673_s4 + $0x118] ss:$68 sps:$4 sm:$0xff]  }
 0x227   :  { %5139 = vmatprep.subr.bf16.mxu0 %v9049_v37  ;;  %v11134_v5 = vpack.c.bf16 %v2665_v48, %v2662_v32  ;;  %v2633_v11 = vmul.f32 %v11072_v34, %v14826_v35  ;;  %v2640_v54 = vmul.f32 %v11065_v43, %v14827_v21  ;;  %v2675_v45 = vadd.f32 %v11078_v60, %v2637_v39  ;;  %v9061_v18 = vld [vmem:[%s14673_s4 + $0x1a0] ss:$68 sps:$4 sm:$0xff]   ;;  %v9078_v32 = vld [vmem:[%s14673_s4 + $0x914] ss:$68 sps:$4 sm:$0xff]   ;;  %v9088_v21 = vld [vmem:[%s14673_s4 + $0x3c8] ss:$68 sps:$4 sm:$0xff]  }
 0x228   :  { %5027 = vmatprep.mubr.bf16.mxu1 %v11119_v2  ;;  %v11142_v19 = vpack.c.bf16 %v2672_v36, %v2669_v0  ;;  %v2668_v46 = vadd.f32 %v11075_v62, %v2630_v49  ;;  %v2636_v27 = vmul.f32 %v11072_v34, %v14828_v52  ;;  %v2639_v59 = vmul.f32 %v11072_v34, %v14829_v58  ;;  %v9069_v37 = vld [vmem:[%s14673_s4 + $0x11c] ss:$68 sps:$4 sm:$0xff]   ;;  %v9076_v22 = vld [vmem:[%s14673_s4 + $0x910] ss:$68 sps:$4 sm:$0xff]   ;;  %v9087_v39 = vld [vmem:[%s14673_s4 + $0x804] ss:$68 sps:$4 sm:$0xff]  }
 0x229   :  { %5028 = vmatmul.mubr.bf16.vlgmr.msra.gmra.mxu1 %v11134_v5  ;;  %v2678_v26 = vadd.f32 %v11078_v60, %v2640_v54  ;;  %v2671_v47 = vadd.f32 %v11075_v62, %v2633_v11  ;;  %v2643_v25 = vmul.f32 %v11065_v43, %v14830_v12  ;;  %v2682_v38 = vadd.f32 %v11069_v4, %v11080_v31  ;;  %v9084_v4 = vld [vmem:[%s14673_s4 + $0x88c] ss:$68 sps:$4 sm:$0xff]   ;;  %v9085_v49 = vld [vmem:[%s14673_s4 + $0x800] ss:$68 sps:$4 sm:$0xff]   ;;  %v9091_v11 = vld [vmem:[%s14673_s4 + $0x778] ss:$68 sps:$4 sm:$0xff]  }
 0x22a   :  { %5140 = vmatpush1.bf16.msra.mxu0 %v9047_v56  ;;  %5037 = vmatprep.mubr.bf16.mxu1 %v11142_v19  ;;  %v2674_v43 = vadd.f32 %v11075_v62, %v2636_v27  ;;  %v2677_v14 = vadd.f32 %v11075_v62, %v2639_v59  ;;  %v2642_v48 = vmul.f32 %v11072_v34, %v14831_v6  ;;  %v9073_v31 = vld [vmem:[%s14673_s4 + $0x90] ss:$68 sps:$4 sm:$0xff]   ;;  %v9093_v35 = vld [vmem:[%s14673_s4 + $0x77c] ss:$68 sps:$4 sm:$0xff]   ;;  %v9112_v27 = vld [vmem:[%s14673_s4 + $0x1a8] ss:$68 sps:$4 sm:$0xff]  }
 0x22b   :  { %5141 = vmatprep.subr.bf16.mxu0 %v9052_v10  ;;  %5213 = vmatpush1.bf16.msra.mxu1 %v4951_v20  ;;  %v11160_v1 = vpack.c.bf16 %v2678_v26, %v2675_v45  ;;  %v11177_v23 = vpack.c.bf16 %v2671_v47, %v2668_v46  ;;  %v2681_v61 = vadd.f32 %v11078_v60, %v2643_v25  ;;  %v9075_v60 = vld [vmem:[%s14673_s4 + $0x94] ss:$68 sps:$4 sm:$0xff]   ;;  %v9081_v34 = vld [vmem:[%s14673_s4 + $0xc] ss:$68 sps:$4 sm:$0xff]   ;;  %v9096_v20 = vld [vmem:[%s14673_s4 + $0x344] ss:$68 sps:$4 sm:$0xff]  }
 0x22c   :  { %5214 = vmatprep.subr.bf16.mxu1 %v9060_v44  ;;  %v11219_v3 = vpack.c.bf16 %v2677_v14, %v2674_v43  ;;  %v11235_v0 = vpack.c.bf16 %v2682_v38, %v2682_v38  ;;  %v2680_v36 = vadd.f32 %v11075_v62, %v2642_v48  ;;  %v9082_v10 = vld [vmem:[%s14673_s4 + $0x888] ss:$68 sps:$4 sm:$0xff]   ;;  %v9099_v54 = vld [vmem:[%s14673_s4 + $0x6f4] ss:$68 sps:$4 sm:$0xff]   ;;  %v9094_v44 = vld [vmem:[%s14673_s4 + $0x340] ss:$68 sps:$4 sm:$0xff]  }
 0x22d   :  { %8348 = vmatmul.mubr.msk.bf16.gmra.mxu0 %vm2458_vm3, %v11097_v8  ;;  %v11226_v56 = vpack.c.bf16 %v2681_v61, %v2681_v61  ;;  %v9079_v62 = vld [vmem:[%s14673_s4 + $0x8] ss:$68 sps:$4 sm:$0xff]   ;;  %v9097_v45 = vld [vmem:[%s14673_s4 + $0x6f0] ss:$68 sps:$4 sm:$0xff]   ;;  %v9102_v26 = vld [vmem:[%s14673_s4 + $0x2bc] ss:$68 sps:$4 sm:$0xff]  }
 0x22e   :  { %5142 = vmatpush1.bf16.msra.mxu0 %v9050_v53  ;;  %5118 = vmatprep.mubr.bf16.mxu0 %v14823_v33  ;;  %v11257_v9 = vpack.c.bf16 %v2680_v36, %v2680_v36  ;;  %v9105_v53 = vld [vmem:[%s14673_s4 + $0x66c] ss:$68 sps:$4 sm:$0xff]   ;;  %v9100_v46 = vld [vmem:[%s14673_s4 + $0x2b8] ss:$68 sps:$4 sm:$0xff]   ;;  %v9111_v47 = vld [vmem:[%s14673_s4 + $0x5e4] ss:$68 sps:$4 sm:$0xff]  }
 0x22f   :  { %5143 = vmatprep.subr.bf16.mxu0 %v9057_v17  ;;  %5215 = vmatpush1.bf16.msra.mxu1 %v9058_v13  ;;  %v9103_v17 = vld [vmem:[%s14673_s4 + $0x668] ss:$68 sps:$4 sm:$0xff]   ;;  %v9108_v13 = vld [vmem:[%s14673_s4 + $0x234] ss:$68 sps:$4 sm:$0xff]   ;;  %v9118_v25 = vld [vmem:[%s14673_s4 + $0x120] ss:$68 sps:$4 sm:$0xff]  }
 0x230   :  { %5216 = vmatprep.subr.bf16.mxu1 %v9066_v63  ;;  %v9109_v63 = vld [vmem:[%s14673_s4 + $0x5e0] ss:$68 sps:$4 sm:$0xff]   ;;  %v9115_v52 = vld [vmem:[%s14673_s4 + $0x558] ss:$68 sps:$4 sm:$0xff]   ;;  %v9121_v12 = vld [vmem:[%s14673_s4 + $0x4d0] ss:$68 sps:$4 sm:$0xff]  }
 0x231   :  { %5038 = vmatmul.mubr.bf16.gmra.mxu1 %v11177_v23  ;;  %v9123_v58 = vld [vmem:[%s14673_s4 + $0x4d4] ss:$68 sps:$4 sm:$0xff]   ;;  %v9120_v59 = vld [vmem:[%s14673_s4 + $0x124] ss:$68 sps:$4 sm:$0xff]  }
 0x232   :  { %5144 = vmatpush1.bf16.msra.mxu0 %v9055_v7  ;;  %5047 = vmatprep.mubr.bf16.mxu1 %v11160_v1  ;;  %v9106_v7 = vld [vmem:[%s14673_s4 + $0x230] ss:$68 sps:$4 sm:$0xff]   ;;  %v9127_v43 = vld [vmem:[%s14673_s4 + $0x448] ss:$68 sps:$4 sm:$0xff]   ;;  %v9124_v14 = vld [vmem:[%s14673_s4 + $0x98] ss:$68 sps:$4 sm:$0xff]  }
 0x233   :  { %5145 = vmatprep.subr.bf16.mxu0 %v9063_v30  ;;  %5217 = vmatpush1.bf16.msra.mxu1 %v9064_v51  ;;  %v9117_v30 = vld [vmem:[%s14673_s4 + $0x55c] ss:$68 sps:$4 sm:$0xff]   ;;  %v9114_v51 = vld [vmem:[%s14673_s4 + $0x1ac] ss:$68 sps:$4 sm:$0xff]   ;;  %v9132_v61 = vld [vmem:[%s14673_s4 + $0x14] ss:$68 sps:$4 sm:$0xff]  }
 0x234   :  { %5218 = vmatprep.subr.bf16.mxu1 %v9072_v28  ;;  %v9129_v28 = vld [vmem:[%s14673_s4 + $0x44c] ss:$68 sps:$4 sm:$0xff]   ;;  %v9138_v36 = vld [vmem:[%s14673_s4 + $0x780] ss:$68 sps:$4 sm:$0xff]  }
 0x235   :  { %8349 = vmatmul.mubr.msk.bf16.gmra.mxu0 %vm2458_vm3, %v11105_v24  ;;  %v9141_v6 = vld [vmem:[%s14673_s4 + $0xab0] ss:$68 sps:$4 sm:$0xff]   ;;  %v9134_v48 = vld [vmem:[%s14673_s4 + $0x808] ss:$68 sps:$4 sm:$0xff]  }
 0x236   :  { %5146 = vmatpush1.bf16.msra.mxu0 %v9061_v18  ;;  %5128 = vmatprep.mubr.bf16.mxu0 %v14823_v33  ;;  %v9126_v18 = vld [vmem:[%s14673_s4 + $0x9c] ss:$68 sps:$4 sm:$0xff]  }
 0x237   :  { %5147 = vmatprep.subr.bf16.mxu0 %v9069_v37  ;;  %5219 = vmatpush1.bf16.msra.mxu1 %v9070_v15  ;;  %v3075_v37 = vld [vmem:[%s14673_s4 + $0xb38] sm:$0xff] }
 0x238   :  { %5220 = vmatprep.subr.bf16.mxu1 %v9078_v32  ;;  %v8333_v15 = vcombine.low %v3075_v37, %v3075_v37  ;;  %v8334_v32 = vcombine.high %v3075_v37, %v3075_v37  ;;  %v9188_v37 = vld [vmem:[%s14673_s4 + $0xab8] ss:$68 sps:$4 sm:$0xff]  }
 0x239   :  { %5048 = vmatmul.mubr.bf16.gmra.mxu1 %v11219_v3 }
 0x23a   :  { %5148 = vmatpush1.bf16.msra.mxu0 %v9067_v41  ;;  %5057 = vmatprep.mubr.bf16.mxu1 %v11226_v56  ;;  %v9130_v41 = vld [vmem:[%s14673_s4 + $0x10] ss:$68 sps:$4 sm:$0xff]   ;;  %v4957_v38 = vsel %vm4943_vm2, %v8333_v15, 0 }
 0x23b   :  { %5149 = vmatprep.subr.bf16.mxu0 %v9075_v60  ;;  %5221 = vmatpush1.bf16.msra.mxu1 %v9076_v22  ;;  %v9143_v60 = vld [vmem:[%s14673_s4 + $0xab4] ss:$68 sps:$4 sm:$0xff]   ;;  %v9136_v22 = vld [vmem:[%s14673_s4 + $0x80c] ss:$68 sps:$4 sm:$0xff]  }
 0x23c   :  { %5222 = vmatprep.subr.bf16.mxu1 %v9084_v4  ;;  %v9149_v4 = vld [vmem:[%s14673_s4 + $0xa2c] ss:$68 sps:$4 sm:$0xff]   ;;  %v9193_v15 = vld [vmem:[%s14673_s4 + $0x1b4] ss:$68 sps:$4 sm:$0xff]  }
 0x23d   :  { %8350 = vmatmul.mubr.msk.bf16.gmra.mxu0 %vm2458_vm3, %v11235_v0 }
 0x23e   :  { %5150 = vmatpush1.bf16.msra.mxu0 %v9073_v31  ;;  %5169 = vmatprep.mubr.bf16.mxu0 %v11119_v2  ;;  %v9140_v31 = vld [vmem:[%s14673_s4 + $0x784] ss:$68 sps:$4 sm:$0xff]  }
 0x23f   :  { %5151 = vmatprep.subr.bf16.mxu0 %v9081_v34  ;;  %5223 = vmatpush1.bf16.msra.mxu1 %v9082_v10  ;;  %v9147_v34 = vld [vmem:[%s14673_s4 + $0xa28] ss:$68 sps:$4 sm:$0xff]  }
 0x240   :  { %5279 = vmatprep.subr.bf16.mxu1 %v9090_v57  ;;  %v9155_v10 = vld [vmem:[%s14673_s4 + $0x9a4] ss:$68 sps:$4 sm:$0xff]   ;;  %v9146_v57 = vld [vmem:[%s14673_s4 + $0x6fc] ss:$68 sps:$4 sm:$0xff]  }
 0x241   :  { %5058 = vmatmul.mubr.bf16.gmra.mxu1 %v11257_v9 }
 0x242   :  { %5152 = vmatpush1.bf16.msra.mxu0 %v9079_v62  ;;  %5240 = vmatprep.mubr.bf16.mxu1 %v14823_v33  ;;  %v9153_v62 = vld [vmem:[%s14673_s4 + $0x9a0] ss:$68 sps:$4 sm:$0xff]  }
 0x243   :  { %5153 = vmatprep.subr.bf16.mxu0 %v9087_v39  ;;  %v9144_v39 = vld [vmem:[%s14673_s4 + $0x6f8] ss:$68 sps:$4 sm:$0xff]  }
 0x246   :  { %5154 = vmatpush2.bf16.msra.mxu0 %v9085_v49  ;;  %v9164_v49 = vld [vmem:[%s14673_s4 + $0x91c] ss:$68 sps:$4 sm:$0xff]  }
 0x247   :  { %5155 = vmatprep.subr.bf16.mxu0 %v9093_v35  ;;  %v9152_v35 = vld [vmem:[%s14673_s4 + $0x674] ss:$68 sps:$4 sm:$0xff]  }
 0x249   :  { %8352 = vmatmul.mubr.msk.bf16.vlgmr.msra.gmra.mxu1 %vm2458_vm3, %v11095_v55 }
 0x24a   :  { %5156 = vmatpush2.bf16.msra.mxu0 %v9091_v11  ;;  %5280 = vmatpush1.bf16.msra.mxu1 %v9088_v21  ;;  %v9162_v11 = vld [vmem:[%s14673_s4 + $0x918] ss:$68 sps:$4 sm:$0xff]   ;;  %v9150_v21 = vld [vmem:[%s14673_s4 + $0x670] ss:$68 sps:$4 sm:$0xff]  }
 0x24b   :  { %5157 = vmatprep.subr.bf16.mxu0 %v9099_v54  ;;  %5281 = vmatprep.subr.bf16.mxu1 %v9096_v20  ;;  %v9170_v54 = vld [vmem:[%s14673_s4 + $0x894] ss:$68 sps:$4 sm:$0xff]   ;;  %v9158_v20 = vld [vmem:[%s14673_s4 + $0x5ec] ss:$68 sps:$4 sm:$0xff]  }
 0x24c   :  { %5250 = vmatprep.mubr.bf16.mxu1 %v14823_v33 }
 0x24e   :  { %5158 = vmatpush2.bf16.msra.mxu0 %v9097_v45  ;;  %5282 = vmatpush1.bf16.msra.mxu1 %v9094_v44  ;;  %v9168_v45 = vld [vmem:[%s14673_s4 + $0x890] ss:$68 sps:$4 sm:$0xff]   ;;  %v9156_v44 = vld [vmem:[%s14673_s4 + $0x5e8] ss:$68 sps:$4 sm:$0xff]  }
 0x24f   :  { %5159 = vmatprep.subr.bf16.mxu0 %v9105_v53  ;;  %5283 = vmatprep.subr.bf16.mxu1 %v9102_v26  ;;  %v9176_v53 = vld [vmem:[%s14673_s4 + $0x3d4] ss:$68 sps:$4 sm:$0xff]   ;;  %v9161_v26 = vld [vmem:[%s14673_s4 + $0x564] ss:$68 sps:$4 sm:$0xff]  }
 0x251   :  { %8353 = vmatmul.mubr.msk.bf16.gmra.mxu1 %vm2458_vm3, %v11097_v8 }
 0x252   :  { %5160 = vmatpush2.bf16.msra.mxu0 %v9103_v17  ;;  %5284 = vmatpush1.bf16.msra.mxu1 %v9100_v46  ;;  %v9159_v17 = vld [vmem:[%s14673_s4 + $0x560] ss:$68 sps:$4 sm:$0xff]  }
 0x253   :  { %5161 = vmatprep.subr.bf16.mxu0 %v9111_v47  ;;  %5285 = vmatprep.subr.bf16.mxu1 %v9108_v13  ;;  %v9167_v46 = vld [vmem:[%s14673_s4 + $0x4dc] ss:$68 sps:$4 sm:$0xff]   ;;  %v9173_v13 = vld [vmem:[%s14673_s4 + $0x454] ss:$68 sps:$4 sm:$0xff]  }
 0x254   :  { %5260 = vmatprep.mubr.bf16.mxu1 %v14823_v33  ;;  %v9165_v47 = vld [vmem:[%s14673_s4 + $0x4d8] ss:$68 sps:$4 sm:$0xff]  }
 0x256   :  { %5162 = vmatpush2.bf16.msra.mxu0 %v9109_v63  ;;  %5286 = vmatpush1.bf16.msra.mxu1 %v9106_v7  ;;  %v3076_v63 = vld [vmem:[%s14673_s4 + $0xb40] sm:$0xff]  ;;  %v9174_v7 = vld [vmem:[%s14673_s4 + $0x3d0] ss:$68 sps:$4 sm:$0xff]  }
 0x257   :  { %5163 = vmatprep.subr.bf16.mxu0 %v9117_v30  ;;  %5287 = vmatprep.subr.bf16.mxu1 %v9114_v51  ;;  %v9171_v30 = vld [vmem:[%s14673_s4 + $0x450] ss:$68 sps:$4 sm:$0xff]  }
 0x258   :  { %v9179_v51 = vld [vmem:[%s14673_s4 + $0x34c] ss:$68 sps:$4 sm:$0xff]  }
 0x259   :  { %8354 = vmatmul.mubr.msk.bf16.gmra.mxu1 %vm2458_vm3, %v11105_v24 }
 0x25a   :  { %5164 = vmatpush2.bf16.msra.mxu0 %v9115_v52  ;;  %5288 = vmatpush1.bf16.msra.mxu1 %v9112_v27  ;;  %v8336_v52 = vcombine.high %v3076_v63, %v3076_v63  ;;  %v8335_v27 = vcombine.low %v3076_v63, %v3076_v63  ;;  %v9239_v63 = vld [vmem:[%s14673_s4 + $0x5f0] ss:$68 sps:$4 sm:$0xff]  }
 0x25b   :  { %5165 = vmatprep.subr.bf16.mxu0 %v9123_v58  ;;  %5289 = vmatprep.subr.bf16.mxu1 %v9120_v59  ;;  %v9177_v58 = vld [vmem:[%s14673_s4 + $0x348] ss:$68 sps:$4 sm:$0xff]  }
 0x25c   :  { %5270 = vmatprep.mubr.bf16.mxu1 %v14823_v33  ;;  %v9182_v59 = vld [vmem:[%s14673_s4 + $0x2c4] ss:$68 sps:$4 sm:$0xff]  }
 0x25e   :  { %5166 = vmatpush2.bf16.msra.mxu0 %v9121_v12  ;;  %5290 = vmatpush1.bf16.msra.mxu1 %v9118_v25  ;;  %v4963_v12 = vsel %vm4943_vm2, %v8335_v27, 0  ;;  %v9190_v25 = vld [vmem:[%s14673_s4 + $0xabc] ss:$68 sps:$4 sm:$0xff]  }
 0x25f   :  { %5167 = vmatprep.subr.bf16.mxu0 %v9129_v28  ;;  %5291 = vmatprep.subr.bf16.mxu1 %v9126_v18  ;;  %v9180_v28 = vld [vmem:[%s14673_s4 + $0x2c0] ss:$68 sps:$4 sm:$0xff]   ;;  %v9242_v27 = vld [vmem:[%s14673_s4 + $0x1b8] ss:$68 sps:$4 sm:$0xff]  }
 0x260   :  { %v9187_v18 = vld [vmem:[%s14673_s4 + $0x23c] ss:$68 sps:$4 sm:$0xff]  }
 0x261   :  { %8355 = vmatmul.mubr.msk.bf16.gmra.mxu1 %vm2458_vm3, %v11235_v0 }
 0x262   :  { %5168 = vmatpush2.bf16.msra.mxu0 %v9127_v43  ;;  %5292 = vmatpush1.bf16.msra.mxu1 %v9124_v14  ;;  %v9196_v43 = vld [vmem:[%s14673_s4 + $0xa34] ss:$68 sps:$4 sm:$0xff]  }
 0x263   :  { %5311 = vmatprep.mubr.bf16.mxu1 %v11119_v2  ;;  %5293 = vmatprep.subr.bf16.mxu1 %v9132_v61  ;;  %v9185_v14 = vld [vmem:[%s14673_s4 + $0x238] ss:$68 sps:$4 sm:$0xff]   ;;  %v9194_v61 = vld [vmem:[%s14673_s4 + $0xa30] ss:$68 sps:$4 sm:$0xff]  }
 0x264   :  { %8356 = vmatprep.subr.msk.bf16.mxu0 %vm4943_vm2, %v8334_v32  ;;  %v9202_v32 = vld [vmem:[%s14673_s4 + $0x9ac] ss:$68 sps:$4 sm:$0xff]  }
 0x265   :  { %5170 = vmatmul.mubr.bf16.vlgmr.msra.gmra.mxu0 %v11134_v5 }
 0x266   :  { %5179 = vmatprep.mubr.bf16.mxu0 %v11142_v19  ;;  %5355 = vmatpush1.bf16.msra.mxu0 %v4957_v38  ;;  %v9199_v38 = vld [vmem:[%s14673_s4 + $0x12c] ss:$68 sps:$4 sm:$0xff]  }
 0x267   :  { %5294 = vmatpush1.bf16.msra.mxu1 %v9130_v41  ;;  %5356 = vmatprep.subr.bf16.mxu0 %v9143_v60  ;;  %v9191_v41 = vld [vmem:[%s14673_s4 + $0x1b0] ss:$68 sps:$4 sm:$0xff]   ;;  %v9200_v60 = vld [vmem:[%s14673_s4 + $0x9a8] ss:$68 sps:$4 sm:$0xff]  }
 0x268   :  { %5295 = vmatprep.subr.bf16.mxu1 %v9136_v22  ;;  %v9208_v22 = vld [vmem:[%s14673_s4 + $0x924] ss:$68 sps:$4 sm:$0xff]  }
 0x26a   :  { %5357 = vmatpush1.bf16.msra.mxu0 %v9141_v6  ;;  %v9197_v6 = vld [vmem:[%s14673_s4 + $0x128] ss:$68 sps:$4 sm:$0xff]  }
 0x26b   :  { %5296 = vmatpush2.bf16.msra.mxu1 %v9134_v48  ;;  %5358 = vmatprep.subr.bf16.mxu0 %v9149_v4  ;;  %v9205_v48 = vld [vmem:[%s14673_s4 + $0xa4] ss:$68 sps:$4 sm:$0xff]  }
 0x26c   :  { %5297 = vmatprep.subr.bf16.mxu1 %v9140_v31  ;;  %v9206_v4 = vld [vmem:[%s14673_s4 + $0x920] ss:$68 sps:$4 sm:$0xff]  }
 0x26d   :  { %5180 = vmatmul.mubr.bf16.gmra.mxu0 %v11177_v23  ;;  %v9214_v31 = vld [vmem:[%s14673_s4 + $0x89c] ss:$68 sps:$4 sm:$0xff]  }
 0x26e   :  { %5189 = vmatprep.mubr.bf16.mxu0 %v11160_v1  ;;  %5359 = vmatpush1.bf16.msra.mxu0 %v9147_v34  ;;  %v9203_v34 = vld [vmem:[%s14673_s4 + $0xa0] ss:$68 sps:$4 sm:$0xff]  }
 0x26f   :  { %5298 = vmatpush2.bf16.msra.mxu1 %v9138_v36  ;;  %5360 = vmatprep.subr.bf16.mxu0 %v9155_v10  ;;  %v9211_v36 = vld [vmem:[%s14673_s4 + $0x1c] ss:$68 sps:$4 sm:$0xff]  }
 0x270   :  { %5299 = vmatprep.subr.bf16.mxu1 %v9146_v57  ;;  %v9212_v10 = vld [vmem:[%s14673_s4 + $0x898] ss:$68 sps:$4 sm:$0xff]  }
 0x271   :  { %v9220_v57 = vld [vmem:[%s14673_s4 + $0x3dc] ss:$68 sps:$4 sm:$0xff]  }
 0x272   :  { %5361 = vmatpush1.bf16.msra.mxu0 %v9153_v62  ;;  %v9209_v62 = vld [vmem:[%s14673_s4 + $0x18] ss:$68 sps:$4 sm:$0xff]  }
 0x273   :  { %5300 = vmatpush2.bf16.msra.mxu1 %v9144_v39  ;;  %5362 = vmatprep.subr.bf16.mxu0 %v9164_v49  ;;  %v9217_v39 = vld [vmem:[%s14673_s4 + $0x814] ss:$68 sps:$4 sm:$0xff]  }
 0x274   :  { %5301 = vmatprep.subr.bf16.mxu1 %v9152_v35  ;;  %v9215_v49 = vld [vmem:[%s14673_s4 + $0x810] ss:$68 sps:$4 sm:$0xff]  }
 0x275   :  { %5190 = vmatmul.mubr.bf16.gmra.mxu0 %v11219_v3  ;;  %v9223_v35 = vld [vmem:[%s14673_s4 + $0x78c] ss:$68 sps:$4 sm:$0xff]  }
 0x276   :  { %5199 = vmatprep.mubr.bf16.mxu0 %v11226_v56  ;;  %5363 = vmatpush1.bf16.msra.mxu0 %v9162_v11  ;;  %v9221_v11 = vld [vmem:[%s14673_s4 + $0x788] ss:$68 sps:$4 sm:$0xff]  }
 0x277   :  { %5302 = vmatpush2.bf16.msra.mxu1 %v9150_v21  ;;  %5364 = vmatprep.subr.bf16.mxu0 %v9170_v54  ;;  %v9218_v21 = vld [vmem:[%s14673_s4 + $0x3d8] ss:$68 sps:$4 sm:$0xff]   ;;  %v9229_v54 = vld [vmem:[%s14673_s4 + $0x704] ss:$68 sps:$4 sm:$0xff]  }
 0x278   :  { %5303 = vmatprep.subr.bf16.mxu1 %v9158_v20  ;;  %v9226_v20 = vld [vmem:[%s14673_s4 + $0x354] ss:$68 sps:$4 sm:$0xff]  }
 0x27a   :  { %5365 = vmatpush1.bf16.msra.mxu0 %v9168_v45  ;;  %v9227_v45 = vld [vmem:[%s14673_s4 + $0x700] ss:$68 sps:$4 sm:$0xff]  }
 0x27b   :  { %5304 = vmatpush2.bf16.msra.mxu1 %v9156_v44  ;;  %5421 = vmatprep.subr.bf16.mxu0 %v9176_v53  ;;  %v9224_v44 = vld [vmem:[%s14673_s4 + $0x350] ss:$68 sps:$4 sm:$0xff]   ;;  %v9235_v53 = vld [vmem:[%s14673_s4 + $0x67c] ss:$68 sps:$4 sm:$0xff]  }
 0x27c   :  { %5305 = vmatprep.subr.bf16.mxu1 %v9161_v26  ;;  %v9232_v26 = vld [vmem:[%s14673_s4 + $0x2cc] ss:$68 sps:$4 sm:$0xff]  }
 0x27d   :  { %5200 = vmatmul.mubr.bf16.gmra.mxu0 %v11257_v9 }
 0x27e   :  { %5382 = vmatprep.mubr.bf16.mxu0 %v14823_v33 }
 0x27f   :  { %5306 = vmatpush2.bf16.msra.mxu1 %v9159_v17  ;;  %v9233_v17 = vld [vmem:[%s14673_s4 + $0x678] ss:$68 sps:$4 sm:$0xff]  }
 0x280   :  { %5307 = vmatprep.subr.bf16.mxu1 %v9167_v46  ;;  %v9230_v46 = vld [vmem:[%s14673_s4 + $0x2c8] ss:$68 sps:$4 sm:$0xff]  }
 0x283   :  { %5308 = vmatpush2.bf16.msra.mxu1 %v9165_v47  ;;  %v9241_v47 = vld [vmem:[%s14673_s4 + $0x5f4] ss:$68 sps:$4 sm:$0xff]  }
 0x284   :  { %5309 = vmatprep.subr.bf16.mxu1 %v9173_v13  ;;  %v9238_v13 = vld [vmem:[%s14673_s4 + $0x244] ss:$68 sps:$4 sm:$0xff]  }
 0x285   :  { %8357 = vmatmul.mubr.msk.bf16.vlgmr.msra.gmra.mxu0 %vm2458_vm3, %v11095_v55 }
 0x286   :  { %5422 = vmatpush1.bf16.msra.mxu0 %v9174_v7  ;;  %5392 = vmatprep.mubr.bf16.mxu0 %v14823_v33  ;;  %v9236_v7 = vld [vmem:[%s14673_s4 + $0x240] ss:$68 sps:$4 sm:$0xff]  }
 0x287   :  { %5310 = vmatpush2.bf16.msra.mxu1 %v9171_v30  ;;  %5423 = vmatprep.subr.bf16.mxu0 %v9179_v51  ;;  %v9247_v30 = vld [vmem:[%s14673_s4 + $0x56c] ss:$68 sps:$4 sm:$0xff]   ;;  %v9244_v51 = vld [vmem:[%s14673_s4 + $0x1bc] ss:$68 sps:$4 sm:$0xff]  }
 0x288   :  { %8361 = vmatprep.subr.msk.bf16.mxu1 %vm4943_vm2, %v8336_v52  ;;  %v9245_v52 = vld [vmem:[%s14673_s4 + $0x568] ss:$68 sps:$4 sm:$0xff]  }
 0x28a   :  { %5312 = vmatmul.mubr.bf16.vlgmr.msra.gmra.mxu1 %v11134_v5  ;;  %5424 = vmatpush1.bf16.msra.mxu0 %v9177_v58  ;;  %v9253_v58 = vld [vmem:[%s14673_s4 + $0x4e4] ss:$68 sps:$4 sm:$0xff]  }
 0x28b   :  { %5321 = vmatprep.mubr.bf16.mxu1 %v11142_v19  ;;  %5425 = vmatprep.subr.bf16.mxu0 %v9182_v59  ;;  %v9250_v59 = vld [vmem:[%s14673_s4 + $0x134] ss:$68 sps:$4 sm:$0xff]  }
 0x28c   :  { %5497 = vmatpush1.bf16.msra.mxu1 %v4963_v12  ;;  %v9251_v12 = vld [vmem:[%s14673_s4 + $0x4e0] ss:$68 sps:$4 sm:$0xff]  }
 0x28d   :  { %8358 = vmatmul.mubr.msk.bf16.gmra.mxu0 %vm2458_vm3, %v11097_v8  ;;  %5498 = vmatprep.subr.bf16.mxu1 %v9190_v25  ;;  %v9248_v25 = vld [vmem:[%s14673_s4 + $0x130] ss:$68 sps:$4 sm:$0xff]  }
 0x28e   :  { %5426 = vmatpush1.bf16.msra.mxu0 %v9180_v28  ;;  %5402 = vmatprep.mubr.bf16.mxu0 %v14823_v33  ;;  %v9259_v28 = vld [vmem:[%s14673_s4 + $0x45c] ss:$68 sps:$4 sm:$0xff]  }
 0x28f   :  { %5427 = vmatprep.subr.bf16.mxu0 %v9187_v18  ;;  %v9256_v18 = vld [vmem:[%s14673_s4 + $0xac] ss:$68 sps:$4 sm:$0xff]  }
 0x290   :  { %5499 = vmatpush1.bf16.msra.mxu1 %v9188_v37  ;;  %v3077_v37 = vld [vmem:[%s14673_s4 + $0xb48] sm:$0xff] }
 0x291   :  { %5500 = vmatprep.subr.bf16.mxu1 %v9196_v43  ;;  %v9257_v43 = vld [vmem:[%s14673_s4 + $0x458] ss:$68 sps:$4 sm:$0xff]  }
 0x292   :  { %5322 = vmatmul.mubr.bf16.gmra.mxu1 %v11177_v23  ;;  %5428 = vmatpush1.bf16.msra.mxu0 %v9185_v14  ;;  %v9254_v14 = vld [vmem:[%s14673_s4 + $0xa8] ss:$68 sps:$4 sm:$0xff]  }
 0x293   :  { %5331 = vmatprep.mubr.bf16.mxu1 %v11160_v1  ;;  %5429 = vmatprep.subr.bf16.mxu0 %v9193_v15  ;;  %v8337_v15 = vcombine.low %v3077_v37, %v3077_v37 }
 0x294   :  { %5501 = vmatpush1.bf16.msra.mxu1 %v9194_v61  ;;  %v9262_v61 = vld [vmem:[%s14673_s4 + $0x24] ss:$68 sps:$4 sm:$0xff]  }
 0x295   :  { %8359 = vmatmul.mubr.msk.bf16.gmra.mxu0 %vm2458_vm3, %v11105_v24  ;;  %5502 = vmatprep.subr.bf16.mxu1 %v9202_v32  ;;  %v8338_v32 = vcombine.high %v3077_v37, %v3077_v37  ;;  %v9320_v37 = vld [vmem:[%s14673_s4 + $0xacc] ss:$68 sps:$4 sm:$0xff]  }
 0x296   :  { %5430 = vmatpush1.bf16.msra.mxu0 %v9191_v41  ;;  %5412 = vmatprep.mubr.bf16.mxu0 %v14823_v33  ;;  %v9260_v41 = vld [vmem:[%s14673_s4 + $0x20] ss:$68 sps:$4 sm:$0xff]  }
 0x297   :  { %5431 = vmatprep.subr.bf16.mxu0 %v9199_v38  ;;  %v4969_v38 = vsel %vm4943_vm2, %v8337_v15, 0 }
 0x298   :  { %5503 = vmatpush1.bf16.msra.mxu1 %v9200_v60  ;;  %v9273_v60 = vld [vmem:[%s14673_s4 + $0xac4] ss:$68 sps:$4 sm:$0xff]  }
 0x299   :  { %5504 = vmatprep.subr.bf16.mxu1 %v9208_v22  ;;  %v9266_v22 = vld [vmem:[%s14673_s4 + $0x81c] ss:$68 sps:$4 sm:$0xff]  }
 0x29a   :  { %5332 = vmatmul.mubr.bf16.gmra.mxu1 %v11219_v3  ;;  %5432 = vmatpush1.bf16.msra.mxu0 %v9197_v6  ;;  %v9271_v6 = vld [vmem:[%s14673_s4 + $0xac0] ss:$68 sps:$4 sm:$0xff]  }
 0x29b   :  { %5341 = vmatprep.mubr.bf16.mxu1 %v11226_v56  ;;  %5433 = vmatprep.subr.bf16.mxu0 %v9205_v48  ;;  %v9264_v48 = vld [vmem:[%s14673_s4 + $0x818] ss:$68 sps:$4 sm:$0xff]  }
 0x29c   :  { %5505 = vmatpush1.bf16.msra.mxu1 %v9206_v4  ;;  %v9279_v4 = vld [vmem:[%s14673_s4 + $0xa3c] ss:$68 sps:$4 sm:$0xff]  }
 0x29d   :  { %8360 = vmatmul.mubr.msk.bf16.gmra.mxu0 %vm2458_vm3, %v11235_v0  ;;  %5506 = vmatprep.subr.bf16.mxu1 %v9214_v31  ;;  %v9270_v31 = vld [vmem:[%s14673_s4 + $0x794] ss:$68 sps:$4 sm:$0xff]  }
 0x29e   :  { %5434 = vmatpush1.bf16.msra.mxu0 %v9203_v34  ;;  %5453 = vmatprep.mubr.bf16.mxu0 %v11119_v2  ;;  %v9277_v34 = vld [vmem:[%s14673_s4 + $0xa38] ss:$68 sps:$4 sm:$0xff]  }
 0x29f   :  { %5435 = vmatprep.subr.bf16.mxu0 %v9211_v36  ;;  %v9268_v36 = vld [vmem:[%s14673_s4 + $0x790] ss:$68 sps:$4 sm:$0xff]  }
 0x2a0   :  { %5507 = vmatpush1.bf16.msra.mxu1 %v9212_v10  ;;  %v9285_v10 = vld [vmem:[%s14673_s4 + $0x9b4] ss:$68 sps:$4 sm:$0xff]  }
 0x2a1   :  { %5563 = vmatprep.subr.bf16.mxu1 %v9220_v57  ;;  %v9276_v57 = vld [vmem:[%s14673_s4 + $0x70c] ss:$68 sps:$4 sm:$0xff]  }
 0x2a2   :  { %5342 = vmatmul.mubr.bf16.gmra.mxu1 %v11257_v9  ;;  %5436 = vmatpush1.bf16.msra.mxu0 %v9209_v62  ;;  %v9283_v62 = vld [vmem:[%s14673_s4 + $0x9b0] ss:$68 sps:$4 sm:$0xff]  }
 0x2a3   :  { %5437 = vmatprep.subr.bf16.mxu0 %v9217_v39  ;;  %5524 = vmatprep.mubr.bf16.mxu1 %v14823_v33  ;;  %v9274_v39 = vld [vmem:[%s14673_s4 + $0x708] ss:$68 sps:$4 sm:$0xff]  }
 0x2a6   :  { %5438 = vmatpush2.bf16.msra.mxu0 %v9215_v49  ;;  %v9294_v49 = vld [vmem:[%s14673_s4 + $0x92c] ss:$68 sps:$4 sm:$0xff]  }
 0x2a7   :  { %5439 = vmatprep.subr.bf16.mxu0 %v9223_v35  ;;  %v9282_v35 = vld [vmem:[%s14673_s4 + $0x684] ss:$68 sps:$4 sm:$0xff]  }
 0x2aa   :  { %8362 = vmatmul.mubr.msk.bf16.vlgmr.msra.gmra.mxu1 %vm2458_vm3, %v11095_v55  ;;  %5440 = vmatpush2.bf16.msra.mxu0 %v9221_v11  ;;  %v9292_v11 = vld [vmem:[%s14673_s4 + $0x928] ss:$68 sps:$4 sm:$0xff]  }
 0x2ab   :  { %5564 = vmatpush1.bf16.msra.mxu1 %v9218_v21  ;;  %5441 = vmatprep.subr.bf16.mxu0 %v9229_v54  ;;  %v9280_v21 = vld [vmem:[%s14673_s4 + $0x680] ss:$68 sps:$4 sm:$0xff]  }
 0x2ac   :  { %5565 = vmatprep.subr.bf16.mxu1 %v9226_v20  ;;  %5534 = vmatprep.mubr.bf16.mxu1 %v14823_v33  ;;  %v9300_v54 = vld [vmem:[%s14673_s4 + $0x8a4] ss:$68 sps:$4 sm:$0xff]   ;;  %v9288_v20 = vld [vmem:[%s14673_s4 + $0x5fc] ss:$68 sps:$4 sm:$0xff]  }
 0x2ae   :  { %5442 = vmatpush2.bf16.msra.mxu0 %v9227_v45  ;;  %v9298_v45 = vld [vmem:[%s14673_s4 + $0x8a0] ss:$68 sps:$4 sm:$0xff]  }
 0x2af   :  { %5566 = vmatpush1.bf16.msra.mxu1 %v9224_v44  ;;  %5443 = vmatprep.subr.bf16.mxu0 %v9235_v53  ;;  %v9286_v44 = vld [vmem:[%s14673_s4 + $0x5f8] ss:$68 sps:$4 sm:$0xff]   ;;  %v9306_v53 = vld [vmem:[%s14673_s4 + $0x3e4] ss:$68 sps:$4 sm:$0xff]  }
 0x2b0   :  { %5567 = vmatprep.subr.bf16.mxu1 %v9232_v26  ;;  %v9291_v26 = vld [vmem:[%s14673_s4 + $0x574] ss:$68 sps:$4 sm:$0xff]  }
 0x2b2   :  { %8363 = vmatmul.mubr.msk.bf16.gmra.mxu1 %vm2458_vm3, %v11097_v8  ;;  %5444 = vmatpush2.bf16.msra.mxu0 %v9233_v17  ;;  %v9289_v17 = vld [vmem:[%s14673_s4 + $0x570] ss:$68 sps:$4 sm:$0xff]  }
 0x2b3   :  { %5568 = vmatpush1.bf16.msra.mxu1 %v9230_v46  ;;  %5445 = vmatprep.subr.bf16.mxu0 %v9241_v47  ;;  %v9297_v46 = vld [vmem:[%s14673_s4 + $0x4ec] ss:$68 sps:$4 sm:$0xff]  }
 0x2b4   :  { %5569 = vmatprep.subr.bf16.mxu1 %v9238_v13  ;;  %5544 = vmatprep.mubr.bf16.mxu1 %v14823_v33  ;;  %v9295_v47 = vld [vmem:[%s14673_s4 + $0x4e8] ss:$68 sps:$4 sm:$0xff]  }
 0x2b5   :  { %v9303_v13 = vld [vmem:[%s14673_s4 + $0x464] ss:$68 sps:$4 sm:$0xff]  }
 0x2b6   :  { %5446 = vmatpush2.bf16.msra.mxu0 %v9239_v63  ;;  %v3078_v63 = vld [vmem:[%s14673_s4 + $0xb50] sm:$0xff] }
 0x2b7   :  { %5570 = vmatpush1.bf16.msra.mxu1 %v9236_v7  ;;  %5447 = vmatprep.subr.bf16.mxu0 %v9247_v30  ;;  %v9304_v7 = vld [vmem:[%s14673_s4 + $0x3e0] ss:$68 sps:$4 sm:$0xff]  }
 0x2b8   :  { %5571 = vmatprep.subr.bf16.mxu1 %v9244_v51  ;;  %v9301_v30 = vld [vmem:[%s14673_s4 + $0x460] ss:$68 sps:$4 sm:$0xff]  }
 0x2b9   :  { %v9309_v51 = vld [vmem:[%s14673_s4 + $0x35c] ss:$68 sps:$4 sm:$0xff]  }
 0x2ba   :  { %8364 = vmatmul.mubr.msk.bf16.gmra.mxu1 %vm2458_vm3, %v11105_v24  ;;  %5448 = vmatpush2.bf16.msra.mxu0 %v9245_v52  ;;  %v8340_v52 = vcombine.high %v3078_v63, %v3078_v63 }
 0x2bb   :  { %5572 = vmatpush1.bf16.msra.mxu1 %v9242_v27  ;;  %5449 = vmatprep.subr.bf16.mxu0 %v9253_v58  ;;  %v8339_v58 = vcombine.low %v3078_v63, %v3078_v63 }
 0x2bc   :  { %5573 = vmatprep.subr.bf16.mxu1 %v9250_v59  ;;  %5554 = vmatprep.mubr.bf16.mxu1 %v14823_v33  ;;  %v9307_v59 = vld [vmem:[%s14673_s4 + $0x358] ss:$68 sps:$4 sm:$0xff]  }
 0x2be   :  { %5450 = vmatpush2.bf16.msra.mxu0 %v9251_v12 }
 0x2bf   :  { %5574 = vmatpush1.bf16.msra.mxu1 %v9248_v25  ;;  %5451 = vmatprep.subr.bf16.mxu0 %v9259_v28  ;;  %v9312_v25 = vld [vmem:[%s14673_s4 + $0x2d4] ss:$68 sps:$4 sm:$0xff]  }
 0x2c0   :  { %5575 = vmatprep.subr.bf16.mxu1 %v9256_v18  ;;  %v4975_v18 = vsel %vm4943_vm2, %v8339_v58, 0 }
 0x2c2   :  { %8365 = vmatmul.mubr.msk.bf16.gmra.mxu1 %vm2458_vm3, %v11235_v0  ;;  %5452 = vmatpush2.bf16.msra.mxu0 %v9257_v43 }
 0x2c3   :  { %5576 = vmatpush1.bf16.msra.mxu1 %v9254_v14  ;;  %5595 = vmatprep.mubr.bf16.mxu1 %v11119_v2  ;;  %v9310_v14 = vld [vmem:[%s14673_s4 + $0x2d0] ss:$68 sps:$4 sm:$0xff]  }
 0x2c4   :  { %5577 = vmatprep.subr.bf16.mxu1 %v9262_v61  ;;  %8366 = vmatprep.subr.msk.bf16.mxu0 %vm4943_vm2, %v8338_v32  ;;  %v9317_v32 = vld [vmem:[%s14673_s4 + $0x24c] ss:$68 sps:$4 sm:$0xff]  }
 0x2c5   :  { %5454 = vmatmul.mubr.bf16.vlgmr.msra.gmra.mxu0 %v11134_v5 }
 0x2c6   :  { %5463 = vmatprep.mubr.bf16.mxu0 %v11142_v19  ;;  %5639 = vmatpush1.bf16.msra.mxu0 %v4969_v38  ;;  %v9318_v38 = vld [vmem:[%s14673_s4 + $0xac8] ss:$68 sps:$4 sm:$0xff]  }
 0x2c7   :  { %5578 = vmatpush1.bf16.msra.mxu1 %v9260_v41  ;;  %5640 = vmatprep.subr.bf16.mxu0 %v9273_v60 }
 0x2c8   :  { %5579 = vmatprep.subr.bf16.mxu1 %v9266_v22 }
 0x2ca   :  { %5641 = vmatpush1.bf16.msra.mxu0 %v9271_v6  ;;  %v9326_v6 = vld [vmem:[%s14673_s4 + $0xa44] ss:$68 sps:$4 sm:$0xff]  }
 0x2cb   :  { %5580 = vmatpush2.bf16.msra.mxu1 %v9264_v48  ;;  %5642 = vmatprep.subr.bf16.mxu0 %v9279_v4  ;;  %v9315_v4 = vld [vmem:[%s14673_s4 + $0x248] ss:$68 sps:$4 sm:$0xff]  }
 0x2cc   :  { %5581 = vmatprep.subr.bf16.mxu1 %v9270_v31 }
 0x2cd   :  { %5464 = vmatmul.mubr.bf16.gmra.mxu0 %v11177_v23 }
 0x2ce   :  { %5473 = vmatprep.mubr.bf16.mxu0 %v11160_v1  ;;  %5643 = vmatpush1.bf16.msra.mxu0 %v9277_v34 }
 0x2cf   :  { %5582 = vmatpush2.bf16.msra.mxu1 %v9268_v36  ;;  %5644 = vmatprep.subr.bf16.mxu0 %v9285_v10  ;;  %v9323_v36 = vld [vmem:[%s14673_s4 + $0x1c4] ss:$68 sps:$4 sm:$0xff]  }
 0x2d0   :  { %5583 = vmatprep.subr.bf16.mxu1 %v9276_v57  ;;  %v9324_v57 = vld [vmem:[%s14673_s4 + $0xa40] ss:$68 sps:$4 sm:$0xff]  }
 0x2d2   :  { %5645 = vmatpush1.bf16.msra.mxu0 %v9283_v62 }
 0x2d3   :  { %5584 = vmatpush2.bf16.msra.mxu1 %v9274_v39  ;;  %5646 = vmatprep.subr.bf16.mxu0 %v9294_v49 }
 0x2d4   :  { %5585 = vmatprep.subr.bf16.mxu1 %v9282_v35  ;;  %v9332_v35 = vld [vmem:[%s14673_s4 + $0x9bc] ss:$68 sps:$4 sm:$0xff]  }
 0x2d5   :  { %5474 = vmatmul.mubr.bf16.gmra.mxu0 %v11219_v3 }
 0x2d6   :  { %5483 = vmatprep.mubr.bf16.mxu0 %v11226_v56  ;;  %5647 = vmatpush1.bf16.msra.mxu0 %v9292_v11 }
 0x2d7   :  { %5586 = vmatpush2.bf16.msra.mxu1 %v9280_v21  ;;  %5648 = vmatprep.subr.bf16.mxu0 %v9300_v54  ;;  %v9321_v21 = vld [vmem:[%s14673_s4 + $0x1c0] ss:$68 sps:$4 sm:$0xff]  }
 0x2d8   :  { %5587 = vmatprep.subr.bf16.mxu1 %v9288_v20 }
 0x2da   :  { %5649 = vmatpush1.bf16.msra.mxu0 %v9298_v45  ;;  %v9329_v45 = vld [vmem:[%s14673_s4 + $0x13c] ss:$68 sps:$4 sm:$0xff]  }
 0x2db   :  { %5588 = vmatpush2.bf16.msra.mxu1 %v9286_v44  ;;  %5705 = vmatprep.subr.bf16.mxu0 %v9306_v53  ;;  %v9330_v53 = vld [vmem:[%s14673_s4 + $0x9b8] ss:$68 sps:$4 sm:$0xff]  }
 0x2dc   :  { %5589 = vmatprep.subr.bf16.mxu1 %v9291_v26 }
 0x2dd   :  { %5484 = vmatmul.mubr.bf16.gmra.mxu0 %v11257_v9 }
 0x2de   :  { %5666 = vmatprep.mubr.bf16.mxu0 %v14823_v33 }
 0x2df   :  { %5590 = vmatpush2.bf16.msra.mxu1 %v9289_v17 }
 0x2e0   :  { %5591 = vmatprep.subr.bf16.mxu1 %v9297_v46 }
 0x2e3   :  { %5592 = vmatpush2.bf16.msra.mxu1 %v9295_v47 }
 0x2e4   :  { %5593 = vmatprep.subr.bf16.mxu1 %v9303_v13  ;;  %v9338_v13 = vld [vmem:[%s14673_s4 + $0x934] ss:$68 sps:$4 sm:$0xff]  }
 0x2e5   :  { %8367 = vmatmul.mubr.msk.bf16.vlgmr.msra.gmra.mxu0 %vm2458_vm3, %v11095_v55  ;;  %v5100_v27 = vpop.f32.mrf.mxu0 }
 0x2e6   :  { %5706 = vmatpush1.bf16.msra.mxu0 %v9304_v7  ;;  %5676 = vmatprep.mubr.bf16.mxu0 %v14823_v33  ;;  %v9327_v7 = vld [vmem:[%s14673_s4 + $0x138] ss:$68 sps:$4 sm:$0xff]  }
 0x2e7   :  { %5594 = vmatpush2.bf16.msra.mxu1 %v9301_v30  ;;  %5707 = vmatprep.subr.bf16.mxu0 %v9309_v51  ;;  %v5102_v12 = vpop.f32.mrf.mxu0 }
 0x2e8   :  { %8371 = vmatprep.subr.msk.bf16.mxu1 %vm4943_vm2, %v8340_v52 }
 0x2e9   :  { %v5104_v28 = vpop.f32.mrf.mxu0  ;;  %v5029_v43 = vpop.f32.mrf.mxu1 }
 0x2ea   :  { %5596 = vmatmul.mubr.bf16.vlgmr.msra.gmra.mxu1 %v11134_v5  ;;  %5708 = vmatpush1.bf16.msra.mxu0 %v9307_v59  ;;  %v11787_v15 = vadd.f32 %v5100_v27, %v5029_v43  ;;  %v9335_v27 = vld [vmem:[%s14673_s4 + $0xb4] ss:$68 sps:$4 sm:$0xff]  }
 0x2eb   :  { %5605 = vmatprep.mubr.bf16.mxu1 %v11142_v19  ;;  %5709 = vmatprep.subr.bf16.mxu0 %v9312_v25  ;;  %v5106_v61 = vpop.f32.mrf.mxu0  ;;  %v5031_v41 = vpop.f32.mrf.mxu1  ;;  %v9336_v59 = vld [vmem:[%s14673_s4 + $0x930] ss:$68 sps:$4 sm:$0xff]  }
 0x2ec   :  { %5781 = vmatpush1.bf16.msra.mxu1 %v4975_v18  ;;  %v11795_v60 = vadd.f32 %v5102_v12, %v5031_v41  ;;  %v9344_v18 = vld [vmem:[%s14673_s4 + $0x8ac] ss:$68 sps:$4 sm:$0xff]  }
 0x2ed   :  { %8368 = vmatmul.mubr.msk.bf16.gmra.mxu0 %vm2458_vm3, %v11097_v8  ;;  %v5110_v22 = vpop.f32.mrf.mxu0  ;;  %5782 = vmatprep.subr.bf16.mxu1 %v9320_v37  ;;  %v5033_v48 = vpop.f32.mrf.mxu1  ;;  %v9333_v43 = vld [vmem:[%s14673_s4 + $0xb0] ss:$68 sps:$4 sm:$0xff]  }
 0x2ee   :  { %5710 = vmatpush1.bf16.msra.mxu0 %v9310_v14  ;;  %5686 = vmatprep.mubr.bf16.mxu0 %v14823_v33  ;;  %v11806_v31 = vadd.f32 %v5104_v28, %v5033_v48 }
 0x2ef   :  { %5711 = vmatprep.subr.bf16.mxu0 %v9317_v32  ;;  %v5112_v34 = vpop.f32.mrf.mxu0  ;;  %v5035_v10 = vpop.f32.mrf.mxu1  ;;  %v9341_v32 = vld [vmem:[%s14673_s4 + $0x2c] ss:$68 sps:$4 sm:$0xff]  }
 0x2f0   :  { %5783 = vmatpush1.bf16.msra.mxu1 %v9318_v38  ;;  %v6259_v62 = vadd.f32 %v11806_v31, %v11787_v15  ;;  %v11816_v39 = vadd.f32 %v5106_v61, %v5035_v10  ;;  %v9342_v38 = vld [vmem:[%s14673_s4 + $0x8a8] ss:$68 sps:$4 sm:$0xff]  }
 0x2f1   :  { %v5114_v49 = vpop.f32.mrf.mxu0  ;;  %5784 = vmatprep.subr.bf16.mxu1 %v9326_v6  ;;  %v5039_v11 = vpop.f32.mrf.mxu1  ;;  %v9339_v10 = vld [vmem:[%s14673_s4 + $0x28] ss:$68 sps:$4 sm:$0xff]  }
 0x2f2   :  { %5606 = vmatmul.mubr.bf16.gmra.mxu1 %v11177_v23  ;;  %5712 = vmatpush1.bf16.msra.mxu0 %v9315_v4  ;;  %v11826_v54 = vadd.f32 %v5110_v22, %v5039_v11  ;;  %v6272_v26 = vadd.f32 %v11816_v39, %v11795_v60 }
 0x2f3   :  { %5615 = vmatprep.mubr.bf16.mxu1 %v11160_v1  ;;  %5713 = vmatprep.subr.bf16.mxu0 %v9323_v36  ;;  %v5116_v20 = vpop.f32.mrf.mxu0  ;;  %v5041_v44 = vpop.f32.mrf.mxu1 }
 0x2f4   :  { %5785 = vmatpush1.bf16.msra.mxu1 %v9324_v57  ;;  %v6260_v17 = vadd.f32 %v6259_v62, %v11826_v54  ;;  %v11837_v46 = vadd.f32 %v5112_v34, %v5041_v44  ;;  %v9350_v34 = vld [vmem:[%s14673_s4 + $0x3ec] ss:$68 sps:$4 sm:$0xff]  }
 0x2f5   :  { %8369 = vmatmul.mubr.msk.bf16.gmra.mxu0 %vm2458_vm3, %v11105_v24  ;;  %v5120_v47 = vpop.f32.mrf.mxu0  ;;  %5786 = vmatprep.subr.bf16.mxu1 %v9332_v35  ;;  %v5043_v63 = vpop.f32.mrf.mxu1  ;;  %v9347_v35 = vld [vmem:[%s14673_s4 + $0x824] ss:$68 sps:$4 sm:$0xff]  }
 0x2f6   :  { %5714 = vmatpush1.bf16.msra.mxu0 %v9321_v21  ;;  %5696 = vmatprep.mubr.bf16.mxu0 %v14823_v33  ;;  %v6273_v30 = vadd.f32 %v6272_v26, %v11837_v46  ;;  %v11849_v51 = vadd.f32 %v5114_v49, %v5043_v63 }
 0x2f7   :  { %5715 = vmatprep.subr.bf16.mxu0 %v9329_v45  ;;  %v5122_v52 = vpop.f32.mrf.mxu0  ;;  %v5045_v58 = vpop.f32.mrf.mxu1 }
 0x2f8   :  { %5787 = vmatpush1.bf16.msra.mxu1 %v9330_v53  ;;  %v6261_v12 = vadd.f32 %v6260_v17, %v11849_v51  ;;  %v11858_v25 = vadd.f32 %v5116_v20, %v5045_v58  ;;  %v9345_v53 = vld [vmem:[%s14673_s4 + $0x820] ss:$68 sps:$4 sm:$0xff]   ;;  %v9351_v58 = vld [vmem:[%s14673_s4 + $0x798] ss:$68 sps:$4 sm:$0xff]  }
 0x2f9   :  { %v5124_v28 = vpop.f32.mrf.mxu0  ;;  %5788 = vmatprep.subr.bf16.mxu1 %v9338_v13  ;;  %v5049_v37 = vpop.f32.mrf.mxu1 }
 0x2fa   :  { %5616 = vmatmul.mubr.bf16.gmra.mxu1 %v11219_v3  ;;  %5716 = vmatpush1.bf16.msra.mxu0 %v9327_v7  ;;  %v11868_v14 = vadd.f32 %v5120_v47, %v5049_v37  ;;  %v6274_v22 = vadd.f32 %v6273_v30, %v11858_v25  ;;  %v9353_v47 = vld [vmem:[%s14673_s4 + $0x79c] ss:$68 sps:$4 sm:$0xff]  }
 0x2fb   :  { %5625 = vmatprep.mubr.bf16.mxu1 %v11226_v56  ;;  %5717 = vmatprep.subr.bf16.mxu0 %v9335_v27  ;;  %v5126_v61 = vpop.f32.mrf.mxu0  ;;  %v5051_v41 = vpop.f32.mrf.mxu1 }
 0x2fc   :  { %5789 = vmatpush1.bf16.msra.mxu1 %v9336_v59  ;;  %v6262_v6 = vadd.f32 %v6261_v12, %v11868_v14  ;;  %v11878_v48 = vadd.f32 %v5122_v52, %v5051_v41  ;;  %v9348_v12 = vld [vmem:[%s14673_s4 + $0x3e8] ss:$68 sps:$4 sm:$0xff]  }
 0x2fd   :  { %8370 = vmatmul.mubr.msk.bf16.gmra.mxu0 %vm2458_vm3, %v11235_v0  ;;  %v5130_v4 = vpop.f32.mrf.mxu0  ;;  %5790 = vmatprep.subr.bf16.mxu1 %v9344_v18  ;;  %v5053_v36 = vpop.f32.mrf.mxu1 }
 0x2fe   :  { %5718 = vmatpush1.bf16.msra.mxu0 %v9333_v43  ;;  %5737 = vmatprep.mubr.bf16.mxu0 %v11119_v2  ;;  %v6275_v57 = vadd.f32 %v6274_v22, %v11878_v48  ;;  %v11890_v62 = vadd.f32 %v5124_v28, %v5053_v36  ;;  %v9359_v28 = vld [vmem:[%s14673_s4 + $0x714] ss:$68 sps:$4 sm:$0xff]  }
 0x2ff   :  { %5719 = vmatprep.subr.bf16.mxu0 %v9341_v32  ;;  %v5132_v49 = vpop.f32.mrf.mxu0  ;;  %v5055_v11 = vpop.f32.mrf.mxu1  ;;  %v9357_v22 = vld [vmem:[%s14673_s4 + $0x710] ss:$68 sps:$4 sm:$0xff]  }
 0x300   :  { %5791 = vmatpush1.bf16.msra.mxu1 %v9342_v38  ;;  %v6263_v21 = vadd.f32 %v6262_v6, %v11890_v62  ;;  %v11896_v45 = vadd.f32 %v5126_v61, %v5055_v11  ;;  %v9356_v61 = vld [vmem:[%s14673_s4 + $0x364] ss:$68 sps:$4 sm:$0xff]  }
 0x301   :  { %v5134_v20 = vpop.f32.mrf.mxu0  ;;  %5847 = vmatprep.subr.bf16.mxu1 %v9350_v34  ;;  %v5059_v44 = vpop.f32.mrf.mxu1  ;;  %v9354_v6 = vld [vmem:[%s14673_s4 + $0x360] ss:$68 sps:$4 sm:$0xff]  }
 0x302   :  { %5626 = vmatmul.mubr.bf16.gmra.mxu1 %v11257_v9  ;;  %5720 = vmatpush1.bf16.msra.mxu0 %v9339_v10  ;;  %v11902_v26 = vadd.f32 %v5130_v4, %v5059_v44  ;;  %v6276_v30 = vadd.f32 %v6275_v57, %v11896_v45  ;;  %v9365_v4 = vld [vmem:[%s14673_s4 + $0x68c] ss:$68 sps:$4 sm:$0xff]   ;;  %v9362_v57 = vld [vmem:[%s14673_s4 + $0x2dc] ss:$68 sps:$4 sm:$0xff]   ;;  %v9371_v44 = vld [vmem:[%s14673_s4 + $0x604] ss:$68 sps:$4 sm:$0xff]  }
 0x303   :  { %5721 = vmatprep.subr.bf16.mxu0 %v9347_v35  ;;  %v5135_v17 = vpop.f32.mrf.mxu0  ;;  %5808 = vmatprep.mubr.bf16.mxu1 %v14823_v33  ;;  %v5061_v13 = vpop.f32.mrf.mxu1  ;;  %v9360_v20 = vld [vmem:[%s14673_s4 + $0x2d8] ss:$68 sps:$4 sm:$0xff]  }
 0x304   :  { %v6264_v63 = vsel %vm2436_vm1, %v11902_v26, 0.0  ;;  %v11910_v7 = vadd.f32 %v5132_v49, %v5061_v13  ;;  %v9368_v13 = vld [vmem:[%s14673_s4 + $0x254] ss:$68 sps:$4 sm:$0xff]  }
 0x305   :  { %v6265_v52 = vadd.f32 %v6264_v63, %v6263_v21  ;;  %v5063_v27 = vpop.f32.mrf.mxu1  ;;  %v9363_v21 = vld [vmem:[%s14673_s4 + $0x688] ss:$68 sps:$4 sm:$0xff]  }
 0x306   :  { %5722 = vmatpush2.bf16.msra.mxu0 %v9345_v53  ;;  %v6277_v59 = vsel %vm2436_vm1, %v11910_v7, 0.0  ;;  %v9369_v27 = vld [vmem:[%s14673_s4 + $0x600] ss:$68 sps:$4 sm:$0xff]  }
 0x307   :  { %5723 = vmatprep.subr.bf16.mxu0 %v9353_v47  ;;  %v6266_v18 = vrot.slane %v6265_v52, 4  ;;  %v6278_v37 = vadd.f32 %v6277_v59, %v6276_v30  ;;  %v5064_v43 = vpop.f32.mrf.mxu1  ;;  %v9377_v59 = vld [vmem:[%s14673_s4 + $0x57c] ss:$68 sps:$4 sm:$0xff]  }
 0x309   :  { %v6267_v32 = vadd.f32 %v6266_v18, %v6265_v52  ;;  %v6279_v41 = vrot.slane %v6278_v37, 4  ;;  %v11929_v38 = vpop.f32.mrf.mxu1 }
 0x30a   :  { %8372 = vmatmul.mubr.msk.bf16.vlgmr.msra.gmra.mxu1 %vm2458_vm3, %v11095_v55  ;;  %5724 = vmatpush2.bf16.msra.mxu0 %v9351_v58  ;;  %v9366_v58 = vld [vmem:[%s14673_s4 + $0x250] ss:$68 sps:$4 sm:$0xff]  }
 0x30b   :  { %5848 = vmatpush1.bf16.msra.mxu1 %v9348_v12  ;;  %5725 = vmatprep.subr.bf16.mxu0 %v9359_v28  ;;  %v6268_v34 = vrot.slane %v6267_v32, 2  ;;  %v6280_v36 = vadd.f32 %v6279_v41, %v6278_v37  ;;  %v11940_v10 = vpop.f32.mrf.mxu1  ;;  %v9374_v37 = vld [vmem:[%s14673_s4 + $0x1cc] ss:$68 sps:$4 sm:$0xff]  }
 0x30c   :  { %5849 = vmatprep.subr.bf16.mxu1 %v9356_v61  ;;  %5818 = vmatprep.mubr.bf16.mxu1 %v14823_v33 }
 0x30d   :  { %v6269_v49 = vadd.f32 %v6268_v34, %v6267_v32  ;;  %v6281_v35 = vrot.slane %v6280_v36, 2  ;;  %v11946_v11 = vpop.f32.mrf.mxu1  ;;  %v9380_v34 = vld [vmem:[%s14673_s4 + $0x144] ss:$68 sps:$4 sm:$0xff]  }
 0x30e   :  { %5726 = vmatpush2.bf16.msra.mxu0 %v9357_v22 }
 0x30f   :  { %5850 = vmatpush1.bf16.msra.mxu1 %v9354_v6  ;;  %5727 = vmatprep.subr.bf16.mxu0 %v9365_v4  ;;  %v6270_v53 = vrot.slane %v6269_v49, 1  ;;  %v6282_v17 = vadd.f32 %v6281_v35, %v6280_v36  ;;  %v11957_v47 = vpop.f32.mrf.mxu1 }
 0x310   :  { %5851 = vmatprep.subr.bf16.mxu1 %v9362_v57  ;;  %v9383_v57 = vld [vmem:[%s14673_s4 + $0x4f4] ss:$68 sps:$4 sm:$0xff]  }
 0x311   :  { %v6271_v63 = vadd.f32 %v6270_v53, %v6269_v49  ;;  %v6283_v30 = vrot.slane %v6282_v17, 1  ;;  %v11964_v52 = vpop.f32.mrf.mxu1 }
 0x312   :  { %8373 = vmatmul.mubr.msk.bf16.gmra.mxu1 %vm2458_vm3, %v11097_v8  ;;  %5728 = vmatpush2.bf16.msra.mxu0 %v9363_v21 }
 0x313   :  { %5852 = vmatpush1.bf16.msra.mxu1 %v9360_v20  ;;  %5729 = vmatprep.subr.bf16.mxu0 %v9371_v44  ;;  %v6488_v12 = vmul.f32 0.020408163, %v6271_v63  ;;  %v6284_v28 = vadd.f32 %v6283_v30, %v6282_v17  ;;  %v11975_v18 = vpop.f32.mrf.mxu1 }
 0x314   :  { %5853 = vmatprep.subr.bf16.mxu1 %v9368_v13  ;;  %5828 = vmatprep.mubr.bf16.mxu1 %v14823_v33 }
 0x315   :  { %v11982_v43 = vsub.f32 %v11787_v15, %v6488_v12  ;;  %v11985_v61 = vsub.f32 %v11806_v31, %v6488_v12  ;;  %v11988_v32 = vsub.f32 %v11826_v54, %v6488_v12  ;;  %v11991_v41 = vsub.f32 %v11849_v51, %v6488_v12  ;;  %v11993_v22 = vpop.f32.mrf.mxu1  ;;  %v9372_v54 = vld [vmem:[%s14673_s4 + $0x1c8] ss:$68 sps:$4 sm:$0xff]   ;;  %v9375_v51 = vld [vmem:[%s14673_s4 + $0x578] ss:$68 sps:$4 sm:$0xff]  }
 0x316   :  { %5730 = vmatpush2.bf16.msra.mxu0 %v9369_v27  ;;  %v11996_v6 = vsub.f32 %v11868_v14, %v6488_v12  ;;  %v11999_v4 = vsub.f32 %v11890_v62, %v6488_v12  ;;  %v12002_v15 = vsub.f32 %v11902_v26, %v6488_v12  ;;  %v6489_v31 = vmul.f32 0.020408163, %v6284_v28  ;;  %v9386_v27 = vld [vmem:[%s14673_s4 + $0xbc] ss:$68 sps:$4 sm:$0xff]  }
 0x317   :  { %14832 = vst [vmem:[#allocation9_spill] sm:$0xff] %v11988_v32  ;;  %14833 = vst [vmem:[#allocation2_spill] sm:$0xff] %v11991_v41  ;;  %5854 = vmatpush1.bf16.msra.mxu1 %v9366_v58  ;;  %5731 = vmatprep.subr.bf16.mxu0 %v9377_v59  ;;  %v6624_v14 = vmul.f32 %v11982_v43, %v11982_v43  ;;  %v6641_v62 = vmul.f32 %v11985_v61, %v11985_v61  ;;  %v12014_v26 = vpop.f32.mrf.mxu1  ;;  %v9389_v58 = vld [vmem:[%s14673_s4 + $0x46c] ss:$68 sps:$4 sm:$0xff]  }
 0x318   :  { %14834 = vst [vmem:[#allocation3_spill] sm:$0xff] %v11996_v6  ;;  %14835 = vst [vmem:[#allocation10_spill] sm:$0xff] %v11999_v4  ;;  %5855 = vmatprep.subr.bf16.mxu1 %v9374_v37  ;;  %v12020_v36 = vsub.f32 %v11795_v60, %v6489_v31  ;;  %v6658_v49 = vmul.f32 %v11988_v32, %v11988_v32  ;;  %v12028_v21 = vsub.f32 %v11816_v39, %v6489_v31  ;;  %v9378_v39 = vld [vmem:[%s14673_s4 + $0x140] ss:$68 sps:$4 sm:$0xff]   ;;  %v9460_v32 = vld [vmem:[%s14673_s4 + $0x9c8] ss:$68 sps:$4 sm:$0xff]  }
 0x319   :  { %14836 = vst [vmem:[#allocation13_spill] sm:$0xff] %v12002_v15  ;;  %v6743_v35 = vadd.f32 %v6641_v62, %v6624_v14  ;;  %v12031_v20 = vsub.f32 %v11837_v46, %v6489_v31  ;;  %v12035_v44 = vpop.f32.mrf.mxu1  ;;  %v6675_v60 = vmul.f32 %v11991_v41, %v11991_v41  ;;  %v12040_v53 = vsub.f32 %v11878_v48, %v6489_v31  ;;  %v9381_v46 = vld [vmem:[%s14673_s4 + $0x4f0] ss:$68 sps:$4 sm:$0xff]  }
 0x31a   :  { %14837 = vst [vmem:[#allocation11_spill] sm:$0xff] %v12028_v21  ;;  %8374 = vmatmul.mubr.msk.bf16.gmra.mxu1 %vm2458_vm3, %v11105_v24  ;;  %v12043_v17 = vsub.f32 %v11910_v7, %v6489_v31  ;;  %5732 = vmatpush2.bf16.msra.mxu0 %v9375_v51  ;;  %v12052_v63 = vsub.f32 %v11858_v25, %v6489_v31 }
 0x31b   :  { %14838 = vst [vmem:[#allocation4_spill] sm:$0xff] %v12031_v20  ;;  %14839 = vst [vmem:[#allocation5_spill] sm:$0xff] %v12040_v53  ;;  %5856 = vmatpush1.bf16.msra.mxu1 %v9372_v54  ;;  %v6744_v13 = vadd.f32 %v6743_v35, %v6658_v49  ;;  %v6625_v48 = vmul.f32 %v12020_v36, %v12020_v36  ;;  %v6642_v7 = vmul.f32 %v12028_v21, %v12028_v21  ;;  %v12058_v30 = vpop.f32.mrf.mxu1  ;;  %v3079_v54 = vld [vmem:[%s14673_s4 + $0xb58] sm:$0xff] }
 0x31c   :  { %14840 = vst [vmem:[#allocation14_spill] sm:$0xff] %v12043_v17  ;;  %14841 = vst [vmem:[#allocation6_spill] sm:$0xff] %v12052_v63  ;;  %5857 = vmatprep.subr.bf16.mxu1 %v9380_v34  ;;  %5733 = vmatprep.subr.bf16.mxu0 %v9383_v57  ;;  %v6692_v25 = vmul.f32 %v11996_v6, %v11996_v6  ;;  %v6659_v12 = vmul.f32 %v12031_v20, %v12031_v20  ;;  %v9384_v34 = vld [vmem:[%s14673_s4 + $0xb8] ss:$68 sps:$4 sm:$0xff]  }
 0x31d   :  { %v6745_v59 = vadd.f32 %v6744_v13, %v6675_v60  ;;  %v6756_v28 = vadd.f32 %v6642_v7, %v6625_v48  ;;  %v12070_v37 = vpop.f32.mrf.mxu1  ;;  %5838 = vmatprep.mubr.bf16.mxu1 %v14823_v33  ;;  %v6709_v51 = vmul.f32 %v11999_v4, %v11999_v4  ;;  %v6726_v14 = vmul.f32 %v12002_v15, %v12002_v15  ;;  %v9387_v13 = vld [vmem:[%s14673_s4 + $0x468] ss:$68 sps:$4 sm:$0xff]  }
 0x31e   :  { %v12081_v62 = vsub.f32 %v11896_v45, %v6489_v31  ;;  %5734 = vmatpush2.bf16.msra.mxu0 %v9381_v46  ;;  %v6676_v49 = vmul.f32 %v12052_v63, %v12052_v63  ;;  %v9392_v45 = vld [vmem:[%s14673_s4 + $0x34] ss:$68 sps:$4 sm:$0xff]   ;;  %v8342_v31 = vcombine.high %v3079_v54, %v3079_v54  ;;  %v6693_v46 = vmul.f32 %v12040_v53, %v12040_v53 }
 0x31f   :  { %5858 = vmatpush1.bf16.msra.mxu1 %v9378_v39  ;;  %v6746_v57 = vadd.f32 %v6745_v59, %v6692_v25  ;;  %v6757_v35 = vadd.f32 %v6756_v28, %v6659_v12  ;;  %v12088_v60 = vpop.f32.mrf.mxu1  ;;  %5735 = vmatprep.subr.bf16.mxu0 %v9389_v58  ;;  %v6748_v25 = vsel %vm2436_vm1, %v6726_v14, 0.0  ;;  %v6727_v58 = vmul.f32 %v12043_v17, %v12043_v17  ;;  %v9390_v59 = vld [vmem:[%s14673_s4 + $0x30] ss:$68 sps:$4 sm:$0xff]  }
 0x320   :  { %14842 = vst [vmem:[#allocation7_spill] sm:$0xff] %v12081_v62  ;;  %5859 = vmatprep.subr.bf16.mxu1 %v9386_v27  ;;  %v8341_v27 = vcombine.low %v3079_v54, %v3079_v54  ;;  %v6710_v28 = vmul.f32 %v12081_v62, %v12081_v62  ;;  %v9396_v14 = vld [vmem:[%s14673_s4 + $0x82c] ss:$68 sps:$4 sm:$0xff]  }
 0x321   :  { %v6747_v39 = vadd.f32 %v6746_v57, %v6709_v51  ;;  %v6758_v48 = vadd.f32 %v6757_v35, %v6676_v49  ;;  %v12100_v7 = vpop.f32.mrf.mxu1 }
 0x322   :  { %8375 = vmatmul.mubr.msk.bf16.gmra.mxu1 %vm2458_vm3, %v11235_v0  ;;  %5736 = vmatpush2.bf16.msra.mxu0 %v9387_v13  ;;  %v9403_v13 = vld [vmem:[%s14673_s4 + $0xad4] ss:$68 sps:$4 sm:$0xff]  }
 0x323   :  { %5860 = vmatpush1.bf16.msra.mxu1 %v9384_v34  ;;  %5879 = vmatprep.mubr.bf16.mxu1 %v11119_v2  ;;  %v6749_v12 = vadd.f32 %v6748_v25, %v6747_v39  ;;  %v6759_v51 = vadd.f32 %v6758_v48, %v6693_v46  ;;  %v12111_v54 = vpop.f32.mrf.mxu1  ;;  %v4981_v39 = vsel %vm4943_vm2, %v8341_v27, 0 }
 0x324   :  { %5861 = vmatprep.subr.bf16.mxu1 %v9392_v45  ;;  %8376 = vmatprep.subr.msk.bf16.mxu0 %vm4943_vm2, %v8342_v31  ;;  %v6761_v45 = vsel %vm2436_vm1, %v6727_v58, 0.0  ;;  %v9394_v31 = vld [vmem:[%s14673_s4 + $0x828] ss:$68 sps:$4 sm:$0xff]  }
 0x325   :  { %v5171_v34 = vpop.f32.mrf.mxu0  ;;  %v6750_v57 = vrot.slane %v6749_v12, 4  ;;  %v6760_v49 = vadd.f32 %v6759_v51, %v6710_v28  ;;  %v5276_v35 = vpop.f32.mrf.mxu1  ;;  %5738 = vmatmul.mubr.bf16.vlgmr.msra.gmra.mxu0 %v11134_v5  ;;  %v9400_v58 = vld [vmem:[%s14673_s4 + $0x7a4] ss:$68 sps:$4 sm:$0xff]   ;;  %v9401_v51 = vld [vmem:[%s14673_s4 + $0xad0] ss:$68 sps:$4 sm:$0xff]  }
 0x326   :  { %v12119_v25 = vadd.f32 %v11929_v38, %v5171_v34  ;;  %5747 = vmatprep.mubr.bf16.mxu0 %v11142_v19  ;;  %5923 = vmatpush1.bf16.msra.mxu0 %v4981_v39 }
 0x327   :  { %5862 = vmatpush1.bf16.msra.mxu1 %v9390_v59  ;;  %v5173_v46 = vpop.f32.mrf.mxu0  ;;  %v6751_v48 = vadd.f32 %v6750_v57, %v6749_v12  ;;  %v6762_v28 = vadd.f32 %v6761_v45, %v6760_v49  ;;  %v5277_v38 = vpop.f32.mrf.mxu1  ;;  %5924 = vmatprep.subr.bf16.mxu0 %v9403_v13 }
 0x328   :  { %5863 = vmatprep.subr.bf16.mxu1 %v9396_v14  ;;  %v12131_v27 = vadd.f32 %v11940_v10, %v5173_v46  ;;  %v9409_v10 = vld [vmem:[%s14673_s4 + $0xa4c] ss:$68 sps:$4 sm:$0xff]   ;;  %v9398_v14 = vld [vmem:[%s14673_s4 + $0x7a0] ss:$68 sps:$4 sm:$0xff]  }
 0x329   :  { %v5175_v59 = vpop.f32.mrf.mxu0  ;;  %v6752_v34 = vrot.slane %v6751_v48, 2  ;;  %v6763_v12 = vrot.slane %v6762_v28, 4  ;;  %v9407_v46 = vld [vmem:[%s14673_s4 + $0xa48] ss:$68 sps:$4 sm:$0xff]  }
 0x32a   :  { %v12140_v57 = vadd.f32 %v11946_v11, %v5175_v59  ;;  %v9406_v11 = vld [vmem:[%s14673_s4 + $0x71c] ss:$68 sps:$4 sm:$0xff]   ;;  %5925 = vmatpush1.bf16.msra.mxu0 %v9401_v51 }
 0x32b   :  { %5864 = vmatpush2.bf16.msra.mxu1 %v9394_v31  ;;  %v5177_v49 = vpop.f32.mrf.mxu0  ;;  %v6753_v35 = vadd.f32 %v6752_v34, %v6751_v48  ;;  %v6764_v39 = vadd.f32 %v6763_v12, %v6762_v28  ;;  %5926 = vmatprep.subr.bf16.mxu0 %v9409_v10  ;;  %v9412_v12 = vld [vmem:[%s14673_s4 + $0x694] ss:$68 sps:$4 sm:$0xff]  }
 0x32c   :  { %5865 = vmatprep.subr.bf16.mxu1 %v9400_v58  ;;  %v6285_v45 = vadd.f32 %v12140_v57, %v12119_v25  ;;  %v12154_v13 = vadd.f32 %v11957_v47, %v5177_v49  ;;  %v9415_v58 = vld [vmem:[%s14673_s4 + $0x9c4] ss:$68 sps:$4 sm:$0xff]   ;;  %v9404_v47 = vld [vmem:[%s14673_s4 + $0x718] ss:$68 sps:$4 sm:$0xff]  }
 0x32d   :  { %v5181_v31 = vpop.f32.mrf.mxu0  ;;  %v6754_v38 = vrot.slane %v6753_v35, 1  ;;  %v6765_v48 = vrot.slane %v6764_v39, 2  ;;  %5748 = vmatmul.mubr.bf16.gmra.mxu0 %v11177_v23 }
 0x32e   :  { %v12160_v28 = vadd.f32 %v11964_v52, %v5181_v31  ;;  %5757 = vmatprep.mubr.bf16.mxu0 %v11160_v1  ;;  %v6298_v10 = vadd.f32 %v12154_v13, %v12131_v27  ;;  %5927 = vmatpush1.bf16.msra.mxu0 %v9407_v46  ;;  %v9424_v31 = vld [vmem:[%s14673_s4 + $0x93c] ss:$68 sps:$4 sm:$0xff]   ;;  %v9410_v46 = vld [vmem:[%s14673_s4 + $0x690] ss:$68 sps:$4 sm:$0xff]  }
 0x32f   :  { %5866 = vmatpush2.bf16.msra.mxu1 %v9398_v14  ;;  %v5183_v59 = vpop.f32.mrf.mxu0  ;;  %v6755_v51 = vadd.f32 %v6754_v38, %v6753_v35  ;;  %v6766_v34 = vadd.f32 %v6765_v48, %v6764_v39  ;;  %v9413_v35 = vld [vmem:[%s14673_s4 + $0x9c0] ss:$68 sps:$4 sm:$0xff]   ;;  %5928 = vmatprep.subr.bf16.mxu0 %v9415_v58  ;;  %v9418_v58 = vld [vmem:[%s14673_s4 + $0x60c] ss:$68 sps:$4 sm:$0xff]  }
 0x330   :  { %5867 = vmatprep.subr.bf16.mxu1 %v9406_v11  ;;  %v6286_v52 = vadd.f32 %v6285_v45, %v12160_v28  ;;  %v12177_v14 = vadd.f32 %v11975_v18, %v5183_v59 }
 0x331   :  { %v5185_v49 = vpop.f32.mrf.mxu0  ;;  %v6970_v39 = vmul.f32 0.020408163, %v6755_v51  ;;  %v6767_v11 = vrot.slane %v6766_v34, 1 }
 0x332   :  { %v12183_v45 = vadd.f32 %v11993_v22, %v5185_v49  ;;  %v6299_v18 = vadd.f32 %v6298_v10, %v12177_v14  ;;  %5929 = vmatpush1.bf16.msra.mxu0 %v9413_v35  ;;  %v9422_v10 = vld [vmem:[%s14673_s4 + $0x938] ss:$68 sps:$4 sm:$0xff]  }
 0x333   :  { %5868 = vmatpush2.bf16.msra.mxu1 %v9404_v47  ;;  %v5187_v38 = vpop.f32.mrf.mxu0  ;;  %v6768_v48 = vadd.f32 %v6767_v11, %v6766_v34  ;;  %v6990_v51 = vadd.f32 1e-05, %v6970_v39  ;;  %5930 = vmatprep.subr.bf16.mxu0 %v9424_v31  ;;  %v9421_v31 = vld [vmem:[%s14673_s4 + $0x584] ss:$68 sps:$4 sm:$0xff]  }
 0x334   :  { %5869 = vmatprep.subr.bf16.mxu1 %v9412_v12  ;;  %v6287_v59 = vadd.f32 %v6286_v52, %v12183_v45  ;;  %v12194_v22 = vadd.f32 %v12014_v26, %v5187_v38  ;;  %v9430_v26 = vld [vmem:[%s14673_s4 + $0x8b4] ss:$68 sps:$4 sm:$0xff]   ;;  %v9416_v52 = vld [vmem:[%s14673_s4 + $0x608] ss:$68 sps:$4 sm:$0xff]  }
 0x335   :  { %v5191_v47 = vpop.f32.mrf.mxu0  ;;  %v6971_v49 = vmul.f32 0.020408163, %v6768_v48  ;;  %5758 = vmatmul.mubr.bf16.gmra.mxu0 %v11219_v3  ;;  %9527 = vrsqrt.f32 %v6990_v51  ;;  %v9428_v38 = vld [vmem:[%s14673_s4 + $0x8b0] ss:$68 sps:$4 sm:$0xff]  }
 0x336   :  { %v12203_v34 = vadd.f32 %v12035_v44, %v5191_v47  ;;  %v6300_v39 = vadd.f32 %v6299_v18, %v12194_v22  ;;  %5767 = vmatprep.mubr.bf16.mxu0 %v11226_v56  ;;  %5931 = vmatpush1.bf16.msra.mxu0 %v9422_v10 }
 0x337   :  { %5870 = vmatpush2.bf16.msra.mxu1 %v9410_v46  ;;  %v5193_v12 = vpop.f32.mrf.mxu0  ;;  %v6991_v35 = vadd.f32 1e-05, %v6971_v49  ;;  %5932 = vmatprep.subr.bf16.mxu0 %v9430_v26 }
 0x338   :  { %5871 = vmatprep.subr.bf16.mxu1 %v9418_v58  ;;  %v6288_v44 = vadd.f32 %v6287_v59, %v12203_v34  ;;  %v12216_v11 = vadd.f32 %v12058_v30, %v5193_v12  ;;  %v9436_v30 = vld [vmem:[%s14673_s4 + $0x3f4] ss:$68 sps:$4 sm:$0xff]   ;;  %v9419_v59 = vld [vmem:[%s14673_s4 + $0x580] ss:$68 sps:$4 sm:$0xff]  }
 0x339   :  { %v5195_v46 = vpop.f32.mrf.mxu0  ;;  %9529 = vrsqrt.f32 %v6991_v35 }
 0x33a   :  { %v6301_v18 = vadd.f32 %v6300_v39, %v12216_v11  ;;  %v12226_v48 = vadd.f32 %v12070_v37, %v5195_v46  ;;  %v9427_v37 = vld [vmem:[%s14673_s4 + $0x4fc] ss:$68 sps:$4 sm:$0xff]   ;;  %5933 = vmatpush1.bf16.msra.mxu0 %v9428_v38 }
 0x33b   :  { %5872 = vmatpush2.bf16.msra.mxu1 %v9416_v52  ;;  %v5197_v58 = vpop.f32.mrf.mxu0  ;;  %5989 = vmatprep.subr.bf16.mxu0 %v9436_v30 }
 0x33c   :  { %5873 = vmatprep.subr.bf16.mxu1 %v9421_v31  ;;  %v6289_v51 = vadd.f32 %v6288_v44, %v12226_v48  ;;  %v12236_v47 = vadd.f32 %v12088_v60, %v5197_v58  ;;  %v9425_v60 = vld [vmem:[%s14673_s4 + $0x4f8] ss:$68 sps:$4 sm:$0xff]   ;;  %v3080_v31 = vld [vmem:[%s14673_s4 + $0xb60] sm:$0xff] }
 0x33d   :  { %v5201_v10 = vpop.f32.mrf.mxu0  ;;  %5768 = vmatmul.mubr.bf16.gmra.mxu0 %v11257_v9  ;;  %v8343_v58 = vcombine.low %v3080_v31, %v3080_v31 }
 0x33e   :  { %v6302_v49 = vadd.f32 %v6301_v18, %v12236_v47  ;;  %v12243_v26 = vadd.f32 %v12100_v7, %v5201_v10  ;;  %v9433_v7 = vld [vmem:[%s14673_s4 + $0x474] ss:$68 sps:$4 sm:$0xff]   ;;  %5950 = vmatprep.mubr.bf16.mxu0 %v14823_v33 }
 0x33f   :  { %5874 = vmatpush2.bf16.msra.mxu1 %v9419_v59  ;;  %v5203_v52 = vpop.f32.mrf.mxu0  ;;  %v9434_v59 = vld [vmem:[%s14673_s4 + $0x3f0] ss:$68 sps:$4 sm:$0xff]  }
 0x340   :  { %5875 = vmatprep.subr.bf16.mxu1 %v9427_v37  ;;  %v6290_v12 = vsel %vm2436_vm1, %v12243_v26, 0.0  ;;  %v12252_v35 = vadd.f32 %v12111_v54, %v5203_v52  ;;  %v9431_v54 = vld [vmem:[%s14673_s4 + $0x470] ss:$68 sps:$4 sm:$0xff]  }
 0x341   :  { %v6291_v39 = vadd.f32 %v6290_v12, %v6289_v51  ;;  %v5205_v44 = vpop.f32.mrf.mxu0  ;;  %v9439_v52 = vld [vmem:[%s14673_s4 + $0x36c] ss:$68 sps:$4 sm:$0xff]  }
 0x342   :  { %v6303_v46 = vsel %vm2436_vm1, %v12252_v35, 0.0 }
 0x343   :  { %v6292_v38 = vrot.slane %v6291_v39, 4  ;;  %5876 = vmatpush2.bf16.msra.mxu1 %v9425_v60  ;;  %v6304_v18 = vadd.f32 %v6303_v46, %v6302_v49  ;;  %v5206_v30 = vpop.f32.mrf.mxu0  ;;  %v8344_v60 = vcombine.high %v3080_v31, %v3080_v31  ;;  %v12272_v49 = vpop.eup %9527  ;;  %v4987_v31 = vsel %vm4943_vm2, %v8343_v58, 0 }
 0x344   :  { %5877 = vmatprep.subr.bf16.mxu1 %v9433_v7 }
 0x345   :  { %v6293_v51 = vadd.f32 %v6292_v38, %v6291_v39  ;;  %v6305_v37 = vrot.slane %v6304_v18, 4  ;;  %v5384_v10 = vpop.f32.mrf.mxu0  ;;  %8377 = vmatmul.mubr.msk.bf16.vlgmr.msra.gmra.mxu0 %vm2458_vm3, %v11095_v55  ;;  %v9437_v38 = vld [vmem:[%s14673_s4 + $0x368] ss:$68 sps:$4 sm:$0xff]  }
 0x346   :  { %v12274_v12 = vpop.eup %9529  ;;  %5990 = vmatpush1.bf16.msra.mxu0 %v9434_v59  ;;  %5960 = vmatprep.mubr.bf16.mxu0 %v14823_v33  ;;  %v9442_v59 = vld [vmem:[%s14673_s4 + $0x2e4] ss:$68 sps:$4 sm:$0xff]  }
 0x347   :  { %v6294_v44 = vrot.slane %v6293_v51, 2  ;;  %v6306_v46 = vadd.f32 %v6305_v37, %v6304_v18  ;;  %5878 = vmatpush2.bf16.msra.mxu1 %v9431_v54  ;;  %v5386_v7 = vpop.f32.mrf.mxu0  ;;  %v9450_v18 = vld [vmem:[%s14673_s4 + $0xadc] ss:$68 sps:$4 sm:$0xff]   ;;  %5991 = vmatprep.subr.bf16.mxu0 %v9439_v52 }
 0x348   :  { %8381 = vmatprep.subr.msk.bf16.mxu1 %vm4943_vm2, %v8344_v60  ;;  %v9440_v60 = vld [vmem:[%s14673_s4 + $0x2e0] ss:$68 sps:$4 sm:$0xff]  }
 0x349   :  { %v6295_v54 = vadd.f32 %v6294_v44, %v6293_v51  ;;  %v6307_v30 = vrot.slane %v6306_v46, 2  ;;  %v5388_v37 = vpop.f32.mrf.mxu0  ;;  %v9448_v51 = vld [vmem:[%s14673_s4 + $0xad8] ss:$68 sps:$4 sm:$0xff]  }
 0x34a   :  { %5880 = vmatmul.mubr.bf16.vlgmr.msra.gmra.mxu1 %v11134_v5  ;;  %v5313_v39 = vpop.f32.mrf.mxu1  ;;  %5992 = vmatpush1.bf16.msra.mxu0 %v9437_v38  ;;  %v9456_v38 = vld [vmem:[%s14673_s4 + $0xa54] ss:$68 sps:$4 sm:$0xff]  }
 0x34b   :  { %v6296_v17 = vrot.slane %v6295_v54, 1  ;;  %v6308_v15 = vadd.f32 %v6307_v30, %v6306_v46  ;;  %5889 = vmatprep.mubr.bf16.mxu1 %v11142_v19  ;;  %v12294_v58 = vadd.f32 %v5384_v10, %v5313_v39  ;;  %v12296_v62 = vpop.f32.mrf.mxu0  ;;  %6065 = vmatpush1.bf16.msra.mxu1 %v4987_v31  ;;  %v9447_v39 = vld [vmem:[%s14673_s4 + $0x25c] ss:$68 sps:$4 sm:$0xff]  }
 0x34c   :  { %v5315_v52 = vpop.f32.mrf.mxu1  ;;  %6066 = vmatprep.subr.bf16.mxu1 %v9450_v18  ;;  %5993 = vmatprep.subr.bf16.mxu0 %v9442_v59  ;;  %v9445_v18 = vld [vmem:[%s14673_s4 + $0x258] ss:$68 sps:$4 sm:$0xff]  }
 0x34d   :  { %v6297_v44 = vadd.f32 %v6296_v17, %v6295_v54  ;;  %v6309_v46 = vrot.slane %v6308_v15, 1  ;;  %v12304_v30 = vadd.f32 %v5386_v7, %v5315_v52  ;;  %v12306_v10 = vpop.f32.mrf.mxu0  ;;  %8378 = vmatmul.mubr.msk.bf16.gmra.mxu0 %vm2458_vm3, %v11097_v8  ;;  %v9453_v52 = vld [vmem:[%s14673_s4 + $0x1d4] ss:$68 sps:$4 sm:$0xff]  }
 0x34e   :  { %v5317_v31 = vpop.f32.mrf.mxu1  ;;  %5994 = vmatpush1.bf16.msra.mxu0 %v9440_v60  ;;  %5970 = vmatprep.mubr.bf16.mxu0 %v14823_v33 }
 0x34f   :  { %v6490_v4 = vmul.f32 0.020408163, %v6297_v44  ;;  %v6310_v53 = vadd.f32 %v6309_v46, %v6308_v15  ;;  %v12314_v6 = vadd.f32 %v5388_v37, %v5317_v31  ;;  %v12318_v17 = vpop.f32.mrf.mxu0  ;;  %6067 = vmatpush1.bf16.msra.mxu1 %v9448_v51  ;;  %5995 = vmatprep.subr.bf16.mxu0 %v9447_v39  ;;  %v9454_v44 = vld [vmem:[%s14673_s4 + $0xa50] ss:$68 sps:$4 sm:$0xff]  }
 0x350   :  { %v5319_v7 = vpop.f32.mrf.mxu1  ;;  %6068 = vmatprep.subr.bf16.mxu1 %v9456_v38  ;;  %v9451_v39 = vld [vmem:[%s14673_s4 + $0x1d0] ss:$68 sps:$4 sm:$0xff]  }
 0x351   :  { %v12325_v54 = vsub.f32 %v12119_v25, %v6490_v4  ;;  %v12328_v15 = vsub.f32 %v12140_v57, %v6490_v4  ;;  %v12331_v37 = vsub.f32 %v12160_v28, %v6490_v4  ;;  %v12334_v59 = vsub.f32 %v12183_v45, %v6490_v4  ;;  %v5398_v51 = vpop.f32.mrf.mxu0 }
 0x352   :  { %v12340_v60 = vsub.f32 %v12203_v34, %v6490_v4  ;;  %v12343_v25 = vsub.f32 %v12226_v48, %v6490_v4  ;;  %v12346_v57 = vsub.f32 %v12243_v26, %v6490_v4  ;;  %v6491_v28 = vmul.f32 0.020408163, %v6310_v53  ;;  %5890 = vmatmul.mubr.bf16.gmra.mxu1 %v11177_v23  ;;  %v5323_v45 = vpop.f32.mrf.mxu1  ;;  %5996 = vmatpush1.bf16.msra.mxu0 %v9445_v18 }
 0x353   :  { %14843 = vst [vmem:[#allocation12_spill] sm:$0xff] %v12328_v15  ;;  %14844 = vst [vmem:[#allocation8_spill] sm:$0xff] %v12331_v37  ;;  %v6626_v46 = vmul.f32 %v12325_v54, %v12325_v54  ;;  %v6643_v34 = vmul.f32 %v12328_v15, %v12328_v15  ;;  %5899 = vmatprep.mubr.bf16.mxu1 %v11160_v1  ;;  %v5400_v48 = vpop.f32.mrf.mxu0  ;;  %v6660_v4 = vmul.f32 %v12331_v37, %v12331_v37 }
 0x354   :  { %14845 = vst [vmem:[#allocation19_spill] sm:$0xff] %v12334_v59  ;;  %14846 = vst [vmem:[#allocation20_spill] sm:$0xff] %v12340_v60  ;;  %v12360_v53 = vsub.f32 %v12131_v27, %v6491_v28  ;;  %v5325_v26 = vpop.f32.mrf.mxu1  ;;  %v12366_v38 = vsub.f32 %v12154_v13, %v6491_v28  ;;  %v12369_v63 = vsub.f32 %v12177_v14, %v6491_v28  ;;  %5997 = vmatprep.subr.bf16.mxu0 %v9453_v52  ;;  %v9459_v27 = vld [vmem:[%s14673_s4 + $0x14c] ss:$68 sps:$4 sm:$0xff]  }
 0x355   :  { %14847 = vst [vmem:[#allocation21_spill] sm:$0xff] %v12343_v25  ;;  %14848 = vst [vmem:[#allocation22_spill] sm:$0xff] %v12346_v57  ;;  %v6769_v31 = vadd.f32 %v6643_v34, %v6626_v46  ;;  %v12372_v41 = vsub.f32 %v12194_v22, %v6491_v28  ;;  %v5404_v37 = vpop.f32.mrf.mxu0  ;;  %v6677_v18 = vmul.f32 %v12334_v59, %v12334_v59  ;;  %6069 = vmatpush1.bf16.msra.mxu1 %v9454_v44  ;;  %v9462_v52 = vld [vmem:[%s14673_s4 + $0x9cc] ss:$68 sps:$4 sm:$0xff]  }
 0x356   :  { %14849 = vst [vmem:[#allocation23_spill] sm:$0xff] %v12366_v38  ;;  %14850 = vst [vmem:[#allocation24_spill] sm:$0xff] %v12369_v63  ;;  %v12380_v46 = vsub.f32 %v12216_v11, %v6491_v28  ;;  %v12383_v13 = vsub.f32 %v12236_v47, %v6491_v28  ;;  %v12386_v14 = vsub.f32 %v12252_v35, %v6491_v28  ;;  %v5327_v22 = vpop.f32.mrf.mxu1  ;;  %8379 = vmatmul.mubr.msk.bf16.gmra.mxu0 %vm2458_vm3, %v11105_v24  ;;  %v9457_v59 = vld [vmem:[%s14673_s4 + $0x148] ss:$68 sps:$4 sm:$0xff]  }
 0x357   :  { %14851 = vst [vmem:[#allocation25_spill] sm:$0xff] %v12372_v41  ;;  %v6694_v34 = vmul.f32 %v12340_v60, %v12340_v60  ;;  %v6770_v20 = vadd.f32 %v6769_v31, %v6660_v4  ;;  %v6627_v11 = vmul.f32 %v12360_v53, %v12360_v53  ;;  %v6644_v47 = vmul.f32 %v12366_v38, %v12366_v38  ;;  %v5406_v35 = vpop.f32.mrf.mxu0 }
 0x358   :  { %14852 = vst [vmem:[#allocation26_spill] sm:$0xff] %v12380_v46  ;;  %14853 = vst [vmem:[#allocation27_spill] sm:$0xff] %v12383_v13  ;;  %v6711_v28 = vmul.f32 %v12343_v25, %v12343_v25  ;;  %v6728_v44 = vmul.f32 %v12346_v57, %v12346_v57  ;;  %v6661_v60 = vmul.f32 %v12369_v63, %v12369_v63  ;;  %5998 = vmatpush1.bf16.msra.mxu0 %v9451_v39  ;;  %v5329_v31 = vpop.f32.mrf.mxu1 }
 0x359   :  { %14854 = vst [vmem:[#allocation28_spill] sm:$0xff] %v12386_v14  ;;  %v6678_v4 = vmul.f32 %v12372_v41, %v12372_v41  ;;  %v6771_v25 = vadd.f32 %v6770_v20, %v6677_v18  ;;  %v6782_v38 = vadd.f32 %v6644_v47, %v6627_v11  ;;  %v6311_v57 = vadd.f32 %v12314_v6, %v12294_v58  ;;  %v5408_v41 = vpop.f32.mrf.mxu0  ;;  %v9465_v18 = vld [vmem:[%s14673_s4 + $0xc4] ss:$68 sps:$4 sm:$0xff]  }
 0x35a   :  { %v12416_v63 = vadd.f32 %v12296_v62, %v5319_v7  ;;  %5999 = vmatprep.subr.bf16.mxu0 %v9459_v27  ;;  %v12419_v39 = vadd.f32 %v12306_v10, %v5323_v45  ;;  %v12422_v15 = vadd.f32 %v12318_v17, %v5325_v26  ;;  %v12424_v21 = vadd.f32 %v5398_v51, %v5327_v22  ;;  %v5333_v20 = vpop.f32.mrf.mxu1  ;;  %v9468_v62 = vld [vmem:[%s14673_s4 + $0x944] ss:$68 sps:$4 sm:$0xff]  }
 0x35b   :  { %5900 = vmatmul.mubr.bf16.gmra.mxu1 %v11219_v3  ;;  %6070 = vmatprep.subr.bf16.mxu1 %v9462_v52  ;;  %v6772_v7 = vadd.f32 %v6771_v25, %v6694_v34  ;;  %v6783_v10 = vadd.f32 %v6782_v38, %v6661_v60  ;;  %v12435_v45 = vadd.f32 %v5400_v48, %v5329_v31  ;;  %v5410_v51 = vpop.f32.mrf.mxu0  ;;  %v9463_v60 = vld [vmem:[%s14673_s4 + $0xc0] ss:$68 sps:$4 sm:$0xff]  }
 0x35c   :  { %v6324_v17 = vadd.f32 %v12416_v63, %v12304_v30  ;;  %5909 = vmatprep.mubr.bf16.mxu1 %v11226_v56  ;;  %v6695_v26 = vmul.f32 %v12380_v46, %v12380_v46  ;;  %v6312_v27 = vadd.f32 %v6311_v57, %v12419_v39  ;;  %v12441_v22 = vadd.f32 %v5404_v37, %v5333_v20  ;;  %v5335_v52 = vpop.f32.mrf.mxu1  ;;  %v9466_v37 = vld [vmem:[%s14673_s4 + $0x940] ss:$68 sps:$4 sm:$0xff]  }
 0x35d   :  { %6000 = vmatpush1.bf16.msra.mxu0 %v9457_v59  ;;  %6071 = vmatpush1.bf16.msra.mxu1 %v9460_v32  ;;  %v6773_v25 = vadd.f32 %v6772_v7, %v6711_v28  ;;  %v6784_v48 = vadd.f32 %v6783_v10, %v6678_v4  ;;  %v12447_v34 = vadd.f32 %v5406_v35, %v5335_v52  ;;  %v5414_v57 = vpop.f32.mrf.mxu0  ;;  %v9471_v32 = vld [vmem:[%s14673_s4 + $0x3c] ss:$68 sps:$4 sm:$0xff]   ;;  %v6774_v59 = vsel %vm2436_vm1, %v6728_v44, 0.0 }
 0x35e   :  { %v6325_v38 = vadd.f32 %v6324_v17, %v12422_v15  ;;  %5980 = vmatprep.mubr.bf16.mxu0 %v14823_v33  ;;  %v6712_v11 = vmul.f32 %v12383_v13, %v12383_v13  ;;  %v6729_v47 = vmul.f32 %v12386_v14, %v12386_v14  ;;  %v6313_v35 = vadd.f32 %v6312_v27, %v12424_v21  ;;  %v5337_v28 = vpop.f32.mrf.mxu1  ;;  %v9474_v4 = vld [vmem:[%s14673_s4 + $0x8bc] ss:$68 sps:$4 sm:$0xff]  }
 0x35f   :  { %6001 = vmatprep.subr.bf16.mxu0 %v9465_v18  ;;  %6072 = vmatprep.subr.bf16.mxu1 %v9468_v62  ;;  %v6775_v31 = vadd.f32 %v6774_v59, %v6773_v25  ;;  %v6785_v20 = vadd.f32 %v6784_v48, %v6695_v26  ;;  %v12466_v44 = vadd.f32 %v5408_v41, %v5337_v28  ;;  %v5416_v10 = vpop.f32.mrf.mxu0  ;;  %v9469_v18 = vld [vmem:[%s14673_s4 + $0x38] ss:$68 sps:$4 sm:$0xff]  }
 0x360   :  { %v6326_v7 = vadd.f32 %v6325_v38, %v12435_v45  ;;  %8380 = vmatmul.mubr.msk.bf16.gmra.mxu0 %vm2458_vm3, %v11235_v0  ;;  %v6314_v17 = vadd.f32 %v6313_v35, %v12441_v22  ;;  %v5339_v27 = vpop.f32.mrf.mxu1  ;;  %v9472_v25 = vld [vmem:[%s14673_s4 + $0x8b8] ss:$68 sps:$4 sm:$0xff]   ;;  %v6787_v38 = vsel %vm2436_vm1, %v6729_v47, 0.0 }
 0x361   :  { %6002 = vmatpush1.bf16.msra.mxu0 %v9463_v60  ;;  %6021 = vmatprep.mubr.bf16.mxu0 %v11119_v2  ;;  %v6776_v62 = vrot.slane %v6775_v31, 4  ;;  %v6786_v26 = vadd.f32 %v6785_v20, %v6712_v11  ;;  %v12476_v41 = vadd.f32 %v5410_v51, %v5339_v27  ;;  %v5418_v60 = vpop.f32.mrf.mxu0  ;;  %v9477_v48 = vld [vmem:[%s14673_s4 + $0x834] ss:$68 sps:$4 sm:$0xff]  }
 0x362   :  { %v6327_v52 = vadd.f32 %v6326_v7, %v12447_v34  ;;  %6073 = vmatpush1.bf16.msra.mxu1 %v9466_v37  ;;  %6003 = vmatprep.subr.bf16.mxu0 %v9471_v32  ;;  %v6315_v59 = vadd.f32 %v6314_v17, %v12466_v44  ;;  %v5343_v11 = vpop.f32.mrf.mxu1  ;;  %v9478_v51 = vld [vmem:[%s14673_s4 + $0x838] ss:$68 sps:$4 sm:$0xff]   ;;  %v9475_v7 = vld [vmem:[%s14673_s4 + $0x830] ss:$68 sps:$4 sm:$0xff]  }
 0x363   :  { %5910 = vmatmul.mubr.bf16.gmra.mxu1 %v11257_v9  ;;  %6074 = vmatprep.subr.bf16.mxu1 %v9474_v4  ;;  %v6777_v37 = vadd.f32 %v6776_v62, %v6775_v31  ;;  %v6788_v32 = vadd.f32 %v6787_v38, %v6786_v26  ;;  %v12491_v28 = vadd.f32 %v5414_v57, %v5343_v11  ;;  %v5419_v20 = vpop.f32.mrf.mxu0  ;;  %v9482_v57 = vld [vmem:[%s14673_s4 + $0x7ac] ss:$68 sps:$4 sm:$0xff]   ;;  %v9479_v38 = vld [vmem:[%s14673_s4 + $0x3f8] ss:$68 sps:$4 sm:$0xff]  }
 0x364   :  { %v6328_v35 = vadd.f32 %v6327_v52, %v12476_v41  ;;  %6092 = vmatprep.mubr.bf16.mxu1 %v14823_v33  ;;  %v5345_v47 = vpop.f32.mrf.mxu1 }
 0x365   :  { %6004 = vmatpush1.bf16.msra.mxu0 %v9469_v18  ;;  %v6778_v4 = vrot.slane %v6777_v37, 2  ;;  %v6789_v17 = vrot.slane %v6788_v32, 4  ;;  %v6316_v27 = vsel %vm2436_vm1, %v12491_v28, 0.0  ;;  %v12499_v31 = vadd.f32 %v5416_v10, %v5345_v47 }
 0x366   :  { %6075 = vmatpush1.bf16.msra.mxu1 %v9472_v25  ;;  %6005 = vmatprep.subr.bf16.mxu0 %v9477_v48  ;;  %v6317_v62 = vadd.f32 %v6316_v27, %v6315_v59  ;;  %v5347_v18 = vpop.f32.mrf.mxu1  ;;  %v9480_v48 = vld [vmem:[%s14673_s4 + $0x7a8] ss:$68 sps:$4 sm:$0xff]   ;;  %v9483_v59 = vld [vmem:[%s14673_s4 + $0x7b0] ss:$68 sps:$4 sm:$0xff]  }
 0x367   :  { %8551 = vmatprep.subr.bf16.mxu1 %v9478_v51  ;;  %v6779_v26 = vadd.f32 %v6778_v4, %v6777_v37  ;;  %v6790_v52 = vadd.f32 %v6789_v17, %v6788_v32  ;;  %v6329_v60 = vsel %vm2436_vm1, %v12499_v31, 0.0  ;;  %v9487_v32 = vld [vmem:[%s14673_s4 + $0x724] ss:$68 sps:$4 sm:$0xff]   ;;  %v9484_v17 = vld [vmem:[%s14673_s4 + $0x370] ss:$68 sps:$4 sm:$0xff]  }
 0x368   :  { %v6318_v10 = vrot.slane %v6317_v62, 4  ;;  %v6330_v11 = vadd.f32 %v6329_v60, %v6328_v35  ;;  %v5348_v25 = vpop.f32.mrf.mxu1 }
 0x369   :  { %6006 = vmatpush2.bf16.msra.mxu0 %v9475_v7  ;;  %v6780_v51 = vrot.slane %v6779_v26, 1  ;;  %v6791_v37 = vrot.slane %v6790_v52, 2 }
 0x36a   :  { %6007 = vmatprep.subr.bf16.mxu0 %v9482_v57  ;;  %v6319_v20 = vadd.f32 %v6318_v10, %v6317_v62  ;;  %v6331_v47 = vrot.slane %v6330_v11, 4  ;;  %v12520_v35 = vpop.f32.mrf.mxu1  ;;  %v9485_v62 = vld [vmem:[%s14673_s4 + $0x720] ss:$68 sps:$4 sm:$0xff]  }
 0x36b   :  { %8382 = vmatmul.mubr.msk.bf16.vlgmr.msra.gmra.mxu1 %vm2458_vm3, %v11095_v55  ;;  %v6781_v7 = vadd.f32 %v6780_v51, %v6779_v26  ;;  %v6792_v4 = vadd.f32 %v6791_v37, %v6790_v52  ;;  %v9488_v26 = vld [vmem:[%s14673_s4 + $0x728] ss:$68 sps:$4 sm:$0xff]   ;;  %v9490_v51 = vld [vmem:[%s14673_s4 + $0x698] ss:$68 sps:$4 sm:$0xff]  }
 0x36c   :  { %8552 = vmatpush3.bf16.msra.mxu1 %v9479_v38  ;;  %6102 = vmatprep.mubr.bf16.mxu1 %v14823_v33  ;;  %v6320_v27 = vrot.slane %v6319_v20, 2  ;;  %v6332_v57 = vadd.f32 %v6331_v47, %v6330_v11  ;;  %v12526_v18 = vpop.f32.mrf.mxu1  ;;  %v9492_v38 = vld [vmem:[%s14673_s4 + $0x69c] ss:$68 sps:$4 sm:$0xff]  }
 0x36d   :  { %6008 = vmatpush2.bf16.msra.mxu0 %v9480_v48  ;;  %8553 = vmatprep.subr.bf16.mxu1 %v9483_v59  ;;  %v6972_v52 = vmul.f32 0.020408163, %v6781_v7  ;;  %v6793_v60 = vrot.slane %v6792_v4, 1  ;;  %v9489_v59 = vld [vmem:[%s14673_s4 + $0x2e8] ss:$68 sps:$4 sm:$0xff]  }
 0x36e   :  { %6009 = vmatprep.subr.bf16.mxu0 %v9487_v32  ;;  %v6321_v10 = vadd.f32 %v6320_v27, %v6319_v20  ;;  %v6333_v11 = vrot.slane %v6332_v57, 2  ;;  %v12537_v25 = vpop.f32.mrf.mxu1  ;;  %v9493_v20 = vld [vmem:[%s14673_s4 + $0x6a0] ss:$68 sps:$4 sm:$0xff]  }
 0x36f   :  { %v6794_v48 = vadd.f32 %v6793_v60, %v6792_v4  ;;  %v6992_v37 = vadd.f32 1e-05, %v6972_v52 }
 0x370   :  { %8554 = vmatpush3.bf16.msra.mxu1 %v9484_v17  ;;  %v6322_v32 = vrot.slane %v6321_v10, 1  ;;  %v6334_v47 = vadd.f32 %v6333_v11, %v6332_v57  ;;  %v12545_v7 = vpop.f32.mrf.mxu1  ;;  %v9497_v17 = vld [vmem:[%s14673_s4 + $0x614] ss:$68 sps:$4 sm:$0xff]  }
 0x371   :  { %6010 = vmatpush2.bf16.msra.mxu0 %v9485_v62  ;;  %8555 = vmatprep.subr.bf16.mxu1 %v9488_v26  ;;  %v6973_v4 = vmul.f32 0.020408163, %v6794_v48  ;;  %v9494_v26 = vld [vmem:[%s14673_s4 + $0x260] ss:$68 sps:$4 sm:$0xff]   ;;  %9531 = vrsqrt.f32 %v6992_v37  ;;  %v9498_v48 = vld [vmem:[%s14673_s4 + $0x618] ss:$68 sps:$4 sm:$0xff]  }
 0x372   :  { %6011 = vmatprep.subr.bf16.mxu0 %v9492_v38  ;;  %v6323_v27 = vadd.f32 %v6322_v32, %v6321_v10  ;;  %v6335_v60 = vrot.slane %v6334_v47, 1  ;;  %v12555_v57 = vpop.f32.mrf.mxu1  ;;  %v9495_v10 = vld [vmem:[%s14673_s4 + $0x610] ss:$68 sps:$4 sm:$0xff]  }
 0x373   :  { %8383 = vmatmul.mubr.msk.bf16.gmra.mxu1 %vm2458_vm3, %v11097_v8  ;;  %v6993_v62 = vadd.f32 1e-05, %v6973_v4 }
 0x374   :  { %8556 = vmatpush3.bf16.msra.mxu1 %v9489_v59  ;;  %6112 = vmatprep.mubr.bf16.mxu1 %v14823_v33  ;;  %v6492_v52 = vmul.f32 0.020408163, %v6323_v27  ;;  %v6336_v38 = vadd.f32 %v6335_v60, %v6334_v47  ;;  %v12561_v11 = vpop.f32.mrf.mxu1 }
 0x375   :  { %6012 = vmatpush2.bf16.msra.mxu0 %v9490_v51  ;;  %8557 = vmatprep.subr.bf16.mxu1 %v9493_v20  ;;  %9533 = vrsqrt.f32 %v6993_v62  ;;  %v9503_v62 = vld [vmem:[%s14673_s4 + $0x590] ss:$68 sps:$4 sm:$0xff]  }
 0x376   :  { %6013 = vmatprep.subr.bf16.mxu0 %v9497_v17  ;;  %v12570_v59 = vsub.f32 %v12294_v58, %v6492_v52  ;;  %v12573_v37 = vsub.f32 %v12314_v6, %v6492_v52  ;;  %v12576_v51 = vsub.f32 %v12419_v39, %v6492_v52  ;;  %v12579_v32 = vsub.f32 %v12424_v21, %v6492_v52  ;;  %v12581_v47 = vpop.f32.mrf.mxu1  ;;  %v9499_v6 = vld [vmem:[%s14673_s4 + $0x1d8] ss:$68 sps:$4 sm:$0xff]   ;;  %v9502_v21 = vld [vmem:[%s14673_s4 + $0x58c] ss:$68 sps:$4 sm:$0xff]  }
 0x377   :  { %v12584_v20 = vsub.f32 %v12441_v22, %v6492_v52  ;;  %v12587_v4 = vsub.f32 %v12466_v44, %v6492_v52  ;;  %v12590_v58 = vsub.f32 %v12491_v28, %v6492_v52  ;;  %v6493_v17 = vmul.f32 0.020408163, %v6336_v38  ;;  %v9500_v28 = vld [vmem:[%s14673_s4 + $0x588] ss:$68 sps:$4 sm:$0xff]  }
 0x378   :  { %14855 = vst [vmem:[#allocation29_spill] sm:$0xff] %v12579_v32  ;;  %8558 = vmatpush3.bf16.msra.mxu1 %v9494_v26  ;;  %v6628_v39 = vmul.f32 %v12570_v59, %v12570_v59  ;;  %v6645_v22 = vmul.f32 %v12573_v37, %v12573_v37  ;;  %v12602_v44 = vpop.f32.mrf.mxu1  ;;  %v6662_v27 = vmul.f32 %v12576_v51, %v12576_v51 }
 0x379   :  { %14856 = vst [vmem:[#allocation30_spill] sm:$0xff] %v12584_v20  ;;  %14857 = vst [vmem:[#allocation31_spill] sm:$0xff] %v12587_v4  ;;  %6014 = vmatpush2.bf16.msra.mxu0 %v9495_v10  ;;  %v12610_v60 = vsub.f32 %v12304_v30, %v6493_v17  ;;  %8559 = vmatprep.subr.bf16.mxu1 %v9498_v48  ;;  %v12616_v52 = vsub.f32 %v12416_v63, %v6493_v17  ;;  %v9507_v48 = vld [vmem:[%s14673_s4 + $0x504] ss:$68 sps:$4 sm:$0xff]  }
 0x37a   :  { %14858 = vst [vmem:[#allocation32_spill] sm:$0xff] %v12590_v58  ;;  %v6795_v26 = vadd.f32 %v6645_v22, %v6628_v39  ;;  %v12619_v38 = vsub.f32 %v12422_v15, %v6493_v17  ;;  %v12622_v10 = vsub.f32 %v12435_v45, %v6493_v17  ;;  %v12626_v30 = vpop.f32.mrf.mxu1  ;;  %v12632_v39 = vsub.f32 %v12447_v34, %v6493_v17  ;;  %v9504_v45 = vld [vmem:[%s14673_s4 + $0x150] ss:$68 sps:$4 sm:$0xff]  }
 0x37b   :  { %8384 = vmatmul.mubr.msk.bf16.gmra.mxu1 %vm2458_vm3, %v11105_v24  ;;  %v12635_v63 = vsub.f32 %v12476_v41, %v6493_v17  ;;  %v12638_v15 = vsub.f32 %v12499_v31, %v6493_v17  ;;  %6015 = vmatprep.subr.bf16.mxu0 %v9502_v21  ;;  %v6679_v22 = vmul.f32 %v12579_v32, %v12579_v32  ;;  %v9505_v31 = vld [vmem:[%s14673_s4 + $0x500] ss:$68 sps:$4 sm:$0xff]   ;;  %v9508_v17 = vld [vmem:[%s14673_s4 + $0x508] ss:$68 sps:$4 sm:$0xff]  }
 0x37c   :  { %14859 = vst [vmem:[#allocation33_spill] sm:$0xff] %v12622_v10  ;;  %14860 = vst [vmem:[#allocation34_spill] sm:$0xff] %v12632_v39  ;;  %8560 = vmatpush3.bf16.msra.mxu1 %v9499_v6  ;;  %v6796_v14 = vadd.f32 %v6795_v26, %v6662_v27  ;;  %v6629_v34 = vmul.f32 %v12610_v60, %v12610_v60  ;;  %v6646_v41 = vmul.f32 %v12616_v52, %v12616_v52  ;;  %v12649_v13 = vpop.f32.mrf.mxu1  ;;  %v9512_v21 = vld [vmem:[%s14673_s4 + $0x47c] ss:$68 sps:$4 sm:$0xff]  }
 0x37d   :  { %14861 = vst [vmem:[#allocation35_spill] sm:$0xff] %v12635_v63  ;;  %14862 = vst [vmem:[#allocation36_spill] sm:$0xff] %v12638_v15  ;;  %6016 = vmatpush2.bf16.msra.mxu0 %v9500_v28  ;;  %v6696_v6 = vmul.f32 %v12584_v20, %v12584_v20  ;;  %8561 = vmatprep.subr.bf16.mxu1 %v9503_v62  ;;  %v6663_v28 = vmul.f32 %v12619_v38, %v12619_v38 }
 0x37e   :  { %v6797_v27 = vadd.f32 %v6796_v14, %v6679_v22  ;;  %v6808_v26 = vadd.f32 %v6646_v41, %v6629_v34  ;;  %v12664_v46 = vpop.f32.mrf.mxu1  ;;  %6017 = vmatprep.subr.bf16.mxu0 %v9507_v48  ;;  %6122 = vmatprep.mubr.bf16.mxu1 %v14823_v33  ;;  %v6713_v32 = vmul.f32 %v12587_v4, %v12587_v4  ;;  %v9509_v14 = vld [vmem:[%s14673_s4 + $0xc8] ss:$68 sps:$4 sm:$0xff]   ;;  %v9510_v33 = vld [vmem:[%s14673_s4 + $0x478] ss:$68 sps:$4 sm:$0xff]  }
 0x37f   :  { %v6730_v62 = vmul.f32 %v12590_v58, %v12590_v58  ;;  %v6680_v34 = vmul.f32 %v12622_v10, %v12622_v10  ;;  %v9532_v58 = vpop.eup %9531 }
 0x380   :  { %8562 = vmatpush3.bf16.msra.mxu1 %v9504_v45  ;;  %v6798_v22 = vadd.f32 %v6797_v27, %v6696_v6  ;;  %v6809_v41 = vadd.f32 %v6808_v26, %v6663_v28  ;;  %v12676_v48 = vpop.f32.mrf.mxu1  ;;  %v9513_v45 = vld [vmem:[%s14673_s4 + $0x480] ss:$68 sps:$4 sm:$0xff]   ;;  %v9515_v6 = vld [vmem:[%s14673_s4 + $0xb68] ss:$0 sps:$4 sm:$0xff]  }
 0x381   :  { %6018 = vmatpush2.bf16.msra.mxu0 %v9505_v31  ;;  %8563 = vmatprep.subr.bf16.mxu1 %v9508_v17  ;;  %v6697_v31 = vmul.f32 %v12632_v39, %v12632_v39  ;;  %v6800_v20 = vsel %vm2436_vm1, %v6730_v62, 0.0 }
 0x382   :  { %6019 = vmatprep.subr.bf16.mxu0 %v9512_v21  ;;  %v9534_v27 = vpop.eup %9533  ;;  %v6799_v28 = vadd.f32 %v6798_v22, %v6713_v32  ;;  %v6810_v17 = vadd.f32 %v6809_v41, %v6680_v34  ;;  %v12691_v26 = vpop.f32.mrf.mxu1  ;;  %v6731_v21 = vmul.f32 %v12638_v15, %v12638_v15  ;;  %v9514_v32 = vld [vmem:[%s14673_s4 + $0x40] ss:$68 sps:$4 sm:$0xff]   ;;  %v6714_v34 = vmul.f32 %v12635_v63, %v12635_v63 }
 0x383   :  { %8385 = vmatmul.mubr.msk.bf16.gmra.mxu1 %vm2458_vm3, %v11235_v0  ;;  %v7042_v4 = vcombine.low %v9532_v58, %v9534_v27  ;;  %v14863_v58 = vcombine.low %v12272_v49, %v12274_v12 }
 0x384   :  { %8564 = vmatpush3.bf16.msra.mxu1 %v9509_v14  ;;  %6163 = vmatprep.mubr.bf16.mxu1 %v11119_v2  ;;  %v6801_v22 = vadd.f32 %v6800_v20, %v6799_v28  ;;  %v6811_v41 = vadd.f32 %v6810_v17, %v6697_v31  ;;  %v12702_v39 = vpop.f32.mrf.mxu1  ;;  %v4993_v20 = vsel %vm4943_vm2, %v9515_v6, 0  ;;  %v6813_v12 = vsel %vm2436_vm1, %v6731_v21, 0.0 }
 0x385   :  { %6020 = vmatpush2.bf16.msra.mxu0 %v9510_v33  ;;  %8565 = vmatprep.subr.bf16.mxu1 %v9513_v45  ;;  %v12708_v62 = vrot.slane %v14863_v58, %v11041_v16  ;;  %v12711_v2 = vrot.slane %v7042_v4, %v11041_v16  ;;  %v5455_v14 = vpop.f32.mrf.mxu0  ;;  %v9516_v33 = vld [vmem:[%s14673_s4 + $0xae0] ss:$68 sps:$4 sm:$0xff]  }
 0x386   :  { %8621 = vmatprep.subr.msk.bf16.mxu0 %vm4943_vm2, %v9515_v6  ;;  %v6802_v27 = vrot.slane %v6801_v22, 4  ;;  %v6812_v45 = vadd.f32 %v6811_v41, %v6714_v34  ;;  %v5560_v28 = vpop.f32.mrf.mxu1  ;;  %v9517_v34 = vld [vmem:[%s14673_s4 + $0xa58] ss:$68 sps:$4 sm:$0xff]  }
 0x387   :  { %v5457_v4 = vpop.f32.mrf.mxu0 }
 0x388   :  { %8566 = vmatpush3.bf16.msra.mxu1 %v9514_v32  ;;  %6022 = vmatmul.mubr.bf16.vlgmr.msra.gmra.mxu0 %v11134_v5  ;;  %v6803_v31 = vadd.f32 %v6802_v27, %v6801_v22  ;;  %v6814_v17 = vadd.f32 %v6813_v12, %v6812_v45  ;;  %v5561_v6 = vpop.f32.mrf.mxu1  ;;  %v9518_v12 = vld [vmem:[%s14673_s4 + $0x9d0] ss:$68 sps:$4 sm:$0xff]  }
 0x389   :  { %6031 = vmatprep.mubr.bf16.mxu0 %v11142_v19  ;;  %8602 = vmatpush3.bf16.msra.mxu0 %v4993_v20  ;;  %v5459_v58 = vpop.f32.mrf.mxu0 }
 0x38a   :  { %8603 = vmatprep.subr.bf16.mxu0 %v9516_v33  ;;  %v6804_v41 = vrot.slane %v6803_v31, 2  ;;  %v6815_v28 = vrot.slane %v6814_v17, 4 }
 0x38b   :  { %6164 = vmatmul.mubr.bf16.vlgmr.msra.gmra.mxu1 %v11134_v5  ;;  %v5461_v21 = vpop.f32.mrf.mxu0 }
 0x38c   :  { %6171 = vmatprep.mubr.bf16.mxu1 %v11142_v19  ;;  %v6805_v32 = vadd.f32 %v6804_v41, %v6803_v31  ;;  %v6816_v22 = vadd.f32 %v6815_v28, %v6814_v17  ;;  %v12738_v17 = vadd.f32 %v12537_v25, %v5459_v58  ;;  %v12751_v25 = vadd.f32 %v12526_v18, %v5457_v4 }
 0x38d   :  { %8604 = vmatpush3.bf16.msra.mxu0 %v9516_v33  ;;  %v5465_v27 = vpop.f32.mrf.mxu0  ;;  %v9519_v33 = vld [vmem:[%s14673_s4 + $0x948] ss:$68 sps:$4 sm:$0xff]  }
 0x38e   :  { %8605 = vmatprep.subr.bf16.mxu0 %v9517_v34  ;;  %v6806_v20 = vrot.slane %v6805_v32, 1  ;;  %v6817_v45 = vrot.slane %v6816_v22, 2 }
 0x38f   :  { %v5467_v6 = vpop.f32.mrf.mxu0 }
 0x390   :  { %6032 = vmatmul.mubr.bf16.gmra.mxu0 %v11177_v23  ;;  %v6807_v49 = vadd.f32 %v6806_v20, %v6805_v32  ;;  %v6818_v15 = vadd.f32 %v6817_v45, %v6816_v22  ;;  %v12742_v32 = vadd.f32 %v12545_v7, %v5461_v21 }
 0x391   :  { %6041 = vmatprep.mubr.bf16.mxu0 %v11160_v1  ;;  %8606 = vmatpush3.bf16.msra.mxu0 %v9517_v34  ;;  %v5469_v5 = vpop.f32.mrf.mxu0 }
 0x392   :  { %v6974_v19 = vmul.f32 0.020408163, %v6807_v49  ;;  %v6819_v31 = vrot.slane %v6818_v15, 1  ;;  %8607 = vmatprep.subr.bf16.mxu0 %v9518_v12  ;;  %v12745_v49 = vadd.f32 %v12520_v35, %v5455_v14  ;;  %v12759_v35 = vadd.f32 %v12561_v11, %v5467_v6 }
 0x393   :  { %6172 = vmatmul.mubr.bf16.gmra.mxu1 %v11177_v23  ;;  %v5471_v41 = vpop.f32.mrf.mxu0  ;;  %v12748_v23 = vadd.f32 %v12555_v57, %v5465_v27  ;;  %v12762_v57 = vadd.f32 %v12581_v47, %v5469_v5  ;;  %v6350_v18 = vadd.f32 %v12742_v32, %v12751_v25 }
 0x394   :  { %6179 = vmatprep.mubr.bf16.mxu1 %v11160_v1  ;;  %v6820_v28 = vadd.f32 %v6819_v31, %v6818_v15  ;;  %v6994_v34 = vadd.f32 1e-05, %v6974_v19  ;;  %v9520_v1 = vld [vmem:[%s14673_s4 + $0x8c0] ss:$68 sps:$4 sm:$0xff]   ;;  %v6337_v7 = vadd.f32 %v12738_v17, %v12745_v49  ;;  %v12770_v58 = vadd.f32 %v12602_v44, %v5471_v41 }
 0x395   :  { %8608 = vmatpush3.bf16.msra.mxu0 %v9518_v12  ;;  %v5475_v22 = vpop.f32.mrf.mxu0  ;;  %v6351_v21 = vadd.f32 %v6350_v18, %v12759_v35 }
 0x396   :  { %v6975_v20 = vmul.f32 0.020408163, %v6820_v28  ;;  %8609 = vmatprep.subr.bf16.mxu0 %v9519_v33  ;;  %9535 = vrsqrt.f32 %v6994_v34  ;;  %v6338_v4 = vadd.f32 %v6337_v7, %v12748_v23  ;;  %v12773_v11 = vadd.f32 %v12626_v30, %v5475_v22 }
 0x397   :  { %v5477_v15 = vpop.f32.mrf.mxu0  ;;  %v6352_v30 = vadd.f32 %v6351_v21, %v12770_v58 }
 0x398   :  { %6042 = vmatmul.mubr.bf16.gmra.mxu0 %v11219_v3  ;;  %v6995_v14 = vadd.f32 1e-05, %v6975_v20  ;;  %v6339_v27 = vadd.f32 %v6338_v4, %v12762_v57  ;;  %v12780_v45 = vadd.f32 %v12649_v13, %v5477_v15 }
 0x399   :  { %6051 = vmatprep.mubr.bf16.mxu0 %v11226_v56  ;;  %v5479_v47 = vpop.f32.mrf.mxu0  ;;  %8610 = vmatpush3.bf16.msra.mxu0 %v9519_v33 }
 0x39a   :  { %9537 = vrsqrt.f32 %v6995_v14  ;;  %8611 = vmatprep.subr.bf16.mxu0 %v9520_v1  ;;  %v5551_v44 = vadd.f32 %v12664_v46, %v5479_v47  ;;  %v6340_v6 = vadd.f32 %v6339_v27, %v12773_v11  ;;  %v6353_v31 = vadd.f32 %v6352_v30, %v12780_v45 }
 0x39b   :  { %6180 = vmatmul.mubr.bf16.gmra.mxu1 %v11219_v3  ;;  %v5481_v12 = vpop.f32.mrf.mxu0 }
 0x39c   :  { %6187 = vmatprep.mubr.bf16.mxu1 %v11226_v56  ;;  %v12786_v5 = vadd.f32 %v12676_v48, %v5481_v12  ;;  %v6341_v56 = vadd.f32 %v6340_v6, %v5551_v44 }
 0x39d   :  { %v5485_v3 = vpop.f32.mrf.mxu0  ;;  %8612 = vmatpush3.bf16.msra.mxu0 %v9520_v1 }
 0x39e   :  { %v5557_v19 = vadd.f32 %v12691_v26, %v5485_v3  ;;  %v6354_v48 = vadd.f32 %v6353_v31, %v12786_v5 }
 0x39f   :  { %v5487_v13 = vpop.f32.mrf.mxu0 }
 0x3a0   :  { %6052 = vmatmul.mubr.bf16.gmra.mxu0 %v11257_v9  ;;  %v6342_v46 = vsel %vm2436_vm1, %v5557_v19, 0.0  ;;  %v12795_v33 = vadd.f32 %v12702_v39, %v5487_v13 }
 0x3a1   :  { %8613 = vmatprep.mubr.msk.bf16.mxu0 %vm2458_vm3, %v11095_v55  ;;  %v6343_v41 = vadd.f32 %v6342_v46, %v6341_v56  ;;  %v5489_v28 = vpop.f32.mrf.mxu0 }
 0x3a2   :  { %v6355_v26 = vsel %vm2436_vm1, %v12795_v33, 0.0 }
 0x3a3   :  { %6188 = vmatmul.mubr.bf16.gmra.mxu1 %v11257_v9  ;;  %v6344_v34 = vrot.slane %v6343_v41, 4  ;;  %v6356_v22 = vadd.f32 %v6355_v26, %v6354_v48  ;;  %v5490_v20 = vpop.f32.mrf.mxu0  ;;  %v12801_v15 = vpop.eup %9535 }
 0x3a5   :  { %v6345_v1 = vadd.f32 %v6344_v34, %v6343_v41  ;;  %v6357_v7 = vrot.slane %v6356_v22, 4  ;;  %v5668_v55 = vpop.f32.mrf.mxu0 }
 0x3a7   :  { %v12803_v14 = vpop.eup %9537  ;;  %v6346_v39 = vrot.slane %v6345_v1, 2  ;;  %v6358_v18 = vadd.f32 %v6357_v7, %v6356_v22  ;;  %v5670_v4 = vpop.f32.mrf.mxu0 }
 0x3a8   :  { %8614 = vmatmul.mubr.msk.bf16.vlgmr.msra.gmra.mxu0 %vm2458_vm3, %v11097_v8 }
 0x3a9   :  { %8617 = vmatprep.mubr.msk.bf16.mxu0 %vm2458_vm3, %v11105_v24  ;;  %v6347_v47 = vadd.f32 %v6346_v39, %v6345_v1  ;;  %v6359_v21 = vrot.slane %v6358_v18, 2  ;;  %v5672_v27 = vpop.f32.mrf.mxu0 }
 0x3aa   :  { %v5597_v12 = vpop.f32.mrf.mxu1 }
 0x3ab   :  { %v6348_v30 = vrot.slane %v6347_v47, 1  ;;  %v6360_v6 = vadd.f32 %v6359_v21, %v6358_v18  ;;  %v12811_v3 = vadd.f32 %v5668_v55, %v5597_v12  ;;  %v5674_v31 = vpop.f32.mrf.mxu0 }
 0x3ac   :  { %v5599_v56 = vpop.f32.mrf.mxu1 }
 0x3ad   :  { %v6349_v13 = vadd.f32 %v6348_v30, %v6347_v47  ;;  %v6361_v46 = vrot.slane %v6360_v6, 1  ;;  %v12813_v8 = vadd.f32 %v5670_v4, %v5599_v56  ;;  %v5678_v48 = vpop.f32.mrf.mxu0 }
 0x3ae   :  { %v5601_v41 = vpop.f32.mrf.mxu1 }
 0x3af   :  { %v6494_v28 = vmul.f32 0.020408163, %v6349_v13  ;;  %v6362_v26 = vadd.f32 %v6361_v46, %v6360_v6  ;;  %v12815_v34 = vadd.f32 %v5672_v27, %v5601_v41  ;;  %v5680_v24 = vpop.f32.mrf.mxu0 }
 0x3b0   :  { %8618 = vmatmul.mubr.msk.bf16.gmra.mxu0 %vm2458_vm3, %v11235_v0  ;;  %v5603_v22 = vpop.f32.mrf.mxu1 }
 0x3b1   :  { %v12820_v20 = vsub.f32 %v12745_v49, %v6494_v28  ;;  %v12823_v1 = vsub.f32 %v12738_v17, %v6494_v28  ;;  %v12826_v7 = vsub.f32 %v12748_v23, %v6494_v28  ;;  %v5682_v55 = vpop.f32.mrf.mxu0  ;;  %v12829_v39 = vsub.f32 %v12762_v57, %v6494_v28 }
 0x3b2   :  { %v12832_v18 = vsub.f32 %v12773_v11, %v6494_v28  ;;  %v12834_v4 = vsub.f32 %v5551_v44, %v6494_v28  ;;  %v6495_v0 = vmul.f32 0.020408163, %v6362_v26  ;;  %v5607_v47 = vpop.f32.mrf.mxu1  ;;  %v12836_v21 = vsub.f32 %v5557_v19, %v6494_v28 }
 0x3b3   :  { %14864 = vst [vmem:[#allocation37_spill] sm:$0xff] %v12826_v7  ;;  %14865 = vst [vmem:[#allocation38_spill] sm:$0xff] %v12829_v39  ;;  %v6630_v17 = vmul.f32 %v12820_v20, %v12820_v20  ;;  %v6647_v49 = vmul.f32 %v12823_v1, %v12823_v1  ;;  %v5684_v23 = vpop.f32.mrf.mxu0  ;;  %v6664_v11 = vmul.f32 %v12826_v7, %v12826_v7 }
 0x3b4   :  { %14866 = vst [vmem:[#allocation39_spill] sm:$0xff] %v12832_v18  ;;  %14867 = vst [vmem:[#allocation40_spill] sm:$0xff] %v12834_v4  ;;  %v12843_v27 = vsub.f32 %v12751_v25, %v6495_v0  ;;  %v5609_v57 = vpop.f32.mrf.mxu1  ;;  %v12848_v12 = vsub.f32 %v12742_v32, %v6495_v0  ;;  %v12851_v19 = vsub.f32 %v12759_v35, %v6495_v0 }
 0x3b5   :  { %14868 = vst [vmem:[#allocation41_spill] sm:$0xff] %v12836_v21  ;;  %v6821_v44 = vadd.f32 %v6647_v49, %v6630_v17  ;;  %v5688_v30 = vpop.f32.mrf.mxu0  ;;  %v6681_v6 = vmul.f32 %v12829_v39, %v12829_v39  ;;  %v6698_v56 = vmul.f32 %v12832_v18, %v12832_v18  ;;  %v6715_v25 = vmul.f32 %v12834_v4, %v12834_v4 }
 0x3b6   :  { %14869 = vst [vmem:[#allocation42_spill] sm:$0xff] %v12851_v19  ;;  %v12860_v13 = vsub.f32 %v12770_v58, %v6495_v0  ;;  %v5611_v46 = vpop.f32.mrf.mxu1  ;;  %v6732_v32 = vmul.f32 %v12836_v21, %v12836_v21  ;;  %v6631_v35 = vmul.f32 %v12843_v27, %v12843_v27  ;;  %v6648_v28 = vmul.f32 %v12848_v12, %v12848_v12 }
 0x3b7   :  { %v6822_v41 = vadd.f32 %v6821_v44, %v6664_v11  ;;  %v5690_v26 = vpop.f32.mrf.mxu0  ;;  %v12869_v17 = vsub.f32 %v12780_v45, %v6495_v0  ;;  %v12872_v49 = vsub.f32 %v12786_v5, %v6495_v0  ;;  %v12875_v58 = vsub.f32 %v12795_v33, %v6495_v0 }
 0x3b8   :  { %14870 = vst [vmem:[#allocation43_spill] sm:$0xff] %v12860_v13  ;;  %v6665_v9 = vmul.f32 %v12851_v19, %v12851_v19  ;;  %v5613_v11 = vpop.f32.mrf.mxu1  ;;  %v6834_v21 = vadd.f32 %v6648_v28, %v6631_v35  ;;  %v6363_v4 = vadd.f32 %v12815_v34, %v12811_v3  ;;  %v12881_v63 = vadd.f32 %v5674_v31, %v5603_v22 }
 0x3b9   :  { %14871 = vst [vmem:[#allocation44_spill] sm:$0xff] %v12869_v17  ;;  %14872 = vst [vmem:[#allocation45_spill] sm:$0xff] %v12872_v49  ;;  %v6823_v44 = vadd.f32 %v6822_v41, %v6681_v6  ;;  %v5692_v18 = vpop.f32.mrf.mxu0  ;;  %v6682_v45 = vmul.f32 %v12860_v13, %v12860_v13  ;;  %v12885_v5 = vadd.f32 %v5678_v48, %v5607_v47 }
 0x3ba   :  { %14873 = vst [vmem:[#allocation46_spill] sm:$0xff] %v12875_v58  ;;  %v12887_v39 = vadd.f32 %v5680_v24, %v5609_v57  ;;  %v12889_v33 = vadd.f32 %v5682_v55, %v5611_v46  ;;  %v5617_v0 = vpop.f32.mrf.mxu1  ;;  %v6835_v19 = vadd.f32 %v6834_v21, %v6665_v9  ;;  %v6376_v6 = vadd.f32 %v12881_v63, %v12813_v8 }
 0x3bb   :  { %v6824_v10 = vadd.f32 %v6823_v44, %v6698_v56  ;;  %v12893_v41 = vadd.f32 %v5684_v23, %v5613_v11  ;;  %v5694_v31 = vpop.f32.mrf.mxu0  ;;  %v6699_v22 = vmul.f32 %v12869_v17, %v12869_v17  ;;  %v6364_v35 = vadd.f32 %v6363_v4, %v12885_v5 }
 0x3bc   :  { %v12898_v48 = vadd.f32 %v5688_v30, %v5617_v0  ;;  %v5619_v24 = vpop.f32.mrf.mxu1  ;;  %v6836_v55 = vadd.f32 %v6835_v19, %v6682_v45  ;;  %v6377_v57 = vadd.f32 %v6376_v6, %v12887_v39  ;;  %v6826_v21 = vsel %vm2436_vm1, %v6732_v32, 0.0 }
 0x3bd   :  { %v6825_v47 = vadd.f32 %v6824_v10, %v6715_v25  ;;  %v12901_v56 = vadd.f32 %v5690_v26, %v5619_v24  ;;  %v5698_v9 = vpop.f32.mrf.mxu0  ;;  %v6716_v23 = vmul.f32 %v12872_v49, %v12872_v49  ;;  %v6733_v46 = vmul.f32 %v12875_v58, %v12875_v58 }
 0x3be   :  { %v6365_v4 = vadd.f32 %v6364_v35, %v12889_v33  ;;  %v5621_v30 = vpop.f32.mrf.mxu1  ;;  %v6837_v11 = vadd.f32 %v6836_v55, %v6699_v22  ;;  %v6378_v10 = vadd.f32 %v6377_v57, %v12893_v41 }
 0x3bf   :  { %v6827_v28 = vadd.f32 %v6826_v21, %v6825_v47  ;;  %v12910_v19 = vadd.f32 %v5692_v18, %v5621_v30  ;;  %v5700_v25 = vpop.f32.mrf.mxu0  ;;  %v6839_v35 = vsel %vm2436_vm1, %v6733_v46, 0.0 }
 0x3c0   :  { %v6366_v26 = vadd.f32 %v6365_v4, %v12898_v48  ;;  %v5623_v44 = vpop.f32.mrf.mxu1  ;;  %v6838_v45 = vadd.f32 %v6837_v11, %v6716_v23  ;;  %v6379_v0 = vadd.f32 %v6378_v10, %v12901_v56 }
 0x3c1   :  { %v6828_v32 = vrot.slane %v6827_v28, 4  ;;  %v12914_v6 = vadd.f32 %v5694_v31, %v5623_v44  ;;  %v5702_v24 = vpop.f32.mrf.mxu0 }
 0x3c2   :  { %v6367_v47 = vadd.f32 %v6366_v26, %v12910_v19  ;;  %v5627_v22 = vpop.f32.mrf.mxu1  ;;  %v6840_v57 = vadd.f32 %v6839_v35, %v6838_v45 }
 0x3c3   :  { %v6829_v55 = vadd.f32 %v6828_v32, %v6827_v28  ;;  %v6380_v18 = vadd.f32 %v6379_v0, %v12914_v6  ;;  %v5699_v21 = vadd.f32 %v5698_v9, %v5627_v22  ;;  %v5703_v30 = vpop.f32.mrf.mxu0 }
 0x3c4   :  { %v5629_v4 = vpop.f32.mrf.mxu1  ;;  %v6841_v49 = vrot.slane %v6840_v57, 4 }
 0x3c5   :  { %v6830_v58 = vrot.slane %v6829_v55, 2  ;;  %v6368_v23 = vsel %vm2436_vm1, %v5699_v21, 0.0  ;;  %v5701_v11 = vadd.f32 %v5700_v25, %v5629_v4 }
 0x3c6   :  { %v6369_v31 = vadd.f32 %v6368_v23, %v6367_v47  ;;  %v5631_v10 = vpop.f32.mrf.mxu1  ;;  %v6842_v24 = vadd.f32 %v6841_v49, %v6840_v57 }
 0x3c7   :  { %v6831_v44 = vadd.f32 %v6830_v58, %v6829_v55  ;;  %v6381_v46 = vsel %vm2436_vm1, %v5701_v11, 0.0 }
 0x3c8   :  { %v6370_v26 = vrot.slane %v6369_v31, 4  ;;  %v6382_v17 = vadd.f32 %v6381_v46, %v6380_v18  ;;  %v5632_v28 = vpop.f32.mrf.mxu1  ;;  %v6843_v45 = vrot.slane %v6842_v24, 2 }
 0x3c9   :  { %v6832_v32 = vrot.slane %v6831_v44, 1 }
 0x3ca   :  { %v6371_v0 = vadd.f32 %v6370_v26, %v6369_v31  ;;  %v6383_v9 = vrot.slane %v6382_v17, 4  ;;  %v12921_v35 = vpop.f32.mrf.mxu1  ;;  %v6844_v30 = vadd.f32 %v6843_v45, %v6842_v24 }
 0x3cb   :  { %v6833_v22 = vadd.f32 %v6832_v32, %v6831_v44 }
 0x3cc   :  { %v6372_v13 = vrot.slane %v6371_v0, 2  ;;  %v6384_v7 = vadd.f32 %v6383_v9, %v6382_v17  ;;  %v12923_v25 = vpop.f32.mrf.mxu1  ;;  %v6845_v58 = vrot.slane %v6844_v30, 1 }
 0x3cd   :  { %v6976_v47 = vmul.f32 0.020408163, %v6833_v22 }
 0x3ce   :  { %v6373_v49 = vadd.f32 %v6372_v13, %v6371_v0  ;;  %v6385_v55 = vrot.slane %v6384_v7, 2  ;;  %v12925_v57 = vpop.f32.mrf.mxu1  ;;  %v6846_v18 = vadd.f32 %v6845_v58, %v6844_v30 }
 0x3cf   :  { %v6996_v4 = vadd.f32 1e-05, %v6976_v47 }
 0x3d0   :  { %v6374_v23 = vrot.slane %v6373_v49, 1  ;;  %v6386_v10 = vadd.f32 %v6385_v55, %v6384_v7  ;;  %v12927_v31 = vpop.f32.mrf.mxu1  ;;  %v6977_v46 = vmul.f32 0.020408163, %v6846_v18 }
 0x3d1   :  { %9539 = vrsqrt.f32 %v6996_v4 }
 0x3d2   :  { %v6375_v26 = vadd.f32 %v6374_v23, %v6373_v49  ;;  %v6387_v44 = vrot.slane %v6386_v10, 1  ;;  %v12929_v24 = vpop.f32.mrf.mxu1  ;;  %v6997_v17 = vadd.f32 1e-05, %v6977_v46 }
 0x3d3   :  { %14874 = vst [vmem:[#allocation47_spill] sm:$0xff] %v12929_v24 }
 0x3d4   :  { %v6496_v28 = vmul.f32 0.020408163, %v6375_v26  ;;  %v6388_v32 = vadd.f32 %v6387_v44, %v6386_v10  ;;  %v12931_v45 = vpop.f32.mrf.mxu1  ;;  %9541 = vrsqrt.f32 %v6997_v17 }
 0x3d5   :  { %14875 = vst [vmem:[#allocation48_spill] sm:$0xff] %v12931_v45  ;;  %v14937_v45 = vld [vmem:[#allocation26_spill] sm:$0xff] }
 0x3d6   :  { %v12934_v13 = vsub.f32 %v12811_v3, %v6496_v28  ;;  %v12937_v0 = vsub.f32 %v12815_v34, %v6496_v28  ;;  %v12940_v7 = vsub.f32 %v12885_v5, %v6496_v28  ;;  %v12943_v9 = vsub.f32 %v12889_v33, %v6496_v28  ;;  %v12945_v22 = vpop.f32.mrf.mxu1 }
 0x3d7   :  { %14880 = vst [vmem:[#allocation53_spill] sm:$0xff] %v12945_v22  ;;  %v12948_v30 = vsub.f32 %v12898_v48, %v6496_v28  ;;  %v12951_v47 = vsub.f32 %v12910_v19, %v6496_v28  ;;  %v12953_v58 = vsub.f32 %v5699_v21, %v6496_v28  ;;  %v6497_v3 = vmul.f32 0.020408163, %v6388_v32 }
 0x3d8   :  { %14876 = vst [vmem:[#allocation49_spill] sm:$0xff] %v12934_v13  ;;  %14877 = vst [vmem:[#allocation50_spill] sm:$0xff] %v12937_v0  ;;  %v6632_v34 = vmul.f32 %v12934_v13, %v12934_v13  ;;  %v6649_v5 = vmul.f32 %v12937_v0, %v12937_v0  ;;  %v12959_v49 = vpop.f32.mrf.mxu1  ;;  %v6666_v33 = vmul.f32 %v12940_v7, %v12940_v7 }
 0x3d9   :  { %14878 = vst [vmem:[#allocation51_spill] sm:$0xff] %v12940_v7  ;;  %14879 = vst [vmem:[#allocation52_spill] sm:$0xff] %v12943_v9  ;;  %v12964_v48 = vsub.f32 %v12813_v8, %v6497_v3  ;;  %v12967_v19 = vsub.f32 %v12881_v63, %v6497_v3  ;;  %v12970_v21 = vsub.f32 %v12887_v39, %v6497_v3 }
 0x3da   :  { %14881 = vst [vmem:[#allocation54_spill] sm:$0xff] %v12948_v30  ;;  %14882 = vst [vmem:[#allocation55_spill] sm:$0xff] %v12951_v47  ;;  %v6847_v55 = vadd.f32 %v6649_v5, %v6632_v34  ;;  %v12973_v18 = vsub.f32 %v12893_v41, %v6497_v3  ;;  %v12975_v4 = vpop.f32.mrf.mxu1  ;;  %v12978_v23 = vsub.f32 %v12901_v56, %v6497_v3 }
 0x3db   :  { %14883 = vst [vmem:[#allocation56_spill] sm:$0xff] %v12953_v58  ;;  %14884 = vst [vmem:[#allocation57_spill] sm:$0xff] %v12959_v49  ;;  %v12981_v10 = vsub.f32 %v12914_v6, %v6497_v3  ;;  %v12983_v8 = vsub.f32 %v5701_v11, %v6497_v3  ;;  %v6683_v63 = vmul.f32 %v12943_v9, %v12943_v9 }
 0x3dc   :  { %14885 = vst [vmem:[#allocation58_spill] sm:$0xff] %v12964_v48  ;;  %14886 = vst [vmem:[#allocation59_spill] sm:$0xff] %v12967_v19  ;;  %v6848_v46 = vadd.f32 %v6847_v55, %v6666_v33  ;;  %v6633_v39 = vmul.f32 %v12964_v48, %v12964_v48  ;;  %v6650_v41 = vmul.f32 %v12967_v19, %v12967_v19  ;;  %v12991_v26 = vpop.f32.mrf.mxu1 }
 0x3dd   :  { %14887 = vst [vmem:[#allocation60_spill] sm:$0xff] %v12970_v21  ;;  %14888 = vst [vmem:[#allocation61_spill] sm:$0xff] %v12973_v18  ;;  %v6700_v56 = vmul.f32 %v12948_v30, %v12948_v30  ;;  %v6667_v6 = vmul.f32 %v12970_v21, %v12970_v21  ;;  %v6734_v28 = vmul.f32 %v12953_v58, %v12953_v58 }
 0x3de   :  { %14889 = vst [vmem:[#allocation62_spill] sm:$0xff] %v12975_v4  ;;  %14890 = vst [vmem:[#allocation63_spill] sm:$0xff] %v12978_v23  ;;  %v6849_v44 = vadd.f32 %v6848_v46, %v6683_v63  ;;  %v6860_v11 = vadd.f32 %v6650_v41, %v6633_v39  ;;  %v12997_v17 = vpop.f32.mrf.mxu1  ;;  %v6717_v32 = vmul.f32 %v12951_v47, %v12951_v47  ;;  %v9540_v55 = vpop.eup %9539 }
 0x3df   :  { %14891 = vst [vmem:[#allocation64_spill] sm:$0xff] %v12981_v10  ;;  %14892 = vst [vmem:[#allocation65_spill] sm:$0xff] %v12983_v8  ;;  %v6684_v34 = vmul.f32 %v12973_v18, %v12973_v18  ;;  %v6701_v39 = vmul.f32 %v12978_v23, %v12978_v23  ;;  %v6852_v9 = vsel %vm2436_vm1, %v6734_v28, 0.0 }
 0x3e0   :  { %14893 = vst [vmem:[#allocation66_spill] sm:$0xff] %v12991_v26  ;;  %14894 = vst [vmem:[#allocation67_spill] sm:$0xff] %v12997_v17  ;;  %v6850_v3 = vadd.f32 %v6849_v44, %v6700_v56  ;;  %v6861_v5 = vadd.f32 %v6860_v11, %v6667_v6  ;;  %v13005_v33 = vpop.f32.mrf.mxu1  ;;  %v6735_v56 = vmul.f32 %v12983_v8, %v12983_v8  ;;  %v13024_v8 = vsub.s32 3, %v11038_v40  ;;  %v14928_v17 = vld [vmem:[#allocation25_spill] sm:$0xff] }
 0x3e1   :  { %14895 = vst [vmem:[#allocation68_spill] sm:$0xff] %v13005_v33  ;;  %v9542_v63 = vpop.eup %9541  ;;  %v6718_v6 = vmul.f32 %v12981_v10, %v12981_v10  ;;  %v14927_v33 = vld [vmem:[#allocation19_spill] sm:$0xff] }
 0x3e2   :  { %v6851_v46 = vadd.f32 %v6850_v3, %v6717_v32  ;;  %v6862_v41 = vadd.f32 %v6861_v5, %v6684_v34  ;;  %v13009_v30 = vpop.f32.mrf.mxu1  ;;  %v7044_v58 = vcombine.low %v9540_v55, %v9542_v63  ;;  %v14898_v32 = vcombine.low %v12801_v15, %v12803_v14  ;;  %14899 = vst [vmem:[#allocation71_spill] sm:$0xff] %v13024_v8 }
 0x3e3   :  { %14896 = vst [vmem:[#allocation69_spill] sm:$0xff] %v13009_v30  ;;  %v13034_v14 = vsub.s32 5, %v11038_v40  ;;  %v14926_v30 = vld [vmem:[#allocation6_spill] sm:$0xff] }
 0x3e4   :  { %v6853_v44 = vadd.f32 %v6852_v9, %v6851_v46  ;;  %v6863_v11 = vadd.f32 %v6862_v41, %v6701_v39  ;;  %v13016_v47 = vpop.f32.mrf.mxu1  ;;  %v7065_v3 = vrot.slane %v14898_v32, %v11041_v16  ;;  %v7072_v34 = vrot.slane %v7044_v58, %v11041_v16  ;;  %v7366_v46 = vld [vmem:[%s14676_s6] sm:$0xff] }
 0x3e5   :  { %14897 = vst [vmem:[#allocation70_spill] sm:$0xff] %v13016_v47  ;;  %v13027_v9 = vsub.s32 4, %v11038_v40  ;;  %v6865_v39 = vsel %vm2436_vm1, %v6735_v56, 0.0  ;;  %v5739_v15 = vpop.f32.mrf.mxu0  ;;  %14901 = vst [vmem:[#allocation73_spill] sm:$0xff] %v13034_v14  ;;  %v14903_v32 = vcombine.low %v12708_v62, %v12711_v2  ;;  %v13048_v56 = vsub.s32 7, %v11038_v40 }
 0x3e6   :  { %v6854_v5 = vrot.slane %v6853_v44, 4  ;;  %v6864_v55 = vadd.f32 %v6863_v11, %v6718_v6  ;;  %v5844_v28 = vpop.f32.mrf.mxu1  ;;  %v7074_v63 = vcombine.low %v7065_v3, %v7072_v34  ;;  %v13037_v6 = vadd.f32 %v12921_v35, %v5739_v15  ;;  %v6987_v35 = vld [vmem:[%s14677_s5] sm:$0xff] }
 0x3e7   :  { %14900 = vst [vmem:[#allocation72_spill] sm:$0xff] %v13027_v9  ;;  %v7081_v3 = vrot.slane %v14903_v32, %v11041_v16  ;;  %v13045_v28 = vsub.s32 6, %v11038_v40  ;;  %14905 = vst [vmem:[#allocation76_spill] sm:$0xff] %v13048_v56  ;;  %v5741_v10 = vpop.f32.mrf.mxu0  ;;  %v13063_v40 = vrot.slane %v7366_v46, %v11058_v42  ;;  %v13085_v18 = vrot.slane %v7366_v46, %v13048_v56 }
 0x3e8   :  { %v6855_v58 = vadd.f32 %v6854_v5, %v6853_v44  ;;  %v6866_v41 = vadd.f32 %v6865_v39, %v6864_v55  ;;  %14902 = vst [vmem:[#allocation74_spill] sm:$0xff] %v13037_v6  ;;  %v5845_v11 = vpop.f32.mrf.mxu1  ;;  %v7088_v34 = vrot.slane %v7074_v63, %v11041_v16  ;;  %v13054_v44 = vrot.slane %v7366_v46, %v11052_v50 }
 0x3e9   :  { %14904 = vst [vmem:[#allocation75_spill] sm:$0xff] %v13045_v28  ;;  %v13057_v62 = vadd.f32 %v12923_v25, %v5741_v10  ;;  %v13060_v63 = vrot.slane %v7366_v46, %v11055_v29  ;;  %v13066_v39 = vrot.slane %v7366_v46, %v13024_v8  ;;  %v5743_v15 = vpop.f32.mrf.mxu0  ;;  %v13069_v11 = vrot.slane %v7366_v46, %v13027_v9 }
 0x3ea   :  { %v6856_v5 = vrot.slane %v6855_v58, 2  ;;  %v6867_v55 = vrot.slane %v6866_v41, 4  ;;  %v7089_v2 = vcombine.low %v7081_v3, %v7088_v34  ;;  %v13076_v25 = vadd.f32 %v12925_v57, %v5743_v15 }
 0x3eb   :  { %14906 = vst [vmem:[#allocation77_spill] sm:$0xff] %v13057_v62  ;;  %v13079_v3 = vrot.slane %v7366_v46, %v13034_v14  ;;  %v13082_v34 = vrot.slane %v7366_v46, %v13045_v28  ;;  %v5745_v21 = vpop.f32.mrf.mxu0 }
 0x3ec   :  { %v13071_v32 = vadd.f32 %v6856_v5, %v6855_v58  ;;  %v13073_v23 = vadd.f32 %v6867_v55, %v6866_v41  ;;  %14909 = vst [vmem:[#allocation80_spill] sm:$0xff] %v13076_v25  ;;  %v7156_v10 = vmul.f32 %v7089_v2, %v6987_v35  ;;  %v13091_v41 = vadd.f32 %v13076_v25, %v13037_v6 }
 0x3ed   :  { %v13094_v57 = vadd.f32 %v12927_v31, %v5745_v21  ;;  %v13108_v2 = vpop.f32.mrf.mxu0 }
 0x3ee   :  { %14907 = vst [vmem:[#allocation78_spill] sm:$0xff] %v13071_v32  ;;  %14908 = vst [vmem:[#allocation79_spill] sm:$0xff] %v13073_v23  ;;  %v13097_v35 = vrot.slane %v7156_v10, %v11052_v50  ;;  %v13100_v5 = vrot.slane %v7156_v10, %v11055_v29  ;;  %v13103_v46 = vrot.slane %v7156_v10, %v11058_v42  ;;  %v14919_v42 = vld [vmem:[#allocation4_spill] sm:$0xff]  ;;  %v14950_v32 = vld [vmem:[#allocation21_spill] sm:$0xff] }
 0x3ef   :  { %14910 = vst [vmem:[#allocation81_spill] sm:$0xff] %v13091_v41  ;;  %14911 = vst [vmem:[#allocation82_spill] sm:$0xff] %v13094_v57  ;;  %v13106_v55 = vrot.slane %v7156_v10, %v13024_v8  ;;  %v13111_v15 = vrot.slane %v7156_v10, %v13027_v9  ;;  %v13114_v31 = vrot.slane %v7156_v10, %v13034_v14  ;;  %v13138_v13 = vpop.f32.mrf.mxu0  ;;  %v14916_v14 = vld [vmem:[#allocation23_spill] sm:$0xff]  ;;  %v14920_v29 = vld [vmem:[#allocation8_spill] sm:$0xff] }
 0x3f0   :  { %14912 = vst [vmem:[#allocation83_spill] sm:$0xff] %v13108_v2  ;;  %v13117_v21 = vrot.slane %v7156_v10, %v13045_v28  ;;  %v13120_v58 = vrot.slane %v7156_v10, %v13048_v56  ;;  %v13124_v7 = vmul.f32 %v13097_v35, %v11982_v43  ;;  %v13128_v19 = vmul.f32 %v13100_v5, %v12020_v36  ;;  %v14914_v56 = vld [vmem:[#allocation11_spill] sm:$0xff]  ;;  %v14915_v28 = vld [vmem:[#allocation12_spill] sm:$0xff] }
 0x3f1   :  { %v13132_v0 = vmul.f32 %v13103_v46, %v12325_v54  ;;  %v13136_v48 = vmul.f32 %v13106_v55, %v12360_v53  ;;  %14913 = vst [vmem:[#allocation84_spill] sm:$0xff] %v13138_v13  ;;  %v13142_v10 = vmul.f32 %v13111_v15, %v12570_v59  ;;  %v13146_v43 = vmul.f32 %v13114_v31, %v12610_v60  ;;  %v13172_v9 = vpop.f32.mrf.mxu0  ;;  %v14921_v50 = vld [vmem:[#allocation24_spill] sm:$0xff] }
 0x3f2   :  { %v13150_v36 = vmul.f32 %v13117_v21, %v12820_v20  ;;  %v13154_v54 = vmul.f32 %v13120_v58, %v12843_v27  ;;  %v13158_v53 = vmul.f32 %v13097_v35, %v11985_v61  ;;  %v13162_v59 = vmul.f32 %v13100_v5, %v14914_v56  ;;  %14917 = vst [vmem:[#allocation11_spill] sm:$0xff] %v13172_v9  ;;  %v14936_v9 = vld [vmem:[#allocation20_spill] sm:$0xff] }
 0x3f3   :  { %v13166_v60 = vmul.f32 %v13103_v46, %v14915_v28  ;;  %v13170_v20 = vmul.f32 %v13106_v55, %v14916_v14  ;;  %v13176_v27 = vmul.f32 %v13111_v15, %v12573_v37  ;;  %v13180_v61 = vmul.f32 %v13114_v31, %v12616_v52  ;;  %v14918_v14 = vld [vmem:[#allocation9_spill] sm:$0xff]  ;;  %v13206_v16 = vpop.f32.mrf.mxu0 }
 0x3f4   :  { %v13184_v56 = vmul.f32 %v13117_v21, %v12823_v1  ;;  %v13188_v28 = vmul.f32 %v13120_v58, %v12848_v12  ;;  %v13192_v8 = vmul.f32 %v13097_v35, %v14918_v14  ;;  %v13196_v37 = vmul.f32 %v13100_v5, %v14919_v42  ;;  %14922 = vst [vmem:[#allocation12_spill] sm:$0xff] %v13206_v16  ;;  %v14923_v42 = vld [vmem:[#allocation37_spill] sm:$0xff] }
 0x3f5   :  { %v13200_v52 = vmul.f32 %v13103_v46, %v14920_v29  ;;  %v13204_v1 = vmul.f32 %v13106_v55, %v14921_v50  ;;  %v13210_v12 = vmul.f32 %v13111_v15, %v12576_v51  ;;  %v13214_v14 = vmul.f32 %v13114_v31, %v12619_v38  ;;  %v14924_v29 = vld [vmem:[#allocation42_spill] sm:$0xff]  ;;  %v13240_v26 = vpop.f32.mrf.mxu0 }
 0x3f6   :  { %v13218_v25 = vmul.f32 %v13117_v21, %v14923_v42  ;;  %v13222_v6 = vmul.f32 %v13120_v58, %v14924_v29  ;;  %v14925_v50 = vld [vmem:[#allocation2_spill] sm:$0xff]  ;;  %v13230_v51 = vmul.f32 %v13100_v5, %v14926_v30  ;;  %v13234_v38 = vmul.f32 %v13103_v46, %v14927_v33  ;;  %14929 = vst [vmem:[#allocation23_spill] sm:$0xff] %v13240_v26  ;;  %v14930_v29 = vld [vmem:[#allocation29_spill] sm:$0xff]  ;;  %v14933_v33 = vld [vmem:[#allocation43_spill] sm:$0xff] }
 0x3f7   :  { %v13226_v47 = vmul.f32 %v13097_v35, %v14925_v50  ;;  %v13238_v42 = vmul.f32 %v13106_v55, %v14928_v17  ;;  %v13244_v41 = vmul.f32 %v13111_v15, %v14930_v29  ;;  %v14931_v50 = vld [vmem:[#allocation33_spill] sm:$0xff]  ;;  %v14932_v30 = vld [vmem:[#allocation38_spill] sm:$0xff]  ;;  %v13256_v16 = vmul.f32 %v13120_v58, %v14933_v33  ;;  %v14934_v17 = vld [vmem:[#allocation3_spill] sm:$0xff]  ;;  %v13274_v13 = vpop.f32.mrf.mxu0 }
 0x3f8   :  { %v13248_v4 = vmul.f32 %v13114_v31, %v14931_v50  ;;  %v13252_v49 = vmul.f32 %v13117_v21, %v14932_v30  ;;  %v13260_v22 = vmul.f32 %v13097_v35, %v14934_v17  ;;  %v14935_v26 = vld [vmem:[#allocation5_spill] sm:$0xff]  ;;  %v13268_v50 = vmul.f32 %v13103_v46, %v14936_v9  ;;  %14938 = vst [vmem:[#allocation9_spill] sm:$0xff] %v13274_v13  ;;  %v14939_v33 = vld [vmem:[#allocation30_spill] sm:$0xff]  ;;  %v14944_v9 = vld [vmem:[#allocation44_spill] sm:$0xff] }
 0x3f9   :  { %v13264_v29 = vmul.f32 %v13100_v5, %v14935_v26  ;;  %v13272_v30 = vmul.f32 %v13106_v55, %v14937_v45  ;;  %v13278_v24 = vmul.f32 %v13111_v15, %v14939_v33  ;;  %v14940_v17 = vld [vmem:[#allocation34_spill] sm:$0xff]  ;;  %v14942_v26 = vld [vmem:[#allocation39_spill] sm:$0xff]  ;;  %v13290_v62 = vmul.f32 %v13120_v58, %v14944_v9 }
 0x3fa   :  { %v13282_v2 = vmul.f32 %v13114_v31, %v14940_v17  ;;  %v13286_v57 = vmul.f32 %v13117_v21, %v14942_v26  ;;  %v14946_v45 = vld [vmem:[#allocation10_spill] sm:$0xff]  ;;  %v14948_v13 = vld [vmem:[#allocation7_spill] sm:$0xff]  ;;  %v13302_v17 = vmul.f32 %v13103_v46, %v14950_v32  ;;  %v14961_v32 = vld [vmem:[#allocation45_spill] sm:$0xff] }
 0x3fb   :  { %14945 = vst [vmem:[#allocation24_spill] sm:$0xff] %v13290_v62  ;;  %v13294_v23 = vmul.f32 %v13097_v35, %v14946_v45  ;;  %v13298_v33 = vmul.f32 %v13100_v5, %v14948_v13  ;;  %v14955_v9 = vld [vmem:[#allocation31_spill] sm:$0xff]  ;;  %v14959_v13 = vld [vmem:[#allocation40_spill] sm:$0xff] }
 0x3fc   :  { %14941 = vst [vmem:[#allocation4_spill] sm:$0xff] %v13282_v2  ;;  %14943 = vst [vmem:[#allocation8_spill] sm:$0xff] %v13286_v57  ;;  %v14952_v2 = vld [vmem:[#allocation27_spill] sm:$0xff]  ;;  %v13308_v57 = vpop.f32.mrf.mxu0  ;;  %v13312_v62 = vmul.f32 %v13111_v15, %v14955_v9 }
 0x3fd   :  { %14947 = vst [vmem:[#allocation37_spill] sm:$0xff] %v13294_v23  ;;  %14949 = vst [vmem:[#allocation42_spill] sm:$0xff] %v13298_v33  ;;  %v13306_v26 = vmul.f32 %v13106_v55, %v14952_v2  ;;  %v14957_v45 = vld [vmem:[#allocation35_spill] sm:$0xff]  ;;  %v13320_v33 = vmul.f32 %v13117_v21, %v14959_v13  ;;  %v14963_v2 = vld [vmem:[#allocation13_spill] sm:$0xff] }
 0x3fe   :  { %14951 = vst [vmem:[#allocation2_spill] sm:$0xff] %v13302_v17  ;;  %14954 = vst [vmem:[#allocation19_spill] sm:$0xff] %v13308_v57  ;;  %v13316_v23 = vmul.f32 %v13114_v31, %v14957_v45  ;;  %v13324_v17 = vmul.f32 %v13120_v58, %v14961_v32  ;;  %v14964_v57 = vld [vmem:[#allocation14_spill] sm:$0xff]  ;;  %v14967_v32 = vld [vmem:[#allocation32_spill] sm:$0xff] }
 0x3ff   :  { %14953 = vst [vmem:[#allocation6_spill] sm:$0xff] %v13306_v26  ;;  %14956 = vst [vmem:[#allocation25_spill] sm:$0xff] %v13312_v62  ;;  %v13328_v26 = vmul.f32 %v13097_v35, %v14963_v2  ;;  %v13332_v9 = vmul.f32 %v13100_v5, %v14964_v57  ;;  %v14965_v62 = vld [vmem:[#allocation22_spill] sm:$0xff]  ;;  %v14968_v35 = vld [vmem:[#allocation36_spill] sm:$0xff] }
 0x400   :  { %14958 = vst [vmem:[#allocation29_spill] sm:$0xff] %v13316_v23  ;;  %14960 = vst [vmem:[#allocation33_spill] sm:$0xff] %v13320_v33  ;;  %v13336_v45 = vmul.f32 %v13103_v46, %v14965_v62  ;;  %v14966_v23 = vld [vmem:[#allocation28_spill] sm:$0xff]  ;;  %v13342_v33 = vpop.f32.mrf.mxu0  ;;  %v13350_v2 = vmul.f32 %v13114_v31, %v14968_v35  ;;  %v14969_v57 = vld [vmem:[#allocation41_spill] sm:$0xff]  ;;  %v7460_v31 = vadd.f32 %v13066_v39, %v13136_v48 }
 0x401   :  { %14962 = vst [vmem:[#allocation38_spill] sm:$0xff] %v13324_v17  ;;  %v13340_v13 = vmul.f32 %v13106_v55, %v14966_v23  ;;  %v13346_v17 = vmul.f32 %v13111_v15, %v14967_v32  ;;  %v13354_v5 = vmul.f32 %v13117_v21, %v14969_v57  ;;  %v14970_v62 = vld [vmem:[#allocation46_spill] sm:$0xff]  ;;  %v7457_v23 = vadd.f32 %v13054_v44, %v13124_v7 }
 0x402   :  { %v13358_v46 = vmul.f32 %v13120_v58, %v14970_v62  ;;  %v7458_v55 = vadd.f32 %v13060_v63, %v13128_v19  ;;  %v7459_v15 = vadd.f32 %v13063_v40, %v13132_v0  ;;  %v13368_v32 = vpop.f32.mrf.mxu0  ;;  %v7461_v21 = vadd.f32 %v13069_v11, %v13142_v10  ;;  %7579 = vst [vmem:[%s14678_s7 + $0x18] sm:$0xff] %v7460_v31 }
 0x403   :  { %v7462_v58 = vadd.f32 %v13079_v3, %v13146_v43  ;;  %v7463_v7 = vadd.f32 %v13082_v34, %v13150_v36  ;;  %v7464_v19 = vadd.f32 %v13085_v18, %v13154_v54  ;;  %v7474_v0 = vadd.f32 %v13054_v44, %v13158_v53  ;;  %7576 = vst [vmem:[%s14678_s7] sm:$0xff] %v7457_v23  ;;  %v14972_v57 = vld [vmem:[#allocation8_spill] sm:$0xff] }
 0x404   :  { %v7475_v48 = vadd.f32 %v13060_v63, %v13162_v59  ;;  %v7476_v35 = vadd.f32 %v13063_v40, %v13166_v60  ;;  %v7477_v10 = vadd.f32 %v13066_v39, %v13170_v20  ;;  %7577 = vst [vmem:[%s14678_s7 + $0x8] sm:$0xff] %v7458_v55  ;;  %7578 = vst [vmem:[%s14678_s7 + $0x10] sm:$0xff] %v7459_v15  ;;  %v13398_v43 = vpop.f32.mrf.mxu0  ;;  %v14973_v23 = vld [vmem:[#allocation24_spill] sm:$0xff]  ;;  %v14975_v31 = vld [vmem:[#allocation42_spill] sm:$0xff] }
 0x405   :  { %v7478_v36 = vadd.f32 %v13069_v11, %v13176_v27  ;;  %v7479_v54 = vadd.f32 %v13079_v3, %v13180_v61  ;;  %v7480_v53 = vadd.f32 %v13082_v34, %v13184_v56  ;;  %v7481_v59 = vadd.f32 %v13085_v18, %v13188_v28  ;;  %7580 = vst [vmem:[%s14678_s7 + $0x20] sm:$0xff] %v7461_v21 }
 0x406   :  { %7581 = vst [vmem:[%s14678_s7 + $0x28] sm:$0xff] %v7462_v58  ;;  %7582 = vst [vmem:[%s14678_s7 + $0x30] sm:$0xff] %v7463_v7  ;;  %v7491_v60 = vadd.f32 %v13054_v44, %v13192_v8  ;;  %v7492_v20 = vadd.f32 %v13060_v63, %v13196_v37  ;;  %v7493_v27 = vadd.f32 %v13063_v40, %v13200_v52  ;;  %v5773_v8 = vpop.f32.mrf.mxu0  ;;  %v14976_v58 = vld [vmem:[#allocation2_spill] sm:$0xff] }
 0x407   :  { %7583 = vst [vmem:[%s14678_s7 + $0x38] sm:$0xff] %v7464_v19  ;;  %v7494_v61 = vadd.f32 %v13066_v39, %v13204_v1  ;;  %7593 = vst [vmem:[%s14678_s7 + $0x88] sm:$0xff] %v7474_v0  ;;  %v7495_v56 = vadd.f32 %v13069_v11, %v13210_v12  ;;  %v7496_v28 = vadd.f32 %v13079_v3, %v13214_v14  ;;  %v14977_v19 = vld [vmem:[#allocation6_spill] sm:$0xff] }
 0x408   :  { %7594 = vst [vmem:[%s14678_s7 + $0x90] sm:$0xff] %v7475_v48  ;;  %7595 = vst [vmem:[%s14678_s7 + $0x98] sm:$0xff] %v7476_v35  ;;  %v7497_v37 = vadd.f32 %v13082_v34, %v13218_v25  ;;  %v7498_v52 = vadd.f32 %v13085_v18, %v13222_v6  ;;  %v7508_v25 = vadd.f32 %v13054_v44, %v13226_v47  ;;  %v5774_v47 = vpop.f32.mrf.mxu0  ;;  %v14978_v35 = vld [vmem:[#allocation25_spill] sm:$0xff] }
 0x409   :  { %7596 = vst [vmem:[%s14678_s7 + $0xa0] sm:$0xff] %v7477_v10  ;;  %7597 = vst [vmem:[%s14678_s7 + $0xa8] sm:$0xff] %v7478_v36  ;;  %v7509_v6 = vadd.f32 %v13060_v63, %v13230_v51  ;;  %v7510_v1 = vadd.f32 %v13063_v40, %v13234_v38  ;;  %v7511_v12 = vadd.f32 %v13066_v39, %v13238_v42  ;;  %v14979_v36 = vld [vmem:[#allocation29_spill] sm:$0xff]  ;;  %v14992_v47 = vld [vmem:[#allocation11_spill] sm:$0xff] }
 0x40a   :  { %7598 = vst [vmem:[%s14678_s7 + $0xb0] sm:$0xff] %v7479_v54  ;;  %7599 = vst [vmem:[%s14678_s7 + $0xb8] sm:$0xff] %v7480_v53  ;;  %v7512_v14 = vadd.f32 %v13069_v11, %v13244_v41  ;;  %v7513_v51 = vadd.f32 %v13079_v3, %v13248_v4  ;;  %v7514_v38 = vadd.f32 %v13082_v34, %v13252_v49  ;;  %v14980_v53 = vld [vmem:[#allocation33_spill] sm:$0xff] }
 0x40b   :  { %7600 = vst [vmem:[%s14678_s7 + $0xc0] sm:$0xff] %v7481_v59  ;;  %7610 = vst [vmem:[%s14678_s7 + $0x110] sm:$0xff] %v7491_v60  ;;  %v7515_v42 = vadd.f32 %v13085_v18, %v13256_v16  ;;  %v7525_v49 = vadd.f32 %v13054_v44, %v13260_v22  ;;  %v7526_v16 = vadd.f32 %v13060_v63, %v13264_v29  ;;  %v13520_v22 = vpop.f32.mrf.mxu0  ;;  %v14981_v60 = vld [vmem:[#allocation38_spill] sm:$0xff] }
 0x40c   :  { %7611 = vst [vmem:[%s14678_s7 + $0x118] sm:$0xff] %v7492_v20  ;;  %7612 = vst [vmem:[%s14678_s7 + $0x120] sm:$0xff] %v7493_v27  ;;  %v7527_v4 = vadd.f32 %v13063_v40, %v13268_v50  ;;  %v7528_v41 = vadd.f32 %v13066_v39, %v13272_v30  ;;  %v7529_v29 = vadd.f32 %v13069_v11, %v13278_v24  ;;  %v14971_v50 = vld [vmem:[#allocation4_spill] sm:$0xff]  ;;  %v14974_v24 = vld [vmem:[#allocation37_spill] sm:$0xff]  ;;  %v5881_v27 = vpop.f32.mrf.mxu1 }
 0x40d   :  { %7613 = vst [vmem:[%s14678_s7 + $0x128] sm:$0xff] %v7494_v61  ;;  %7614 = vst [vmem:[%s14678_s7 + $0x130] sm:$0xff] %v7495_v56  ;;  %v7530_v30 = vadd.f32 %v13079_v3, %v14971_v50  ;;  %v7531_v62 = vadd.f32 %v13082_v34, %v14972_v57  ;;  %v7532_v55 = vadd.f32 %v13085_v18, %v14973_v23  ;;  %v13562_v48 = vpop.f32.mrf.mxu0  ;;  %v14998_v57 = vld [vmem:[#allocation81_spill] sm:$0xff] }
 0x40e   :  { %7615 = vst [vmem:[%s14678_s7 + $0x138] sm:$0xff] %v7496_v28  ;;  %7616 = vst [vmem:[%s14678_s7 + $0x140] sm:$0xff] %v7497_v37  ;;  %v7542_v15 = vadd.f32 %v13054_v44, %v14974_v24  ;;  %v7543_v21 = vadd.f32 %v13060_v63, %v14975_v31  ;;  %v7544_v7 = vadd.f32 %v13063_v40, %v14976_v58  ;;  %v14989_v37 = vld [vmem:[#allocation47_spill] sm:$0xff]  ;;  %v14999_v23 = vld [vmem:[#allocation9_spill] sm:$0xff] }
 0x40f   :  { %7617 = vst [vmem:[%s14678_s7 + $0x148] sm:$0xff] %v7498_v52  ;;  %7627 = vst [vmem:[%s14678_s7 + $0x198] sm:$0xff] %v7508_v25  ;;  %v7545_v0 = vadd.f32 %v13066_v39, %v14977_v19  ;;  %v7546_v10 = vadd.f32 %v13069_v11, %v14978_v35  ;;  %v7547_v54 = vadd.f32 %v13079_v3, %v14979_v36  ;;  %v15002_v58 = vld [vmem:[#allocation67_spill] sm:$0xff]  ;;  %v15003_v19 = vld [vmem:[#allocation68_spill] sm:$0xff] }
 0x410   :  { %7628 = vst [vmem:[%s14678_s7 + $0x1a0] sm:$0xff] %v7509_v6  ;;  %7629 = vst [vmem:[%s14678_s7 + $0x1a8] sm:$0xff] %v7510_v1  ;;  %v7548_v59 = vadd.f32 %v13082_v34, %v14980_v53  ;;  %v7549_v20 = vadd.f32 %v13085_v18, %v14981_v60  ;;  %v7559_v61 = vadd.f32 %v13054_v44, %v13328_v26  ;;  %v5956_v44 = vpop.f32.mrf.mxu0  ;;  %v14990_v6 = vld [vmem:[#allocation84_spill] sm:$0xff]  ;;  %v15004_v35 = vld [vmem:[#allocation69_spill] sm:$0xff] }
 0x411   :  { %7630 = vst [vmem:[%s14678_s7 + $0x1b0] sm:$0xff] %v7511_v12  ;;  %7631 = vst [vmem:[%s14678_s7 + $0x1b8] sm:$0xff] %v7512_v14  ;;  %v7560_v8 = vadd.f32 %v13060_v63, %v13332_v9  ;;  %v7561_v56 = vadd.f32 %v13063_v40, %v13336_v45  ;;  %v7562_v28 = vadd.f32 %v13066_v39, %v13340_v13  ;;  %v14986_v13 = vld [vmem:[#allocation77_spill] sm:$0xff]  ;;  %v14991_v1 = vld [vmem:[#allocation48_spill] sm:$0xff] }
 0x412   :  { %7632 = vst [vmem:[%s14678_s7 + $0x1c0] sm:$0xff] %v7513_v51  ;;  %7633 = vst [vmem:[%s14678_s7 + $0x1c8] sm:$0xff] %v7514_v38  ;;  %v7563_v63 = vadd.f32 %v13069_v11, %v13346_v17  ;;  %v7564_v40 = vadd.f32 %v13079_v3, %v13350_v2  ;;  %v7565_v39 = vadd.f32 %v13082_v34, %v13354_v5  ;;  %v5883_v11 = vpop.f32.mrf.mxu1  ;;  %v14984_v17 = vld [vmem:[#allocation79_spill] sm:$0xff]  ;;  %v14987_v2 = vld [vmem:[#allocation82_spill] sm:$0xff]  ;;  %v5958_v25 = vpop.f32.mrf.mxu0 }
 0x413   :  { %7634 = vst [vmem:[%s14678_s7 + $0x1d0] sm:$0xff] %v7515_v42  ;;  %7644 = vst [vmem:[%s14678_s7 + $0x220] sm:$0xff] %v7525_v49  ;;  %v7566_v26 = vadd.f32 %v13085_v18, %v13358_v46  ;;  %v14982_v18 = vld [vmem:[#allocation78_spill] sm:$0xff]  ;;  %v14985_v9 = vrot.slane %v14984_v17, 2  ;;  %v6402_v5 = vadd.f32 %v14987_v2, %v14986_v13  ;;  %v14988_v46 = vld [vmem:[#allocation83_spill] sm:$0xff]  ;;  %v13662_v12 = vadd.f32 %v14991_v1, %v14990_v6 }
 0x414   :  { %7645 = vst [vmem:[%s14678_s7 + $0x228] sm:$0xff] %v7526_v16  ;;  %7646 = vst [vmem:[%s14678_s7 + $0x230] sm:$0xff] %v7527_v4  ;;  %v14983_v3 = vrot.slane %v14982_v18, 1  ;;  %v13646_v52 = vadd.f32 %v14989_v37, %v14988_v46  ;;  %v14993_v14 = vld [vmem:[#allocation53_spill] sm:$0xff]  ;;  %v14994_v38 = vld [vmem:[#allocation12_spill] sm:$0xff] }
 0x415   :  { %7647 = vst [vmem:[%s14678_s7 + $0x238] sm:$0xff] %v7528_v41  ;;  %7648 = vst [vmem:[%s14678_s7 + $0x240] sm:$0xff] %v7529_v29  ;;  %v6870_v45 = vadd.f32 %v14985_v9, %v14984_v17  ;;  %v13666_v51 = vadd.f32 %v14993_v14, %v14992_v47  ;;  %v14995_v42 = vld [vmem:[#allocation57_spill] sm:$0xff]  ;;  %v14996_v16 = vld [vmem:[#allocation23_spill] sm:$0xff]  ;;  %v5885_v29 = vpop.f32.mrf.mxu1  ;;  %v6403_v31 = vadd.f32 %v6402_v5, %v13662_v12 }
 0x416   :  { %7649 = vst [vmem:[%s14678_s7 + $0x248] sm:$0xff] %v7530_v30  ;;  %7650 = vst [vmem:[%s14678_s7 + $0x250] sm:$0xff] %v7531_v62  ;;  %v6859_v34 = vadd.f32 %v14983_v3, %v14982_v18  ;;  %v13670_v49 = vadd.f32 %v14995_v42, %v14994_v38  ;;  %v14997_v4 = vld [vmem:[#allocation62_spill] sm:$0xff]  ;;  %v6390_v62 = vadd.f32 %v14998_v57, %v13646_v52 }
 0x417   :  { %7651 = vst [vmem:[%s14678_s7 + $0x258] sm:$0xff] %v7532_v55  ;;  %7661 = vst [vmem:[%s14678_s7 + $0x2a8] sm:$0xff] %v7542_v15  ;;  %v13674_v41 = vadd.f32 %v14997_v4, %v14996_v16  ;;  %v6871_v30 = vrot.slane %v6870_v45, 1  ;;  %v15000_v55 = vld [vmem:[#allocation66_spill] sm:$0xff]  ;;  %v5962_v15 = vpop.f32.mrf.mxu0  ;;  %v5887_v36 = vpop.f32.mrf.mxu1 }
 0x418   :  { %7662 = vst [vmem:[%s14678_s7 + $0x2b0] sm:$0xff] %v7543_v21  ;;  %7663 = vst [vmem:[%s14678_s7 + $0x2b8] sm:$0xff] %v7544_v7  ;;  %v6978_v50 = vmul.f32 0.020408163, %v6859_v34  ;;  %v13680_v24 = vadd.f32 %v15000_v55, %v14999_v23  ;;  %v15001_v21 = vld [vmem:[#allocation19_spill] sm:$0xff]  ;;  %v6391_v53 = vadd.f32 %v6390_v62, %v13666_v51  ;;  %v13713_v18 = vadd.f32 %v5958_v25, %v5887_v36 }
 0x419   :  { %7664 = vst [vmem:[%s14678_s7 + $0x2c0] sm:$0xff] %v7545_v0  ;;  %7665 = vst [vmem:[%s14678_s7 + $0x2c8] sm:$0xff] %v7546_v10  ;;  %v13685_v7 = vadd.f32 %v15002_v58, %v15001_v21  ;;  %v13689_v0 = vadd.f32 %v15003_v19, %v13342_v33  ;;  %v13693_v10 = vadd.f32 %v15004_v35, %v13368_v32  ;;  %v5891_v32 = vpop.f32.mrf.mxu1 }
 0x41a   :  { %7666 = vst [vmem:[%s14678_s7 + $0x2d0] sm:$0xff] %v7547_v54  ;;  %7667 = vst [vmem:[%s14678_s7 + $0x2d8] sm:$0xff] %v7548_v59  ;;  %v6872_v54 = vadd.f32 %v6871_v30, %v6870_v45  ;;  %v15005_v59 = vld [vmem:[#allocation70_spill] sm:$0xff]  ;;  %v13705_v33 = vadd.f32 %v13562_v48, %v5883_v11  ;;  %v13715_v3 = vadd.f32 %v5962_v15, %v5891_v32 }
 0x41b   :  { %7668 = vst [vmem:[%s14678_s7 + $0x2e0] sm:$0xff] %v7549_v20  ;;  %7678 = vst [vmem:[%s14678_s7 + $0x330] sm:$0x1] %v7559_v61  ;;  %v13698_v60 = vadd.f32 %v15005_v59, %v13398_v43  ;;  %v5964_v20 = vpop.f32.mrf.mxu0  ;;  %v6998_v61 = vadd.f32 1e-05, %v6978_v50 }
 0x41c   :  { %7679 = vst [vmem:[%s14678_s7 + $0x338] sm:$0x1] %v7560_v8  ;;  %7680 = vst [vmem:[%s14678_s7 + $0x340] sm:$0x1] %v7561_v56  ;;  %v6404_v8 = vadd.f32 %v6403_v31, %v13670_v49  ;;  %v13702_v56 = vadd.f32 %v13520_v22, %v5881_v27  ;;  %v5893_v22 = vpop.f32.mrf.mxu1  ;;  %v6428_v45 = vadd.f32 %v13713_v18, %v13705_v33 }
 0x41d   :  { %7681 = vst [vmem:[%s14678_s7 + $0x348] sm:$0x1] %v7562_v28  ;;  %7682 = vst [vmem:[%s14678_s7 + $0x350] sm:$0x1] %v7563_v63  ;;  %v6979_v28 = vmul.f32 0.020408163, %v6872_v54  ;;  %v6392_v63 = vadd.f32 %v6391_v53, %v13674_v41  ;;  %v13720_v34 = vadd.f32 %v5964_v20, %v5893_v22  ;;  %9543 = vrsqrt.f32 %v6998_v61 }
 0x41e   :  { %7683 = vst [vmem:[%s14678_s7 + $0x358] sm:$0x1] %v7564_v40  ;;  %7684 = vst [vmem:[%s14678_s7 + $0x360] sm:$0x1] %v7565_v39  ;;  %v6394_v40 = vsel %vm2436_vm1, %v13693_v10, 0.0  ;;  %v5966_v39 = vpop.f32.mrf.mxu0  ;;  %v6405_v43 = vadd.f32 %v6404_v8, %v13680_v24  ;;  %v6407_v11 = vsel %vm2436_vm1, %v13698_v60, 0.0  ;;  %v5895_v5 = vpop.f32.mrf.mxu1 }
 0x41f   :  { %7685 = vst [vmem:[%s14678_s7 + $0x368] sm:$0x1] %v7566_v26  ;;  %v13711_v26 = vadd.f32 %v5956_v44, %v5885_v29  ;;  %v6999_v27 = vadd.f32 1e-05, %v6979_v28  ;;  %v6393_v48 = vadd.f32 %v6392_v63, %v13685_v7  ;;  %v13727_v37 = vadd.f32 %v5966_v39, %v5895_v5 }
 0x420   :  { %v5968_v17 = vpop.f32.mrf.mxu0  ;;  %v6406_v9 = vadd.f32 %v6405_v43, %v13689_v0  ;;  %v6429_v47 = vadd.f32 %v6428_v45, %v13720_v34  ;;  %v5897_v14 = vpop.f32.mrf.mxu1 }
 0x421   :  { %v6415_v44 = vadd.f32 %v13711_v26, %v13702_v56  ;;  %9545 = vrsqrt.f32 %v6999_v27  ;;  %v6395_v46 = vadd.f32 %v6394_v40, %v6393_v48  ;;  %v13731_v42 = vadd.f32 %v5968_v17, %v5897_v14 }
 0x422   :  { %v5972_v25 = vpop.f32.mrf.mxu0  ;;  %v6408_v6 = vadd.f32 %v6407_v11, %v6406_v9  ;;  %v5901_v50 = vpop.f32.mrf.mxu1 }
 0x423   :  { %v6416_v1 = vadd.f32 %v6415_v44, %v13715_v3  ;;  %v6396_v38 = vrot.slane %v6395_v46, 4  ;;  %v6430_v57 = vadd.f32 %v6429_v47, %v13731_v42  ;;  %v13735_v62 = vadd.f32 %v5972_v25, %v5901_v50 }
 0x424   :  { %v5974_v16 = vpop.f32.mrf.mxu0  ;;  %v6409_v4 = vrot.slane %v6408_v6, 4  ;;  %v5903_v15 = vpop.f32.mrf.mxu1 }
 0x425   :  { %v6417_v29 = vadd.f32 %v6416_v1, %v13727_v37  ;;  %v6397_v30 = vadd.f32 %v6396_v38, %v6395_v46  ;;  %v13738_v58 = vadd.f32 %v5974_v16, %v5903_v15  ;;  %v15006_v16 = vld [vmem:[#allocation74_spill] sm:$0xff] }
 0x426   :  { %v5976_v23 = vpop.f32.mrf.mxu0  ;;  %v6410_v55 = vadd.f32 %v6409_v4, %v6408_v6  ;;  %v5905_v36 = vpop.f32.mrf.mxu1 }
 0x427   :  { %v6398_v31 = vrot.slane %v6397_v30, 2  ;;  %v6418_v21 = vadd.f32 %v6417_v29, %v13735_v62  ;;  %v6431_v53 = vadd.f32 %v6430_v57, %v13738_v58  ;;  %v13741_v59 = vadd.f32 %v5976_v23, %v5905_v36  ;;  %v15007_v29 = vld [vmem:[#allocation80_spill] sm:$0xff] }
 0x428   :  { %v5978_v19 = vpop.f32.mrf.mxu0  ;;  %v6411_v35 = vrot.slane %v6410_v55, 2  ;;  %v5907_v8 = vpop.f32.mrf.mxu1 }
 0x429   :  { %v6399_v54 = vadd.f32 %v6398_v31, %v6397_v30  ;;  %v6419_v28 = vadd.f32 %v6418_v21, %v13741_v59  ;;  %v13744_v63 = vadd.f32 %v5978_v19, %v5907_v8 }
 0x42a   :  { %v5982_v20 = vpop.f32.mrf.mxu0  ;;  %v6412_v61 = vadd.f32 %v6411_v35, %v6410_v55  ;;  %v5911_v43 = vpop.f32.mrf.mxu1 }
 0x42b   :  { %v6400_v32 = vrot.slane %v6399_v54, 1  ;;  %v13746_v22 = vpop.eup %9543  ;;  %v6432_v48 = vadd.f32 %v6431_v53, %v13744_v63  ;;  %v13749_v11 = vadd.f32 %v5982_v20, %v5911_v43 }
 0x42c   :  { %v5984_v40 = vpop.f32.mrf.mxu0  ;;  %v6413_v39 = vrot.slane %v6412_v61, 1  ;;  %v5913_v45 = vpop.f32.mrf.mxu1 }
 0x42d   :  { %v6401_v27 = vadd.f32 %v6400_v32, %v6399_v54  ;;  %v6420_v25 = vsel %vm2436_vm1, %v13749_v11, 0.0  ;;  %v13757_v6 = vadd.f32 %v5984_v40, %v5913_v45 }
 0x42e   :  { %v5986_v17 = vpop.f32.mrf.mxu0  ;;  %v13751_v9 = vpop.eup %9545  ;;  %v6414_v44 = vadd.f32 %v6413_v39, %v6412_v61  ;;  %v6421_v14 = vadd.f32 %v6420_v25, %v6419_v28 }
 0x42f   :  { %v6498_v46 = vmul.f32 0.020408163, %v6401_v27  ;;  %v5915_v38 = vpop.f32.mrf.mxu1  ;;  %v6433_v40 = vsel %vm2436_vm1, %v13757_v6, 0.0 }
 0x430   :  { %v5987_v1 = vpop.f32.mrf.mxu0  ;;  %v6499_v47 = vmul.f32 0.020408163, %v6414_v44  ;;  %v6422_v28 = vrot.slane %v6421_v14, 4  ;;  %v6434_v27 = vadd.f32 %v6433_v40, %v6432_v48 }
 0x431   :  { %v13760_v4 = vsub.f32 %v15006_v16, %v6498_v46  ;;  %v13763_v50 = vsub.f32 %v15007_v29, %v6498_v46  ;;  %v13766_v30 = vsub.f32 %v13646_v52, %v6498_v46  ;;  %v13769_v57 = vsub.f32 %v13666_v51, %v6498_v46  ;;  %v5916_v31 = vpop.f32.mrf.mxu1 }
 0x432   :  { %v13772_v23 = vsub.f32 %v13674_v41, %v6498_v46  ;;  %v13775_v55 = vsub.f32 %v13685_v7, %v6498_v46  ;;  %v13778_v15 = vsub.f32 %v13693_v10, %v6498_v46  ;;  %v13785_v19 = vsub.f32 %v14986_v13, %v6499_v47 }
 0x433   :  { %v6634_v21 = vmul.f32 %v13760_v4, %v13760_v4  ;;  %v6651_v52 = vmul.f32 %v13763_v50, %v13763_v50  ;;  %v6668_v51 = vmul.f32 %v13766_v30, %v13766_v30  ;;  %v13789_v41 = vpop.f32.mrf.mxu1  ;;  %v13792_v35 = vsub.f32 %v14987_v2, %v6499_v47 }
 0x434   :  { %15008 = vst [vmem:[#allocation43_spill] sm:$0xff] %v13772_v23  ;;  %15009 = vst [vmem:[#allocation3_spill] sm:$0xff] %v13775_v55  ;;  %v13795_v10 = vsub.f32 %v13662_v12, %v6499_v47  ;;  %v13798_v36 = vsub.f32 %v13670_v49, %v6499_v47  ;;  %v13801_v54 = vsub.f32 %v13680_v24, %v6499_v47  ;;  %v6435_v1 = vrot.slane %v6434_v27, 4 }
 0x435   :  { %15010 = vst [vmem:[#allocation5_spill] sm:$0xff] %v13778_v15  ;;  %v6873_v7 = vadd.f32 %v6651_v52, %v6634_v21  ;;  %v13804_v13 = vsub.f32 %v13689_v0, %v6499_v47  ;;  %v13807_v53 = vsub.f32 %v13698_v60, %v6499_v47  ;;  %v13809_v20 = vpop.f32.mrf.mxu1  ;;  %v6685_v2 = vmul.f32 %v13769_v57, %v13769_v57 }
 0x436   :  { %15011 = vst [vmem:[#allocation20_spill] sm:$0xff] %v13801_v54  ;;  %v6635_v12 = vmul.f32 %v13785_v19, %v13785_v19  ;;  %v6652_v49 = vmul.f32 %v13792_v35, %v13792_v35  ;;  %v6702_v24 = vmul.f32 %v13772_v23, %v13772_v23  ;;  %v6669_v0 = vmul.f32 %v13795_v10, %v13795_v10 }
 0x437   :  { %15012 = vst [vmem:[#allocation26_spill] sm:$0xff] %v13804_v13  ;;  %15013 = vst [vmem:[#allocation30_spill] sm:$0xff] %v13807_v53  ;;  %v6874_v61 = vadd.f32 %v6873_v7, %v6668_v51  ;;  %v13821_v60 = vpop.f32.mrf.mxu1  ;;  %v6719_v39 = vmul.f32 %v13775_v55, %v13775_v55  ;;  %v6736_v43 = vmul.f32 %v13778_v15, %v13778_v15 }
 0x438   :  { %v6886_v32 = vadd.f32 %v6652_v49, %v6635_v12  ;;  %v6686_v45 = vmul.f32 %v13798_v36, %v13798_v36  ;;  %v6423_v25 = vadd.f32 %v6422_v28, %v6421_v14  ;;  %v6703_v16 = vmul.f32 %v13801_v54, %v13801_v54 }
 0x439   :  { %v6875_v8 = vadd.f32 %v6874_v61, %v6685_v2  ;;  %v13829_v17 = vpop.f32.mrf.mxu1  ;;  %v6878_v21 = vsel %vm2436_vm1, %v6736_v43, 0.0  ;;  %v6737_v48 = vmul.f32 %v13807_v53, %v13807_v53  ;;  %v6436_v52 = vadd.f32 %v6435_v1, %v6434_v27 }
 0x43a   :  { %v6887_v46 = vadd.f32 %v6886_v32, %v6669_v0  ;;  %v6424_v31 = vrot.slane %v6423_v25, 2  ;;  %v6720_v14 = vmul.f32 %v13804_v13, %v13804_v13 }
 0x43b   :  { %v6876_v44 = vadd.f32 %v6875_v8, %v6702_v24  ;;  %v13833_v47 = vpop.f32.mrf.mxu1  ;;  %v6437_v12 = vrot.slane %v6436_v52, 2  ;;  %v6891_v32 = vsel %vm2436_vm1, %v6737_v48, 0.0 }
 0x43c   :  { %v6888_v29 = vadd.f32 %v6887_v46, %v6686_v45  ;;  %v6425_v61 = vadd.f32 %v6424_v31, %v6423_v25 }
 0x43d   :  { %v6877_v38 = vadd.f32 %v6876_v44, %v6719_v39  ;;  %v13840_v51 = vpop.f32.mrf.mxu1  ;;  %v6438_v28 = vadd.f32 %v6437_v12, %v6436_v52 }
 0x43e   :  { %v6889_v2 = vadd.f32 %v6888_v29, %v6703_v16  ;;  %v6426_v8 = vrot.slane %v6425_v61, 1 }
 0x43f   :  { %v6879_v7 = vadd.f32 %v6878_v21, %v6877_v38  ;;  %v13844_v49 = vpop.f32.mrf.mxu1  ;;  %v6439_v44 = vrot.slane %v6438_v28, 1 }
 0x440   :  { %v6890_v0 = vadd.f32 %v6889_v2, %v6720_v14  ;;  %v6427_v27 = vadd.f32 %v6426_v8, %v6425_v61 }
 0x441   :  { %v6880_v24 = vrot.slane %v6879_v7, 4  ;;  %v13847_v40 = vpop.f32.mrf.mxu1  ;;  %v6440_v38 = vadd.f32 %v6439_v44, %v6438_v28 }
 0x442   :  { %v6892_v43 = vadd.f32 %v6891_v32, %v6890_v0  ;;  %v6500_v25 = vmul.f32 0.020408163, %v6427_v27 }
 0x443   :  { %v6881_v39 = vadd.f32 %v6880_v24, %v6879_v7  ;;  %v13849_v45 = vpop.f32.mrf.mxu1  ;;  %v6501_v32 = vmul.f32 0.020408163, %v6440_v38 }
 0x444   :  { %v6893_v1 = vrot.slane %v6892_v43, 4  ;;  %v13854_v21 = vsub.f32 %v13702_v56, %v6500_v25  ;;  %v13857_v48 = vsub.f32 %v13711_v26, %v6500_v25  ;;  %v13860_v52 = vsub.f32 %v13715_v3, %v6500_v25 }
 0x445   :  { %v6882_v46 = vrot.slane %v6881_v39, 2  ;;  %v13851_v16 = vpop.f32.mrf.mxu1  ;;  %v13863_v7 = vsub.f32 %v13727_v37, %v6500_v25  ;;  %v13866_v14 = vsub.f32 %v13735_v62, %v6500_v25  ;;  %v13869_v2 = vsub.f32 %v13741_v59, %v6500_v25 }
 0x446   :  { %v6894_v31 = vadd.f32 %v6893_v1, %v6892_v43  ;;  %v13874_v24 = vsub.f32 %v13749_v11, %v6500_v25  ;;  %v6636_v26 = vmul.f32 %v13854_v21, %v13854_v21  ;;  %v6653_v3 = vmul.f32 %v13857_v48, %v13857_v48 }
 0x447   :  { %v6883_v29 = vadd.f32 %v6882_v46, %v6881_v39  ;;  %15014 = vst [vmem:[#allocation34_spill] sm:$0xff] %v13863_v7  ;;  %15015 = vst [vmem:[#allocation39_spill] sm:$0xff] %v13866_v14  ;;  %v13871_v61 = vpop.f32.mrf.mxu1  ;;  %v6670_v59 = vmul.f32 %v13860_v52, %v13860_v52  ;;  %v6687_v43 = vmul.f32 %v13863_v7, %v13863_v7 }
 0x448   :  { %15016 = vst [vmem:[#allocation44_spill] sm:$0xff] %v13869_v2  ;;  %v6895_v56 = vrot.slane %v6894_v31, 2  ;;  %15017 = vst [vmem:[#allocation10_spill] sm:$0xff] %v13874_v24  ;;  %v6899_v8 = vadd.f32 %v6653_v3, %v6636_v26  ;;  %v6704_v27 = vmul.f32 %v13866_v14, %v13866_v14  ;;  %v13891_v46 = vsub.f32 %v13705_v33, %v6501_v32 }
 0x449   :  { %v6884_v12 = vrot.slane %v6883_v29, 1  ;;  %v13880_v37 = vpop.f32.mrf.mxu1  ;;  %v13894_v1 = vsub.f32 %v13713_v18, %v6501_v32  ;;  %v13897_v25 = vsub.f32 %v13720_v34, %v6501_v32  ;;  %v13908_v33 = vsub.f32 %v13744_v63, %v6501_v32 }
 0x44a   :  { %v6896_v0 = vadd.f32 %v6895_v56, %v6894_v31  ;;  %v6900_v44 = vadd.f32 %v6899_v8, %v6670_v59  ;;  %v13905_v56 = vsub.f32 %v13738_v58, %v6501_v32  ;;  %v13911_v18 = vsub.f32 %v13757_v6, %v6501_v32  ;;  %v6023_v58 = vpop.f32.mrf.mxu0 }
 0x44b   :  { %v6885_v62 = vadd.f32 %v6884_v12, %v6883_v29  ;;  %v13884_v28 = vpop.f32.mrf.mxu1  ;;  %v13902_v12 = vsub.f32 %v13731_v42, %v6501_v32  ;;  %15020 = vst [vmem:[#allocation27_spill] sm:$0xff] %v13908_v33  ;;  %v6637_v34 = vmul.f32 %v13891_v46, %v13891_v46  ;;  %v6654_v42 = vmul.f32 %v13894_v1, %v13894_v1 }
 0x44c   :  { %v6897_v11 = vrot.slane %v6896_v0, 1  ;;  %15019 = vst [vmem:[#allocation21_spill] sm:$0xff] %v13905_v56  ;;  %v6901_v26 = vadd.f32 %v6900_v44, %v6687_v43  ;;  %15021 = vst [vmem:[#allocation31_spill] sm:$0xff] %v13911_v18  ;;  %v6721_v59 = vmul.f32 %v13869_v2, %v13869_v2  ;;  %v6671_v6 = vmul.f32 %v13897_v25, %v13897_v25 }
 0x44d   :  { %v6980_v39 = vmul.f32 0.020408163, %v6885_v62  ;;  %v13899_v38 = vpop.f32.mrf.mxu1  ;;  %15018 = vst [vmem:[#allocation7_spill] sm:$0xff] %v13902_v12  ;;  %v6912_v32 = vadd.f32 %v6654_v42, %v6637_v34  ;;  %v6739_v42 = vmul.f32 %v13911_v18, %v13911_v18 }
 0x44e   :  { %v6898_v31 = vadd.f32 %v6897_v11, %v6896_v0  ;;  %v6738_v0 = vmul.f32 %v13874_v24, %v13874_v24  ;;  %v6902_v63 = vadd.f32 %v6901_v26, %v6704_v27  ;;  %v6025_v11 = vpop.f32.mrf.mxu0  ;;  %v6705_v26 = vmul.f32 %v13905_v56, %v13905_v56 }
 0x44f   :  { %v7000_v29 = vadd.f32 1e-05, %v6980_v39  ;;  %v6128_v3 = vpop.f32.mrf.mxu1  ;;  %v6913_v5 = vadd.f32 %v6912_v32, %v6671_v6 }
 0x450   :  { %v6981_v62 = vmul.f32 0.020408163, %v6898_v31  ;;  %v6903_v43 = vadd.f32 %v6902_v63, %v6721_v59  ;;  %v6904_v31 = vsel %vm2436_vm1, %v6738_v0, 0.0  ;;  %v6688_v3 = vmul.f32 %v13902_v12, %v13902_v12  ;;  %v6027_v24 = vpop.f32.mrf.mxu0 }
 0x451   :  { %v6129_v8 = vpop.f32.mrf.mxu1  ;;  %9547 = vrsqrt.f32 %v7000_v29  ;;  %v6722_v0 = vmul.f32 %v13908_v33, %v13908_v33  ;;  %v13940_v13 = vadd.f32 %v13821_v60, %v6027_v24  ;;  %v13956_v60 = vadd.f32 %v13809_v20, %v6025_v11 }
 0x452   :  { %v7001_v39 = vadd.f32 1e-05, %v6981_v62  ;;  %v6905_v53 = vadd.f32 %v6904_v31, %v6903_v43  ;;  %v6914_v62 = vadd.f32 %v6913_v5, %v6688_v3  ;;  %v6029_v34 = vpop.f32.mrf.mxu0  ;;  %v15023_v20 = vcombine.low %v13746_v22, %v13751_v9 }
 0x453   :  { %v8567_v44 = vpop.f32.mrf.mxu1 }
 0x454   :  { %9549 = vrsqrt.f32 %v7001_v39  ;;  %v6906_v29 = vrot.slane %v6905_v53, 4  ;;  %v6915_v63 = vadd.f32 %v6914_v62, %v6705_v26  ;;  %v6033_v39 = vpop.f32.mrf.mxu0 }
 0x455   :  { %v8568_v27 = vpop.f32.mrf.mxu1 }
 0x456   :  { %v13928_v8 = vadd.f32 %v8568_v27, %v8567_v44  ;;  %v6907_v6 = vadd.f32 %v6906_v29, %v6905_v53  ;;  %v6916_v43 = vadd.f32 %v6915_v63, %v6722_v0  ;;  %v6035_v15 = vpop.f32.mrf.mxu0  ;;  %v6917_v44 = vsel %vm2436_vm1, %v6739_v42, 0.0 }
 0x457   :  { %v8570_v59 = vpop.f32.mrf.mxu1  ;;  %v13945_v29 = vadd.f32 %v13789_v41, %v6023_v58  ;;  %v13951_v42 = vadd.f32 %v13833_v47, %v6033_v39  ;;  %v13961_v58 = vadd.f32 %v13840_v51, %v6035_v15 }
 0x458   :  { %v6908_v5 = vrot.slane %v6907_v6, 2  ;;  %v6918_v27 = vadd.f32 %v6917_v44, %v6916_v43  ;;  %v6037_v2 = vpop.f32.mrf.mxu0  ;;  %v15022_v44 = vld [vmem:[#allocation15_spill] sm:$0xff] }
 0x459   :  { %v8571_v32 = vpop.f32.mrf.mxu1  ;;  %v6441_v41 = vadd.f32 %v13940_v13, %v13945_v29  ;;  %v13972_v11 = vrot.slane %v15023_v20, %v15022_v44 }
 0x45a   :  { %v13934_v31 = vadd.f32 %v8571_v32, %v8570_v59  ;;  %v6909_v18 = vadd.f32 %v6908_v5, %v6907_v6  ;;  %v6919_v26 = vrot.slane %v6918_v27, 4  ;;  %v6039_v53 = vpop.f32.mrf.mxu0  ;;  %v13948_v59 = vadd.f32 %v13829_v17, %v6029_v34 }
 0x45b   :  { %v13937_v3 = vpop.f32.mrf.mxu1  ;;  %v13964_v17 = vadd.f32 %v13844_v49, %v6037_v2  ;;  %v6442_v15 = vadd.f32 %v6441_v41, %v13951_v42 }
 0x45c   :  { %v6910_v62 = vrot.slane %v6909_v18, 1  ;;  %v6920_v6 = vadd.f32 %v6919_v26, %v6918_v27  ;;  %v6043_v24 = vpop.f32.mrf.mxu0  ;;  %v13983_v27 = vadd.f32 %v13847_v40, %v6039_v53 }
 0x45d   :  { %v13942_v33 = vpop.f32.mrf.mxu1  ;;  %v13986_v26 = vadd.f32 %v13849_v45, %v6043_v24 }
 0x45e   :  { %v9548_v63 = vpop.eup %9547  ;;  %v6911_v43 = vadd.f32 %v6910_v62, %v6909_v18  ;;  %v6921_v39 = vrot.slane %v6920_v6, 2  ;;  %v6045_v5 = vpop.f32.mrf.mxu0  ;;  %v6454_v18 = vadd.f32 %v13948_v59, %v13956_v60 }
 0x45f   :  { %v13953_v0 = vpop.f32.mrf.mxu1 }
 0x460   :  { %v6922_v2 = vadd.f32 %v6921_v39, %v6920_v6  ;;  %v6047_v22 = vpop.f32.mrf.mxu0  ;;  %v6982_v9 = vmul.f32 0.020408163, %v6911_v43  ;;  %v6455_v62 = vadd.f32 %v6454_v18, %v13961_v58  ;;  %v13995_v6 = vadd.f32 %v13851_v16, %v6045_v5 }
 0x461   :  { %v9550_v32 = vpop.eup %9549  ;;  %v13966_v47 = vpop.f32.mrf.mxu1  ;;  %v13998_v40 = vadd.f32 %v13871_v61, %v6047_v22 }
 0x462   :  { %v7091_v34 = vcombine.low %v9548_v63, %v9550_v32  ;;  %v6443_v63 = vadd.f32 %v6442_v15, %v13964_v17  ;;  %v6049_v45 = vpop.f32.mrf.mxu0  ;;  %v6456_v43 = vadd.f32 %v6455_v62, %v13983_v27  ;;  %v7002_v15 = vadd.f32 1e-05, %v6982_v9 }
 0x463   :  { %v13977_v51 = vpop.f32.mrf.mxu1  ;;  %v14005_v20 = vadd.f32 %v13880_v37, %v6049_v45 }
 0x464   :  { %v13980_v49 = vrot.slane %v7091_v34, %v15022_v44  ;;  %v6923_v34 = vrot.slane %v6922_v2, 1  ;;  %v6444_v39 = vadd.f32 %v6443_v63, %v13986_v26  ;;  %v6053_v18 = vpop.f32.mrf.mxu0  ;;  %v6457_v61 = vadd.f32 %v6456_v43, %v13995_v6 }
 0x465   :  { %v13990_v32 = vpop.f32.mrf.mxu1  ;;  %v14008_v41 = vadd.f32 %v13884_v28, %v6053_v18  ;;  %9551 = vrsqrt.f32 %v7002_v15 }
 0x466   :  { %v6924_v24 = vadd.f32 %v6923_v34, %v6922_v2  ;;  %v6445_v22 = vadd.f32 %v6444_v39, %v13998_v40  ;;  %v6055_v55 = vpop.f32.mrf.mxu0  ;;  %v6458_v9 = vadd.f32 %v6457_v61, %v14005_v20 }
 0x467   :  { %v14000_v53 = vpop.f32.mrf.mxu1  ;;  %v6446_v2 = vsel %vm2436_vm1, %v14008_v41, 0.0  ;;  %v14015_v62 = vadd.f32 %v13899_v38, %v6055_v55 }
 0x468   :  { %v6983_v5 = vmul.f32 0.020408163, %v6924_v24  ;;  %v6447_v28 = vadd.f32 %v6446_v2, %v6445_v22  ;;  %v6057_v34 = vpop.f32.mrf.mxu0 }
 0x469   :  { %v8583_v16 = vpop.f32.mrf.mxu1  ;;  %v6459_v45 = vsel %vm2436_vm1, %v14015_v62, 0.0 }
 0x46a   :  { %v7003_v63 = vadd.f32 1e-05, %v6983_v5  ;;  %v6448_v43 = vrot.slane %v6447_v28, 4  ;;  %v6460_v39 = vadd.f32 %v6459_v45, %v6458_v9  ;;  %v6058_v18 = vpop.f32.mrf.mxu0 }
 0x46b   :  { %v14017_v37 = vpop.f32.mrf.mxu1 }
 0x46c   :  { %9553 = vrsqrt.f32 %v7003_v63  ;;  %v6449_v14 = vadd.f32 %v6448_v43, %v6447_v28  ;;  %v6461_v55 = vrot.slane %v6460_v39, 4  ;;  %v8615_v38 = vpop.f32.mrf.mxu0 }
 0x46d   :  { %v8586_v24 = vpop.f32.mrf.mxu1 }
 0x46e   :  { %v6450_v23 = vrot.slane %v6449_v14, 2  ;;  %v6462_v5 = vadd.f32 %v6461_v55, %v6460_v39  ;;  %v6229_v12 = vpop.f32.mrf.mxu0 }
 0x46f   :  { %v8588_v56 = vpop.f32.mrf.mxu1  ;;  %v14023_v15 = vadd.f32 %v13928_v8, %v6229_v12 }
 0x470   :  { %v6451_v61 = vadd.f32 %v6450_v23, %v6449_v14  ;;  %v6463_v22 = vrot.slane %v6462_v5, 2  ;;  %v8616_v2 = vpop.f32.mrf.mxu0 }
 0x471   :  { %v8589_v54 = vpop.f32.mrf.mxu1  ;;  %v6468_v23 = vsel %vm6467_vm5, %v14023_v15, 0.0 }
 0x472   :  { %v6452_v34 = vrot.slane %v6451_v61, 1  ;;  %v6464_v7 = vadd.f32 %v6463_v22, %v6462_v5  ;;  %v6232_v63 = vpop.f32.mrf.mxu0  ;;  %v8575_v54 = vadd.f32 %v13942_v33, %v13937_v3  ;;  %v14034_v12 = vpop.eup %9551 }
 0x473   :  { %v14026_v9 = vadd.f32 %v13934_v31, %v6232_v63 }
 0x474   :  { %v6453_v56 = vadd.f32 %v6452_v34, %v6451_v61  ;;  %v6465_v28 = vrot.slane %v6464_v7, 1  ;;  %v8619_v45 = vpop.f32.mrf.mxu0  ;;  %v14038_v55 = vadd.f32 %v8615_v38, %v8575_v54  ;;  %v8578_v34 = vadd.f32 %v13966_v47, %v13953_v0 }
 0x475   :  { %v6469_v14 = vsel %vm6467_vm5, %v14026_v9, 0.0  ;;  %v8581_v38 = vadd.f32 %v13990_v32, %v13977_v51 }
 0x476   :  { %v6502_v8 = vmul.f32 0.020408163, %v6453_v56  ;;  %v6470_v43 = vadd.f32 %v6469_v14, %v6468_v23  ;;  %v6245_v39 = vpop.f32.mrf.mxu0  ;;  %v6466_v18 = vadd.f32 %v6465_v28, %v6464_v7  ;;  %v6471_v0 = vsel %vm6467_vm5, %v14038_v55, 0.0 }
 0x477   :  { %v14068_v47 = vadd.f32 %v8616_v2, %v8578_v34 }
 0x478   :  { %v14043_v33 = vsub.f32 %v13945_v29, %v6502_v8  ;;  %v14046_v3 = vsub.f32 %v13940_v13, %v6502_v8  ;;  %v14049_v61 = vsub.f32 %v13951_v42, %v6502_v8  ;;  %v8620_v22 = vpop.f32.mrf.mxu0  ;;  %v14054_v7 = vsub.f32 %v13964_v17, %v6502_v8 }
 0x479   :  { %v14036_v31 = vpop.eup %9553  ;;  %v14063_v63 = vsub.f32 %v13986_v26, %v6502_v8  ;;  %v8584_v42 = vadd.f32 %v8583_v16, %v14000_v53  ;;  %v6503_v32 = vmul.f32 0.020408163, %v6466_v18  ;;  %v6472_v56 = vadd.f32 %v6471_v0, %v6470_v43 }
 0x47a   :  { %v6638_v29 = vmul.f32 %v14043_v33, %v14043_v33  ;;  %v6655_v13 = vmul.f32 %v14046_v3, %v14046_v3  ;;  %v6672_v17 = vmul.f32 %v14049_v61, %v14049_v61  ;;  %v6248_v28 = vpop.f32.mrf.mxu0  ;;  %v14073_v54 = vsub.f32 %v13998_v40, %v6502_v8 }
 0x47b   :  { %v14076_v26 = vsub.f32 %v14008_v41, %v6502_v8  ;;  %v6689_v53 = vmul.f32 %v14054_v7, %v14054_v7  ;;  %v8587_v16 = vadd.f32 %v8586_v24, %v14017_v37  ;;  %v14082_v23 = vsub.f32 %v13956_v60, %v6503_v32 }
 0x47c   :  { %v6925_v51 = vadd.f32 %v6655_v13, %v6638_v29  ;;  %v14085_v14 = vsub.f32 %v13948_v59, %v6503_v32  ;;  %v14088_v43 = vsub.f32 %v13961_v58, %v6503_v32  ;;  %v6706_v40 = vmul.f32 %v14063_v63, %v14063_v63 }
 0x47d   :  { %15024 = vst [vmem:[#allocation35_spill] sm:$0xff] %v14076_v26  ;;  %v6473_v41 = vsel %vm6467_vm5, %v14068_v47, 0.0  ;;  %v6246_v8 = vadd.f32 %v8581_v38, %v6245_v39  ;;  %v14094_v18 = vadd.f32 %v8584_v42, %v6248_v28  ;;  %v14097_v24 = vsub.f32 %v13983_v27, %v6503_v32 }
 0x47e   :  { %v6926_v2 = vadd.f32 %v6925_v51, %v6672_v17  ;;  %v6639_v59 = vmul.f32 %v14082_v23, %v14082_v23  ;;  %v6656_v60 = vmul.f32 %v14085_v14, %v14085_v14  ;;  %v6723_v58 = vmul.f32 %v14073_v54, %v14073_v54 }
 0x47f   :  { %v6740_v22 = vmul.f32 %v14076_v26, %v14076_v26  ;;  %v14108_v39 = vsub.f32 %v13995_v6, %v6503_v32  ;;  %v14110_v34 = vadd.f32 %v8619_v45, %v8587_v16  ;;  %v6673_v27 = vmul.f32 %v14088_v43, %v14088_v43 }
 0x480   :  { %v6927_v37 = vadd.f32 %v6926_v2, %v6689_v53  ;;  %v6938_v29 = vadd.f32 %v6656_v60, %v6639_v59  ;;  %v6474_v13 = vadd.f32 %v6473_v41, %v6472_v56  ;;  %v14115_v42 = vsub.f32 %v14005_v20, %v6503_v32 }
 0x481   :  { %v14118_v0 = vsub.f32 %v14015_v62, %v6503_v32  ;;  %v6475_v17 = vsel %vm6467_vm5, %v6246_v8, 0.0  ;;  %v6477_v6 = vsel %vm6467_vm5, %v14094_v18, 0.0  ;;  %v6690_v45 = vmul.f32 %v14097_v24, %v14097_v24 }
 0x482   :  { %v6928_v38 = vadd.f32 %v6927_v37, %v6706_v40  ;;  %15025 = vst [vmem:[#allocation40_spill] sm:$0xff] %v14115_v42  ;;  %v6939_v28 = vadd.f32 %v6938_v29, %v6673_v27  ;;  %v6476_v53 = vadd.f32 %v6475_v17, %v6474_v13  ;;  %v6930_v16 = vsel %vm2436_vm1, %v6740_v22, 0.0 }
 0x483   :  { %15026 = vst [vmem:[#allocation45_spill] sm:$0xff] %v14118_v0  ;;  %v6707_v20 = vmul.f32 %v14108_v39, %v14108_v39  ;;  %v6741_v32 = vmul.f32 %v14118_v0, %v14118_v0  ;;  %v6480_v40 = vsel %vm6479_vm6, %v14110_v34, 0.0  ;;  %v6724_v37 = vmul.f32 %v14115_v42, %v14115_v42 }
 0x484   :  { %v6929_v51 = vadd.f32 %v6928_v38, %v6723_v58  ;;  %v6940_v2 = vadd.f32 %v6939_v28, %v6690_v45  ;;  %v6478_v62 = vadd.f32 %v6477_v6, %v6476_v53 }
 0x485   :  { %v6943_v27 = vsel %vm2436_vm1, %v6741_v32, 0.0 }
 0x486   :  { %v6931_v56 = vadd.f32 %v6930_v16, %v6929_v51  ;;  %v6941_v59 = vadd.f32 %v6940_v2, %v6707_v20  ;;  %v6481_v60 = vadd.f32 %v6480_v40, %v6478_v62 }
 0x488   :  { %v6932_v41 = vrot.slane %v6931_v56, 4  ;;  %v6942_v22 = vadd.f32 %v6941_v59, %v6724_v37  ;;  %v6482_v38 = vrot.slane %v6481_v60, 4 }
 0x48a   :  { %v6933_v58 = vadd.f32 %v6932_v41, %v6931_v56  ;;  %v6944_v13 = vadd.f32 %v6943_v27, %v6942_v22  ;;  %v6483_v17 = vadd.f32 %v6482_v38, %v6481_v60 }
 0x48c   :  { %v6934_v29 = vrot.slane %v6933_v58, 2  ;;  %v6945_v51 = vrot.slane %v6944_v13, 4  ;;  %v6484_v45 = vrot.slane %v6483_v17, 2 }
 0x48e   :  { %v6935_v6 = vadd.f32 %v6934_v29, %v6933_v58  ;;  %v6946_v53 = vadd.f32 %v6945_v51, %v6944_v13  ;;  %v6485_v16 = vadd.f32 %v6484_v45, %v6483_v17 }
 0x490   :  { %v6936_v28 = vrot.slane %v6935_v6, 1  ;;  %v6947_v0 = vrot.slane %v6946_v53, 2  ;;  %v6486_v26 = vrot.slane %v6485_v16, 1 }
 0x492   :  { %v6937_v5 = vadd.f32 %v6936_v28, %v6935_v6  ;;  %v6948_v42 = vadd.f32 %v6947_v0, %v6946_v53  ;;  %v6487_v20 = vadd.f32 %v6486_v26, %v6485_v16 }
 0x494   :  { %v6984_v2 = vmul.f32 0.020408163, %v6937_v5  ;;  %v6949_v56 = vrot.slane %v6948_v42, 1  ;;  %v6504_v62 = vmul.f32 0.020408163, %v6487_v20 }
 0x496   :  { %v6950_v40 = vadd.f32 %v6949_v56, %v6948_v42  ;;  %v14136_v32 = vsub.f32 %v14023_v15, %v6504_v62  ;;  %v14139_v41 = vsub.f32 %v14026_v9, %v6504_v62  ;;  %v7004_v37 = vadd.f32 1e-05, %v6984_v2 }
 0x497   :  { %v14142_v59 = vsub.f32 %v14038_v55, %v6504_v62  ;;  %v14145_v60 = vsub.f32 %v14068_v47, %v6504_v62  ;;  %v14147_v0 = vsub.f32 %v6246_v8, %v6504_v62  ;;  %v14154_v26 = vsub.f32 %v14094_v18, %v6504_v62 }
 0x498   :  { %15027 = vst [vmem:[#allocation13_spill] sm:$0xff] %v14136_v32  ;;  %15028 = vst [vmem:[#allocation14_spill] sm:$0xff] %v14139_v41  ;;  %v6985_v58 = vmul.f32 0.020408163, %v6950_v40  ;;  %v6640_v5 = vmul.f32 %v14136_v32, %v14136_v32  ;;  %v6657_v15 = vmul.f32 %v14139_v41, %v14139_v41  ;;  %9555 = vrsqrt.f32 %v7004_v37 }
 0x499   :  { %15029 = vst [vmem:[#allocation22_spill] sm:$0xff] %v14142_v59  ;;  %15030 = vst [vmem:[#allocation28_spill] sm:$0xff] %v14145_v60  ;;  %v6674_v9 = vmul.f32 %v14142_v59, %v14142_v59  ;;  %v6691_v47 = vmul.f32 %v14145_v60, %v14145_v60  ;;  %v14163_v38 = vsub.f32 %v14110_v34, %v6504_v62 }
 0x49a   :  { %15031 = vst [vmem:[#allocation32_spill] sm:$0xff] %v14147_v0  ;;  %15032 = vst [vmem:[#allocation36_spill] sm:$0xff] %v14154_v26  ;;  %v7005_v55 = vadd.f32 1e-05, %v6985_v58  ;;  %v6951_v42 = vsel %vm6467_vm5, %v6640_v5, 0.0  ;;  %v6952_v8 = vsel %vm6467_vm5, %v6657_v15, 0.0  ;;  %v6708_v18 = vmul.f32 %v14147_v0, %v14147_v0 }
 0x49b   :  { %v6953_v22 = vadd.f32 %v6952_v8, %v6951_v42  ;;  %15033 = vst [vmem:[#allocation41_spill] sm:$0xff] %v14163_v38  ;;  %v6954_v27 = vsel %vm6467_vm5, %v6674_v9, 0.0  ;;  %v6725_v13 = vmul.f32 %v14154_v26, %v14154_v26  ;;  %v6956_v17 = vsel %vm6467_vm5, %v6691_v47, 0.0  ;;  %v15048_v26 = vld [vmem:[#allocation59_spill] sm:$0xff] }
 0x49c   :  { %9557 = vrsqrt.f32 %v7005_v55  ;;  %v6742_v51 = vmul.f32 %v14163_v38, %v14163_v38  ;;  %v6958_v45 = vsel %vm6467_vm5, %v6708_v18, 0.0  ;;  %v15034_v5 = vcombine.low %v14034_v12, %v14036_v31  ;;  %v6988_v12 = vld [vmem:[%s14677_s5 + $0x8] sm:$0xff]  ;;  %v15047_v38 = vld [vmem:[#allocation50_spill] sm:$0xff] }
 0x49d   :  { %v6955_v29 = vadd.f32 %v6954_v27, %v6953_v22  ;;  %v6960_v34 = vsel %vm6467_vm5, %v6725_v13, 0.0  ;;  %v15035_v8 = vcombine.low %v13972_v11, %v13980_v49  ;;  %v7367_v27 = vld [vmem:[%s14676_s6 + $0x8] sm:$0xff]  ;;  %v15036_v13 = vld [vmem:[#allocation16_spill] sm:$0xff] }
 0x49e   :  { %v6962_v16 = vsel %vm6479_vm6, %v6742_v51, 0.0  ;;  %v7114_v15 = vrot.slane %v15034_v5, %v15022_v44 }
 0x49f   :  { %v6957_v6 = vadd.f32 %v6956_v17, %v6955_v29  ;;  %v7130_v22 = vrot.slane %v15035_v8, %v15022_v44  ;;  %v14193_v17 = vrot.slane %v7367_v27, %v15036_v13 }
 0x4a1   :  { %v6959_v28 = vadd.f32 %v6958_v45, %v6957_v6  ;;  %v15037_v6 = vld [vmem:[#allocation17_spill] sm:$0xff]  ;;  %v15038_v45 = vld [vmem:[#allocation18_spill] sm:$0xff] }
 0x4a2   :  { %v14196_v51 = vrot.slane %v7367_v27, %v15037_v6 }
 0x4a3   :  { %v6961_v53 = vadd.f32 %v6960_v34, %v6959_v28  ;;  %v14199_v28 = vrot.slane %v7367_v27, %v15038_v45  ;;  %v15039_v34 = vld [vmem:[#allocation71_spill] sm:$0xff] }
 0x4a5   :  { %v6963_v20 = vadd.f32 %v6962_v16, %v6961_v53  ;;  %v9556_v56 = vpop.eup %9555  ;;  %v14202_v53 = vrot.slane %v7367_v27, %v15039_v34  ;;  %v15040_v16 = vld [vmem:[#allocation72_spill] sm:$0xff] }
 0x4a7   :  { %v6964_v2 = vrot.slane %v6963_v20, 4 }
 0x4a9   :  { %v9558_v62 = vpop.eup %9557  ;;  %v6965_v40 = vadd.f32 %v6964_v2, %v6963_v20  ;;  %v14205_v20 = vrot.slane %v7367_v27, %v15040_v16  ;;  %v15041_v2 = vld [vmem:[#allocation73_spill] sm:$0xff] }
 0x4aa   :  { %v7093_v37 = vcombine.low %v9556_v56, %v9558_v62  ;;  %v14208_v56 = vrot.slane %v7367_v27, %v15041_v2  ;;  %v15042_v62 = vld [vmem:[#allocation75_spill] sm:$0xff] }
 0x4ab   :  { %v6966_v58 = vrot.slane %v6965_v40, 2 }
 0x4ac   :  { %v7121_v9 = vrot.slane %v7093_v37, %v15022_v44  ;;  %v15043_v37 = vld [vmem:[#allocation76_spill] sm:$0xff] }
 0x4ad   :  { %v6967_v55 = vadd.f32 %v6966_v58, %v6965_v40  ;;  %v14211_v40 = vrot.slane %v7367_v27, %v15042_v62  ;;  %v14214_v58 = vrot.slane %v7367_v27, %v15043_v37  ;;  %v15045_v27 = vld [vmem:[#allocation49_spill] sm:$0xff] }
 0x4ae   :  { %v7123_v47 = vcombine.low %v7114_v15, %v7121_v9 }
 0x4af   :  { %v6968_v42 = vrot.slane %v6967_v55, 1 }
 0x4b0   :  { %v7137_v18 = vrot.slane %v7123_v47, %v15022_v44 }
 0x4b1   :  { %v6969_v31 = vadd.f32 %v6968_v42, %v6967_v55 }
 0x4b2   :  { %v7138_v29 = vcombine.low %v7130_v22, %v7137_v18 }
 0x4b3   :  { %v6986_v11 = vmul.f32 0.020408163, %v6969_v31  ;;  %v15046_v31 = vld [vmem:[#allocation58_spill] sm:$0xff] }
 0x4b4   :  { %v7157_v49 = vmul.f32 %v7138_v29, %v6988_v12 }
 0x4b5   :  { %v14216_v5 = vadd.f32 1e-05, %v6986_v11 }
 0x4b6   :  { %v7197_v15 = vrot.slane %v7157_v49, %v15036_v13  ;;  %v7201_v9 = vrot.slane %v7157_v49, %v15037_v6  ;;  %v7205_v55 = vrot.slane %v7157_v49, %v15038_v45  ;;  %v7209_v47 = vrot.slane %v7157_v49, %v15039_v34 }
 0x4b7   :  { %15044 = vst [vmem:[#allocation46_spill] sm:$0xff] %v14216_v5  ;;  %v7213_v42 = vrot.slane %v7157_v49, %v15040_v16  ;;  %v7217_v8 = vrot.slane %v7157_v49, %v15041_v2  ;;  %v7221_v22 = vrot.slane %v7157_v49, %v15042_v62  ;;  %v7225_v18 = vrot.slane %v7157_v49, %v15043_v37 }
 0x4b8   :  { %v7255_v12 = vmul.f32 %v7197_v15, %v15045_v27  ;;  %v7256_v29 = vmul.f32 %v7201_v9, %v15046_v31  ;;  %v7257_v11 = vmul.f32 %v7205_v55, %v13760_v4  ;;  %v7258_v6 = vmul.f32 %v7209_v47, %v13785_v19  ;;  %v15049_v31 = vld [vmem:[#allocation51_spill] sm:$0xff] }
 0x4b9   :  { %v7259_v45 = vmul.f32 %v7213_v42, %v13854_v21  ;;  %v7260_v34 = vmul.f32 %v7217_v8, %v13891_v46  ;;  %v7261_v16 = vmul.f32 %v7221_v22, %v14043_v33  ;;  %v7262_v2 = vmul.f32 %v7225_v18, %v14082_v23  ;;  %v15050_v23 = vld [vmem:[#allocation60_spill] sm:$0xff] }
 0x4ba   :  { %v7272_v62 = vmul.f32 %v7197_v15, %v15047_v38  ;;  %v7273_v49 = vmul.f32 %v7201_v9, %v15048_v26  ;;  %v7274_v37 = vmul.f32 %v7205_v55, %v13763_v50  ;;  %v7275_v27 = vmul.f32 %v7209_v47, %v13792_v35 }
 0x4bb   :  { %v7276_v4 = vmul.f32 %v7213_v42, %v13857_v48  ;;  %v7277_v19 = vmul.f32 %v7217_v8, %v13894_v1  ;;  %v7278_v21 = vmul.f32 %v7221_v22, %v14046_v3  ;;  %v7279_v46 = vmul.f32 %v7225_v18, %v14085_v14  ;;  %v15051_v14 = vld [vmem:[#allocation52_spill] sm:$0xff] }
 0x4bc   :  { %v14243_v33 = vmul.f32 %v7197_v15, %v15049_v31  ;;  %v14246_v0 = vmul.f32 %v7201_v9, %v15050_v23  ;;  %v14249_v26 = vmul.f32 %v7205_v55, %v13766_v30  ;;  %v14252_v50 = vmul.f32 %v7209_v47, %v13795_v10  ;;  %v15052_v30 = vld [vmem:[#allocation61_spill] sm:$0xff] }
 0x4bd   :  { %v14255_v35 = vmul.f32 %v7213_v42, %v13860_v52  ;;  %v14258_v48 = vmul.f32 %v7217_v8, %v13897_v25  ;;  %v14261_v1 = vmul.f32 %v7221_v22, %v14049_v61  ;;  %v14264_v3 = vmul.f32 %v7225_v18, %v14088_v43  ;;  %v15053_v25 = vld [vmem:[#allocation34_spill] sm:$0xff]  ;;  %v15054_v61 = vld [vmem:[#allocation7_spill] sm:$0xff] }
 0x4be   :  { %v14267_v38 = vmul.f32 %v7197_v15, %v15051_v14  ;;  %v14270_v31 = vmul.f32 %v7201_v9, %v15052_v30  ;;  %v14273_v10 = vmul.f32 %v7205_v55, %v13769_v57  ;;  %v14276_v52 = vmul.f32 %v7209_v47, %v13798_v36  ;;  %v15055_v30 = vld [vmem:[#allocation54_spill] sm:$0xff]  ;;  %v15056_v57 = vld [vmem:[#allocation63_spill] sm:$0xff] }
 0x4bf   :  { %v14279_v23 = vmul.f32 %v7213_v42, %v15053_v25  ;;  %v14282_v60 = vmul.f32 %v7217_v8, %v15054_v61  ;;  %v14285_v43 = vmul.f32 %v7221_v22, %v14054_v7  ;;  %v14288_v14 = vmul.f32 %v7225_v18, %v14097_v24  ;;  %v15058_v36 = vld [vmem:[#allocation43_spill] sm:$0xff]  ;;  %v15060_v25 = vld [vmem:[#allocation20_spill] sm:$0xff]  ;;  %v15064_v7 = vld [vmem:[#allocation21_spill] sm:$0xff] }
 0x4c0   :  { %v14291_v59 = vmul.f32 %v7197_v15, %v15055_v30  ;;  %v14294_v41 = vmul.f32 %v7201_v9, %v15056_v57  ;;  %v14297_v32 = vmul.f32 %v7205_v55, %v15058_v36  ;;  %v14300_v13 = vmul.f32 %v7209_v47, %v15060_v25  ;;  %v15062_v61 = vld [vmem:[#allocation39_spill] sm:$0xff]  ;;  %v15069_v36 = vld [vmem:[#allocation64_spill] sm:$0xff] }
 0x4c1   :  { %v14303_v44 = vmul.f32 %v7213_v42, %v15062_v61  ;;  %v14306_v5 = vmul.f32 %v7217_v8, %v15064_v7  ;;  %v14309_v24 = vmul.f32 %v7221_v22, %v14063_v63  ;;  %v14312_v30 = vmul.f32 %v7225_v18, %v14108_v39  ;;  %v15067_v57 = vld [vmem:[#allocation55_spill] sm:$0xff]  ;;  %v15073_v61 = vld [vmem:[#allocation26_spill] sm:$0xff]  ;;  %v15075_v7 = vld [vmem:[#allocation44_spill] sm:$0xff] }
 0x4c2   :  { %15057 = vst [vmem:[#allocation4_spill] sm:$0xff] %v14294_v41  ;;  %15059 = vst [vmem:[#allocation8_spill] sm:$0xff] %v14297_v32  ;;  %v14315_v41 = vmul.f32 %v7197_v15, %v15067_v57  ;;  %v14318_v32 = vmul.f32 %v7201_v9, %v15069_v36  ;;  %v15071_v25 = vld [vmem:[#allocation3_spill] sm:$0xff]  ;;  %v14333_v39 = vmul.f32 %v7221_v22, %v14073_v54  ;;  %v15080_v57 = vld [vmem:[#allocation40_spill] sm:$0xff] }
 0x4c3   :  { %15061 = vst [vmem:[#allocation24_spill] sm:$0xff] %v14300_v13  ;;  %15063 = vst [vmem:[#allocation37_spill] sm:$0xff] %v14303_v44  ;;  %v14321_v13 = vmul.f32 %v7205_v55, %v15071_v25  ;;  %v14324_v44 = vmul.f32 %v7209_v47, %v15073_v61  ;;  %v15077_v63 = vld [vmem:[#allocation27_spill] sm:$0xff]  ;;  %v15082_v36 = vld [vmem:[#allocation56_spill] sm:$0xff] }
 0x4c4   :  { %15065 = vst [vmem:[#allocation42_spill] sm:$0xff] %v14306_v5  ;;  %15066 = vst [vmem:[#allocation2_spill] sm:$0xff] %v14309_v24  ;;  %v14327_v5 = vmul.f32 %v7213_v42, %v15075_v7  ;;  %v14330_v24 = vmul.f32 %v7217_v8, %v15077_v63  ;;  %v15083_v25 = vld [vmem:[#allocation65_spill] sm:$0xff]  ;;  %v15085_v7 = vld [vmem:[#allocation30_spill] sm:$0xff] }
 0x4c5   :  { %15068 = vst [vmem:[#allocation6_spill] sm:$0xff] %v14315_v41  ;;  %15070 = vst [vmem:[#allocation25_spill] sm:$0xff] %v14318_v32  ;;  %v14336_v41 = vmul.f32 %v7225_v18, %v15080_v57  ;;  %v14339_v32 = vmul.f32 %v7197_v15, %v15082_v36  ;;  %v15084_v61 = vld [vmem:[#allocation5_spill] sm:$0xff]  ;;  %v15086_v63 = vld [vmem:[#allocation10_spill] sm:$0xff] }
 0x4c6   :  { %15072 = vst [vmem:[#allocation29_spill] sm:$0xff] %v14321_v13  ;;  %15074 = vst [vmem:[#allocation33_spill] sm:$0xff] %v14324_v44  ;;  %v14342_v13 = vmul.f32 %v7201_v9, %v15083_v25  ;;  %v14345_v44 = vmul.f32 %v7205_v55, %v15084_v61  ;;  %v15087_v54 = vld [vmem:[#allocation31_spill] sm:$0xff]  ;;  %v15089_v15 = vld [vmem:[#allocation45_spill] sm:$0xff]  ;;  %v7465_v9 = vadd.f32 %v14193_v17, %v7255_v12 }
 0x4c7   :  { %15076 = vst [vmem:[#allocation38_spill] sm:$0xff] %v14327_v5  ;;  %15078 = vst [vmem:[#allocation78_spill] sm:$0xff] %v14330_v24  ;;  %v14348_v5 = vmul.f32 %v7209_v47, %v15085_v7  ;;  %v14351_v24 = vmul.f32 %v7213_v42, %v15086_v63  ;;  %v15088_v57 = vld [vmem:[#allocation35_spill] sm:$0xff]  ;;  %v14360_v36 = vmul.f32 %v7225_v18, %v15089_v15 }
 0x4c8   :  { %15079 = vst [vmem:[#allocation79_spill] sm:$0xff] %v14333_v39  ;;  %15081 = vst [vmem:[#allocation77_spill] sm:$0xff] %v14336_v41  ;;  %v14354_v39 = vmul.f32 %v7217_v8, %v15087_v54  ;;  %v14357_v41 = vmul.f32 %v7221_v22, %v15088_v57  ;;  %v7466_v55 = vadd.f32 %v14196_v51, %v7256_v29 }
 0x4c9   :  { %v7467_v25 = vadd.f32 %v14199_v28, %v7257_v11  ;;  %v7468_v47 = vadd.f32 %v14202_v53, %v7258_v6  ;;  %v7469_v42 = vadd.f32 %v14205_v20, %v7259_v45  ;;  %v7470_v61 = vadd.f32 %v14208_v56, %v7260_v34  ;;  %7584 = vst [vmem:[%s14678_s7 + $0x40] sm:$0xff] %v7465_v9 }
 0x4ca   :  { %v7471_v8 = vadd.f32 %v14211_v40, %v7261_v16  ;;  %v7472_v22 = vadd.f32 %v14214_v58, %v7262_v2  ;;  %v7482_v7 = vadd.f32 %v14193_v17, %v7272_v62  ;;  %v7483_v18 = vadd.f32 %v14196_v51, %v7273_v49  ;;  %7585 = vst [vmem:[%s14678_s7 + $0x48] sm:$0xff] %v7466_v55 }
 0x4cb   :  { %v7484_v12 = vadd.f32 %v14199_v28, %v7274_v37  ;;  %v7485_v29 = vadd.f32 %v14202_v53, %v7275_v27  ;;  %7586 = vst [vmem:[%s14678_s7 + $0x50] sm:$0xff] %v7467_v25  ;;  %7587 = vst [vmem:[%s14678_s7 + $0x58] sm:$0xff] %v7468_v47  ;;  %v7486_v11 = vadd.f32 %v14205_v20, %v7276_v4  ;;  %v15095_v63 = vld [vmem:[#allocation2_spill] sm:$0xff] }
 0x4cc   :  { %v7487_v6 = vadd.f32 %v14208_v56, %v7277_v19  ;;  %v7488_v45 = vadd.f32 %v14211_v40, %v7278_v21  ;;  %v7489_v34 = vadd.f32 %v14214_v58, %v7279_v46  ;;  %7588 = vst [vmem:[%s14678_s7 + $0x60] sm:$0xff] %v7469_v42  ;;  %7589 = vst [vmem:[%s14678_s7 + $0x68] sm:$0xff] %v7470_v61  ;;  %v15096_v15 = vld [vmem:[#allocation6_spill] sm:$0xff] }
 0x4cd   :  { %7590 = vst [vmem:[%s14678_s7 + $0x70] sm:$0xff] %v7471_v8  ;;  %7591 = vst [vmem:[%s14678_s7 + $0x78] sm:$0xff] %v7472_v22  ;;  %v7499_v16 = vadd.f32 %v14193_v17, %v14243_v33  ;;  %v7500_v2 = vadd.f32 %v14196_v51, %v14246_v0  ;;  %v7501_v62 = vadd.f32 %v14199_v28, %v14249_v26  ;;  %v15098_v25 = vld [vmem:[#allocation29_spill] sm:$0xff] }
 0x4ce   :  { %v7502_v49 = vadd.f32 %v14202_v53, %v14252_v50  ;;  %7601 = vst [vmem:[%s14678_s7 + $0xc8] sm:$0xff] %v7482_v7  ;;  %7602 = vst [vmem:[%s14678_s7 + $0xd0] sm:$0xff] %v7483_v18  ;;  %v7503_v0 = vadd.f32 %v14205_v20, %v14255_v35  ;;  %v7504_v37 = vadd.f32 %v14208_v56, %v14258_v48  ;;  %v15099_v42 = vld [vmem:[#allocation33_spill] sm:$0xff]  ;;  %v15100_v8 = vld [vmem:[#allocation38_spill] sm:$0xff] }
 0x4cf   :  { %7603 = vst [vmem:[%s14678_s7 + $0xd8] sm:$0xff] %v7484_v12  ;;  %7604 = vst [vmem:[%s14678_s7 + $0xe0] sm:$0xff] %v7485_v29  ;;  %v7505_v27 = vadd.f32 %v14211_v40, %v14261_v1  ;;  %v7506_v4 = vadd.f32 %v14214_v58, %v14264_v3  ;;  %v7516_v19 = vadd.f32 %v14193_v17, %v14267_v38  ;;  %v15090_v1 = vld [vmem:[#allocation4_spill] sm:$0xff]  ;;  %v15101_v7 = vld [vmem:[#allocation78_spill] sm:$0xff] }
 0x4d0   :  { %7605 = vst [vmem:[%s14678_s7 + $0xe8] sm:$0xff] %v7486_v11  ;;  %7606 = vst [vmem:[%s14678_s7 + $0xf0] sm:$0xff] %v7487_v6  ;;  %v7517_v21 = vadd.f32 %v14196_v51, %v14270_v31  ;;  %v7518_v46 = vadd.f32 %v14199_v28, %v14273_v10  ;;  %v7519_v33 = vadd.f32 %v14202_v53, %v14276_v52  ;;  %v15091_v38 = vld [vmem:[#allocation8_spill] sm:$0xff]  ;;  %v15102_v12 = vld [vmem:[#allocation79_spill] sm:$0xff] }
 0x4d1   :  { %7607 = vst [vmem:[%s14678_s7 + $0xf8] sm:$0xff] %v7488_v45  ;;  %7608 = vst [vmem:[%s14678_s7 + $0x100] sm:$0xff] %v7489_v34  ;;  %v7520_v26 = vadd.f32 %v14205_v20, %v14279_v23  ;;  %v7521_v50 = vadd.f32 %v14208_v56, %v14282_v60  ;;  %v7522_v35 = vadd.f32 %v14211_v40, %v14285_v43  ;;  %v15092_v10 = vld [vmem:[#allocation24_spill] sm:$0xff]  ;;  %v15094_v43 = vld [vmem:[#allocation42_spill] sm:$0xff] }
 0x4d2   :  { %7618 = vst [vmem:[%s14678_s7 + $0x150] sm:$0xff] %v7499_v16  ;;  %7619 = vst [vmem:[%s14678_s7 + $0x158] sm:$0xff] %v7500_v2  ;;  %v7523_v48 = vadd.f32 %v14214_v58, %v14288_v14  ;;  %v7533_v60 = vadd.f32 %v14193_v17, %v14291_v59  ;;  %v7534_v3 = vadd.f32 %v14196_v51, %v15090_v1  ;;  %v15093_v59 = vld [vmem:[#allocation37_spill] sm:$0xff] }
 0x4d3   :  { %7620 = vst [vmem:[%s14678_s7 + $0x160] sm:$0xff] %v7501_v62  ;;  %7621 = vst [vmem:[%s14678_s7 + $0x168] sm:$0xff] %v7502_v49  ;;  %v7535_v31 = vadd.f32 %v14199_v28, %v15091_v38  ;;  %v7536_v52 = vadd.f32 %v14202_v53, %v15092_v10  ;;  %v7537_v23 = vadd.f32 %v14205_v20, %v15093_v59  ;;  %v15103_v11 = vld [vmem:[#allocation77_spill] sm:$0xff]  ;;  %v15108_v62 = vld [vmem:[#allocation14_spill] sm:$0xff] }
 0x4d4   :  { %7622 = vst [vmem:[%s14678_s7 + $0x170] sm:$0xff] %v7503_v0  ;;  %7623 = vst [vmem:[%s14678_s7 + $0x178] sm:$0xff] %v7504_v37  ;;  %v7538_v14 = vadd.f32 %v14208_v56, %v15094_v43  ;;  %v7539_v54 = vadd.f32 %v14211_v40, %v15095_v63  ;;  %v7540_v57 = vadd.f32 %v14214_v58, %v14312_v30  ;;  %v15097_v30 = vld [vmem:[#allocation25_spill] sm:$0xff]  ;;  %v15109_v0 = vld [vmem:[#allocation22_spill] sm:$0xff] }
 0x4d5   :  { %7624 = vst [vmem:[%s14678_s7 + $0x180] sm:$0xff] %v7505_v27  ;;  %7625 = vst [vmem:[%s14678_s7 + $0x188] sm:$0xff] %v7506_v4  ;;  %v7550_v9 = vadd.f32 %v14193_v17, %v15096_v15  ;;  %v7551_v55 = vadd.f32 %v14196_v51, %v15097_v30  ;;  %v7552_v47 = vadd.f32 %v14199_v28, %v15098_v25  ;;  %v15110_v27 = vld [vmem:[#allocation28_spill] sm:$0xff] }
 0x4d6   :  { %7635 = vst [vmem:[%s14678_s7 + $0x1d8] sm:$0xff] %v7516_v19  ;;  %7636 = vst [vmem:[%s14678_s7 + $0x1e0] sm:$0xff] %v7517_v21  ;;  %v7553_v61 = vadd.f32 %v14202_v53, %v15099_v42  ;;  %v7554_v22 = vadd.f32 %v14205_v20, %v15100_v8  ;;  %v7555_v18 = vadd.f32 %v14208_v56, %v15101_v7  ;;  %v15111_v19 = vld [vmem:[#allocation32_spill] sm:$0xff] }
 0x4d7   :  { %7637 = vst [vmem:[%s14678_s7 + $0x1e8] sm:$0xff] %v7518_v46  ;;  %7638 = vst [vmem:[%s14678_s7 + $0x1f0] sm:$0xff] %v7519_v33  ;;  %v7556_v29 = vadd.f32 %v14211_v40, %v15102_v12  ;;  %v7557_v6 = vadd.f32 %v14214_v58, %v15103_v11  ;;  %v7567_v45 = vadd.f32 %v14193_v17, %v14339_v32  ;;  %v15112_v46 = vld [vmem:[#allocation36_spill] sm:$0xff] }
 0x4d8   :  { %7639 = vst [vmem:[%s14678_s7 + $0x1f8] sm:$0xff] %v7520_v26  ;;  %7640 = vst [vmem:[%s14678_s7 + $0x200] sm:$0xff] %v7521_v50  ;;  %v7568_v34 = vadd.f32 %v14196_v51, %v14342_v13  ;;  %v7569_v16 = vadd.f32 %v14199_v28, %v14345_v44  ;;  %v7570_v2 = vadd.f32 %v14202_v53, %v14348_v5  ;;  %v15105_v28 = vld [vmem:[#allocation15_spill] sm:$0xff]  ;;  %v15113_v26 = vld [vmem:[#allocation41_spill] sm:$0xff] }
 0x4d9   :  { %7641 = vst [vmem:[%s14678_s7 + $0x208] sm:$0xff] %v7522_v35  ;;  %7642 = vst [vmem:[%s14678_s7 + $0x210] sm:$0xff] %v7523_v48  ;;  %v7571_v44 = vadd.f32 %v14205_v20, %v14351_v24  ;;  %v7572_v32 = vadd.f32 %v14208_v56, %v14354_v39  ;;  %v7573_v13 = vadd.f32 %v14211_v40, %v14357_v41  ;;  %v15104_v41 = vld [vmem:[#allocation46_spill] sm:$0xff]  ;;  %v6989_v20 = vld [vmem:[%s14677_s5 + $0x10] sm:$0x1] }
 0x4da   :  { %7652 = vst [vmem:[%s14678_s7 + $0x260] sm:$0xff] %v7533_v60  ;;  %7653 = vst [vmem:[%s14678_s7 + $0x268] sm:$0xff] %v7534_v3  ;;  %v7574_v17 = vadd.f32 %v14214_v58, %v14360_v36  ;;  %9559 = vrsqrt.f32 %v15104_v41  ;;  %v15106_v58 = vld [vmem:[#allocation16_spill] sm:$0xff]  ;;  %v15107_v39 = vld [vmem:[#allocation13_spill] sm:$0xff] }
 0x4db   :  { %7654 = vst [vmem:[%s14678_s7 + $0x270] sm:$0xff] %v7535_v31  ;;  %7655 = vst [vmem:[%s14678_s7 + $0x278] sm:$0xff] %v7536_v52  ;;  %v8390_v24 = vld [vmem:[%s14676_s6 + $0x10] ss:$0 sm:$0xff] }
 0x4dc   :  { %7656 = vst [vmem:[%s14678_s7 + $0x280] sm:$0xff] %v7537_v23  ;;  %7657 = vst [vmem:[%s14678_s7 + $0x288] sm:$0xff] %v7538_v14 }
 0x4dd   :  { %7658 = vst [vmem:[%s14678_s7 + $0x290] sm:$0xff] %v7539_v54  ;;  %7659 = vst [vmem:[%s14678_s7 + $0x298] sm:$0xff] %v7540_v57 }
 0x4de   :  { %7669 = vst [vmem:[%s14678_s7 + $0x2e8] sm:$0xff] %v7550_v9  ;;  %7670 = vst [vmem:[%s14678_s7 + $0x2f0] sm:$0xff] %v7551_v55 }
 0x4df   :  { %7671 = vst [vmem:[%s14678_s7 + $0x2f8] sm:$0xff] %v7552_v47  ;;  %7672 = vst [vmem:[%s14678_s7 + $0x300] sm:$0xff] %v7553_v61 }
 0x4e0   :  { %7673 = vst [vmem:[%s14678_s7 + $0x308] sm:$0xff] %v7554_v22  ;;  %7674 = vst [vmem:[%s14678_s7 + $0x310] sm:$0xff] %v7555_v18 }
 0x4e1   :  { %7675 = vst [vmem:[%s14678_s7 + $0x318] sm:$0xff] %v7556_v29  ;;  %7676 = vst [vmem:[%s14678_s7 + $0x320] sm:$0xff] %v7557_v6 }
 0x4e2   :  { %7686 = vst [vmem:[%s14678_s7 + $0x370] sm:$0x1] %v7567_v45  ;;  %7687 = vst [vmem:[%s14678_s7 + $0x378] sm:$0x1] %v7568_v34 }
 0x4e3   :  { %7688 = vst [vmem:[%s14678_s7 + $0x380] sm:$0x1] %v7569_v16  ;;  %7689 = vst [vmem:[%s14678_s7 + $0x388] sm:$0x1] %v7570_v2 }
 0x4e4   :  { %7690 = vst [vmem:[%s14678_s7 + $0x390] sm:$0x1] %v7571_v44  ;;  %7691 = vst [vmem:[%s14678_s7 + $0x398] sm:$0x1] %v7572_v32 }
 0x4e5   :  { %7692 = vst [vmem:[%s14678_s7 + $0x3a0] sm:$0x1] %v7573_v13  ;;  %7693 = vst [vmem:[%s14678_s7 + $0x3a8] sm:$0x1] %v7574_v17 }
 0x4e7   :  { %v9560_v51 = vpop.eup %9559 }
 0x4e8   :  { %v7145_v53 = vrot.slane %v9560_v51, %v15105_v28 }
 0x4ea   :  { %v7152_v56 = vrot.slane %v7145_v53, %v15105_v28 }
 0x4ec   :  { %v7158_v40 = vmul.f32 %v7152_v56, %v6989_v20 }
 0x4ee   :  { %v7229_v5 = vrot.slane %v7158_v40, %v15106_v58 }
 0x4f0   :  { %v7263_v36 = vmul.f32 %v7229_v5, %v15107_v39  ;;  %v7280_v49 = vmul.f32 %v7229_v5, %v15108_v62  ;;  %v7297_v37 = vmul.f32 %v7229_v5, %v15109_v0  ;;  %v7314_v4 = vmul.f32 %v7229_v5, %v15110_v27 }
 0x4f1   :  { %v7331_v21 = vmul.f32 %v7229_v5, %v15111_v19  ;;  %v7348_v33 = vmul.f32 %v7229_v5, %v15112_v46  ;;  %v7365_v50 = vmul.f32 %v7229_v5, %v15113_v26 }
 0x4f2   :  { %v7473_v35 = vadd.f32 %v8390_v24, %v7263_v36  ;;  %v7490_v48 = vadd.f32 %v8390_v24, %v7280_v49  ;;  %v7507_v60 = vadd.f32 %v8390_v24, %v7297_v37  ;;  %v7524_v1 = vadd.f32 %v8390_v24, %v7314_v4 }
 0x4f3   :  { %v7541_v3 = vadd.f32 %v8390_v24, %v7331_v21  ;;  %v7558_v38 = vadd.f32 %v8390_v24, %v7348_v33  ;;  %v7575_v31 = vadd.f32 %v8390_v24, %v7365_v50 }
 0x4f4   :  { %7592 = vst.msk [vmem:[%s14678_s7 + $0x80] sm:$0xff] %vm6467_vm5, %v7473_v35  ;;  %7609 = vst.msk [vmem:[%s14678_s7 + $0x108] sm:$0xff] %vm6467_vm5, %v7490_v48 }
 0x4f5   :  { %7626 = vst.msk [vmem:[%s14678_s7 + $0x190] sm:$0xff] %vm6467_vm5, %v7507_v60  ;;  %7643 = vst.msk [vmem:[%s14678_s7 + $0x218] sm:$0xff] %vm6467_vm5, %v7524_v1 }
 0x4f6   :  { %7660 = vst.msk [vmem:[%s14678_s7 + $0x2a0] sm:$0xff] %vm6467_vm5, %v7541_v3  ;;  %7677 = vst.msk [vmem:[%s14678_s7 + $0x328] sm:$0xff] %vm6467_vm5, %v7558_v38 }
 0x4f7   :  { %7694 = vst.msk [vmem:[%s14678_s7 + $0x3b0] sm:$0x1] %vm6479_vm6, %v7575_v31 }

</bundles_post_ra>
